<compile_context>
chip_gen: v5e
topology: v5e:2x2
jax: 0.10.0
libtpu: 0.0.40
codegen_flags: <defaults>
</compile_context>

<pallas_src>
import functools

import jax
import jax.numpy as jnp
from jax.experimental import pallas as pl
from jax.experimental.pallas import tpu as pltpu


def _round_up(x, m):
    return (x + m - 1) // m * m


def _pick_tile(n, cap=256, mult=16):
    """Largest multiple-of-`mult` divisor of n that is <= cap (fallback: n)."""
    best = None
    d = mult
    lim = min(cap, n)
    while d <= lim:
        if n % d == 0:
            best = d
        d += mult
    return best if best is not None else n


# --------------------------------------------------------------------------
# Pallas kernel 1: tiled matmul with fused bias + activation (bf16 -> f32 acc)
# --------------------------------------------------------------------------
def _mm_kernel(a_ref, b_ref, bias_ref, o_ref, acc_ref, *, act):
    @pl.when(pl.program_id(2) == 0)
    def _():
        acc_ref[...] = jnp.zeros_like(acc_ref)

    acc_ref[...] += jnp.dot(a_ref[...], b_ref[...],
                            preferred_element_type=jnp.float32)

    @pl.when(pl.program_id(2) == pl.num_programs(2) - 1)
    def _():
        r = acc_ref[...] + bias_ref[...]
        if act == "relu":
            r = jnp.maximum(r, 0.0)
        elif act == "tanh":
            r = jnp.tanh(r)
        o_ref[...] = r.astype(o_ref.dtype)


def matmul_bias_act(a, b, bias=None, act="none", out_dtype=jnp.float32):
    """(M,K)@(K,N)+bias with fused relu/tanh. bf16 MXU operands, f32 accumulate."""
    M, K = a.shape
    K2, N = b.shape
    assert K == K2
    tm = _pick_tile(_round_up(M, 16), cap=256)
    Mp = _round_up(M, tm)
    if K < 128:
        Kp, tk = K, K
    else:
        Kp = _round_up(K, 128)
        tk = 256 if Kp % 256 == 0 else 128
    if N < 128:
        Np, tn = N, N
    else:
        Np = _round_up(N, 128)
        tn = 256 if Np % 256 == 0 else 128

    a_p = a.astype(jnp.bfloat16)
    if (Mp, Kp) != (M, K):
        a_p = jnp.pad(a_p, ((0, Mp - M), (0, Kp - K)))
    b_p = b.astype(jnp.bfloat16)
    if (Kp, Np) != (K, N):
        b_p = jnp.pad(b_p, ((0, Kp - K), (0, Np - N)))
    bias_p = jnp.zeros((1, Np), jnp.float32)
    if bias is not None:
        bias_p = bias_p.at[0, :N].set(bias.astype(jnp.float32))

    grid = (Mp // tm, Np // tn, Kp // tk)
    out = pl.pallas_call(
        functools.partial(_mm_kernel, act=act),
        out_shape=jax.ShapeDtypeStruct((Mp, Np), out_dtype),
        grid_spec=pltpu.PrefetchScalarGridSpec(
            num_scalar_prefetch=0,
            grid=grid,
            in_specs=[
                pl.BlockSpec((tm, tk), lambda i, j, k: (i, k)),
                pl.BlockSpec((tk, tn), lambda i, j, k: (k, j)),
                pl.BlockSpec((1, tn), lambda i, j, k: (0, j)),
            ],
            out_specs=pl.BlockSpec((tm, tn), lambda i, j, k: (i, j)),
            scratch_shapes=[pltpu.VMEM((tm, tn), jnp.float32)],
        ),
        compiler_params=pltpu.CompilerParams(
            dimension_semantics=("parallel", "parallel", "arbitrary")),
    )(a_p, b_p, bias_p)
    if (Mp, Np) != (M, N):
        out = out[:M, :N]
    return out


# --------------------------------------------------------------------------
# Pallas kernel 2: batch-norm statistics (tiled sum / sum-of-squares, f32)
# --------------------------------------------------------------------------
def _bn_stats_kernel(x_ref, mean_ref, var_ref, *, inv_n):
    @pl.when(pl.program_id(0) == 0)
    def _():
        mean_ref[...] = jnp.zeros_like(mean_ref)
        var_ref[...] = jnp.zeros_like(var_ref)

    x = x_ref[...].astype(jnp.float32)
    mean_ref[...] += jnp.sum(x, axis=0, keepdims=True)
    var_ref[...] += jnp.sum(x * x, axis=0, keepdims=True)

    @pl.when(pl.program_id(0) == pl.num_programs(0) - 1)
    def _():
        m = mean_ref[...] * inv_n
        v = var_ref[...] * inv_n - m * m
        mean_ref[...] = m
        var_ref[...] = jnp.maximum(v, 0.0)   # guard E[x^2]-E[x]^2 cancellation


def bn_stats(x2d):
    M, C = x2d.shape
    tm = _pick_tile(M, cap=1024)
    mean, var = pl.pallas_call(
        functools.partial(_bn_stats_kernel, inv_n=1.0 / M),
        out_shape=(jax.ShapeDtypeStruct((1, C), jnp.float32),
                   jax.ShapeDtypeStruct((1, C), jnp.float32)),
        grid=(M // tm,),
        in_specs=[pl.BlockSpec((tm, C), lambda m: (m, 0))],
        out_specs=(pl.BlockSpec((1, C), lambda m: (0, 0)),
                   pl.BlockSpec((1, C), lambda m: (0, 0))),
        compiler_params=pltpu.CompilerParams(
            dimension_semantics=("arbitrary",)),
    )(x2d)
    return mean, var


# --------------------------------------------------------------------------
# Pallas kernel 3: conditional BN apply (precomputed scale/shift) + fused ReLU
# --------------------------------------------------------------------------
def _ccbn_apply_kernel(x_ref, scale_ref, shift_ref, o_ref):
    x = x_ref[...].astype(jnp.float32)              # compute in f32, store bf16
    o = x * scale_ref[...] + shift_ref[...]
    o_ref[...] = jnp.maximum(o, 0.0).astype(o_ref.dtype)


def ccbn_relu(x_bhwc, gain_bc, bias_bc, eps=1e-5):
    """ccbn with training-mode batch stats + per-sample affine + fused ReLU."""
    B, H, W, C = x_bhwc.shape
    HW = H * W
    x3 = x_bhwc.reshape(B, HW, C)
    mean, var = bn_stats(x3.reshape(B * HW, C))
    inv = jax.lax.rsqrt(var + eps)                              # (1, C)
    scale = gain_bc.astype(jnp.float32) * inv                   # (B, C)
    shift = bias_bc.astype(jnp.float32) - mean * scale          # (B, C)
    thw = _pick_tile(HW, cap=512)
    out = pl.pallas_call(
        _ccbn_apply_kernel,
        out_shape=jax.ShapeDtypeStruct((B, HW, C), jnp.bfloat16),
        grid=(B, HW // thw),
        in_specs=[
            pl.BlockSpec((None, thw, C), lambda b, m: (b, m, 0)),
            pl.BlockSpec((None, 1, C), lambda b, m: (b, 0, 0)),
            pl.BlockSpec((None, 1, C), lambda b, m: (b, 0, 0)),
        ],
        out_specs=pl.BlockSpec((None, thw, C), lambda b, m: (b, m, 0)),
        compiler_params=pltpu.CompilerParams(
            dimension_semantics=("parallel", "parallel")),
    )(x3, scale.reshape(B, 1, C), shift.reshape(B, 1, C))
    return out.reshape(B, H, W, C)


# --------------------------------------------------------------------------
# Pallas kernel 4: direct 3x3 "same" conv (no HBM im2col) with fused bias+act
# --------------------------------------------------------------------------
def _conv3x3_kernel(x_ref, w_ref, b_ref, o_ref, *, tm, span, offs, act):
    # x_ref: (msrc, Cin) bf16 flattened zero-padded source of the current batch
    # w_ref: (9, Cin, tn) bf16 tap weights; o_ref: (tm, tn)
    base = pl.multiple_of(pl.program_id(1) * tm, tm)
    xw = x_ref[pl.ds(base, tm + span), :].astype(jnp.float32)
    acc = jnp.zeros((tm, o_ref.shape[-1]), jnp.float32)
    for t in range(9):
        xs = xw[offs[t]:offs[t] + tm, :].astype(jnp.bfloat16)
        acc = acc + jnp.dot(xs, w_ref[t], preferred_element_type=jnp.float32)
    r = acc + b_ref[...]
    if act == "relu":
        r = jnp.maximum(r, 0.0)
    o_ref[...] = r.astype(o_ref.dtype)


def conv3x3_act(x_bhwc, w_taps, bias=None, act="none", out_dtype=jnp.bfloat16):
    """3x3 conv, padding=1.  w_taps: (9, Cin, Cout) with tap index t = kh*3+kw.
    The input is width-padded and row-flattened once (cheap), and each of the 9
    taps is a shifted (rows, Cin)@(Cin, Cout) MXU matmul accumulated in-kernel."""
    B, H, W, Cin = x_bhwc.shape
    Cout = w_taps.shape[2]
    Wp = W + 2
    nq = H * Wp                     # padded-width output rows; cols 1..W are valid
    tm = _pick_tile(_round_up(nq, 16), cap=256)
    nq_pad = _round_up(nq, tm)
    span = _round_up(2 * Wp + 2, 8)
    msrc = nq_pad + span

    xp = jnp.pad(x_bhwc.astype(jnp.bfloat16), ((0, 0), (1, 1), (1, 1), (0, 0)))
    xf = xp.reshape(B, (H + 2) * Wp, Cin)
    x_src = jnp.pad(xf, ((0, 0), (1, msrc - 1 - (H + 2) * Wp), (0, 0)))

    if Cout < 128:
        Np, tn = Cout, Cout
    else:
        Np = _round_up(Cout, 128)
        tn = 256 if Np % 256 == 0 else 128
    w_p = w_taps.astype(jnp.bfloat16)
    if Np != Cout:
        w_p = jnp.pad(w_p, ((0, 0), (0, 0), (0, Np - Cout)))
    bias_p = jnp.zeros((1, Np), jnp.float32)
    if bias is not None:
        bias_p = bias_p.at[0, :Cout].set(bias.astype(jnp.float32))

    offs = tuple(kh * Wp + kw for kh in range(3) for kw in range(3))
    grid = (B, nq_pad // tm, Np // tn)
    out = pl.pallas_call(
        functools.partial(_conv3x3_kernel, tm=tm, span=span, offs=offs, act=act),
        out_shape=jax.ShapeDtypeStruct((B, nq_pad, Np), out_dtype),
        grid=grid,
        in_specs=[
            pl.BlockSpec((None, msrc, Cin), lambda b, m, n: (b, 0, 0)),
            pl.BlockSpec((9, Cin, tn), lambda b, m, n: (0, 0, n)),
            pl.BlockSpec((1, tn), lambda b, m, n: (0, n)),
        ],
        out_specs=pl.BlockSpec((None, tm, tn), lambda b, m, n: (b, m, n)),
        compiler_params=pltpu.CompilerParams(
            dimension_semantics=("parallel", "parallel", "parallel")),
    )(x_src, w_p, bias_p)
    out = out[:, :nq, :Cout].reshape(B, H, Wp, Cout)[:, :, 1:W + 1, :]
    return out


# --------------------------------------------------------------------------
# Pallas kernel 5: INR MLP tail -- fc1(+ReLU) and fc2(+tanh, N=3) fused
# --------------------------------------------------------------------------
def _inr_mlp_tail_kernel(x_ref, w1_ref, b1_ref, w2_ref, b2_ref, o_ref):
    h = jnp.dot(x_ref[...], w1_ref[...], preferred_element_type=jnp.float32)
    h = jnp.maximum(h + b1_ref[...], 0.0)
    y = jnp.dot(h.astype(jnp.bfloat16), w2_ref[...],
                preferred_element_type=jnp.float32)
    o_ref[...] = jnp.tanh(y + b2_ref[...]).astype(o_ref.dtype)


def inr_mlp_tail(x, w1, b1, w2, b2):
    M, Hd = x.shape
    N = w2.shape[1]
    tm = _pick_tile(_round_up(M, 16), cap=512)
    Mp = _round_up(M, tm)
    xp = x.astype(jnp.bfloat16)
    if Mp != M:
        xp = jnp.pad(xp, ((0, Mp - M), (0, 0)))
    out = pl.pallas_call(
        _inr_mlp_tail_kernel,
        out_shape=jax.ShapeDtypeStruct((Mp, N), jnp.float32),
        grid=(Mp // tm,),
        in_specs=[
            pl.BlockSpec((tm, Hd), lambda m: (m, 0)),
            pl.BlockSpec((Hd, Hd), lambda m: (0, 0)),
            pl.BlockSpec((1, Hd), lambda m: (0, 0)),
            pl.BlockSpec((Hd, N), lambda m: (0, 0)),
            pl.BlockSpec((1, N), lambda m: (0, 0)),
        ],
        out_specs=pl.BlockSpec((tm, N), lambda m: (m, 0)),
        compiler_params=pltpu.CompilerParams(
            dimension_semantics=("parallel",)),
    )(xp, w1.astype(jnp.bfloat16), b1.astype(jnp.float32).reshape(1, Hd),
      w2.astype(jnp.bfloat16), b2.astype(jnp.float32).reshape(1, N))
    return out[:M] if Mp != M else out


# --------------------------------------------------------------------------
# Glue: spectral norm (one power iteration, matches BigGAN SNConv2d/SNLinear)
# --------------------------------------------------------------------------
def _l2norm(x, eps):
    return x / jnp.maximum(jnp.linalg.norm(x), eps)


def spectral_norm(w, u, eps=1e-12):
    # TODO(synk): the PyTorch module updates u in-place; u is kept frozen here.
    wm = w.reshape(w.shape[0], -1)
    v = _l2norm(u @ wm, eps)
    u2 = _l2norm(v @ wm.T, eps)
    sigma = jnp.squeeze(v @ wm.T @ u2.T)
    return w / sigma


def conv_w_to_taps(w_oihw):
    """(Cout, Cin, 3, 3) torch conv weight -> (9, Cin, Cout), tap t = kh*3+kw."""
    cout, cin = w_oihw.shape[0], w_oihw.shape[1]
    return jnp.transpose(w_oihw, (2, 3, 1, 0)).reshape(9, cin, cout)


def conv1x1(x_bhwc, w_oikk, bias, out_dtype=jnp.bfloat16):
    B, H, W, C = x_bhwc.shape
    Cout = w_oikk.shape[0]
    w2 = w_oikk.reshape(Cout, C).T
    out = matmul_bias_act(x_bhwc.reshape(B * H * W, C), w2, bias,
                          out_dtype=out_dtype)
    return out.reshape(B, H, W, Cout)


def upsample2x(x_bhwc):   # F.interpolate(scale_factor=2), mode='nearest'
    # TODO(synk): fuse the nearest upsample into the conv kernel's source
    # indexing instead of materializing the 2x tensor in HBM.
    return jnp.repeat(jnp.repeat(x_bhwc, 2, axis=1), 2, axis=2)


# --------------------------------------------------------------------------
# GBlock / ccbn conditioning
# --------------------------------------------------------------------------
def cond_affine(p, y):
    wg = spectral_norm(p["gain"]["w"], p["gain"]["u"])
    wb = spectral_norm(p["bias"]["w"], p["bias"]["u"])
    gain = 1.0 + matmul_bias_act(y, wg.T)     # ccbn: gain = 1 + linear(y)
    bias = matmul_bias_act(y, wb.T)           # ccbn: bias = linear(y)
    return gain, bias


def gblock_forward(p, x, y):
    g1, b1 = cond_affine(p["bn1"], y)
    h = ccbn_relu(x, g1, b1)                                       # bn1 + ReLU
    h = upsample2x(h)
    h = conv3x3_act(h, conv_w_to_taps(
        spectral_norm(p["conv1"]["w"], p["conv1"]["u"])), p["conv1"]["b"])
    g2, b2 = cond_affine(p["bn2"], y)
    h = ccbn_relu(h, g2, b2)                                       # bn2 + ReLU
    h = conv3x3_act(h, conv_w_to_taps(
        spectral_norm(p["conv2"]["w"], p["conv2"]["u"])), p["conv2"]["b"])
    # 1x1 conv commutes with nearest upsample: conv the small tensor, then up.
    xs = conv1x1(x, spectral_norm(p["conv_sc"]["w"], p["conv_sc"]["u"]),
                 p["conv_sc"]["b"])
    xs = upsample2x(xs)
    return h + xs


# --------------------------------------------------------------------------
# INR head (make_coord / make_cell / unfold / grid_sample / MLP)
# --------------------------------------------------------------------------
def make_coord(shape):
    seqs = []
    for n in shape:
        r = 1.0 / n
        seqs.append(-1.0 + r + 2.0 * r * jnp.arange(n, dtype=jnp.float32))
    yy, xx = jnp.meshgrid(seqs[0], seqs[1], indexing="ij")
    return jnp.stack([yy, xx], axis=-1).reshape(-1, 2)      # (Q, 2): (H, W) coords


def make_cell(shape):
    cell = jnp.ones((shape[0] * shape[1], 2), jnp.float32)
    cell = cell.at[:, 0].multiply(2.0 / shape[0])
    cell = cell.at[:, 1].multiply(2.0 / shape[1])
    return cell


def bilinear_matrix(n_out, n_in):
    """Separable interpolation matrix equivalent to F.grid_sample(bilinear,
    align_corners=False, padding_mode='zeros') on the regular make_coord grid."""
    i = jnp.arange(n_out, dtype=jnp.float32)
    src = (i + 0.5) * (n_in / n_out) - 0.5
    i0 = jnp.floor(src)
    w1 = src - i0
    w0 = 1.0 - w1
    i0i = i0.astype(jnp.int32)
    i1i = i0i + 1
    v0 = ((i0i >= 0) & (i0i < n_in)).astype(jnp.float32)
    v1 = ((i1i >= 0) & (i1i < n_in)).astype(jnp.float32)
    m0 = jax.nn.one_hot(jnp.clip(i0i, 0, n_in - 1), n_in) * (w0 * v0)[:, None]
    m1 = jax.nn.one_hot(jnp.clip(i1i, 0, n_in - 1), n_in) * (w1 * v1)[:, None]
    return m0 + m1


def inr_forward(p, h_bhwc, shape):
    B, Hf, Wf, C = h_bhwc.shape
    Hq, Wq = shape
    Q = Hq * Wq
    hid = p["fc1"]["w"].shape[0]

    # TODO(synk): the real inr_net architecture comes from `inr_net_cfg`; a 3-layer
    # SNLinear MLP with ReLU (in_dim = C*9+4 -> hidden -> hidden -> 3) stands in.
    # fc0 on the unfolded feature == 3x3 conv (F.unfold channel order c*9+kh*3+kw),
    # and both commute with the linear bilinear resample, so neither the 9*C
    # unfolded tensor nor the gathered sample is ever materialized in HBM.
    w0 = spectral_norm(p["fc0"]["w"], p["fc0"]["u"])       # (hid, 9C + 4)
    w0_feat = w0[:, :9 * C]
    w0_cc = w0[:, 9 * C:]                                  # coord(2) + cell(2)
    w0_taps = jnp.transpose(w0_feat.reshape(hid, C, 3, 3),
                            (2, 3, 1, 0)).reshape(9, C, hid)
    f0 = conv3x3_act(h_bhwc, w0_taps, bias=None, act="none",
                     out_dtype=jnp.bfloat16)               # (B, Hf, Wf, hid)

    wy = bilinear_matrix(Hq, Hf)
    wx = bilinear_matrix(Wq, Wf)
    s = jnp.einsum("qh,bhwc->bqwc", wy, f0.astype(jnp.float32))
    s = jnp.einsum("pw,bqwc->bqpc", wx, s).reshape(B, Q, hid)

    coord = make_coord(shape)                              # (Q, 2)
    cell = make_cell(shape) * jnp.array([Hf, Wf], jnp.float32)
    cc = jnp.concatenate([coord, cell], axis=-1) @ w0_cc.T + p["fc0"]["b"]
    x1 = jnp.maximum(s + cc[None], 0.0)                    # fc0 bias + ReLU

    w1 = spectral_norm(p["fc1"]["w"], p["fc1"]["u"])
    w2 = spectral_norm(p["fc2"]["w"], p["fc2"]["u"])
    out = inr_mlp_tail(x1.reshape(B * Q, hid), w1.T, p["fc1"]["b"],
                       w2.T, p["fc2"]["b"])                # (B*Q, 3), tanh fused
    pred = out.reshape(B, Q, 3)
    return jnp.transpose(pred, (0, 2, 1)).reshape(B, 3, Hq, Wq)   # NCHW out


# --------------------------------------------------------------------------
# Generator forward
# --------------------------------------------------------------------------
def generator_forward(params, z, y, cfg, shape=None):
    if shape is None:
        shape = (cfg["resolution"], cfg["resolution"])
    B = z.shape[0]
    bw = cfg["bottom_width"]
    C0 = cfg["in_channels"][0]
    w = spectral_norm(params["linear"]["w"], params["linear"]["u"])
    h = matmul_bias_act(z, w.T, params["linear"]["b"])          # (B, C0*bw*bw)
    h = h.reshape(B, C0, bw, bw).transpose(0, 2, 3, 1)          # NCHW -> NHWC
    h = h.astype(jnp.bfloat16)
    for blk in params["blocks"]:
        h = gblock_forward(blk, h, y)                           # ys[i] == y (hier=False)
    return inr_forward(params["inr"], h, shape)


# --------------------------------------------------------------------------
# Deterministic parameter construction (synthetic; no checkpoint load)
# --------------------------------------------------------------------------
def init_params(key, cfg):
    keys = iter(jax.random.split(key, 256))

    def nrm(shape, scale=0.05):
        return scale * jax.random.normal(next(keys), shape, jnp.float32)

    def linear_p(out_dim, in_dim, bias=True):
        p = {"w": nrm((out_dim, in_dim)), "u": nrm((1, out_dim), 1.0)}
        if bias:
            p["b"] = nrm((out_dim,), 0.01)
        return p

    def conv_p(cout, cin, k):
        return {"w": nrm((cout, cin, k, k)), "b": nrm((cout,), 0.01),
                "u": nrm((1, cout), 1.0)}

    shared_dim = cfg["shared_dim"]
    params = {
        "linear": linear_p(cfg["in_channels"][0] * cfg["bottom_width"] ** 2,
                           cfg["dim_z"]),
        "blocks": [],
    }
    for cin, cout in zip(cfg["in_channels"], cfg["out_channels"]):
        params["blocks"].append({
            "bn1": {"gain": linear_p(cin, shared_dim, bias=False),
                    "bias": linear_p(cin, shared_dim, bias=False)},
            "bn2": {"gain": linear_p(cout, shared_dim, bias=False),
                    "bias": linear_p(cout, shared_dim, bias=False)},
            "conv1": conv_p(cout, cin, 3),
            "conv2": conv_p(cout, cout, 3),
            "conv_sc": conv_p(cout, cin, 1),
        })
    in_dim = cfg["out_channels"][-1] * 9 + 2 + 2     # _get_inr_net_in_dim
    hid = cfg["hidden"]
    params["inr"] = {"fc0": linear_p(hid, in_dim),
                     "fc1": linear_p(hid, hid),
                     "fc2": linear_p(3, hid)}
    return params


if __name__ == "__main__":
    # Small, forward-consistent configuration: two up-sampling GBlocks 4->8->16.
    cfg = dict(
        dim_z=16, shared_dim=16, bottom_width=4, resolution=16,
        in_channels=[32, 16], out_channels=[16, 8], hidden=32,
    )
    key = jax.random.PRNGKey(0)
    kp, kz, ky = jax.random.split(key, 3)
    params = init_params(kp, cfg)
    z = jax.random.normal(kz, (2, cfg["dim_z"]), jnp.float32)
    # y is the shared class embedding the PyTorch forward receives (B, shared_dim)
    y = jax.random.normal(ky, (2, cfg["shared_dim"]), jnp.float32)

    fwd = jax.jit(functools.partial(generator_forward, cfg=cfg))
    out = fwd(params, z, y)
    out = jax.block_until_ready(out)
    assert out.shape == (2, 3, cfg["resolution"], cfg["resolution"])
    assert bool(jnp.all(jnp.isfinite(out)))
    assert bool(jnp.all(jnp.abs(out) <= 1.0))      # tanh output range
    print("KERNEL_OK")
</pallas_src>

<mosaic_0001>
module attributes {stable_mosaic.version = 11 : i64} {
  func.func @_ccbn_apply_kernel(%arg0: i32, %arg1: i32, %arg2: memref<1x16x32xbf16, #tpu.memory_space<vmem>>, %arg3: memref<1x1x32xf32, #tpu.memory_space<vmem>>, %arg4: memref<1x1x32xf32, #tpu.memory_space<vmem>>, %arg5: memref<1x16x32xbf16, #tpu.memory_space<vmem>>) attributes {dimension_semantics = [#tpu.dimension_semantics<parallel>, #tpu.dimension_semantics<parallel>], iteration_bounds = array<i64: 2, 1>, scalar_prefetch = 0 : i64, scratch_operands = 0 : i64, tpu.core_type = #tpu.core_type<tc>, window_params = [{transform_indices = @transform_0, window_bounds = array<i64: 1, 16, 32>}, {transform_indices = @transform_1, window_bounds = array<i64: 1, 1, 32>}, {transform_indices = @transform_2, window_bounds = array<i64: 1, 1, 32>}, {transform_indices = @transform_3, window_bounds = array<i64: 1, 16, 32>}]} {
    %c0 = arith.constant 0 : index
    %c0_0 = arith.constant 0 : index
    %c0_1 = arith.constant 0 : index
    %0 = vector.load %arg2[%c0, %c0_0, %c0_1] : memref<1x16x32xbf16, #tpu.memory_space<vmem>>, vector<1x16x32xbf16>
    %1 = vector.shape_cast %0 : vector<1x16x32xbf16> to vector<16x32xbf16>
    %2 = arith.extf %1 : vector<16x32xbf16> to vector<16x32xf32>
    %c0_2 = arith.constant 0 : index
    %c0_3 = arith.constant 0 : index
    %c0_4 = arith.constant 0 : index
    %3 = vector.load %arg3[%c0_2, %c0_3, %c0_4] : memref<1x1x32xf32, #tpu.memory_space<vmem>>, vector<1x1x32xf32>
    %4 = vector.shape_cast %3 : vector<1x1x32xf32> to vector<1x32xf32>
    %5 = vector.broadcast %4 : vector<1x32xf32> to vector<16x32xf32>
    %6 = arith.mulf %2, %5 : vector<16x32xf32>
    %c0_5 = arith.constant 0 : index
    %c0_6 = arith.constant 0 : index
    %c0_7 = arith.constant 0 : index
    %7 = vector.load %arg4[%c0_5, %c0_6, %c0_7] : memref<1x1x32xf32, #tpu.memory_space<vmem>>, vector<1x1x32xf32>
    %8 = vector.shape_cast %7 : vector<1x1x32xf32> to vector<1x32xf32>
    %9 = vector.broadcast %8 : vector<1x32xf32> to vector<16x32xf32>
    %10 = arith.addf %6, %9 : vector<16x32xf32>
    %cst = arith.constant 0.000000e+00 : f32
    %11 = vector.broadcast %cst : f32 to vector<16x32xf32>
    %12 = arith.maximumf %10, %11 : vector<16x32xf32>
    %13 = arith.truncf %12 : vector<16x32xf32> to vector<16x32xbf16>
    %c0_8 = arith.constant 0 : index
    %c0_9 = arith.constant 0 : index
    %c0_10 = arith.constant 0 : index
    %14 = vector.load %arg5[%c0_8, %c0_9, %c0_10] : memref<1x16x32xbf16, #tpu.memory_space<vmem>>, vector<1x16x32xbf16>
    %15 = vector.shape_cast %14 : vector<1x16x32xbf16> to vector<16x32xbf16>
    %16 = vector.shape_cast %13 : vector<16x32xbf16> to vector<1x16x32xbf16>
    tpu.vector_store %arg5[%c0_8, %c0_9, %c0_10], %16 {strides = array<i32>} : memref<1x16x32xbf16, #tpu.memory_space<vmem>>, vector<1x16x32xbf16>,
    return
  }
  func.func @transform_0(%arg0: i32, %arg1: i32) -> (i32, i32, i32) {
    %c0_i32 = arith.constant 0 : i32
    %c0_i32_0 = arith.constant 0 : i32
    return %arg0, %arg1, %c0_i32 : i32, i32, i32
  }
  func.func @transform_1(%arg0: i32, %arg1: i32) -> (i32, i32, i32) {
    %c0_i32 = arith.constant 0 : i32
    %c0_i32_0 = arith.constant 0 : i32
    %c0_i32_1 = arith.constant 0 : i32
    return %arg0, %c0_i32, %c0_i32_0 : i32, i32, i32
  }
  func.func @transform_2(%arg0: i32, %arg1: i32) -> (i32, i32, i32) {
    %c0_i32 = arith.constant 0 : i32
    %c0_i32_0 = arith.constant 0 : i32
    %c0_i32_1 = arith.constant 0 : i32
    return %arg0, %c0_i32, %c0_i32_0 : i32, i32, i32
  }
  func.func @transform_3(%arg0: i32, %arg1: i32) -> (i32, i32, i32) {
    %c0_i32 = arith.constant 0 : i32
    %c0_i32_0 = arith.constant 0 : i32
    return %arg0, %arg1, %c0_i32 : i32, i32, i32
  }
}

module attributes {stable_mosaic.version = 11 : i64} {
  func.func @_mm_kernel(%arg0: i32, %arg1: i32, %arg2: i32, %arg3: memref<16x16xbf16, #tpu.memory_space<vmem>>, %arg4: memref<16x32xbf16, #tpu.memory_space<vmem>>, %arg5: memref<1x32xf32, #tpu.memory_space<vmem>>, %arg6: memref<16x32xf32, #tpu.memory_space<vmem>>, %arg7: memref<16x32xf32, #tpu.memory_space<vmem>>) attributes {dimension_semantics = [#tpu.dimension_semantics<parallel>, #tpu.dimension_semantics<parallel>, #tpu.dimension_semantics<arbitrary>], iteration_bounds = array<i64: 1, 1, 1>, scalar_prefetch = 0 : i64, scratch_operands = 1 : i64, tpu.core_type = #tpu.core_type<tc>, window_params = [{transform_indices = @transform_0, window_bounds = array<i64: 16, 16>}, {transform_indices = @transform_1, window_bounds = array<i64: 16, 32>}, {transform_indices = @transform_2, window_bounds = array<i64: 1, 32>}, {transform_indices = @transform_3, window_bounds = array<i64: 16, 32>}]} {
    %c0_i32 = arith.constant 0 : i32
    %0 = arith.cmpi eq, %arg2, %c0_i32 : i32
    %1 = arith.extui %0 : i1 to i32
    %c0_i32_0 = arith.constant 0 : i32
    %2 = arith.cmpi ne, %1, %c0_i32_0 : i32
    scf.if %2 {
      %cst_10 = arith.constant 0.000000e+00 : f32
      %12 = vector.broadcast %cst_10 : f32 to vector<16x32xf32>
      %c0_11 = arith.constant 0 : index
      %c0_12 = arith.constant 0 : index
      %13 = vector.load %arg7[%c0_11, %c0_12] : memref<16x32xf32, #tpu.memory_space<vmem>>, vector<16x32xf32>
      tpu.vector_store %arg7[%c0_11, %c0_12], %12 {strides = array<i32>} : memref<16x32xf32, #tpu.memory_space<vmem>>, vector<16x32xf32>,
    } else {
    }
    %c0 = arith.constant 0 : index
    %c0_1 = arith.constant 0 : index
    %3 = vector.load %arg7[%c0, %c0_1] : memref<16x32xf32, #tpu.memory_space<vmem>>, vector<16x32xf32>
    %c0_2 = arith.constant 0 : index
    %c0_3 = arith.constant 0 : index
    %4 = vector.load %arg3[%c0_2, %c0_3] : memref<16x16xbf16, #tpu.memory_space<vmem>>, vector<16x16xbf16>
    %c0_4 = arith.constant 0 : index
    %c0_5 = arith.constant 0 : index
    %5 = vector.load %arg4[%c0_4, %c0_5] : memref<16x32xbf16, #tpu.memory_space<vmem>>, vector<16x32xbf16>
    %cst = arith.constant dense<0.000000e+00> : vector<16x32xf32>
    %6 = tpu.matmul %4, %5, %cst {dimension_numbers = #tpu.dot_dimension_numbers<[1], [0], [0], [1], [0, 0, 1, 1], [], []>} : vector<16x16xbf16>, vector<16x32xbf16>, vector<16x32xf32> -> vector<16x32xf32>
    %7 = arith.addf %3, %6 : vector<16x32xf32>
    %c0_6 = arith.constant 0 : index
    %c0_7 = arith.constant 0 : index
    %8 = vector.load %arg7[%c0_6, %c0_7] : memref<16x32xf32, #tpu.memory_space<vmem>>, vector<16x32xf32>
    tpu.vector_store %arg7[%c0_6, %c0_7], %7 {strides = array<i32>} : memref<16x32xf32, #tpu.memory_space<vmem>>, vector<16x32xf32>,
    %c0_i32_8 = arith.constant 0 : i32
    %9 = arith.cmpi eq, %arg2, %c0_i32_8 : i32
    %10 = arith.extui %9 : i1 to i32
    %c0_i32_9 = arith.constant 0 : i32
    %11 = arith.cmpi ne, %10, %c0_i32_9 : i32
    scf.if %11 {
      %c0_10 = arith.constant 0 : index
      %c0_11 = arith.constant 0 : index
      %12 = vector.load %arg7[%c0_10, %c0_11] : memref<16x32xf32, #tpu.memory_space<vmem>>, vector<16x32xf32>
      %c0_12 = arith.constant 0 : index
      %c0_13 = arith.constant 0 : index
      %13 = vector.load %arg5[%c0_12, %c0_13] : memref<1x32xf32, #tpu.memory_space<vmem>>, vector<1x32xf32>
      %14 = vector.broadcast %13 : vector<1x32xf32> to vector<16x32xf32>
      %15 = arith.addf %12, %14 : vector<16x32xf32>
      %c0_14 = arith.constant 0 : index
      %c0_15 = arith.constant 0 : index
      %16 = vector.load %arg6[%c0_14, %c0_15] : memref<16x32xf32, #tpu.memory_space<vmem>>, vector<16x32xf32>
      tpu.vector_store %arg6[%c0_14, %c0_15], %15 {strides = array<i32>} : memref<16x32xf32, #tpu.memory_space<vmem>>, vector<16x32xf32>,
    } else {
    }
    return
  }
  func.func @transform_0(%arg0: i32, %arg1: i32, %arg2: i32) -> (i32, i32) {
    %c0_i32 = arith.constant 0 : i32
    return %arg0, %arg2 : i32, i32
  }
  func.func @transform_1(%arg0: i32, %arg1: i32, %arg2: i32) -> (i32, i32) {
    %c0_i32 = arith.constant 0 : i32
    return %arg2, %arg1 : i32, i32
  }
  func.func @transform_2(%arg0: i32, %arg1: i32, %arg2: i32) -> (i32, i32) {
    %c0_i32 = arith.constant 0 : i32
    %c0_i32_0 = arith.constant 0 : i32
    return %c0_i32, %arg1 : i32, i32
  }
  func.func @transform_3(%arg0: i32, %arg1: i32, %arg2: i32) -> (i32, i32) {
    %c0_i32 = arith.constant 0 : i32
    return %arg0, %arg1 : i32, i32
  }
}

module attributes {stable_mosaic.version = 11 : i64} {
  func.func @_bn_stats_kernel(%arg0: i32, %arg1: memref<32x32xbf16, #tpu.memory_space<vmem>>, %arg2: memref<1x32xf32, #tpu.memory_space<vmem>>, %arg3: memref<1x32xf32, #tpu.memory_space<vmem>>) attributes {dimension_semantics = [#tpu.dimension_semantics<arbitrary>], iteration_bounds = array<i64: 1>, scalar_prefetch = 0 : i64, scratch_operands = 0 : i64, tpu.core_type = #tpu.core_type<tc>, window_params = [{transform_indices = @transform_0, window_bounds = array<i64: 32, 32>}, {pipeline_mode = #tpu.pipeline_mode<synchronous>, transform_indices = @transform_1, window_bounds = array<i64: 1, 32>}, {pipeline_mode = #tpu.pipeline_mode<synchronous>, transform_indices = @transform_2, window_bounds = array<i64: 1, 32>}]} {
    %c0_i32 = arith.constant 0 : i32
    %0 = arith.cmpi eq, %arg0, %c0_i32 : i32
    %1 = arith.extui %0 : i1 to i32
    %c0_i32_0 = arith.constant 0 : i32
    %2 = arith.cmpi ne, %1, %c0_i32_0 : i32
    scf.if %2 {
      %cst_13 = arith.constant 0.000000e+00 : f32
      %19 = vector.broadcast %cst_13 : f32 to vector<1x32xf32>
      %c0_14 = arith.constant 0 : index
      %c0_15 = arith.constant 0 : index
      %20 = vector.load %arg2[%c0_14, %c0_15] : memref<1x32xf32, #tpu.memory_space<vmem>>, vector<1x32xf32>
      tpu.vector_store %arg2[%c0_14, %c0_15], %19 {strides = array<i32>} : memref<1x32xf32, #tpu.memory_space<vmem>>, vector<1x32xf32>,
      %cst_16 = arith.constant 0.000000e+00 : f32
      %21 = vector.broadcast %cst_16 : f32 to vector<1x32xf32>
      %c0_17 = arith.constant 0 : index
      %c0_18 = arith.constant 0 : index
      %22 = vector.load %arg3[%c0_17, %c0_18] : memref<1x32xf32, #tpu.memory_space<vmem>>, vector<1x32xf32>
      tpu.vector_store %arg3[%c0_17, %c0_18], %21 {strides = array<i32>} : memref<1x32xf32, #tpu.memory_space<vmem>>, vector<1x32xf32>,
    } else {
    }
    %c0 = arith.constant 0 : index
    %c0_1 = arith.constant 0 : index
    %3 = vector.load %arg1[%c0, %c0_1] : memref<32x32xbf16, #tpu.memory_space<vmem>>, vector<32x32xbf16>
    %4 = arith.extf %3 : vector<32x32xbf16> to vector<32x32xf32>
    %c0_2 = arith.constant 0 : index
    %c0_3 = arith.constant 0 : index
    %5 = vector.load %arg2[%c0_2, %c0_3] : memref<1x32xf32, #tpu.memory_space<vmem>>, vector<1x32xf32>
    %cst = arith.constant dense<0.000000e+00> : vector<32xf32>
    %6 = vector.multi_reduction <add>, %4, %cst [0] : vector<32x32xf32> to vector<32xf32>
    %7 = vector.shape_cast %6 : vector<32xf32> to vector<1x32xf32>
    %8 = arith.addf %5, %7 : vector<1x32xf32>
    %c0_4 = arith.constant 0 : index
    %c0_5 = arith.constant 0 : index
    %9 = vector.load %arg2[%c0_4, %c0_5] : memref<1x32xf32, #tpu.memory_space<vmem>>, vector<1x32xf32>
    tpu.vector_store %arg2[%c0_4, %c0_5], %8 {strides = array<i32>} : memref<1x32xf32, #tpu.memory_space<vmem>>, vector<1x32xf32>,
    %c0_6 = arith.constant 0 : index
    %c0_7 = arith.constant 0 : index
    %10 = vector.load %arg3[%c0_6, %c0_7] : memref<1x32xf32, #tpu.memory_space<vmem>>, vector<1x32xf32>
    %11 = arith.mulf %4, %4 : vector<32x32xf32>
    %cst_8 = arith.constant dense<0.000000e+00> : vector<32xf32>
    %12 = vector.multi_reduction <add>, %11, %cst_8 [0] : vector<32x32xf32> to vector<32xf32>
    %13 = vector.shape_cast %12 : vector<32xf32> to vector<1x32xf32>
    %14 = arith.addf %10, %13 : vector<1x32xf32>
    %c0_9 = arith.constant 0 : index
    %c0_10 = arith.constant 0 : index
    %15 = vector.load %arg3[%c0_9, %c0_10] : memref<1x32xf32, #tpu.memory_space<vmem>>, vector<1x32xf32>
    tpu.vector_store %arg3[%c0_9, %c0_10], %14 {strides = array<i32>} : memref<1x32xf32, #tpu.memory_space<vmem>>, vector<1x32xf32>,
    %c0_i32_11 = arith.constant 0 : i32
    %16 = arith.cmpi eq, %arg0, %c0_i32_11 : i32
    %17 = arith.extui %16 : i1 to i32
    %c0_i32_12 = arith.constant 0 : i32
    %18 = arith.cmpi ne, %17, %c0_i32_12 : i32
    scf.if %18 {
      %c0_13 = arith.constant 0 : index
      %c0_14 = arith.constant 0 : index
      %19 = vector.load %arg2[%c0_13, %c0_14] : memref<1x32xf32, #tpu.memory_space<vmem>>, vector<1x32xf32>
      %cst_15 = arith.constant 3.125000e-02 : f32
      %20 = vector.broadcast %cst_15 : f32 to vector<1x32xf32>
      %21 = arith.mulf %19, %20 : vector<1x32xf32>
      %c0_16 = arith.constant 0 : index
      %c0_17 = arith.constant 0 : index
      %22 = vector.load %arg3[%c0_16, %c0_17] : memref<1x32xf32, #tpu.memory_space<vmem>>, vector<1x32xf32>
      %cst_18 = arith.constant 3.125000e-02 : f32
      %23 = vector.broadcast %cst_18 : f32 to vector<1x32xf32>
      %24 = arith.mulf %22, %23 : vector<1x32xf32>
      %25 = arith.mulf %21, %21 : vector<1x32xf32>
      %26 = arith.subf %24, %25 : vector<1x32xf32>
      %c0_19 = arith.constant 0 : index
      %c0_20 = arith.constant 0 : index
      %27 = vector.load %arg2[%c0_19, %c0_20] : memref<1x32xf32, #tpu.memory_space<vmem>>, vector<1x32xf32>
      tpu.vector_store %arg2[%c0_19, %c0_20], %21 {strides = array<i32>} : memref<1x32xf32, #tpu.memory_space<vmem>>, vector<1x32xf32>,
      %cst_21 = arith.constant 0.000000e+00 : f32
      %28 = vector.broadcast %cst_21 : f32 to vector<1x32xf32>
      %29 = arith.maximumf %26, %28 : vector<1x32xf32>
      %c0_22 = arith.constant 0 : index
      %c0_23 = arith.constant 0 : index
      %30 = vector.load %arg3[%c0_22, %c0_23] : memref<1x32xf32, #tpu.memory_space<vmem>>, vector<1x32xf32>
      tpu.vector_store %arg3[%c0_22, %c0_23], %29 {strides = array<i32>} : memref<1x32xf32, #tpu.memory_space<vmem>>, vector<1x32xf32>,
    } else {
    }
    return
  }
  func.func @transform_0(%arg0: i32) -> (i32, i32) {
    %c0_i32 = arith.constant 0 : i32
    %c0_i32_0 = arith.constant 0 : i32
    return %arg0, %c0_i32 : i32, i32
  }
  func.func @transform_1(%arg0: i32) -> (i32, i32) {
    %c0_i32 = arith.constant 0 : i32
    %c0_i32_0 = arith.constant 0 : i32
    %c0_i32_1 = arith.constant 0 : i32
    return %c0_i32, %c0_i32_0 : i32, i32
  }
  func.func @transform_2(%arg0: i32) -> (i32, i32) {
    %c0_i32 = arith.constant 0 : i32
    %c0_i32_0 = arith.constant 0 : i32
    %c0_i32_1 = arith.constant 0 : i32
    return %c0_i32, %c0_i32_0 : i32, i32
  }
}

module attributes {stable_mosaic.version = 11 : i64} {
  func.func @_mm_kernel(%arg0: i32, %arg1: i32, %arg2: i32, %arg3: memref<16x16xbf16, #tpu.memory_space<vmem>>, %arg4: memref<16x256xbf16, #tpu.memory_space<vmem>>, %arg5: memref<1x256xf32, #tpu.memory_space<vmem>>, %arg6: memref<16x256xf32, #tpu.memory_space<vmem>>, %arg7: memref<16x256xf32, #tpu.memory_space<vmem>>) attributes {dimension_semantics = [#tpu.dimension_semantics<parallel>, #tpu.dimension_semantics<parallel>, #tpu.dimension_semantics<arbitrary>], iteration_bounds = array<i64: 1, 2, 1>, scalar_prefetch = 0 : i64, scratch_operands = 1 : i64, tpu.core_type = #tpu.core_type<tc>, window_params = [{transform_indices = @transform_0, window_bounds = array<i64: 16, 16>}, {transform_indices = @transform_1, window_bounds = array<i64: 16, 256>}, {transform_indices = @transform_2, window_bounds = array<i64: 1, 256>}, {transform_indices = @transform_3, window_bounds = array<i64: 16, 256>}]} {
    %c0_i32 = arith.constant 0 : i32
    %0 = arith.cmpi eq, %arg2, %c0_i32 : i32
    %1 = arith.extui %0 : i1 to i32
    %c0_i32_0 = arith.constant 0 : i32
    %2 = arith.cmpi ne, %1, %c0_i32_0 : i32
    scf.if %2 {
      %cst_10 = arith.constant 0.000000e+00 : f32
      %12 = vector.broadcast %cst_10 : f32 to vector<16x256xf32>
      %c0_11 = arith.constant 0 : index
      %c0_12 = arith.constant 0 : index
      %13 = vector.load %arg7[%c0_11, %c0_12] : memref<16x256xf32, #tpu.memory_space<vmem>>, vector<16x256xf32>
      tpu.vector_store %arg7[%c0_11, %c0_12], %12 {strides = array<i32>} : memref<16x256xf32, #tpu.memory_space<vmem>>, vector<16x256xf32>,
    } else {
    }
    %c0 = arith.constant 0 : index
    %c0_1 = arith.constant 0 : index
    %3 = vector.load %arg7[%c0, %c0_1] : memref<16x256xf32, #tpu.memory_space<vmem>>, vector<16x256xf32>
    %c0_2 = arith.constant 0 : index
    %c0_3 = arith.constant 0 : index
    %4 = vector.load %arg3[%c0_2, %c0_3] : memref<16x16xbf16, #tpu.memory_space<vmem>>, vector<16x16xbf16>
    %c0_4 = arith.constant 0 : index
    %c0_5 = arith.constant 0 : index
    %5 = vector.load %arg4[%c0_4, %c0_5] : memref<16x256xbf16, #tpu.memory_space<vmem>>, vector<16x256xbf16>
    %cst = arith.constant dense<0.000000e+00> : vector<16x256xf32>
    %6 = tpu.matmul %4, %5, %cst {dimension_numbers = #tpu.dot_dimension_numbers<[1], [0], [0], [1], [0, 0, 1, 1], [], []>} : vector<16x16xbf16>, vector<16x256xbf16>, vector<16x256xf32> -> vector<16x256xf32>
    %7 = arith.addf %3, %6 : vector<16x256xf32>
    %c0_6 = arith.constant 0 : index
    %c0_7 = arith.constant 0 : index
    %8 = vector.load %arg7[%c0_6, %c0_7] : memref<16x256xf32, #tpu.memory_space<vmem>>, vector<16x256xf32>
    tpu.vector_store %arg7[%c0_6, %c0_7], %7 {strides = array<i32>} : memref<16x256xf32, #tpu.memory_space<vmem>>, vector<16x256xf32>,
    %c0_i32_8 = arith.constant 0 : i32
    %9 = arith.cmpi eq, %arg2, %c0_i32_8 : i32
    %10 = arith.extui %9 : i1 to i32
    %c0_i32_9 = arith.constant 0 : i32
    %11 = arith.cmpi ne, %10, %c0_i32_9 : i32
    scf.if %11 {
      %c0_10 = arith.constant 0 : index
      %c0_11 = arith.constant 0 : index
      %12 = vector.load %arg7[%c0_10, %c0_11] : memref<16x256xf32, #tpu.memory_space<vmem>>, vector<16x256xf32>
      %c0_12 = arith.constant 0 : index
      %c0_13 = arith.constant 0 : index
      %13 = vector.load %arg5[%c0_12, %c0_13] : memref<1x256xf32, #tpu.memory_space<vmem>>, vector<1x256xf32>
      %14 = vector.broadcast %13 : vector<1x256xf32> to vector<16x256xf32>
      %15 = arith.addf %12, %14 : vector<16x256xf32>
      %c0_14 = arith.constant 0 : index
      %c0_15 = arith.constant 0 : index
      %16 = vector.load %arg6[%c0_14, %c0_15] : memref<16x256xf32, #tpu.memory_space<vmem>>, vector<16x256xf32>
      tpu.vector_store %arg6[%c0_14, %c0_15], %15 {strides = array<i32>} : memref<16x256xf32, #tpu.memory_space<vmem>>, vector<16x256xf32>,
    } else {
    }
    return
  }
  func.func @transform_0(%arg0: i32, %arg1: i32, %arg2: i32) -> (i32, i32) {
    %c0_i32 = arith.constant 0 : i32
    return %arg0, %arg2 : i32, i32
  }
  func.func @transform_1(%arg0: i32, %arg1: i32, %arg2: i32) -> (i32, i32) {
    %c0_i32 = arith.constant 0 : i32
    return %arg2, %arg1 : i32, i32
  }
  func.func @transform_2(%arg0: i32, %arg1: i32, %arg2: i32) -> (i32, i32) {
    %c0_i32 = arith.constant 0 : i32
    %c0_i32_0 = arith.constant 0 : i32
    return %c0_i32, %arg1 : i32, i32
  }
  func.func @transform_3(%arg0: i32, %arg1: i32, %arg2: i32) -> (i32, i32) {
    %c0_i32 = arith.constant 0 : i32
    return %arg0, %arg1 : i32, i32
  }
}

module attributes {stable_mosaic.version = 11 : i64} {
  func.func @_conv3x3_kernel(%arg0: i32, %arg1: i32, %arg2: i32, %arg3: memref<1x104x32xbf16, #tpu.memory_space<vmem>>, %arg4: memref<9x32x16xbf16, #tpu.memory_space<vmem>>, %arg5: memref<1x16xf32, #tpu.memory_space<vmem>>, %arg6: memref<1x80x16xbf16, #tpu.memory_space<vmem>>) attributes {dimension_semantics = [#tpu.dimension_semantics<parallel>, #tpu.dimension_semantics<parallel>, #tpu.dimension_semantics<parallel>], iteration_bounds = array<i64: 2, 1, 1>, scalar_prefetch = 0 : i64, scratch_operands = 0 : i64, tpu.core_type = #tpu.core_type<tc>, window_params = [{transform_indices = @transform_0, window_bounds = array<i64: 1, 104, 32>}, {transform_indices = @transform_1, window_bounds = array<i64: 9, 32, 16>}, {transform_indices = @transform_2, window_bounds = array<i64: 1, 16>}, {transform_indices = @transform_3, window_bounds = array<i64: 1, 80, 16>}]} {
    %c80_i32 = arith.constant 80 : i32
    %0 = arith.muli %arg1, %c80_i32 : i32
    %1 = tpu.assume_multiple %0, 80 : i32
    %c0 = arith.constant 0 : index
    %2 = arith.index_cast %1 : i32 to index
    %c0_0 = arith.constant 0 : index
    %3 = vector.load %arg3[%c0, %2, %c0_0] : memref<1x104x32xbf16, #tpu.memory_space<vmem>>, vector<1x104x32xbf16>
    %4 = vector.shape_cast %3 : vector<1x104x32xbf16> to vector<104x32xbf16>
    %5 = arith.extf %4 : vector<104x32xbf16> to vector<104x32xf32>
    %cst = arith.constant 0.000000e+00 : f32
    %6 = vector.broadcast %cst : f32 to vector<80x16xf32>
    %7 = vector.extract_strided_slice %5 {offsets = [0, 0], sizes = [80, 32], strides = [1, 1]} : vector<104x32xf32> to vector<80x32xf32>
    %8 = arith.truncf %7 : vector<80x32xf32> to vector<80x32xbf16>
    %c0_1 = arith.constant 0 : index
    %c0_2 = arith.constant 0 : index
    %c0_3 = arith.constant 0 : index
    %9 = vector.load %arg4[%c0_1, %c0_2, %c0_3] : memref<9x32x16xbf16, #tpu.memory_space<vmem>>, vector<1x32x16xbf16>
    %10 = vector.shape_cast %9 : vector<1x32x16xbf16> to vector<32x16xbf16>
    %cst_4 = arith.constant dense<0.000000e+00> : vector<80x16xf32>
    %11 = tpu.matmul %8, %10, %cst_4 {dimension_numbers = #tpu.dot_dimension_numbers<[1], [0], [0], [1], [0, 0, 1, 1], [], []>} : vector<80x32xbf16>, vector<32x16xbf16>, vector<80x16xf32> -> vector<80x16xf32>
    %12 = arith.addf %6, %11 : vector<80x16xf32>
    %13 = vector.extract_strided_slice %5 {offsets = [1, 0], sizes = [80, 32], strides = [1, 1]} : vector<104x32xf32> to vector<80x32xf32>
    %14 = arith.truncf %13 : vector<80x32xf32> to vector<80x32xbf16>
    %c1 = arith.constant 1 : index
    %c0_5 = arith.constant 0 : index
    %c0_6 = arith.constant 0 : index
    %15 = vector.load %arg4[%c1, %c0_5, %c0_6] : memref<9x32x16xbf16, #tpu.memory_space<vmem>>, vector<1x32x16xbf16>
    %16 = vector.shape_cast %15 : vector<1x32x16xbf16> to vector<32x16xbf16>
    %cst_7 = arith.constant dense<0.000000e+00> : vector<80x16xf32>
    %17 = tpu.matmul %14, %16, %cst_7 {dimension_numbers = #tpu.dot_dimension_numbers<[1], [0], [0], [1], [0, 0, 1, 1], [], []>} : vector<80x32xbf16>, vector<32x16xbf16>, vector<80x16xf32> -> vector<80x16xf32>
    %18 = arith.addf %12, %17 : vector<80x16xf32>
    %19 = vector.extract_strided_slice %5 {offsets = [2, 0], sizes = [80, 32], strides = [1, 1]} : vector<104x32xf32> to vector<80x32xf32>
    %20 = arith.truncf %19 : vector<80x32xf32> to vector<80x32xbf16>
    %c2 = arith.constant 2 : index
    %c0_8 = arith.constant 0 : index
    %c0_9 = arith.constant 0 : index
    %21 = vector.load %arg4[%c2, %c0_8, %c0_9] : memref<9x32x16xbf16, #tpu.memory_space<vmem>>, vector<1x32x16xbf16>
    %22 = vector.shape_cast %21 : vector<1x32x16xbf16> to vector<32x16xbf16>
    %cst_10 = arith.constant dense<0.000000e+00> : vector<80x16xf32>
    %23 = tpu.matmul %20, %22, %cst_10 {dimension_numbers = #tpu.dot_dimension_numbers<[1], [0], [0], [1], [0, 0, 1, 1], [], []>} : vector<80x32xbf16>, vector<32x16xbf16>, vector<80x16xf32> -> vector<80x16xf32>
    %24 = arith.addf %18, %23 : vector<80x16xf32>
    %25 = vector.extract_strided_slice %5 {offsets = [10, 0], sizes = [80, 32], strides = [1, 1]} : vector<104x32xf32> to vector<80x32xf32>
    %26 = arith.truncf %25 : vector<80x32xf32> to vector<80x32xbf16>
    %c3 = arith.constant 3 : index
    %c0_11 = arith.constant 0 : index
    %c0_12 = arith.constant 0 : index
    %27 = vector.load %arg4[%c3, %c0_11, %c0_12] : memref<9x32x16xbf16, #tpu.memory_space<vmem>>, vector<1x32x16xbf16>
    %28 = vector.shape_cast %27 : vector<1x32x16xbf16> to vector<32x16xbf16>
    %cst_13 = arith.constant dense<0.000000e+00> : vector<80x16xf32>
    %29 = tpu.matmul %26, %28, %cst_13 {dimension_numbers = #tpu.dot_dimension_numbers<[1], [0], [0], [1], [0, 0, 1, 1], [], []>} : vector<80x32xbf16>, vector<32x16xbf16>, vector<80x16xf32> -> vector<80x16xf32>
    %30 = arith.addf %24, %29 : vector<80x16xf32>
    %31 = vector.extract_strided_slice %5 {offsets = [11, 0], sizes = [80, 32], strides = [1, 1]} : vector<104x32xf32> to vector<80x32xf32>
    %32 = arith.truncf %31 : vector<80x32xf32> to vector<80x32xbf16>
    %c4 = arith.constant 4 : index
    %c0_14 = arith.constant 0 : index
    %c0_15 = arith.constant 0 : index
    %33 = vector.load %arg4[%c4, %c0_14, %c0_15] : memref<9x32x16xbf16, #tpu.memory_space<vmem>>, vector<1x32x16xbf16>
    %34 = vector.shape_cast %33 : vector<1x32x16xbf16> to vector<32x16xbf16>
    %cst_16 = arith.constant dense<0.000000e+00> : vector<80x16xf32>
    %35 = tpu.matmul %32, %34, %cst_16 {dimension_numbers = #tpu.dot_dimension_numbers<[1], [0], [0], [1], [0, 0, 1, 1], [], []>} : vector<80x32xbf16>, vector<32x16xbf16>, vector<80x16xf32> -> vector<80x16xf32>
    %36 = arith.addf %30, %35 : vector<80x16xf32>
    %37 = vector.extract_strided_slice %5 {offsets = [12, 0], sizes = [80, 32], strides = [1, 1]} : vector<104x32xf32> to vector<80x32xf32>
    %38 = arith.truncf %37 : vector<80x32xf32> to vector<80x32xbf16>
    %c5 = arith.constant 5 : index
    %c0_17 = arith.constant 0 : index
    %c0_18 = arith.constant 0 : index
    %39 = vector.load %arg4[%c5, %c0_17, %c0_18] : memref<9x32x16xbf16, #tpu.memory_space<vmem>>, vector<1x32x16xbf16>
    %40 = vector.shape_cast %39 : vector<1x32x16xbf16> to vector<32x16xbf16>
    %cst_19 = arith.constant dense<0.000000e+00> : vector<80x16xf32>
    %41 = tpu.matmul %38, %40, %cst_19 {dimension_numbers = #tpu.dot_dimension_numbers<[1], [0], [0], [1], [0, 0, 1, 1], [], []>} : vector<80x32xbf16>, vector<32x16xbf16>, vector<80x16xf32> -> vector<80x16xf32>
    %42 = arith.addf %36, %41 : vector<80x16xf32>
    %43 = vector.extract_strided_slice %5 {offsets = [20, 0], sizes = [80, 32], strides = [1, 1]} : vector<104x32xf32> to vector<80x32xf32>
    %44 = arith.truncf %43 : vector<80x32xf32> to vector<80x32xbf16>
    %c6 = arith.constant 6 : index
    %c0_20 = arith.constant 0 : index
    %c0_21 = arith.constant 0 : index
    %45 = vector.load %arg4[%c6, %c0_20, %c0_21] : memref<9x32x16xbf16, #tpu.memory_space<vmem>>, vector<1x32x16xbf16>
    %46 = vector.shape_cast %45 : vector<1x32x16xbf16> to vector<32x16xbf16>
    %cst_22 = arith.constant dense<0.000000e+00> : vector<80x16xf32>
    %47 = tpu.matmul %44, %46, %cst_22 {dimension_numbers = #tpu.dot_dimension_numbers<[1], [0], [0], [1], [0, 0, 1, 1], [], []>} : vector<80x32xbf16>, vector<32x16xbf16>, vector<80x16xf32> -> vector<80x16xf32>
    %48 = arith.addf %42, %47 : vector<80x16xf32>
    %49 = vector.extract_strided_slice %5 {offsets = [21, 0], sizes = [80, 32], strides = [1, 1]} : vector<104x32xf32> to vector<80x32xf32>
    %50 = arith.truncf %49 : vector<80x32xf32> to vector<80x32xbf16>
    %c7 = arith.constant 7 : index
    %c0_23 = arith.constant 0 : index
    %c0_24 = arith.constant 0 : index
    %51 = vector.load %arg4[%c7, %c0_23, %c0_24] : memref<9x32x16xbf16, #tpu.memory_space<vmem>>, vector<1x32x16xbf16>
    %52 = vector.shape_cast %51 : vector<1x32x16xbf16> to vector<32x16xbf16>
    %cst_25 = arith.constant dense<0.000000e+00> : vector<80x16xf32>
    %53 = tpu.matmul %50, %52, %cst_25 {dimension_numbers = #tpu.dot_dimension_numbers<[1], [0], [0], [1], [0, 0, 1, 1], [], []>} : vector<80x32xbf16>, vector<32x16xbf16>, vector<80x16xf32> -> vector<80x16xf32>
    %54 = arith.addf %48, %53 : vector<80x16xf32>
    %55 = vector.extract_strided_slice %5 {offsets = [22, 0], sizes = [80, 32], strides = [1, 1]} : vector<104x32xf32> to vector<80x32xf32>
    %56 = arith.truncf %55 : vector<80x32xf32> to vector<80x32xbf16>
    %c8 = arith.constant 8 : index
    %c0_26 = arith.constant 0 : index
    %c0_27 = arith.constant 0 : index
    %57 = vector.load %arg4[%c8, %c0_26, %c0_27] : memref<9x32x16xbf16, #tpu.memory_space<vmem>>, vector<1x32x16xbf16>
    %58 = vector.shape_cast %57 : vector<1x32x16xbf16> to vector<32x16xbf16>
    %cst_28 = arith.constant dense<0.000000e+00> : vector<80x16xf32>
    %59 = tpu.matmul %56, %58, %cst_28 {dimension_numbers = #tpu.dot_dimension_numbers<[1], [0], [0], [1], [0, 0, 1, 1], [], []>} : vector<80x32xbf16>, vector<32x16xbf16>, vector<80x16xf32> -> vector<80x16xf32>
    %60 = arith.addf %54, %59 : vector<80x16xf32>
    %c0_29 = arith.constant 0 : index
    %c0_30 = arith.constant 0 : index
    %61 = vector.load %arg5[%c0_29, %c0_30] : memref<1x16xf32, #tpu.memory_space<vmem>>, vector<1x16xf32>
    %62 = vector.broadcast %61 : vector<1x16xf32> to vector<80x16xf32>
    %63 = arith.addf %60, %62 : vector<80x16xf32>
    %64 = arith.truncf %63 : vector<80x16xf32> to vector<80x16xbf16>
    %c0_31 = arith.constant 0 : index
    %c0_32 = arith.constant 0 : index
    %c0_33 = arith.constant 0 : index
    %65 = vector.load %arg6[%c0_31, %c0_32, %c0_33] : memref<1x80x16xbf16, #tpu.memory_space<vmem>>, vector<1x80x16xbf16>
    %66 = vector.shape_cast %65 : vector<1x80x16xbf16> to vector<80x16xbf16>
    %67 = vector.shape_cast %64 : vector<80x16xbf16> to vector<1x80x16xbf16>
    tpu.vector_store %arg6[%c0_31, %c0_32, %c0_33], %67 {strides = array<i32>} : memref<1x80x16xbf16, #tpu.memory_space<vmem>>, vector<1x80x16xbf16>,
    return
  }
  func.func @transform_0(%arg0: i32, %arg1: i32, %arg2: i32) -> (i32, i32, i32) {
    %c0_i32 = arith.constant 0 : i32
    %c0_i32_0 = arith.constant 0 : i32
    %c0_i32_1 = arith.constant 0 : i32
    return %arg0, %c0_i32, %c0_i32_0 : i32, i32, i32
  }
  func.func @transform_1(%arg0: i32, %arg1: i32, %arg2: i32) -> (i32, i32, i32) {
    %c0_i32 = arith.constant 0 : i32
    %c0_i32_0 = arith.constant 0 : i32
    %c0_i32_1 = arith.constant 0 : i32
    return %c0_i32, %c0_i32_0, %arg2 : i32, i32, i32
  }
  func.func @transform_2(%arg0: i32, %arg1: i32, %arg2: i32) -> (i32, i32) {
    %c0_i32 = arith.constant 0 : i32
    %c0_i32_0 = arith.constant 0 : i32
    return %c0_i32, %arg2 : i32, i32
  }
  func.func @transform_3(%arg0: i32, %arg1: i32, %arg2: i32) -> (i32, i32, i32) {
    %c0_i32 = arith.constant 0 : i32
    return %arg0, %arg1, %arg2 : i32, i32, i32
  }
}

module attributes {stable_mosaic.version = 11 : i64} {
  func.func @_bn_stats_kernel(%arg0: i32, %arg1: memref<128x16xbf16, #tpu.memory_space<vmem>>, %arg2: memref<1x16xf32, #tpu.memory_space<vmem>>, %arg3: memref<1x16xf32, #tpu.memory_space<vmem>>) attributes {dimension_semantics = [#tpu.dimension_semantics<arbitrary>], iteration_bounds = array<i64: 1>, scalar_prefetch = 0 : i64, scratch_operands = 0 : i64, tpu.core_type = #tpu.core_type<tc>, window_params = [{transform_indices = @transform_0, window_bounds = array<i64: 128, 16>}, {pipeline_mode = #tpu.pipeline_mode<synchronous>, transform_indices = @transform_1, window_bounds = array<i64: 1, 16>}, {pipeline_mode = #tpu.pipeline_mode<synchronous>, transform_indices = @transform_2, window_bounds = array<i64: 1, 16>}]} {
    %c0_i32 = arith.constant 0 : i32
    %0 = arith.cmpi eq, %arg0, %c0_i32 : i32
    %1 = arith.extui %0 : i1 to i32
    %c0_i32_0 = arith.constant 0 : i32
    %2 = arith.cmpi ne, %1, %c0_i32_0 : i32
    scf.if %2 {
      %cst_13 = arith.constant 0.000000e+00 : f32
      %19 = vector.broadcast %cst_13 : f32 to vector<1x16xf32>
      %c0_14 = arith.constant 0 : index
      %c0_15 = arith.constant 0 : index
      %20 = vector.load %arg2[%c0_14, %c0_15] : memref<1x16xf32, #tpu.memory_space<vmem>>, vector<1x16xf32>
      tpu.vector_store %arg2[%c0_14, %c0_15], %19 {strides = array<i32>} : memref<1x16xf32, #tpu.memory_space<vmem>>, vector<1x16xf32>,
      %cst_16 = arith.constant 0.000000e+00 : f32
      %21 = vector.broadcast %cst_16 : f32 to vector<1x16xf32>
      %c0_17 = arith.constant 0 : index
      %c0_18 = arith.constant 0 : index
      %22 = vector.load %arg3[%c0_17, %c0_18] : memref<1x16xf32, #tpu.memory_space<vmem>>, vector<1x16xf32>
      tpu.vector_store %arg3[%c0_17, %c0_18], %21 {strides = array<i32>} : memref<1x16xf32, #tpu.memory_space<vmem>>, vector<1x16xf32>,
    } else {
    }
    %c0 = arith.constant 0 : index
    %c0_1 = arith.constant 0 : index
    %3 = vector.load %arg1[%c0, %c0_1] : memref<128x16xbf16, #tpu.memory_space<vmem>>, vector<128x16xbf16>
    %4 = arith.extf %3 : vector<128x16xbf16> to vector<128x16xf32>
    %c0_2 = arith.constant 0 : index
    %c0_3 = arith.constant 0 : index
    %5 = vector.load %arg2[%c0_2, %c0_3] : memref<1x16xf32, #tpu.memory_space<vmem>>, vector<1x16xf32>
    %cst = arith.constant dense<0.000000e+00> : vector<16xf32>
    %6 = vector.multi_reduction <add>, %4, %cst [0] : vector<128x16xf32> to vector<16xf32>
    %7 = vector.shape_cast %6 : vector<16xf32> to vector<1x16xf32>
    %8 = arith.addf %5, %7 : vector<1x16xf32>
    %c0_4 = arith.constant 0 : index
    %c0_5 = arith.constant 0 : index
    %9 = vector.load %arg2[%c0_4, %c0_5] : memref<1x16xf32, #tpu.memory_space<vmem>>, vector<1x16xf32>
    tpu.vector_store %arg2[%c0_4, %c0_5], %8 {strides = array<i32>} : memref<1x16xf32, #tpu.memory_space<vmem>>, vector<1x16xf32>,
    %c0_6 = arith.constant 0 : index
    %c0_7 = arith.constant 0 : index
    %10 = vector.load %arg3[%c0_6, %c0_7] : memref<1x16xf32, #tpu.memory_space<vmem>>, vector<1x16xf32>
    %11 = arith.mulf %4, %4 : vector<128x16xf32>
    %cst_8 = arith.constant dense<0.000000e+00> : vector<16xf32>
    %12 = vector.multi_reduction <add>, %11, %cst_8 [0] : vector<128x16xf32> to vector<16xf32>
    %13 = vector.shape_cast %12 : vector<16xf32> to vector<1x16xf32>
    %14 = arith.addf %10, %13 : vector<1x16xf32>
    %c0_9 = arith.constant 0 : index
    %c0_10 = arith.constant 0 : index
    %15 = vector.load %arg3[%c0_9, %c0_10] : memref<1x16xf32, #tpu.memory_space<vmem>>, vector<1x16xf32>
    tpu.vector_store %arg3[%c0_9, %c0_10], %14 {strides = array<i32>} : memref<1x16xf32, #tpu.memory_space<vmem>>, vector<1x16xf32>,
    %c0_i32_11 = arith.constant 0 : i32
    %16 = arith.cmpi eq, %arg0, %c0_i32_11 : i32
    %17 = arith.extui %16 : i1 to i32
    %c0_i32_12 = arith.constant 0 : i32
    %18 = arith.cmpi ne, %17, %c0_i32_12 : i32
    scf.if %18 {
      %c0_13 = arith.constant 0 : index
      %c0_14 = arith.constant 0 : index
      %19 = vector.load %arg2[%c0_13, %c0_14] : memref<1x16xf32, #tpu.memory_space<vmem>>, vector<1x16xf32>
      %cst_15 = arith.constant 7.812500e-03 : f32
      %20 = vector.broadcast %cst_15 : f32 to vector<1x16xf32>
      %21 = arith.mulf %19, %20 : vector<1x16xf32>
      %c0_16 = arith.constant 0 : index
      %c0_17 = arith.constant 0 : index
      %22 = vector.load %arg3[%c0_16, %c0_17] : memref<1x16xf32, #tpu.memory_space<vmem>>, vector<1x16xf32>
      %cst_18 = arith.constant 7.812500e-03 : f32
      %23 = vector.broadcast %cst_18 : f32 to vector<1x16xf32>
      %24 = arith.mulf %22, %23 : vector<1x16xf32>
      %25 = arith.mulf %21, %21 : vector<1x16xf32>
      %26 = arith.subf %24, %25 : vector<1x16xf32>
      %c0_19 = arith.constant 0 : index
      %c0_20 = arith.constant 0 : index
      %27 = vector.load %arg2[%c0_19, %c0_20] : memref<1x16xf32, #tpu.memory_space<vmem>>, vector<1x16xf32>
      tpu.vector_store %arg2[%c0_19, %c0_20], %21 {strides = array<i32>} : memref<1x16xf32, #tpu.memory_space<vmem>>, vector<1x16xf32>,
      %cst_21 = arith.constant 0.000000e+00 : f32
      %28 = vector.broadcast %cst_21 : f32 to vector<1x16xf32>
      %29 = arith.maximumf %26, %28 : vector<1x16xf32>
      %c0_22 = arith.constant 0 : index
      %c0_23 = arith.constant 0 : index
      %30 = vector.load %arg3[%c0_22, %c0_23] : memref<1x16xf32, #tpu.memory_space<vmem>>, vector<1x16xf32>
      tpu.vector_store %arg3[%c0_22, %c0_23], %29 {strides = array<i32>} : memref<1x16xf32, #tpu.memory_space<vmem>>, vector<1x16xf32>,
    } else {
    }
    return
  }
  func.func @transform_0(%arg0: i32) -> (i32, i32) {
    %c0_i32 = arith.constant 0 : i32
    %c0_i32_0 = arith.constant 0 : i32
    return %arg0, %c0_i32 : i32, i32
  }
  func.func @transform_1(%arg0: i32) -> (i32, i32) {
    %c0_i32 = arith.constant 0 : i32
    %c0_i32_0 = arith.constant 0 : i32
    %c0_i32_1 = arith.constant 0 : i32
    return %c0_i32, %c0_i32_0 : i32, i32
  }
  func.func @transform_2(%arg0: i32) -> (i32, i32) {
    %c0_i32 = arith.constant 0 : i32
    %c0_i32_0 = arith.constant 0 : i32
    %c0_i32_1 = arith.constant 0 : i32
    return %c0_i32, %c0_i32_0 : i32, i32
  }
}

module attributes {stable_mosaic.version = 11 : i64} {
  func.func @_ccbn_apply_kernel(%arg0: i32, %arg1: i32, %arg2: memref<1x64x16xbf16, #tpu.memory_space<vmem>>, %arg3: memref<1x1x16xf32, #tpu.memory_space<vmem>>, %arg4: memref<1x1x16xf32, #tpu.memory_space<vmem>>, %arg5: memref<1x64x16xbf16, #tpu.memory_space<vmem>>) attributes {dimension_semantics = [#tpu.dimension_semantics<parallel>, #tpu.dimension_semantics<parallel>], iteration_bounds = array<i64: 2, 1>, scalar_prefetch = 0 : i64, scratch_operands = 0 : i64, tpu.core_type = #tpu.core_type<tc>, window_params = [{transform_indices = @transform_0, window_bounds = array<i64: 1, 64, 16>}, {transform_indices = @transform_1, window_bounds = array<i64: 1, 1, 16>}, {transform_indices = @transform_2, window_bounds = array<i64: 1, 1, 16>}, {transform_indices = @transform_3, window_bounds = array<i64: 1, 64, 16>}]} {
    %c0 = arith.constant 0 : index
    %c0_0 = arith.constant 0 : index
    %c0_1 = arith.constant 0 : index
    %0 = vector.load %arg2[%c0, %c0_0, %c0_1] : memref<1x64x16xbf16, #tpu.memory_space<vmem>>, vector<1x64x16xbf16>
    %1 = vector.shape_cast %0 : vector<1x64x16xbf16> to vector<64x16xbf16>
    %2 = arith.extf %1 : vector<64x16xbf16> to vector<64x16xf32>
    %c0_2 = arith.constant 0 : index
    %c0_3 = arith.constant 0 : index
    %c0_4 = arith.constant 0 : index
    %3 = vector.load %arg3[%c0_2, %c0_3, %c0_4] : memref<1x1x16xf32, #tpu.memory_space<vmem>>, vector<1x1x16xf32>
    %4 = vector.shape_cast %3 : vector<1x1x16xf32> to vector<1x16xf32>
    %5 = vector.broadcast %4 : vector<1x16xf32> to vector<64x16xf32>
    %6 = arith.mulf %2, %5 : vector<64x16xf32>
    %c0_5 = arith.constant 0 : index
    %c0_6 = arith.constant 0 : index
    %c0_7 = arith.constant 0 : index
    %7 = vector.load %arg4[%c0_5, %c0_6, %c0_7] : memref<1x1x16xf32, #tpu.memory_space<vmem>>, vector<1x1x16xf32>
    %8 = vector.shape_cast %7 : vector<1x1x16xf32> to vector<1x16xf32>
    %9 = vector.broadcast %8 : vector<1x16xf32> to vector<64x16xf32>
    %10 = arith.addf %6, %9 : vector<64x16xf32>
    %cst = arith.constant 0.000000e+00 : f32
    %11 = vector.broadcast %cst : f32 to vector<64x16xf32>
    %12 = arith.maximumf %10, %11 : vector<64x16xf32>
    %13 = arith.truncf %12 : vector<64x16xf32> to vector<64x16xbf16>
    %c0_8 = arith.constant 0 : index
    %c0_9 = arith.constant 0 : index
    %c0_10 = arith.constant 0 : index
    %14 = vector.load %arg5[%c0_8, %c0_9, %c0_10] : memref<1x64x16xbf16, #tpu.memory_space<vmem>>, vector<1x64x16xbf16>
    %15 = vector.shape_cast %14 : vector<1x64x16xbf16> to vector<64x16xbf16>
    %16 = vector.shape_cast %13 : vector<64x16xbf16> to vector<1x64x16xbf16>
    tpu.vector_store %arg5[%c0_8, %c0_9, %c0_10], %16 {strides = array<i32>} : memref<1x64x16xbf16, #tpu.memory_space<vmem>>, vector<1x64x16xbf16>,
    return
  }
  func.func @transform_0(%arg0: i32, %arg1: i32) -> (i32, i32, i32) {
    %c0_i32 = arith.constant 0 : i32
    %c0_i32_0 = arith.constant 0 : i32
    return %arg0, %arg1, %c0_i32 : i32, i32, i32
  }
  func.func @transform_1(%arg0: i32, %arg1: i32) -> (i32, i32, i32) {
    %c0_i32 = arith.constant 0 : i32
    %c0_i32_0 = arith.constant 0 : i32
    %c0_i32_1 = arith.constant 0 : i32
    return %arg0, %c0_i32, %c0_i32_0 : i32, i32, i32
  }
  func.func @transform_2(%arg0: i32, %arg1: i32) -> (i32, i32, i32) {
    %c0_i32 = arith.constant 0 : i32
    %c0_i32_0 = arith.constant 0 : i32
    %c0_i32_1 = arith.constant 0 : i32
    return %arg0, %c0_i32, %c0_i32_0 : i32, i32, i32
  }
  func.func @transform_3(%arg0: i32, %arg1: i32) -> (i32, i32, i32) {
    %c0_i32 = arith.constant 0 : i32
    %c0_i32_0 = arith.constant 0 : i32
    return %arg0, %arg1, %c0_i32 : i32, i32, i32
  }
}

module attributes {stable_mosaic.version = 11 : i64} {
  func.func @_mm_kernel(%arg0: i32, %arg1: i32, %arg2: i32, %arg3: memref<16x16xbf16, #tpu.memory_space<vmem>>, %arg4: memref<16x16xbf16, #tpu.memory_space<vmem>>, %arg5: memref<1x16xf32, #tpu.memory_space<vmem>>, %arg6: memref<16x16xf32, #tpu.memory_space<vmem>>, %arg7: memref<16x16xf32, #tpu.memory_space<vmem>>) attributes {dimension_semantics = [#tpu.dimension_semantics<parallel>, #tpu.dimension_semantics<parallel>, #tpu.dimension_semantics<arbitrary>], iteration_bounds = array<i64: 1, 1, 1>, scalar_prefetch = 0 : i64, scratch_operands = 1 : i64, tpu.core_type = #tpu.core_type<tc>, window_params = [{transform_indices = @transform_0, window_bounds = array<i64: 16, 16>}, {transform_indices = @transform_1, window_bounds = array<i64: 16, 16>}, {transform_indices = @transform_2, window_bounds = array<i64: 1, 16>}, {transform_indices = @transform_3, window_bounds = array<i64: 16, 16>}]} {
    %c0_i32 = arith.constant 0 : i32
    %0 = arith.cmpi eq, %arg2, %c0_i32 : i32
    %1 = arith.extui %0 : i1 to i32
    %c0_i32_0 = arith.constant 0 : i32
    %2 = arith.cmpi ne, %1, %c0_i32_0 : i32
    scf.if %2 {
      %cst_10 = arith.constant 0.000000e+00 : f32
      %12 = vector.broadcast %cst_10 : f32 to vector<16x16xf32>
      %c0_11 = arith.constant 0 : index
      %c0_12 = arith.constant 0 : index
      %13 = vector.load %arg7[%c0_11, %c0_12] : memref<16x16xf32, #tpu.memory_space<vmem>>, vector<16x16xf32>
      tpu.vector_store %arg7[%c0_11, %c0_12], %12 {strides = array<i32>} : memref<16x16xf32, #tpu.memory_space<vmem>>, vector<16x16xf32>,
    } else {
    }
    %c0 = arith.constant 0 : index
    %c0_1 = arith.constant 0 : index
    %3 = vector.load %arg7[%c0, %c0_1] : memref<16x16xf32, #tpu.memory_space<vmem>>, vector<16x16xf32>
    %c0_2 = arith.constant 0 : index
    %c0_3 = arith.constant 0 : index
    %4 = vector.load %arg3[%c0_2, %c0_3] : memref<16x16xbf16, #tpu.memory_space<vmem>>, vector<16x16xbf16>
    %c0_4 = arith.constant 0 : index
    %c0_5 = arith.constant 0 : index
    %5 = vector.load %arg4[%c0_4, %c0_5] : memref<16x16xbf16, #tpu.memory_space<vmem>>, vector<16x16xbf16>
    %cst = arith.constant dense<0.000000e+00> : vector<16x16xf32>
    %6 = tpu.matmul %4, %5, %cst {dimension_numbers = #tpu.dot_dimension_numbers<[1], [0], [0], [1], [0, 0, 1, 1], [], []>} : vector<16x16xbf16>, vector<16x16xbf16>, vector<16x16xf32> -> vector<16x16xf32>
    %7 = arith.addf %3, %6 : vector<16x16xf32>
    %c0_6 = arith.constant 0 : index
    %c0_7 = arith.constant 0 : index
    %8 = vector.load %arg7[%c0_6, %c0_7] : memref<16x16xf32, #tpu.memory_space<vmem>>, vector<16x16xf32>
    tpu.vector_store %arg7[%c0_6, %c0_7], %7 {strides = array<i32>} : memref<16x16xf32, #tpu.memory_space<vmem>>, vector<16x16xf32>,
    %c0_i32_8 = arith.constant 0 : i32
    %9 = arith.cmpi eq, %arg2, %c0_i32_8 : i32
    %10 = arith.extui %9 : i1 to i32
    %c0_i32_9 = arith.constant 0 : i32
    %11 = arith.cmpi ne, %10, %c0_i32_9 : i32
    scf.if %11 {
      %c0_10 = arith.constant 0 : index
      %c0_11 = arith.constant 0 : index
      %12 = vector.load %arg7[%c0_10, %c0_11] : memref<16x16xf32, #tpu.memory_space<vmem>>, vector<16x16xf32>
      %c0_12 = arith.constant 0 : index
      %c0_13 = arith.constant 0 : index
      %13 = vector.load %arg5[%c0_12, %c0_13] : memref<1x16xf32, #tpu.memory_space<vmem>>, vector<1x16xf32>
      %14 = vector.broadcast %13 : vector<1x16xf32> to vector<16x16xf32>
      %15 = arith.addf %12, %14 : vector<16x16xf32>
      %c0_14 = arith.constant 0 : index
      %c0_15 = arith.constant 0 : index
      %16 = vector.load %arg6[%c0_14, %c0_15] : memref<16x16xf32, #tpu.memory_space<vmem>>, vector<16x16xf32>
      tpu.vector_store %arg6[%c0_14, %c0_15], %15 {strides = array<i32>} : memref<16x16xf32, #tpu.memory_space<vmem>>, vector<16x16xf32>,
    } else {
    }
    return
  }
  func.func @transform_0(%arg0: i32, %arg1: i32, %arg2: i32) -> (i32, i32) {
    %c0_i32 = arith.constant 0 : i32
    return %arg0, %arg2 : i32, i32
  }
  func.func @transform_1(%arg0: i32, %arg1: i32, %arg2: i32) -> (i32, i32) {
    %c0_i32 = arith.constant 0 : i32
    return %arg2, %arg1 : i32, i32
  }
  func.func @transform_2(%arg0: i32, %arg1: i32, %arg2: i32) -> (i32, i32) {
    %c0_i32 = arith.constant 0 : i32
    %c0_i32_0 = arith.constant 0 : i32
    return %c0_i32, %arg1 : i32, i32
  }
  func.func @transform_3(%arg0: i32, %arg1: i32, %arg2: i32) -> (i32, i32) {
    %c0_i32 = arith.constant 0 : i32
    return %arg0, %arg1 : i32, i32
  }
}

module attributes {stable_mosaic.version = 11 : i64} {
  func.func @_conv3x3_kernel(%arg0: i32, %arg1: i32, %arg2: i32, %arg3: memref<1x104x16xbf16, #tpu.memory_space<vmem>>, %arg4: memref<9x16x16xbf16, #tpu.memory_space<vmem>>, %arg5: memref<1x16xf32, #tpu.memory_space<vmem>>, %arg6: memref<1x80x16xbf16, #tpu.memory_space<vmem>>) attributes {dimension_semantics = [#tpu.dimension_semantics<parallel>, #tpu.dimension_semantics<parallel>, #tpu.dimension_semantics<parallel>], iteration_bounds = array<i64: 2, 1, 1>, scalar_prefetch = 0 : i64, scratch_operands = 0 : i64, tpu.core_type = #tpu.core_type<tc>, window_params = [{transform_indices = @transform_0, window_bounds = array<i64: 1, 104, 16>}, {transform_indices = @transform_1, window_bounds = array<i64: 9, 16, 16>}, {transform_indices = @transform_2, window_bounds = array<i64: 1, 16>}, {transform_indices = @transform_3, window_bounds = array<i64: 1, 80, 16>}]} {
    %c80_i32 = arith.constant 80 : i32
    %0 = arith.muli %arg1, %c80_i32 : i32
    %1 = tpu.assume_multiple %0, 80 : i32
    %c0 = arith.constant 0 : index
    %2 = arith.index_cast %1 : i32 to index
    %c0_0 = arith.constant 0 : index
    %3 = vector.load %arg3[%c0, %2, %c0_0] : memref<1x104x16xbf16, #tpu.memory_space<vmem>>, vector<1x104x16xbf16>
    %4 = vector.shape_cast %3 : vector<1x104x16xbf16> to vector<104x16xbf16>
    %5 = arith.extf %4 : vector<104x16xbf16> to vector<104x16xf32>
    %cst = arith.constant 0.000000e+00 : f32
    %6 = vector.broadcast %cst : f32 to vector<80x16xf32>
    %7 = vector.extract_strided_slice %5 {offsets = [0, 0], sizes = [80, 16], strides = [1, 1]} : vector<104x16xf32> to vector<80x16xf32>
    %8 = arith.truncf %7 : vector<80x16xf32> to vector<80x16xbf16>
    %c0_1 = arith.constant 0 : index
    %c0_2 = arith.constant 0 : index
    %c0_3 = arith.constant 0 : index
    %9 = vector.load %arg4[%c0_1, %c0_2, %c0_3] : memref<9x16x16xbf16, #tpu.memory_space<vmem>>, vector<1x16x16xbf16>
    %10 = vector.shape_cast %9 : vector<1x16x16xbf16> to vector<16x16xbf16>
    %cst_4 = arith.constant dense<0.000000e+00> : vector<80x16xf32>
    %11 = tpu.matmul %8, %10, %cst_4 {dimension_numbers = #tpu.dot_dimension_numbers<[1], [0], [0], [1], [0, 0, 1, 1], [], []>} : vector<80x16xbf16>, vector<16x16xbf16>, vector<80x16xf32> -> vector<80x16xf32>
    %12 = arith.addf %6, %11 : vector<80x16xf32>
    %13 = vector.extract_strided_slice %5 {offsets = [1, 0], sizes = [80, 16], strides = [1, 1]} : vector<104x16xf32> to vector<80x16xf32>
    %14 = arith.truncf %13 : vector<80x16xf32> to vector<80x16xbf16>
    %c1 = arith.constant 1 : index
    %c0_5 = arith.constant 0 : index
    %c0_6 = arith.constant 0 : index
    %15 = vector.load %arg4[%c1, %c0_5, %c0_6] : memref<9x16x16xbf16, #tpu.memory_space<vmem>>, vector<1x16x16xbf16>
    %16 = vector.shape_cast %15 : vector<1x16x16xbf16> to vector<16x16xbf16>
    %cst_7 = arith.constant dense<0.000000e+00> : vector<80x16xf32>
    %17 = tpu.matmul %14, %16, %cst_7 {dimension_numbers = #tpu.dot_dimension_numbers<[1], [0], [0], [1], [0, 0, 1, 1], [], []>} : vector<80x16xbf16>, vector<16x16xbf16>, vector<80x16xf32> -> vector<80x16xf32>
    %18 = arith.addf %12, %17 : vector<80x16xf32>
    %19 = vector.extract_strided_slice %5 {offsets = [2, 0], sizes = [80, 16], strides = [1, 1]} : vector<104x16xf32> to vector<80x16xf32>
    %20 = arith.truncf %19 : vector<80x16xf32> to vector<80x16xbf16>
    %c2 = arith.constant 2 : index
    %c0_8 = arith.constant 0 : index
    %c0_9 = arith.constant 0 : index
    %21 = vector.load %arg4[%c2, %c0_8, %c0_9] : memref<9x16x16xbf16, #tpu.memory_space<vmem>>, vector<1x16x16xbf16>
    %22 = vector.shape_cast %21 : vector<1x16x16xbf16> to vector<16x16xbf16>
    %cst_10 = arith.constant dense<0.000000e+00> : vector<80x16xf32>
    %23 = tpu.matmul %20, %22, %cst_10 {dimension_numbers = #tpu.dot_dimension_numbers<[1], [0], [0], [1], [0, 0, 1, 1], [], []>} : vector<80x16xbf16>, vector<16x16xbf16>, vector<80x16xf32> -> vector<80x16xf32>
    %24 = arith.addf %18, %23 : vector<80x16xf32>
    %25 = vector.extract_strided_slice %5 {offsets = [10, 0], sizes = [80, 16], strides = [1, 1]} : vector<104x16xf32> to vector<80x16xf32>
    %26 = arith.truncf %25 : vector<80x16xf32> to vector<80x16xbf16>
    %c3 = arith.constant 3 : index
    %c0_11 = arith.constant 0 : index
    %c0_12 = arith.constant 0 : index
    %27 = vector.load %arg4[%c3, %c0_11, %c0_12] : memref<9x16x16xbf16, #tpu.memory_space<vmem>>, vector<1x16x16xbf16>
    %28 = vector.shape_cast %27 : vector<1x16x16xbf16> to vector<16x16xbf16>
    %cst_13 = arith.constant dense<0.000000e+00> : vector<80x16xf32>
    %29 = tpu.matmul %26, %28, %cst_13 {dimension_numbers = #tpu.dot_dimension_numbers<[1], [0], [0], [1], [0, 0, 1, 1], [], []>} : vector<80x16xbf16>, vector<16x16xbf16>, vector<80x16xf32> -> vector<80x16xf32>
    %30 = arith.addf %24, %29 : vector<80x16xf32>
    %31 = vector.extract_strided_slice %5 {offsets = [11, 0], sizes = [80, 16], strides = [1, 1]} : vector<104x16xf32> to vector<80x16xf32>
    %32 = arith.truncf %31 : vector<80x16xf32> to vector<80x16xbf16>
    %c4 = arith.constant 4 : index
    %c0_14 = arith.constant 0 : index
    %c0_15 = arith.constant 0 : index
    %33 = vector.load %arg4[%c4, %c0_14, %c0_15] : memref<9x16x16xbf16, #tpu.memory_space<vmem>>, vector<1x16x16xbf16>
    %34 = vector.shape_cast %33 : vector<1x16x16xbf16> to vector<16x16xbf16>
    %cst_16 = arith.constant dense<0.000000e+00> : vector<80x16xf32>
    %35 = tpu.matmul %32, %34, %cst_16 {dimension_numbers = #tpu.dot_dimension_numbers<[1], [0], [0], [1], [0, 0, 1, 1], [], []>} : vector<80x16xbf16>, vector<16x16xbf16>, vector<80x16xf32> -> vector<80x16xf32>
    %36 = arith.addf %30, %35 : vector<80x16xf32>
    %37 = vector.extract_strided_slice %5 {offsets = [12, 0], sizes = [80, 16], strides = [1, 1]} : vector<104x16xf32> to vector<80x16xf32>
    %38 = arith.truncf %37 : vector<80x16xf32> to vector<80x16xbf16>
    %c5 = arith.constant 5 : index
    %c0_17 = arith.constant 0 : index
    %c0_18 = arith.constant 0 : index
    %39 = vector.load %arg4[%c5, %c0_17, %c0_18] : memref<9x16x16xbf16, #tpu.memory_space<vmem>>, vector<1x16x16xbf16>
    %40 = vector.shape_cast %39 : vector<1x16x16xbf16> to vector<16x16xbf16>
    %cst_19 = arith.constant dense<0.000000e+00> : vector<80x16xf32>
    %41 = tpu.matmul %38, %40, %cst_19 {dimension_numbers = #tpu.dot_dimension_numbers<[1], [0], [0], [1], [0, 0, 1, 1], [], []>} : vector<80x16xbf16>, vector<16x16xbf16>, vector<80x16xf32> -> vector<80x16xf32>
    %42 = arith.addf %36, %41 : vector<80x16xf32>
    %43 = vector.extract_strided_slice %5 {offsets = [20, 0], sizes = [80, 16], strides = [1, 1]} : vector<104x16xf32> to vector<80x16xf32>
    %44 = arith.truncf %43 : vector<80x16xf32> to vector<80x16xbf16>
    %c6 = arith.constant 6 : index
    %c0_20 = arith.constant 0 : index
    %c0_21 = arith.constant 0 : index
    %45 = vector.load %arg4[%c6, %c0_20, %c0_21] : memref<9x16x16xbf16, #tpu.memory_space<vmem>>, vector<1x16x16xbf16>
    %46 = vector.shape_cast %45 : vector<1x16x16xbf16> to vector<16x16xbf16>
    %cst_22 = arith.constant dense<0.000000e+00> : vector<80x16xf32>
    %47 = tpu.matmul %44, %46, %cst_22 {dimension_numbers = #tpu.dot_dimension_numbers<[1], [0], [0], [1], [0, 0, 1, 1], [], []>} : vector<80x16xbf16>, vector<16x16xbf16>, vector<80x16xf32> -> vector<80x16xf32>
    %48 = arith.addf %42, %47 : vector<80x16xf32>
    %49 = vector.extract_strided_slice %5 {offsets = [21, 0], sizes = [80, 16], strides = [1, 1]} : vector<104x16xf32> to vector<80x16xf32>
    %50 = arith.truncf %49 : vector<80x16xf32> to vector<80x16xbf16>
    %c7 = arith.constant 7 : index
    %c0_23 = arith.constant 0 : index
    %c0_24 = arith.constant 0 : index
    %51 = vector.load %arg4[%c7, %c0_23, %c0_24] : memref<9x16x16xbf16, #tpu.memory_space<vmem>>, vector<1x16x16xbf16>
    %52 = vector.shape_cast %51 : vector<1x16x16xbf16> to vector<16x16xbf16>
    %cst_25 = arith.constant dense<0.000000e+00> : vector<80x16xf32>
    %53 = tpu.matmul %50, %52, %cst_25 {dimension_numbers = #tpu.dot_dimension_numbers<[1], [0], [0], [1], [0, 0, 1, 1], [], []>} : vector<80x16xbf16>, vector<16x16xbf16>, vector<80x16xf32> -> vector<80x16xf32>
    %54 = arith.addf %48, %53 : vector<80x16xf32>
    %55 = vector.extract_strided_slice %5 {offsets = [22, 0], sizes = [80, 16], strides = [1, 1]} : vector<104x16xf32> to vector<80x16xf32>
    %56 = arith.truncf %55 : vector<80x16xf32> to vector<80x16xbf16>
    %c8 = arith.constant 8 : index
    %c0_26 = arith.constant 0 : index
    %c0_27 = arith.constant 0 : index
    %57 = vector.load %arg4[%c8, %c0_26, %c0_27] : memref<9x16x16xbf16, #tpu.memory_space<vmem>>, vector<1x16x16xbf16>
    %58 = vector.shape_cast %57 : vector<1x16x16xbf16> to vector<16x16xbf16>
    %cst_28 = arith.constant dense<0.000000e+00> : vector<80x16xf32>
    %59 = tpu.matmul %56, %58, %cst_28 {dimension_numbers = #tpu.dot_dimension_numbers<[1], [0], [0], [1], [0, 0, 1, 1], [], []>} : vector<80x16xbf16>, vector<16x16xbf16>, vector<80x16xf32> -> vector<80x16xf32>
    %60 = arith.addf %54, %59 : vector<80x16xf32>
    %c0_29 = arith.constant 0 : index
    %c0_30 = arith.constant 0 : index
    %61 = vector.load %arg5[%c0_29, %c0_30] : memref<1x16xf32, #tpu.memory_space<vmem>>, vector<1x16xf32>
    %62 = vector.broadcast %61 : vector<1x16xf32> to vector<80x16xf32>
    %63 = arith.addf %60, %62 : vector<80x16xf32>
    %64 = arith.truncf %63 : vector<80x16xf32> to vector<80x16xbf16>
    %c0_31 = arith.constant 0 : index
    %c0_32 = arith.constant 0 : index
    %c0_33 = arith.constant 0 : index
    %65 = vector.load %arg6[%c0_31, %c0_32, %c0_33] : memref<1x80x16xbf16, #tpu.memory_space<vmem>>, vector<1x80x16xbf16>
    %66 = vector.shape_cast %65 : vector<1x80x16xbf16> to vector<80x16xbf16>
    %67 = vector.shape_cast %64 : vector<80x16xbf16> to vector<1x80x16xbf16>
    tpu.vector_store %arg6[%c0_31, %c0_32, %c0_33], %67 {strides = array<i32>} : memref<1x80x16xbf16, #tpu.memory_space<vmem>>, vector<1x80x16xbf16>,
    return
  }
  func.func @transform_0(%arg0: i32, %arg1: i32, %arg2: i32) -> (i32, i32, i32) {
    %c0_i32 = arith.constant 0 : i32
    %c0_i32_0 = arith.constant 0 : i32
    %c0_i32_1 = arith.constant 0 : i32
    return %arg0, %c0_i32, %c0_i32_0 : i32, i32, i32
  }
  func.func @transform_1(%arg0: i32, %arg1: i32, %arg2: i32) -> (i32, i32, i32) {
    %c0_i32 = arith.constant 0 : i32
    %c0_i32_0 = arith.constant 0 : i32
    %c0_i32_1 = arith.constant 0 : i32
    return %c0_i32, %c0_i32_0, %arg2 : i32, i32, i32
  }
  func.func @transform_2(%arg0: i32, %arg1: i32, %arg2: i32) -> (i32, i32) {
    %c0_i32 = arith.constant 0 : i32
    %c0_i32_0 = arith.constant 0 : i32
    return %c0_i32, %arg2 : i32, i32
  }
  func.func @transform_3(%arg0: i32, %arg1: i32, %arg2: i32) -> (i32, i32, i32) {
    %c0_i32 = arith.constant 0 : i32
    return %arg0, %arg1, %arg2 : i32, i32, i32
  }
}

module attributes {stable_mosaic.version = 11 : i64} {
  func.func @_mm_kernel(%arg0: i32, %arg1: i32, %arg2: i32, %arg3: memref<32x32xbf16, #tpu.memory_space<vmem>>, %arg4: memref<32x16xbf16, #tpu.memory_space<vmem>>, %arg5: memref<1x16xf32, #tpu.memory_space<vmem>>, %arg6: memref<32x16xbf16, #tpu.memory_space<vmem>>, %arg7: memref<32x16xf32, #tpu.memory_space<vmem>>) attributes {dimension_semantics = [#tpu.dimension_semantics<parallel>, #tpu.dimension_semantics<parallel>, #tpu.dimension_semantics<arbitrary>], iteration_bounds = array<i64: 1, 1, 1>, scalar_prefetch = 0 : i64, scratch_operands = 1 : i64, tpu.core_type = #tpu.core_type<tc>, window_params = [{transform_indices = @transform_0, window_bounds = array<i64: 32, 32>}, {transform_indices = @transform_1, window_bounds = array<i64: 32, 16>}, {transform_indices = @transform_2, window_bounds = array<i64: 1, 16>}, {transform_indices = @transform_3, window_bounds = array<i64: 32, 16>}]} {
    %c0_i32 = arith.constant 0 : i32
    %0 = arith.cmpi eq, %arg2, %c0_i32 : i32
    %1 = arith.extui %0 : i1 to i32
    %c0_i32_0 = arith.constant 0 : i32
    %2 = arith.cmpi ne, %1, %c0_i32_0 : i32
    scf.if %2 {
      %cst_10 = arith.constant 0.000000e+00 : f32
      %12 = vector.broadcast %cst_10 : f32 to vector<32x16xf32>
      %c0_11 = arith.constant 0 : index
      %c0_12 = arith.constant 0 : index
      %13 = vector.load %arg7[%c0_11, %c0_12] : memref<32x16xf32, #tpu.memory_space<vmem>>, vector<32x16xf32>
      tpu.vector_store %arg7[%c0_11, %c0_12], %12 {strides = array<i32>} : memref<32x16xf32, #tpu.memory_space<vmem>>, vector<32x16xf32>,
    } else {
    }
    %c0 = arith.constant 0 : index
    %c0_1 = arith.constant 0 : index
    %3 = vector.load %arg7[%c0, %c0_1] : memref<32x16xf32, #tpu.memory_space<vmem>>, vector<32x16xf32>
    %c0_2 = arith.constant 0 : index
    %c0_3 = arith.constant 0 : index
    %4 = vector.load %arg3[%c0_2, %c0_3] : memref<32x32xbf16, #tpu.memory_space<vmem>>, vector<32x32xbf16>
    %c0_4 = arith.constant 0 : index
    %c0_5 = arith.constant 0 : index
    %5 = vector.load %arg4[%c0_4, %c0_5] : memref<32x16xbf16, #tpu.memory_space<vmem>>, vector<32x16xbf16>
    %cst = arith.constant dense<0.000000e+00> : vector<32x16xf32>
    %6 = tpu.matmul %4, %5, %cst {dimension_numbers = #tpu.dot_dimension_numbers<[1], [0], [0], [1], [0, 0, 1, 1], [], []>} : vector<32x32xbf16>, vector<32x16xbf16>, vector<32x16xf32> -> vector<32x16xf32>
    %7 = arith.addf %3, %6 : vector<32x16xf32>
    %c0_6 = arith.constant 0 : index
    %c0_7 = arith.constant 0 : index
    %8 = vector.load %arg7[%c0_6, %c0_7] : memref<32x16xf32, #tpu.memory_space<vmem>>, vector<32x16xf32>
    tpu.vector_store %arg7[%c0_6, %c0_7], %7 {strides = array<i32>} : memref<32x16xf32, #tpu.memory_space<vmem>>, vector<32x16xf32>,
    %c0_i32_8 = arith.constant 0 : i32
    %9 = arith.cmpi eq, %arg2, %c0_i32_8 : i32
    %10 = arith.extui %9 : i1 to i32
    %c0_i32_9 = arith.constant 0 : i32
    %11 = arith.cmpi ne, %10, %c0_i32_9 : i32
    scf.if %11 {
      %c0_10 = arith.constant 0 : index
      %c0_11 = arith.constant 0 : index
      %12 = vector.load %arg7[%c0_10, %c0_11] : memref<32x16xf32, #tpu.memory_space<vmem>>, vector<32x16xf32>
      %c0_12 = arith.constant 0 : index
      %c0_13 = arith.constant 0 : index
      %13 = vector.load %arg5[%c0_12, %c0_13] : memref<1x16xf32, #tpu.memory_space<vmem>>, vector<1x16xf32>
      %14 = vector.broadcast %13 : vector<1x16xf32> to vector<32x16xf32>
      %15 = arith.addf %12, %14 : vector<32x16xf32>
      %16 = arith.truncf %15 : vector<32x16xf32> to vector<32x16xbf16>
      %c0_14 = arith.constant 0 : index
      %c0_15 = arith.constant 0 : index
      %17 = vector.load %arg6[%c0_14, %c0_15] : memref<32x16xbf16, #tpu.memory_space<vmem>>, vector<32x16xbf16>
      tpu.vector_store %arg6[%c0_14, %c0_15], %16 {strides = array<i32>} : memref<32x16xbf16, #tpu.memory_space<vmem>>, vector<32x16xbf16>,
    } else {
    }
    return
  }
  func.func @transform_0(%arg0: i32, %arg1: i32, %arg2: i32) -> (i32, i32) {
    %c0_i32 = arith.constant 0 : i32
    return %arg0, %arg2 : i32, i32
  }
  func.func @transform_1(%arg0: i32, %arg1: i32, %arg2: i32) -> (i32, i32) {
    %c0_i32 = arith.constant 0 : i32
    return %arg2, %arg1 : i32, i32
  }
  func.func @transform_2(%arg0: i32, %arg1: i32, %arg2: i32) -> (i32, i32) {
    %c0_i32 = arith.constant 0 : i32
    %c0_i32_0 = arith.constant 0 : i32
    return %c0_i32, %arg1 : i32, i32
  }
  func.func @transform_3(%arg0: i32, %arg1: i32, %arg2: i32) -> (i32, i32) {
    %c0_i32 = arith.constant 0 : i32
    return %arg0, %arg1 : i32, i32
  }
}

module attributes {stable_mosaic.version = 11 : i64} {
  func.func @_conv3x3_kernel(%arg0: i32, %arg1: i32, %arg2: i32, %arg3: memref<1x328x16xbf16, #tpu.memory_space<vmem>>, %arg4: memref<9x16x8xbf16, #tpu.memory_space<vmem>>, %arg5: memref<1x8xf32, #tpu.memory_space<vmem>>, %arg6: memref<1x144x8xbf16, #tpu.memory_space<vmem>>) attributes {dimension_semantics = [#tpu.dimension_semantics<parallel>, #tpu.dimension_semantics<parallel>, #tpu.dimension_semantics<parallel>], iteration_bounds = array<i64: 2, 2, 1>, scalar_prefetch = 0 : i64, scratch_operands = 0 : i64, tpu.core_type = #tpu.core_type<tc>, window_params = [{transform_indices = @transform_0, window_bounds = array<i64: 1, 328, 16>}, {transform_indices = @transform_1, window_bounds = array<i64: 9, 16, 8>}, {transform_indices = @transform_2, window_bounds = array<i64: 1, 8>}, {transform_indices = @transform_3, window_bounds = array<i64: 1, 144, 8>}]} {
    %c144_i32 = arith.constant 144 : i32
    %0 = arith.muli %arg1, %c144_i32 : i32
    %1 = tpu.assume_multiple %0, 144 : i32
    %c0 = arith.constant 0 : index
    %2 = arith.index_cast %1 : i32 to index
    %c0_0 = arith.constant 0 : index
    %3 = vector.load %arg3[%c0, %2, %c0_0] : memref<1x328x16xbf16, #tpu.memory_space<vmem>>, vector<1x184x16xbf16>
    %4 = vector.shape_cast %3 : vector<1x184x16xbf16> to vector<184x16xbf16>
    %5 = arith.extf %4 : vector<184x16xbf16> to vector<184x16xf32>
    %cst = arith.constant 0.000000e+00 : f32
    %6 = vector.broadcast %cst : f32 to vector<144x8xf32>
    %7 = vector.extract_strided_slice %5 {offsets = [0, 0], sizes = [144, 16], strides = [1, 1]} : vector<184x16xf32> to vector<144x16xf32>
    %8 = arith.truncf %7 : vector<144x16xf32> to vector<144x16xbf16>
    %c0_1 = arith.constant 0 : index
    %c0_2 = arith.constant 0 : index
    %c0_3 = arith.constant 0 : index
    %9 = vector.load %arg4[%c0_1, %c0_2, %c0_3] : memref<9x16x8xbf16, #tpu.memory_space<vmem>>, vector<1x16x8xbf16>
    %10 = vector.shape_cast %9 : vector<1x16x8xbf16> to vector<16x8xbf16>
    %cst_4 = arith.constant dense<0.000000e+00> : vector<144x8xf32>
    %11 = tpu.matmul %8, %10, %cst_4 {dimension_numbers = #tpu.dot_dimension_numbers<[1], [0], [0], [1], [0, 0, 1, 1], [], []>} : vector<144x16xbf16>, vector<16x8xbf16>, vector<144x8xf32> -> vector<144x8xf32>
    %12 = arith.addf %6, %11 : vector<144x8xf32>
    %13 = vector.extract_strided_slice %5 {offsets = [1, 0], sizes = [144, 16], strides = [1, 1]} : vector<184x16xf32> to vector<144x16xf32>
    %14 = arith.truncf %13 : vector<144x16xf32> to vector<144x16xbf16>
    %c1 = arith.constant 1 : index
    %c0_5 = arith.constant 0 : index
    %c0_6 = arith.constant 0 : index
    %15 = vector.load %arg4[%c1, %c0_5, %c0_6] : memref<9x16x8xbf16, #tpu.memory_space<vmem>>, vector<1x16x8xbf16>
    %16 = vector.shape_cast %15 : vector<1x16x8xbf16> to vector<16x8xbf16>
    %cst_7 = arith.constant dense<0.000000e+00> : vector<144x8xf32>
    %17 = tpu.matmul %14, %16, %cst_7 {dimension_numbers = #tpu.dot_dimension_numbers<[1], [0], [0], [1], [0, 0, 1, 1], [], []>} : vector<144x16xbf16>, vector<16x8xbf16>, vector<144x8xf32> -> vector<144x8xf32>
    %18 = arith.addf %12, %17 : vector<144x8xf32>
    %19 = vector.extract_strided_slice %5 {offsets = [2, 0], sizes = [144, 16], strides = [1, 1]} : vector<184x16xf32> to vector<144x16xf32>
    %20 = arith.truncf %19 : vector<144x16xf32> to vector<144x16xbf16>
    %c2 = arith.constant 2 : index
    %c0_8 = arith.constant 0 : index
    %c0_9 = arith.constant 0 : index
    %21 = vector.load %arg4[%c2, %c0_8, %c0_9] : memref<9x16x8xbf16, #tpu.memory_space<vmem>>, vector<1x16x8xbf16>
    %22 = vector.shape_cast %21 : vector<1x16x8xbf16> to vector<16x8xbf16>
    %cst_10 = arith.constant dense<0.000000e+00> : vector<144x8xf32>
    %23 = tpu.matmul %20, %22, %cst_10 {dimension_numbers = #tpu.dot_dimension_numbers<[1], [0], [0], [1], [0, 0, 1, 1], [], []>} : vector<144x16xbf16>, vector<16x8xbf16>, vector<144x8xf32> -> vector<144x8xf32>
    %24 = arith.addf %18, %23 : vector<144x8xf32>
    %25 = vector.extract_strided_slice %5 {offsets = [18, 0], sizes = [144, 16], strides = [1, 1]} : vector<184x16xf32> to vector<144x16xf32>
    %26 = arith.truncf %25 : vector<144x16xf32> to vector<144x16xbf16>
    %c3 = arith.constant 3 : index
    %c0_11 = arith.constant 0 : index
    %c0_12 = arith.constant 0 : index
    %27 = vector.load %arg4[%c3, %c0_11, %c0_12] : memref<9x16x8xbf16, #tpu.memory_space<vmem>>, vector<1x16x8xbf16>
    %28 = vector.shape_cast %27 : vector<1x16x8xbf16> to vector<16x8xbf16>
    %cst_13 = arith.constant dense<0.000000e+00> : vector<144x8xf32>
    %29 = tpu.matmul %26, %28, %cst_13 {dimension_numbers = #tpu.dot_dimension_numbers<[1], [0], [0], [1], [0, 0, 1, 1], [], []>} : vector<144x16xbf16>, vector<16x8xbf16>, vector<144x8xf32> -> vector<144x8xf32>
    %30 = arith.addf %24, %29 : vector<144x8xf32>
    %31 = vector.extract_strided_slice %5 {offsets = [19, 0], sizes = [144, 16], strides = [1, 1]} : vector<184x16xf32> to vector<144x16xf32>
    %32 = arith.truncf %31 : vector<144x16xf32> to vector<144x16xbf16>
    %c4 = arith.constant 4 : index
    %c0_14 = arith.constant 0 : index
    %c0_15 = arith.constant 0 : index
    %33 = vector.load %arg4[%c4, %c0_14, %c0_15] : memref<9x16x8xbf16, #tpu.memory_space<vmem>>, vector<1x16x8xbf16>
    %34 = vector.shape_cast %33 : vector<1x16x8xbf16> to vector<16x8xbf16>
    %cst_16 = arith.constant dense<0.000000e+00> : vector<144x8xf32>
    %35 = tpu.matmul %32, %34, %cst_16 {dimension_numbers = #tpu.dot_dimension_numbers<[1], [0], [0], [1], [0, 0, 1, 1], [], []>} : vector<144x16xbf16>, vector<16x8xbf16>, vector<144x8xf32> -> vector<144x8xf32>
    %36 = arith.addf %30, %35 : vector<144x8xf32>
    %37 = vector.extract_strided_slice %5 {offsets = [20, 0], sizes = [144, 16], strides = [1, 1]} : vector<184x16xf32> to vector<144x16xf32>
    %38 = arith.truncf %37 : vector<144x16xf32> to vector<144x16xbf16>
    %c5 = arith.constant 5 : index
    %c0_17 = arith.constant 0 : index
    %c0_18 = arith.constant 0 : index
    %39 = vector.load %arg4[%c5, %c0_17, %c0_18] : memref<9x16x8xbf16, #tpu.memory_space<vmem>>, vector<1x16x8xbf16>
    %40 = vector.shape_cast %39 : vector<1x16x8xbf16> to vector<16x8xbf16>
    %cst_19 = arith.constant dense<0.000000e+00> : vector<144x8xf32>
    %41 = tpu.matmul %38, %40, %cst_19 {dimension_numbers = #tpu.dot_dimension_numbers<[1], [0], [0], [1], [0, 0, 1, 1], [], []>} : vector<144x16xbf16>, vector<16x8xbf16>, vector<144x8xf32> -> vector<144x8xf32>
    %42 = arith.addf %36, %41 : vector<144x8xf32>
    %43 = vector.extract_strided_slice %5 {offsets = [36, 0], sizes = [144, 16], strides = [1, 1]} : vector<184x16xf32> to vector<144x16xf32>
    %44 = arith.truncf %43 : vector<144x16xf32> to vector<144x16xbf16>
    %c6 = arith.constant 6 : index
    %c0_20 = arith.constant 0 : index
    %c0_21 = arith.constant 0 : index
    %45 = vector.load %arg4[%c6, %c0_20, %c0_21] : memref<9x16x8xbf16, #tpu.memory_space<vmem>>, vector<1x16x8xbf16>
    %46 = vector.shape_cast %45 : vector<1x16x8xbf16> to vector<16x8xbf16>
    %cst_22 = arith.constant dense<0.000000e+00> : vector<144x8xf32>
    %47 = tpu.matmul %44, %46, %cst_22 {dimension_numbers = #tpu.dot_dimension_numbers<[1], [0], [0], [1], [0, 0, 1, 1], [], []>} : vector<144x16xbf16>, vector<16x8xbf16>, vector<144x8xf32> -> vector<144x8xf32>
    %48 = arith.addf %42, %47 : vector<144x8xf32>
    %49 = vector.extract_strided_slice %5 {offsets = [37, 0], sizes = [144, 16], strides = [1, 1]} : vector<184x16xf32> to vector<144x16xf32>
    %50 = arith.truncf %49 : vector<144x16xf32> to vector<144x16xbf16>
    %c7 = arith.constant 7 : index
    %c0_23 = arith.constant 0 : index
    %c0_24 = arith.constant 0 : index
    %51 = vector.load %arg4[%c7, %c0_23, %c0_24] : memref<9x16x8xbf16, #tpu.memory_space<vmem>>, vector<1x16x8xbf16>
    %52 = vector.shape_cast %51 : vector<1x16x8xbf16> to vector<16x8xbf16>
    %cst_25 = arith.constant dense<0.000000e+00> : vector<144x8xf32>
    %53 = tpu.matmul %50, %52, %cst_25 {dimension_numbers = #tpu.dot_dimension_numbers<[1], [0], [0], [1], [0, 0, 1, 1], [], []>} : vector<144x16xbf16>, vector<16x8xbf16>, vector<144x8xf32> -> vector<144x8xf32>
    %54 = arith.addf %48, %53 : vector<144x8xf32>
    %55 = vector.extract_strided_slice %5 {offsets = [38, 0], sizes = [144, 16], strides = [1, 1]} : vector<184x16xf32> to vector<144x16xf32>
    %56 = arith.truncf %55 : vector<144x16xf32> to vector<144x16xbf16>
    %c8 = arith.constant 8 : index
    %c0_26 = arith.constant 0 : index
    %c0_27 = arith.constant 0 : index
    %57 = vector.load %arg4[%c8, %c0_26, %c0_27] : memref<9x16x8xbf16, #tpu.memory_space<vmem>>, vector<1x16x8xbf16>
    %58 = vector.shape_cast %57 : vector<1x16x8xbf16> to vector<16x8xbf16>
    %cst_28 = arith.constant dense<0.000000e+00> : vector<144x8xf32>
    %59 = tpu.matmul %56, %58, %cst_28 {dimension_numbers = #tpu.dot_dimension_numbers<[1], [0], [0], [1], [0, 0, 1, 1], [], []>} : vector<144x16xbf16>, vector<16x8xbf16>, vector<144x8xf32> -> vector<144x8xf32>
    %60 = arith.addf %54, %59 : vector<144x8xf32>
    %c0_29 = arith.constant 0 : index
    %c0_30 = arith.constant 0 : index
    %61 = vector.load %arg5[%c0_29, %c0_30] : memref<1x8xf32, #tpu.memory_space<vmem>>, vector<1x8xf32>
    %62 = vector.broadcast %61 : vector<1x8xf32> to vector<144x8xf32>
    %63 = arith.addf %60, %62 : vector<144x8xf32>
    %64 = arith.truncf %63 : vector<144x8xf32> to vector<144x8xbf16>
    %c0_31 = arith.constant 0 : index
    %c0_32 = arith.constant 0 : index
    %c0_33 = arith.constant 0 : index
    %65 = vector.load %arg6[%c0_31, %c0_32, %c0_33] : memref<1x144x8xbf16, #tpu.memory_space<vmem>>, vector<1x144x8xbf16>
    %66 = vector.shape_cast %65 : vector<1x144x8xbf16> to vector<144x8xbf16>
    %67 = vector.shape_cast %64 : vector<144x8xbf16> to vector<1x144x8xbf16>
    tpu.vector_store %arg6[%c0_31, %c0_32, %c0_33], %67 {strides = array<i32>} : memref<1x144x8xbf16, #tpu.memory_space<vmem>>, vector<1x144x8xbf16>,
    return
  }
  func.func @transform_0(%arg0: i32, %arg1: i32, %arg2: i32) -> (i32, i32, i32) {
    %c0_i32 = arith.constant 0 : i32
    %c0_i32_0 = arith.constant 0 : i32
    %c0_i32_1 = arith.constant 0 : i32
    return %arg0, %c0_i32, %c0_i32_0 : i32, i32, i32
  }
  func.func @transform_1(%arg0: i32, %arg1: i32, %arg2: i32) -> (i32, i32, i32) {
    %c0_i32 = arith.constant 0 : i32
    %c0_i32_0 = arith.constant 0 : i32
    %c0_i32_1 = arith.constant 0 : i32
    return %c0_i32, %c0_i32_0, %arg2 : i32, i32, i32
  }
  func.func @transform_2(%arg0: i32, %arg1: i32, %arg2: i32) -> (i32, i32) {
    %c0_i32 = arith.constant 0 : i32
    %c0_i32_0 = arith.constant 0 : i32
    return %c0_i32, %arg2 : i32, i32
  }
  func.func @transform_3(%arg0: i32, %arg1: i32, %arg2: i32) -> (i32, i32, i32) {
    %c0_i32 = arith.constant 0 : i32
    return %arg0, %arg1, %arg2 : i32, i32, i32
  }
}

module attributes {stable_mosaic.version = 11 : i64} {
  func.func @_mm_kernel(%arg0: i32, %arg1: i32, %arg2: i32, %arg3: memref<16x16xbf16, #tpu.memory_space<vmem>>, %arg4: memref<16x8xbf16, #tpu.memory_space<vmem>>, %arg5: memref<1x8xf32, #tpu.memory_space<vmem>>, %arg6: memref<16x8xf32, #tpu.memory_space<vmem>>, %arg7: memref<16x8xf32, #tpu.memory_space<vmem>>) attributes {dimension_semantics = [#tpu.dimension_semantics<parallel>, #tpu.dimension_semantics<parallel>, #tpu.dimension_semantics<arbitrary>], iteration_bounds = array<i64: 1, 1, 1>, scalar_prefetch = 0 : i64, scratch_operands = 1 : i64, tpu.core_type = #tpu.core_type<tc>, window_params = [{transform_indices = @transform_0, window_bounds = array<i64: 16, 16>}, {transform_indices = @transform_1, window_bounds = array<i64: 16, 8>}, {transform_indices = @transform_2, window_bounds = array<i64: 1, 8>}, {transform_indices = @transform_3, window_bounds = array<i64: 16, 8>}]} {
    %c0_i32 = arith.constant 0 : i32
    %0 = arith.cmpi eq, %arg2, %c0_i32 : i32
    %1 = arith.extui %0 : i1 to i32
    %c0_i32_0 = arith.constant 0 : i32
    %2 = arith.cmpi ne, %1, %c0_i32_0 : i32
    scf.if %2 {
      %cst_10 = arith.constant 0.000000e+00 : f32
      %12 = vector.broadcast %cst_10 : f32 to vector<16x8xf32>
      %c0_11 = arith.constant 0 : index
      %c0_12 = arith.constant 0 : index
      %13 = vector.load %arg7[%c0_11, %c0_12] : memref<16x8xf32, #tpu.memory_space<vmem>>, vector<16x8xf32>
      tpu.vector_store %arg7[%c0_11, %c0_12], %12 {strides = array<i32>} : memref<16x8xf32, #tpu.memory_space<vmem>>, vector<16x8xf32>,
    } else {
    }
    %c0 = arith.constant 0 : index
    %c0_1 = arith.constant 0 : index
    %3 = vector.load %arg7[%c0, %c0_1] : memref<16x8xf32, #tpu.memory_space<vmem>>, vector<16x8xf32>
    %c0_2 = arith.constant 0 : index
    %c0_3 = arith.constant 0 : index
    %4 = vector.load %arg3[%c0_2, %c0_3] : memref<16x16xbf16, #tpu.memory_space<vmem>>, vector<16x16xbf16>
    %c0_4 = arith.constant 0 : index
    %c0_5 = arith.constant 0 : index
    %5 = vector.load %arg4[%c0_4, %c0_5] : memref<16x8xbf16, #tpu.memory_space<vmem>>, vector<16x8xbf16>
    %cst = arith.constant dense<0.000000e+00> : vector<16x8xf32>
    %6 = tpu.matmul %4, %5, %cst {dimension_numbers = #tpu.dot_dimension_numbers<[1], [0], [0], [1], [0, 0, 1, 1], [], []>} : vector<16x16xbf16>, vector<16x8xbf16>, vector<16x8xf32> -> vector<16x8xf32>
    %7 = arith.addf %3, %6 : vector<16x8xf32>
    %c0_6 = arith.constant 0 : index
    %c0_7 = arith.constant 0 : index
    %8 = vector.load %arg7[%c0_6, %c0_7] : memref<16x8xf32, #tpu.memory_space<vmem>>, vector<16x8xf32>
    tpu.vector_store %arg7[%c0_6, %c0_7], %7 {strides = array<i32>} : memref<16x8xf32, #tpu.memory_space<vmem>>, vector<16x8xf32>,
    %c0_i32_8 = arith.constant 0 : i32
    %9 = arith.cmpi eq, %arg2, %c0_i32_8 : i32
    %10 = arith.extui %9 : i1 to i32
    %c0_i32_9 = arith.constant 0 : i32
    %11 = arith.cmpi ne, %10, %c0_i32_9 : i32
    scf.if %11 {
      %c0_10 = arith.constant 0 : index
      %c0_11 = arith.constant 0 : index
      %12 = vector.load %arg7[%c0_10, %c0_11] : memref<16x8xf32, #tpu.memory_space<vmem>>, vector<16x8xf32>
      %c0_12 = arith.constant 0 : index
      %c0_13 = arith.constant 0 : index
      %13 = vector.load %arg5[%c0_12, %c0_13] : memref<1x8xf32, #tpu.memory_space<vmem>>, vector<1x8xf32>
      %14 = vector.broadcast %13 : vector<1x8xf32> to vector<16x8xf32>
      %15 = arith.addf %12, %14 : vector<16x8xf32>
      %c0_14 = arith.constant 0 : index
      %c0_15 = arith.constant 0 : index
      %16 = vector.load %arg6[%c0_14, %c0_15] : memref<16x8xf32, #tpu.memory_space<vmem>>, vector<16x8xf32>
      tpu.vector_store %arg6[%c0_14, %c0_15], %15 {strides = array<i32>} : memref<16x8xf32, #tpu.memory_space<vmem>>, vector<16x8xf32>,
    } else {
    }
    return
  }
  func.func @transform_0(%arg0: i32, %arg1: i32, %arg2: i32) -> (i32, i32) {
    %c0_i32 = arith.constant 0 : i32
    return %arg0, %arg2 : i32, i32
  }
  func.func @transform_1(%arg0: i32, %arg1: i32, %arg2: i32) -> (i32, i32) {
    %c0_i32 = arith.constant 0 : i32
    return %arg2, %arg1 : i32, i32
  }
  func.func @transform_2(%arg0: i32, %arg1: i32, %arg2: i32) -> (i32, i32) {
    %c0_i32 = arith.constant 0 : i32
    %c0_i32_0 = arith.constant 0 : i32
    return %c0_i32, %arg1 : i32, i32
  }
  func.func @transform_3(%arg0: i32, %arg1: i32, %arg2: i32) -> (i32, i32) {
    %c0_i32 = arith.constant 0 : i32
    return %arg0, %arg1 : i32, i32
  }
}

module attributes {stable_mosaic.version = 11 : i64} {
  func.func @_bn_stats_kernel(%arg0: i32, %arg1: memref<512x8xbf16, #tpu.memory_space<vmem>>, %arg2: memref<1x8xf32, #tpu.memory_space<vmem>>, %arg3: memref<1x8xf32, #tpu.memory_space<vmem>>) attributes {dimension_semantics = [#tpu.dimension_semantics<arbitrary>], iteration_bounds = array<i64: 1>, scalar_prefetch = 0 : i64, scratch_operands = 0 : i64, tpu.core_type = #tpu.core_type<tc>, window_params = [{transform_indices = @transform_0, window_bounds = array<i64: 512, 8>}, {pipeline_mode = #tpu.pipeline_mode<synchronous>, transform_indices = @transform_1, window_bounds = array<i64: 1, 8>}, {pipeline_mode = #tpu.pipeline_mode<synchronous>, transform_indices = @transform_2, window_bounds = array<i64: 1, 8>}]} {
    %c0_i32 = arith.constant 0 : i32
    %0 = arith.cmpi eq, %arg0, %c0_i32 : i32
    %1 = arith.extui %0 : i1 to i32
    %c0_i32_0 = arith.constant 0 : i32
    %2 = arith.cmpi ne, %1, %c0_i32_0 : i32
    scf.if %2 {
      %cst_13 = arith.constant 0.000000e+00 : f32
      %19 = vector.broadcast %cst_13 : f32 to vector<1x8xf32>
      %c0_14 = arith.constant 0 : index
      %c0_15 = arith.constant 0 : index
      %20 = vector.load %arg2[%c0_14, %c0_15] : memref<1x8xf32, #tpu.memory_space<vmem>>, vector<1x8xf32>
      tpu.vector_store %arg2[%c0_14, %c0_15], %19 {strides = array<i32>} : memref<1x8xf32, #tpu.memory_space<vmem>>, vector<1x8xf32>,
      %cst_16 = arith.constant 0.000000e+00 : f32
      %21 = vector.broadcast %cst_16 : f32 to vector<1x8xf32>
      %c0_17 = arith.constant 0 : index
      %c0_18 = arith.constant 0 : index
      %22 = vector.load %arg3[%c0_17, %c0_18] : memref<1x8xf32, #tpu.memory_space<vmem>>, vector<1x8xf32>
      tpu.vector_store %arg3[%c0_17, %c0_18], %21 {strides = array<i32>} : memref<1x8xf32, #tpu.memory_space<vmem>>, vector<1x8xf32>,
    } else {
    }
    %c0 = arith.constant 0 : index
    %c0_1 = arith.constant 0 : index
    %3 = vector.load %arg1[%c0, %c0_1] : memref<512x8xbf16, #tpu.memory_space<vmem>>, vector<512x8xbf16>
    %4 = arith.extf %3 : vector<512x8xbf16> to vector<512x8xf32>
    %c0_2 = arith.constant 0 : index
    %c0_3 = arith.constant 0 : index
    %5 = vector.load %arg2[%c0_2, %c0_3] : memref<1x8xf32, #tpu.memory_space<vmem>>, vector<1x8xf32>
    %cst = arith.constant dense<0.000000e+00> : vector<8xf32>
    %6 = vector.multi_reduction <add>, %4, %cst [0] : vector<512x8xf32> to vector<8xf32>
    %7 = vector.shape_cast %6 : vector<8xf32> to vector<1x8xf32>
    %8 = arith.addf %5, %7 : vector<1x8xf32>
    %c0_4 = arith.constant 0 : index
    %c0_5 = arith.constant 0 : index
    %9 = vector.load %arg2[%c0_4, %c0_5] : memref<1x8xf32, #tpu.memory_space<vmem>>, vector<1x8xf32>
    tpu.vector_store %arg2[%c0_4, %c0_5], %8 {strides = array<i32>} : memref<1x8xf32, #tpu.memory_space<vmem>>, vector<1x8xf32>,
    %c0_6 = arith.constant 0 : index
    %c0_7 = arith.constant 0 : index
    %10 = vector.load %arg3[%c0_6, %c0_7] : memref<1x8xf32, #tpu.memory_space<vmem>>, vector<1x8xf32>
    %11 = arith.mulf %4, %4 : vector<512x8xf32>
    %cst_8 = arith.constant dense<0.000000e+00> : vector<8xf32>
    %12 = vector.multi_reduction <add>, %11, %cst_8 [0] : vector<512x8xf32> to vector<8xf32>
    %13 = vector.shape_cast %12 : vector<8xf32> to vector<1x8xf32>
    %14 = arith.addf %10, %13 : vector<1x8xf32>
    %c0_9 = arith.constant 0 : index
    %c0_10 = arith.constant 0 : index
    %15 = vector.load %arg3[%c0_9, %c0_10] : memref<1x8xf32, #tpu.memory_space<vmem>>, vector<1x8xf32>
    tpu.vector_store %arg3[%c0_9, %c0_10], %14 {strides = array<i32>} : memref<1x8xf32, #tpu.memory_space<vmem>>, vector<1x8xf32>,
    %c0_i32_11 = arith.constant 0 : i32
    %16 = arith.cmpi eq, %arg0, %c0_i32_11 : i32
    %17 = arith.extui %16 : i1 to i32
    %c0_i32_12 = arith.constant 0 : i32
    %18 = arith.cmpi ne, %17, %c0_i32_12 : i32
    scf.if %18 {
      %c0_13 = arith.constant 0 : index
      %c0_14 = arith.constant 0 : index
      %19 = vector.load %arg2[%c0_13, %c0_14] : memref<1x8xf32, #tpu.memory_space<vmem>>, vector<1x8xf32>
      %cst_15 = arith.constant 0.001953125 : f32
      %20 = vector.broadcast %cst_15 : f32 to vector<1x8xf32>
      %21 = arith.mulf %19, %20 : vector<1x8xf32>
      %c0_16 = arith.constant 0 : index
      %c0_17 = arith.constant 0 : index
      %22 = vector.load %arg3[%c0_16, %c0_17] : memref<1x8xf32, #tpu.memory_space<vmem>>, vector<1x8xf32>
      %cst_18 = arith.constant 0.001953125 : f32
      %23 = vector.broadcast %cst_18 : f32 to vector<1x8xf32>
      %24 = arith.mulf %22, %23 : vector<1x8xf32>
      %25 = arith.mulf %21, %21 : vector<1x8xf32>
      %26 = arith.subf %24, %25 : vector<1x8xf32>
      %c0_19 = arith.constant 0 : index
      %c0_20 = arith.constant 0 : index
      %27 = vector.load %arg2[%c0_19, %c0_20] : memref<1x8xf32, #tpu.memory_space<vmem>>, vector<1x8xf32>
      tpu.vector_store %arg2[%c0_19, %c0_20], %21 {strides = array<i32>} : memref<1x8xf32, #tpu.memory_space<vmem>>, vector<1x8xf32>,
      %cst_21 = arith.constant 0.000000e+00 : f32
      %28 = vector.broadcast %cst_21 : f32 to vector<1x8xf32>
      %29 = arith.maximumf %26, %28 : vector<1x8xf32>
      %c0_22 = arith.constant 0 : index
      %c0_23 = arith.constant 0 : index
      %30 = vector.load %arg3[%c0_22, %c0_23] : memref<1x8xf32, #tpu.memory_space<vmem>>, vector<1x8xf32>
      tpu.vector_store %arg3[%c0_22, %c0_23], %29 {strides = array<i32>} : memref<1x8xf32, #tpu.memory_space<vmem>>, vector<1x8xf32>,
    } else {
    }
    return
  }
  func.func @transform_0(%arg0: i32) -> (i32, i32) {
    %c0_i32 = arith.constant 0 : i32
    %c0_i32_0 = arith.constant 0 : i32
    return %arg0, %c0_i32 : i32, i32
  }
  func.func @transform_1(%arg0: i32) -> (i32, i32) {
    %c0_i32 = arith.constant 0 : i32
    %c0_i32_0 = arith.constant 0 : i32
    %c0_i32_1 = arith.constant 0 : i32
    return %c0_i32, %c0_i32_0 : i32, i32
  }
  func.func @transform_2(%arg0: i32) -> (i32, i32) {
    %c0_i32 = arith.constant 0 : i32
    %c0_i32_0 = arith.constant 0 : i32
    %c0_i32_1 = arith.constant 0 : i32
    return %c0_i32, %c0_i32_0 : i32, i32
  }
}

module attributes {stable_mosaic.version = 11 : i64} {
  func.func @_ccbn_apply_kernel(%arg0: i32, %arg1: i32, %arg2: memref<1x256x8xbf16, #tpu.memory_space<vmem>>, %arg3: memref<1x1x8xf32, #tpu.memory_space<vmem>>, %arg4: memref<1x1x8xf32, #tpu.memory_space<vmem>>, %arg5: memref<1x256x8xbf16, #tpu.memory_space<vmem>>) attributes {dimension_semantics = [#tpu.dimension_semantics<parallel>, #tpu.dimension_semantics<parallel>], iteration_bounds = array<i64: 2, 1>, scalar_prefetch = 0 : i64, scratch_operands = 0 : i64, tpu.core_type = #tpu.core_type<tc>, window_params = [{transform_indices = @transform_0, window_bounds = array<i64: 1, 256, 8>}, {transform_indices = @transform_1, window_bounds = array<i64: 1, 1, 8>}, {transform_indices = @transform_2, window_bounds = array<i64: 1, 1, 8>}, {transform_indices = @transform_3, window_bounds = array<i64: 1, 256, 8>}]} {
    %c0 = arith.constant 0 : index
    %c0_0 = arith.constant 0 : index
    %c0_1 = arith.constant 0 : index
    %0 = vector.load %arg2[%c0, %c0_0, %c0_1] : memref<1x256x8xbf16, #tpu.memory_space<vmem>>, vector<1x256x8xbf16>
    %1 = vector.shape_cast %0 : vector<1x256x8xbf16> to vector<256x8xbf16>
    %2 = arith.extf %1 : vector<256x8xbf16> to vector<256x8xf32>
    %c0_2 = arith.constant 0 : index
    %c0_3 = arith.constant 0 : index
    %c0_4 = arith.constant 0 : index
    %3 = vector.load %arg3[%c0_2, %c0_3, %c0_4] : memref<1x1x8xf32, #tpu.memory_space<vmem>>, vector<1x1x8xf32>
    %4 = vector.shape_cast %3 : vector<1x1x8xf32> to vector<1x8xf32>
    %5 = vector.broadcast %4 : vector<1x8xf32> to vector<256x8xf32>
    %6 = arith.mulf %2, %5 : vector<256x8xf32>
    %c0_5 = arith.constant 0 : index
    %c0_6 = arith.constant 0 : index
    %c0_7 = arith.constant 0 : index
    %7 = vector.load %arg4[%c0_5, %c0_6, %c0_7] : memref<1x1x8xf32, #tpu.memory_space<vmem>>, vector<1x1x8xf32>
    %8 = vector.shape_cast %7 : vector<1x1x8xf32> to vector<1x8xf32>
    %9 = vector.broadcast %8 : vector<1x8xf32> to vector<256x8xf32>
    %10 = arith.addf %6, %9 : vector<256x8xf32>
    %cst = arith.constant 0.000000e+00 : f32
    %11 = vector.broadcast %cst : f32 to vector<256x8xf32>
    %12 = arith.maximumf %10, %11 : vector<256x8xf32>
    %13 = arith.truncf %12 : vector<256x8xf32> to vector<256x8xbf16>
    %c0_8 = arith.constant 0 : index
    %c0_9 = arith.constant 0 : index
    %c0_10 = arith.constant 0 : index
    %14 = vector.load %arg5[%c0_8, %c0_9, %c0_10] : memref<1x256x8xbf16, #tpu.memory_space<vmem>>, vector<1x256x8xbf16>
    %15 = vector.shape_cast %14 : vector<1x256x8xbf16> to vector<256x8xbf16>
    %16 = vector.shape_cast %13 : vector<256x8xbf16> to vector<1x256x8xbf16>
    tpu.vector_store %arg5[%c0_8, %c0_9, %c0_10], %16 {strides = array<i32>} : memref<1x256x8xbf16, #tpu.memory_space<vmem>>, vector<1x256x8xbf16>,
    return
  }
  func.func @transform_0(%arg0: i32, %arg1: i32) -> (i32, i32, i32) {
    %c0_i32 = arith.constant 0 : i32
    %c0_i32_0 = arith.constant 0 : i32
    return %arg0, %arg1, %c0_i32 : i32, i32, i32
  }
  func.func @transform_1(%arg0: i32, %arg1: i32) -> (i32, i32, i32) {
    %c0_i32 = arith.constant 0 : i32
    %c0_i32_0 = arith.constant 0 : i32
    %c0_i32_1 = arith.constant 0 : i32
    return %arg0, %c0_i32, %c0_i32_0 : i32, i32, i32
  }
  func.func @transform_2(%arg0: i32, %arg1: i32) -> (i32, i32, i32) {
    %c0_i32 = arith.constant 0 : i32
    %c0_i32_0 = arith.constant 0 : i32
    %c0_i32_1 = arith.constant 0 : i32
    return %arg0, %c0_i32, %c0_i32_0 : i32, i32, i32
  }
  func.func @transform_3(%arg0: i32, %arg1: i32) -> (i32, i32, i32) {
    %c0_i32 = arith.constant 0 : i32
    %c0_i32_0 = arith.constant 0 : i32
    return %arg0, %arg1, %c0_i32 : i32, i32, i32
  }
}

module attributes {stable_mosaic.version = 11 : i64} {
  func.func @_mm_kernel(%arg0: i32, %arg1: i32, %arg2: i32, %arg3: memref<128x16xbf16, #tpu.memory_space<vmem>>, %arg4: memref<16x8xbf16, #tpu.memory_space<vmem>>, %arg5: memref<1x8xf32, #tpu.memory_space<vmem>>, %arg6: memref<128x8xbf16, #tpu.memory_space<vmem>>, %arg7: memref<128x8xf32, #tpu.memory_space<vmem>>) attributes {dimension_semantics = [#tpu.dimension_semantics<parallel>, #tpu.dimension_semantics<parallel>, #tpu.dimension_semantics<arbitrary>], iteration_bounds = array<i64: 1, 1, 1>, scalar_prefetch = 0 : i64, scratch_operands = 1 : i64, tpu.core_type = #tpu.core_type<tc>, window_params = [{transform_indices = @transform_0, window_bounds = array<i64: 128, 16>}, {transform_indices = @transform_1, window_bounds = array<i64: 16, 8>}, {transform_indices = @transform_2, window_bounds = array<i64: 1, 8>}, {transform_indices = @transform_3, window_bounds = array<i64: 128, 8>}]} {
    %c0_i32 = arith.constant 0 : i32
    %0 = arith.cmpi eq, %arg2, %c0_i32 : i32
    %1 = arith.extui %0 : i1 to i32
    %c0_i32_0 = arith.constant 0 : i32
    %2 = arith.cmpi ne, %1, %c0_i32_0 : i32
    scf.if %2 {
      %cst_10 = arith.constant 0.000000e+00 : f32
      %12 = vector.broadcast %cst_10 : f32 to vector<128x8xf32>
      %c0_11 = arith.constant 0 : index
      %c0_12 = arith.constant 0 : index
      %13 = vector.load %arg7[%c0_11, %c0_12] : memref<128x8xf32, #tpu.memory_space<vmem>>, vector<128x8xf32>
      tpu.vector_store %arg7[%c0_11, %c0_12], %12 {strides = array<i32>} : memref<128x8xf32, #tpu.memory_space<vmem>>, vector<128x8xf32>,
    } else {
    }
    %c0 = arith.constant 0 : index
    %c0_1 = arith.constant 0 : index
    %3 = vector.load %arg7[%c0, %c0_1] : memref<128x8xf32, #tpu.memory_space<vmem>>, vector<128x8xf32>
    %c0_2 = arith.constant 0 : index
    %c0_3 = arith.constant 0 : index
    %4 = vector.load %arg3[%c0_2, %c0_3] : memref<128x16xbf16, #tpu.memory_space<vmem>>, vector<128x16xbf16>
    %c0_4 = arith.constant 0 : index
    %c0_5 = arith.constant 0 : index
    %5 = vector.load %arg4[%c0_4, %c0_5] : memref<16x8xbf16, #tpu.memory_space<vmem>>, vector<16x8xbf16>
    %cst = arith.constant dense<0.000000e+00> : vector<128x8xf32>
    %6 = tpu.matmul %4, %5, %cst {dimension_numbers = #tpu.dot_dimension_numbers<[1], [0], [0], [1], [0, 0, 1, 1], [], []>} : vector<128x16xbf16>, vector<16x8xbf16>, vector<128x8xf32> -> vector<128x8xf32>
    %7 = arith.addf %3, %6 : vector<128x8xf32>
    %c0_6 = arith.constant 0 : index
    %c0_7 = arith.constant 0 : index
    %8 = vector.load %arg7[%c0_6, %c0_7] : memref<128x8xf32, #tpu.memory_space<vmem>>, vector<128x8xf32>
    tpu.vector_store %arg7[%c0_6, %c0_7], %7 {strides = array<i32>} : memref<128x8xf32, #tpu.memory_space<vmem>>, vector<128x8xf32>,
    %c0_i32_8 = arith.constant 0 : i32
    %9 = arith.cmpi eq, %arg2, %c0_i32_8 : i32
    %10 = arith.extui %9 : i1 to i32
    %c0_i32_9 = arith.constant 0 : i32
    %11 = arith.cmpi ne, %10, %c0_i32_9 : i32
    scf.if %11 {
      %c0_10 = arith.constant 0 : index
      %c0_11 = arith.constant 0 : index
      %12 = vector.load %arg7[%c0_10, %c0_11] : memref<128x8xf32, #tpu.memory_space<vmem>>, vector<128x8xf32>
      %c0_12 = arith.constant 0 : index
      %c0_13 = arith.constant 0 : index
      %13 = vector.load %arg5[%c0_12, %c0_13] : memref<1x8xf32, #tpu.memory_space<vmem>>, vector<1x8xf32>
      %14 = vector.broadcast %13 : vector<1x8xf32> to vector<128x8xf32>
      %15 = arith.addf %12, %14 : vector<128x8xf32>
      %16 = arith.truncf %15 : vector<128x8xf32> to vector<128x8xbf16>
      %c0_14 = arith.constant 0 : index
      %c0_15 = arith.constant 0 : index
      %17 = vector.load %arg6[%c0_14, %c0_15] : memref<128x8xbf16, #tpu.memory_space<vmem>>, vector<128x8xbf16>
      tpu.vector_store %arg6[%c0_14, %c0_15], %16 {strides = array<i32>} : memref<128x8xbf16, #tpu.memory_space<vmem>>, vector<128x8xbf16>,
    } else {
    }
    return
  }
  func.func @transform_0(%arg0: i32, %arg1: i32, %arg2: i32) -> (i32, i32) {
    %c0_i32 = arith.constant 0 : i32
    return %arg0, %arg2 : i32, i32
  }
  func.func @transform_1(%arg0: i32, %arg1: i32, %arg2: i32) -> (i32, i32) {
    %c0_i32 = arith.constant 0 : i32
    return %arg2, %arg1 : i32, i32
  }
  func.func @transform_2(%arg0: i32, %arg1: i32, %arg2: i32) -> (i32, i32) {
    %c0_i32 = arith.constant 0 : i32
    %c0_i32_0 = arith.constant 0 : i32
    return %c0_i32, %arg1 : i32, i32
  }
  func.func @transform_3(%arg0: i32, %arg1: i32, %arg2: i32) -> (i32, i32) {
    %c0_i32 = arith.constant 0 : i32
    return %arg0, %arg1 : i32, i32
  }
}

module attributes {stable_mosaic.version = 11 : i64} {
  func.func @_conv3x3_kernel(%arg0: i32, %arg1: i32, %arg2: i32, %arg3: memref<1x328x8xbf16, #tpu.memory_space<vmem>>, %arg4: memref<9x8x8xbf16, #tpu.memory_space<vmem>>, %arg5: memref<1x8xf32, #tpu.memory_space<vmem>>, %arg6: memref<1x144x8xbf16, #tpu.memory_space<vmem>>) attributes {dimension_semantics = [#tpu.dimension_semantics<parallel>, #tpu.dimension_semantics<parallel>, #tpu.dimension_semantics<parallel>], iteration_bounds = array<i64: 2, 2, 1>, scalar_prefetch = 0 : i64, scratch_operands = 0 : i64, tpu.core_type = #tpu.core_type<tc>, window_params = [{transform_indices = @transform_0, window_bounds = array<i64: 1, 328, 8>}, {transform_indices = @transform_1, window_bounds = array<i64: 9, 8, 8>}, {transform_indices = @transform_2, window_bounds = array<i64: 1, 8>}, {transform_indices = @transform_3, window_bounds = array<i64: 1, 144, 8>}]} {
    %c144_i32 = arith.constant 144 : i32
    %0 = arith.muli %arg1, %c144_i32 : i32
    %1 = tpu.assume_multiple %0, 144 : i32
    %c0 = arith.constant 0 : index
    %2 = arith.index_cast %1 : i32 to index
    %c0_0 = arith.constant 0 : index
    %3 = vector.load %arg3[%c0, %2, %c0_0] : memref<1x328x8xbf16, #tpu.memory_space<vmem>>, vector<1x184x8xbf16>
    %4 = vector.shape_cast %3 : vector<1x184x8xbf16> to vector<184x8xbf16>
    %5 = arith.extf %4 : vector<184x8xbf16> to vector<184x8xf32>
    %cst = arith.constant 0.000000e+00 : f32
    %6 = vector.broadcast %cst : f32 to vector<144x8xf32>
    %7 = vector.extract_strided_slice %5 {offsets = [0, 0], sizes = [144, 8], strides = [1, 1]} : vector<184x8xf32> to vector<144x8xf32>
    %8 = arith.truncf %7 : vector<144x8xf32> to vector<144x8xbf16>
    %c0_1 = arith.constant 0 : index
    %c0_2 = arith.constant 0 : index
    %c0_3 = arith.constant 0 : index
    %9 = vector.load %arg4[%c0_1, %c0_2, %c0_3] : memref<9x8x8xbf16, #tpu.memory_space<vmem>>, vector<1x8x8xbf16>
    %10 = vector.shape_cast %9 : vector<1x8x8xbf16> to vector<8x8xbf16>
    %cst_4 = arith.constant dense<0.000000e+00> : vector<144x8xf32>
    %11 = tpu.matmul %8, %10, %cst_4 {dimension_numbers = #tpu.dot_dimension_numbers<[1], [0], [0], [1], [0, 0, 1, 1], [], []>} : vector<144x8xbf16>, vector<8x8xbf16>, vector<144x8xf32> -> vector<144x8xf32>
    %12 = arith.addf %6, %11 : vector<144x8xf32>
    %13 = vector.extract_strided_slice %5 {offsets = [1, 0], sizes = [144, 8], strides = [1, 1]} : vector<184x8xf32> to vector<144x8xf32>
    %14 = arith.truncf %13 : vector<144x8xf32> to vector<144x8xbf16>
    %c1 = arith.constant 1 : index
    %c0_5 = arith.constant 0 : index
    %c0_6 = arith.constant 0 : index
    %15 = vector.load %arg4[%c1, %c0_5, %c0_6] : memref<9x8x8xbf16, #tpu.memory_space<vmem>>, vector<1x8x8xbf16>
    %16 = vector.shape_cast %15 : vector<1x8x8xbf16> to vector<8x8xbf16>
    %cst_7 = arith.constant dense<0.000000e+00> : vector<144x8xf32>
    %17 = tpu.matmul %14, %16, %cst_7 {dimension_numbers = #tpu.dot_dimension_numbers<[1], [0], [0], [1], [0, 0, 1, 1], [], []>} : vector<144x8xbf16>, vector<8x8xbf16>, vector<144x8xf32> -> vector<144x8xf32>
    %18 = arith.addf %12, %17 : vector<144x8xf32>
    %19 = vector.extract_strided_slice %5 {offsets = [2, 0], sizes = [144, 8], strides = [1, 1]} : vector<184x8xf32> to vector<144x8xf32>
    %20 = arith.truncf %19 : vector<144x8xf32> to vector<144x8xbf16>
    %c2 = arith.constant 2 : index
    %c0_8 = arith.constant 0 : index
    %c0_9 = arith.constant 0 : index
    %21 = vector.load %arg4[%c2, %c0_8, %c0_9] : memref<9x8x8xbf16, #tpu.memory_space<vmem>>, vector<1x8x8xbf16>
    %22 = vector.shape_cast %21 : vector<1x8x8xbf16> to vector<8x8xbf16>
    %cst_10 = arith.constant dense<0.000000e+00> : vector<144x8xf32>
    %23 = tpu.matmul %20, %22, %cst_10 {dimension_numbers = #tpu.dot_dimension_numbers<[1], [0], [0], [1], [0, 0, 1, 1], [], []>} : vector<144x8xbf16>, vector<8x8xbf16>, vector<144x8xf32> -> vector<144x8xf32>
    %24 = arith.addf %18, %23 : vector<144x8xf32>
    %25 = vector.extract_strided_slice %5 {offsets = [18, 0], sizes = [144, 8], strides = [1, 1]} : vector<184x8xf32> to vector<144x8xf32>
    %26 = arith.truncf %25 : vector<144x8xf32> to vector<144x8xbf16>
    %c3 = arith.constant 3 : index
    %c0_11 = arith.constant 0 : index
    %c0_12 = arith.constant 0 : index
    %27 = vector.load %arg4[%c3, %c0_11, %c0_12] : memref<9x8x8xbf16, #tpu.memory_space<vmem>>, vector<1x8x8xbf16>
    %28 = vector.shape_cast %27 : vector<1x8x8xbf16> to vector<8x8xbf16>
    %cst_13 = arith.constant dense<0.000000e+00> : vector<144x8xf32>
    %29 = tpu.matmul %26, %28, %cst_13 {dimension_numbers = #tpu.dot_dimension_numbers<[1], [0], [0], [1], [0, 0, 1, 1], [], []>} : vector<144x8xbf16>, vector<8x8xbf16>, vector<144x8xf32> -> vector<144x8xf32>
    %30 = arith.addf %24, %29 : vector<144x8xf32>
    %31 = vector.extract_strided_slice %5 {offsets = [19, 0], sizes = [144, 8], strides = [1, 1]} : vector<184x8xf32> to vector<144x8xf32>
    %32 = arith.truncf %31 : vector<144x8xf32> to vector<144x8xbf16>
    %c4 = arith.constant 4 : index
    %c0_14 = arith.constant 0 : index
    %c0_15 = arith.constant 0 : index
    %33 = vector.load %arg4[%c4, %c0_14, %c0_15] : memref<9x8x8xbf16, #tpu.memory_space<vmem>>, vector<1x8x8xbf16>
    %34 = vector.shape_cast %33 : vector<1x8x8xbf16> to vector<8x8xbf16>
    %cst_16 = arith.constant dense<0.000000e+00> : vector<144x8xf32>
    %35 = tpu.matmul %32, %34, %cst_16 {dimension_numbers = #tpu.dot_dimension_numbers<[1], [0], [0], [1], [0, 0, 1, 1], [], []>} : vector<144x8xbf16>, vector<8x8xbf16>, vector<144x8xf32> -> vector<144x8xf32>
    %36 = arith.addf %30, %35 : vector<144x8xf32>
    %37 = vector.extract_strided_slice %5 {offsets = [20, 0], sizes = [144, 8], strides = [1, 1]} : vector<184x8xf32> to vector<144x8xf32>
    %38 = arith.truncf %37 : vector<144x8xf32> to vector<144x8xbf16>
    %c5 = arith.constant 5 : index
    %c0_17 = arith.constant 0 : index
    %c0_18 = arith.constant 0 : index
    %39 = vector.load %arg4[%c5, %c0_17, %c0_18] : memref<9x8x8xbf16, #tpu.memory_space<vmem>>, vector<1x8x8xbf16>
    %40 = vector.shape_cast %39 : vector<1x8x8xbf16> to vector<8x8xbf16>
    %cst_19 = arith.constant dense<0.000000e+00> : vector<144x8xf32>
    %41 = tpu.matmul %38, %40, %cst_19 {dimension_numbers = #tpu.dot_dimension_numbers<[1], [0], [0], [1], [0, 0, 1, 1], [], []>} : vector<144x8xbf16>, vector<8x8xbf16>, vector<144x8xf32> -> vector<144x8xf32>
    %42 = arith.addf %36, %41 : vector<144x8xf32>
    %43 = vector.extract_strided_slice %5 {offsets = [36, 0], sizes = [144, 8], strides = [1, 1]} : vector<184x8xf32> to vector<144x8xf32>
    %44 = arith.truncf %43 : vector<144x8xf32> to vector<144x8xbf16>
    %c6 = arith.constant 6 : index
    %c0_20 = arith.constant 0 : index
    %c0_21 = arith.constant 0 : index
    %45 = vector.load %arg4[%c6, %c0_20, %c0_21] : memref<9x8x8xbf16, #tpu.memory_space<vmem>>, vector<1x8x8xbf16>
    %46 = vector.shape_cast %45 : vector<1x8x8xbf16> to vector<8x8xbf16>
    %cst_22 = arith.constant dense<0.000000e+00> : vector<144x8xf32>
    %47 = tpu.matmul %44, %46, %cst_22 {dimension_numbers = #tpu.dot_dimension_numbers<[1], [0], [0], [1], [0, 0, 1, 1], [], []>} : vector<144x8xbf16>, vector<8x8xbf16>, vector<144x8xf32> -> vector<144x8xf32>
    %48 = arith.addf %42, %47 : vector<144x8xf32>
    %49 = vector.extract_strided_slice %5 {offsets = [37, 0], sizes = [144, 8], strides = [1, 1]} : vector<184x8xf32> to vector<144x8xf32>
    %50 = arith.truncf %49 : vector<144x8xf32> to vector<144x8xbf16>
    %c7 = arith.constant 7 : index
    %c0_23 = arith.constant 0 : index
    %c0_24 = arith.constant 0 : index
    %51 = vector.load %arg4[%c7, %c0_23, %c0_24] : memref<9x8x8xbf16, #tpu.memory_space<vmem>>, vector<1x8x8xbf16>
    %52 = vector.shape_cast %51 : vector<1x8x8xbf16> to vector<8x8xbf16>
    %cst_25 = arith.constant dense<0.000000e+00> : vector<144x8xf32>
    %53 = tpu.matmul %50, %52, %cst_25 {dimension_numbers = #tpu.dot_dimension_numbers<[1], [0], [0], [1], [0, 0, 1, 1], [], []>} : vector<144x8xbf16>, vector<8x8xbf16>, vector<144x8xf32> -> vector<144x8xf32>
    %54 = arith.addf %48, %53 : vector<144x8xf32>
    %55 = vector.extract_strided_slice %5 {offsets = [38, 0], sizes = [144, 8], strides = [1, 1]} : vector<184x8xf32> to vector<144x8xf32>
    %56 = arith.truncf %55 : vector<144x8xf32> to vector<144x8xbf16>
    %c8 = arith.constant 8 : index
    %c0_26 = arith.constant 0 : index
    %c0_27 = arith.constant 0 : index
    %57 = vector.load %arg4[%c8, %c0_26, %c0_27] : memref<9x8x8xbf16, #tpu.memory_space<vmem>>, vector<1x8x8xbf16>
    %58 = vector.shape_cast %57 : vector<1x8x8xbf16> to vector<8x8xbf16>
    %cst_28 = arith.constant dense<0.000000e+00> : vector<144x8xf32>
    %59 = tpu.matmul %56, %58, %cst_28 {dimension_numbers = #tpu.dot_dimension_numbers<[1], [0], [0], [1], [0, 0, 1, 1], [], []>} : vector<144x8xbf16>, vector<8x8xbf16>, vector<144x8xf32> -> vector<144x8xf32>
    %60 = arith.addf %54, %59 : vector<144x8xf32>
    %c0_29 = arith.constant 0 : index
    %c0_30 = arith.constant 0 : index
    %61 = vector.load %arg5[%c0_29, %c0_30] : memref<1x8xf32, #tpu.memory_space<vmem>>, vector<1x8xf32>
    %62 = vector.broadcast %61 : vector<1x8xf32> to vector<144x8xf32>
    %63 = arith.addf %60, %62 : vector<144x8xf32>
    %64 = arith.truncf %63 : vector<144x8xf32> to vector<144x8xbf16>
    %c0_31 = arith.constant 0 : index
    %c0_32 = arith.constant 0 : index
    %c0_33 = arith.constant 0 : index
    %65 = vector.load %arg6[%c0_31, %c0_32, %c0_33] : memref<1x144x8xbf16, #tpu.memory_space<vmem>>, vector<1x144x8xbf16>
    %66 = vector.shape_cast %65 : vector<1x144x8xbf16> to vector<144x8xbf16>
    %67 = vector.shape_cast %64 : vector<144x8xbf16> to vector<1x144x8xbf16>
    tpu.vector_store %arg6[%c0_31, %c0_32, %c0_33], %67 {strides = array<i32>} : memref<1x144x8xbf16, #tpu.memory_space<vmem>>, vector<1x144x8xbf16>,
    return
  }
  func.func @transform_0(%arg0: i32, %arg1: i32, %arg2: i32) -> (i32, i32, i32) {
    %c0_i32 = arith.constant 0 : i32
    %c0_i32_0 = arith.constant 0 : i32
    %c0_i32_1 = arith.constant 0 : i32
    return %arg0, %c0_i32, %c0_i32_0 : i32, i32, i32
  }
  func.func @transform_1(%arg0: i32, %arg1: i32, %arg2: i32) -> (i32, i32, i32) {
    %c0_i32 = arith.constant 0 : i32
    %c0_i32_0 = arith.constant 0 : i32
    %c0_i32_1 = arith.constant 0 : i32
    return %c0_i32, %c0_i32_0, %arg2 : i32, i32, i32
  }
  func.func @transform_2(%arg0: i32, %arg1: i32, %arg2: i32) -> (i32, i32) {
    %c0_i32 = arith.constant 0 : i32
    %c0_i32_0 = arith.constant 0 : i32
    return %c0_i32, %arg2 : i32, i32
  }
  func.func @transform_3(%arg0: i32, %arg1: i32, %arg2: i32) -> (i32, i32, i32) {
    %c0_i32 = arith.constant 0 : i32
    return %arg0, %arg1, %arg2 : i32, i32, i32
  }
}

module attributes {stable_mosaic.version = 11 : i64} {
  func.func @_conv3x3_kernel(%arg0: i32, %arg1: i32, %arg2: i32, %arg3: memref<1x328x8xbf16, #tpu.memory_space<vmem>>, %arg4: memref<9x8x32xbf16, #tpu.memory_space<vmem>>, %arg5: memref<1x32xf32, #tpu.memory_space<vmem>>, %arg6: memref<1x144x32xbf16, #tpu.memory_space<vmem>>) attributes {dimension_semantics = [#tpu.dimension_semantics<parallel>, #tpu.dimension_semantics<parallel>, #tpu.dimension_semantics<parallel>], iteration_bounds = array<i64: 2, 2, 1>, scalar_prefetch = 0 : i64, scratch_operands = 0 : i64, tpu.core_type = #tpu.core_type<tc>, window_params = [{transform_indices = @transform_0, window_bounds = array<i64: 1, 328, 8>}, {transform_indices = @transform_1, window_bounds = array<i64: 9, 8, 32>}, {transform_indices = @transform_2, window_bounds = array<i64: 1, 32>}, {transform_indices = @transform_3, window_bounds = array<i64: 1, 144, 32>}]} {
    %c144_i32 = arith.constant 144 : i32
    %0 = arith.muli %arg1, %c144_i32 : i32
    %1 = tpu.assume_multiple %0, 144 : i32
    %c0 = arith.constant 0 : index
    %2 = arith.index_cast %1 : i32 to index
    %c0_0 = arith.constant 0 : index
    %3 = vector.load %arg3[%c0, %2, %c0_0] : memref<1x328x8xbf16, #tpu.memory_space<vmem>>, vector<1x184x8xbf16>
    %4 = vector.shape_cast %3 : vector<1x184x8xbf16> to vector<184x8xbf16>
    %5 = arith.extf %4 : vector<184x8xbf16> to vector<184x8xf32>
    %cst = arith.constant 0.000000e+00 : f32
    %6 = vector.broadcast %cst : f32 to vector<144x32xf32>
    %7 = vector.extract_strided_slice %5 {offsets = [0, 0], sizes = [144, 8], strides = [1, 1]} : vector<184x8xf32> to vector<144x8xf32>
    %8 = arith.truncf %7 : vector<144x8xf32> to vector<144x8xbf16>
    %c0_1 = arith.constant 0 : index
    %c0_2 = arith.constant 0 : index
    %c0_3 = arith.constant 0 : index
    %9 = vector.load %arg4[%c0_1, %c0_2, %c0_3] : memref<9x8x32xbf16, #tpu.memory_space<vmem>>, vector<1x8x32xbf16>
    %10 = vector.shape_cast %9 : vector<1x8x32xbf16> to vector<8x32xbf16>
    %cst_4 = arith.constant dense<0.000000e+00> : vector<144x32xf32>
    %11 = tpu.matmul %8, %10, %cst_4 {dimension_numbers = #tpu.dot_dimension_numbers<[1], [0], [0], [1], [0, 0, 1, 1], [], []>} : vector<144x8xbf16>, vector<8x32xbf16>, vector<144x32xf32> -> vector<144x32xf32>
    %12 = arith.addf %6, %11 : vector<144x32xf32>
    %13 = vector.extract_strided_slice %5 {offsets = [1, 0], sizes = [144, 8], strides = [1, 1]} : vector<184x8xf32> to vector<144x8xf32>
    %14 = arith.truncf %13 : vector<144x8xf32> to vector<144x8xbf16>
    %c1 = arith.constant 1 : index
    %c0_5 = arith.constant 0 : index
    %c0_6 = arith.constant 0 : index
    %15 = vector.load %arg4[%c1, %c0_5, %c0_6] : memref<9x8x32xbf16, #tpu.memory_space<vmem>>, vector<1x8x32xbf16>
    %16 = vector.shape_cast %15 : vector<1x8x32xbf16> to vector<8x32xbf16>
    %cst_7 = arith.constant dense<0.000000e+00> : vector<144x32xf32>
    %17 = tpu.matmul %14, %16, %cst_7 {dimension_numbers = #tpu.dot_dimension_numbers<[1], [0], [0], [1], [0, 0, 1, 1], [], []>} : vector<144x8xbf16>, vector<8x32xbf16>, vector<144x32xf32> -> vector<144x32xf32>
    %18 = arith.addf %12, %17 : vector<144x32xf32>
    %19 = vector.extract_strided_slice %5 {offsets = [2, 0], sizes = [144, 8], strides = [1, 1]} : vector<184x8xf32> to vector<144x8xf32>
    %20 = arith.truncf %19 : vector<144x8xf32> to vector<144x8xbf16>
    %c2 = arith.constant 2 : index
    %c0_8 = arith.constant 0 : index
    %c0_9 = arith.constant 0 : index
    %21 = vector.load %arg4[%c2, %c0_8, %c0_9] : memref<9x8x32xbf16, #tpu.memory_space<vmem>>, vector<1x8x32xbf16>
    %22 = vector.shape_cast %21 : vector<1x8x32xbf16> to vector<8x32xbf16>
    %cst_10 = arith.constant dense<0.000000e+00> : vector<144x32xf32>
    %23 = tpu.matmul %20, %22, %cst_10 {dimension_numbers = #tpu.dot_dimension_numbers<[1], [0], [0], [1], [0, 0, 1, 1], [], []>} : vector<144x8xbf16>, vector<8x32xbf16>, vector<144x32xf32> -> vector<144x32xf32>
    %24 = arith.addf %18, %23 : vector<144x32xf32>
    %25 = vector.extract_strided_slice %5 {offsets = [18, 0], sizes = [144, 8], strides = [1, 1]} : vector<184x8xf32> to vector<144x8xf32>
    %26 = arith.truncf %25 : vector<144x8xf32> to vector<144x8xbf16>
    %c3 = arith.constant 3 : index
    %c0_11 = arith.constant 0 : index
    %c0_12 = arith.constant 0 : index
    %27 = vector.load %arg4[%c3, %c0_11, %c0_12] : memref<9x8x32xbf16, #tpu.memory_space<vmem>>, vector<1x8x32xbf16>
    %28 = vector.shape_cast %27 : vector<1x8x32xbf16> to vector<8x32xbf16>
    %cst_13 = arith.constant dense<0.000000e+00> : vector<144x32xf32>
    %29 = tpu.matmul %26, %28, %cst_13 {dimension_numbers = #tpu.dot_dimension_numbers<[1], [0], [0], [1], [0, 0, 1, 1], [], []>} : vector<144x8xbf16>, vector<8x32xbf16>, vector<144x32xf32> -> vector<144x32xf32>
    %30 = arith.addf %24, %29 : vector<144x32xf32>
    %31 = vector.extract_strided_slice %5 {offsets = [19, 0], sizes = [144, 8], strides = [1, 1]} : vector<184x8xf32> to vector<144x8xf32>
    %32 = arith.truncf %31 : vector<144x8xf32> to vector<144x8xbf16>
    %c4 = arith.constant 4 : index
    %c0_14 = arith.constant 0 : index
    %c0_15 = arith.constant 0 : index
    %33 = vector.load %arg4[%c4, %c0_14, %c0_15] : memref<9x8x32xbf16, #tpu.memory_space<vmem>>, vector<1x8x32xbf16>
    %34 = vector.shape_cast %33 : vector<1x8x32xbf16> to vector<8x32xbf16>
    %cst_16 = arith.constant dense<0.000000e+00> : vector<144x32xf32>
    %35 = tpu.matmul %32, %34, %cst_16 {dimension_numbers = #tpu.dot_dimension_numbers<[1], [0], [0], [1], [0, 0, 1, 1], [], []>} : vector<144x8xbf16>, vector<8x32xbf16>, vector<144x32xf32> -> vector<144x32xf32>
    %36 = arith.addf %30, %35 : vector<144x32xf32>
    %37 = vector.extract_strided_slice %5 {offsets = [20, 0], sizes = [144, 8], strides = [1, 1]} : vector<184x8xf32> to vector<144x8xf32>
    %38 = arith.truncf %37 : vector<144x8xf32> to vector<144x8xbf16>
    %c5 = arith.constant 5 : index
    %c0_17 = arith.constant 0 : index
    %c0_18 = arith.constant 0 : index
    %39 = vector.load %arg4[%c5, %c0_17, %c0_18] : memref<9x8x32xbf16, #tpu.memory_space<vmem>>, vector<1x8x32xbf16>
    %40 = vector.shape_cast %39 : vector<1x8x32xbf16> to vector<8x32xbf16>
    %cst_19 = arith.constant dense<0.000000e+00> : vector<144x32xf32>
    %41 = tpu.matmul %38, %40, %cst_19 {dimension_numbers = #tpu.dot_dimension_numbers<[1], [0], [0], [1], [0, 0, 1, 1], [], []>} : vector<144x8xbf16>, vector<8x32xbf16>, vector<144x32xf32> -> vector<144x32xf32>
    %42 = arith.addf %36, %41 : vector<144x32xf32>
    %43 = vector.extract_strided_slice %5 {offsets = [36, 0], sizes = [144, 8], strides = [1, 1]} : vector<184x8xf32> to vector<144x8xf32>
    %44 = arith.truncf %43 : vector<144x8xf32> to vector<144x8xbf16>
    %c6 = arith.constant 6 : index
    %c0_20 = arith.constant 0 : index
    %c0_21 = arith.constant 0 : index
    %45 = vector.load %arg4[%c6, %c0_20, %c0_21] : memref<9x8x32xbf16, #tpu.memory_space<vmem>>, vector<1x8x32xbf16>
    %46 = vector.shape_cast %45 : vector<1x8x32xbf16> to vector<8x32xbf16>
    %cst_22 = arith.constant dense<0.000000e+00> : vector<144x32xf32>
    %47 = tpu.matmul %44, %46, %cst_22 {dimension_numbers = #tpu.dot_dimension_numbers<[1], [0], [0], [1], [0, 0, 1, 1], [], []>} : vector<144x8xbf16>, vector<8x32xbf16>, vector<144x32xf32> -> vector<144x32xf32>
    %48 = arith.addf %42, %47 : vector<144x32xf32>
    %49 = vector.extract_strided_slice %5 {offsets = [37, 0], sizes = [144, 8], strides = [1, 1]} : vector<184x8xf32> to vector<144x8xf32>
    %50 = arith.truncf %49 : vector<144x8xf32> to vector<144x8xbf16>
    %c7 = arith.constant 7 : index
    %c0_23 = arith.constant 0 : index
    %c0_24 = arith.constant 0 : index
    %51 = vector.load %arg4[%c7, %c0_23, %c0_24] : memref<9x8x32xbf16, #tpu.memory_space<vmem>>, vector<1x8x32xbf16>
    %52 = vector.shape_cast %51 : vector<1x8x32xbf16> to vector<8x32xbf16>
    %cst_25 = arith.constant dense<0.000000e+00> : vector<144x32xf32>
    %53 = tpu.matmul %50, %52, %cst_25 {dimension_numbers = #tpu.dot_dimension_numbers<[1], [0], [0], [1], [0, 0, 1, 1], [], []>} : vector<144x8xbf16>, vector<8x32xbf16>, vector<144x32xf32> -> vector<144x32xf32>
    %54 = arith.addf %48, %53 : vector<144x32xf32>
    %55 = vector.extract_strided_slice %5 {offsets = [38, 0], sizes = [144, 8], strides = [1, 1]} : vector<184x8xf32> to vector<144x8xf32>
    %56 = arith.truncf %55 : vector<144x8xf32> to vector<144x8xbf16>
    %c8 = arith.constant 8 : index
    %c0_26 = arith.constant 0 : index
    %c0_27 = arith.constant 0 : index
    %57 = vector.load %arg4[%c8, %c0_26, %c0_27] : memref<9x8x32xbf16, #tpu.memory_space<vmem>>, vector<1x8x32xbf16>
    %58 = vector.shape_cast %57 : vector<1x8x32xbf16> to vector<8x32xbf16>
    %cst_28 = arith.constant dense<0.000000e+00> : vector<144x32xf32>
    %59 = tpu.matmul %56, %58, %cst_28 {dimension_numbers = #tpu.dot_dimension_numbers<[1], [0], [0], [1], [0, 0, 1, 1], [], []>} : vector<144x8xbf16>, vector<8x32xbf16>, vector<144x32xf32> -> vector<144x32xf32>
    %60 = arith.addf %54, %59 : vector<144x32xf32>
    %c0_29 = arith.constant 0 : index
    %c0_30 = arith.constant 0 : index
    %61 = vector.load %arg5[%c0_29, %c0_30] : memref<1x32xf32, #tpu.memory_space<vmem>>, vector<1x32xf32>
    %62 = vector.broadcast %61 : vector<1x32xf32> to vector<144x32xf32>
    %63 = arith.addf %60, %62 : vector<144x32xf32>
    %64 = arith.truncf %63 : vector<144x32xf32> to vector<144x32xbf16>
    %c0_31 = arith.constant 0 : index
    %c0_32 = arith.constant 0 : index
    %c0_33 = arith.constant 0 : index
    %65 = vector.load %arg6[%c0_31, %c0_32, %c0_33] : memref<1x144x32xbf16, #tpu.memory_space<vmem>>, vector<1x144x32xbf16>
    %66 = vector.shape_cast %65 : vector<1x144x32xbf16> to vector<144x32xbf16>
    %67 = vector.shape_cast %64 : vector<144x32xbf16> to vector<1x144x32xbf16>
    tpu.vector_store %arg6[%c0_31, %c0_32, %c0_33], %67 {strides = array<i32>} : memref<1x144x32xbf16, #tpu.memory_space<vmem>>, vector<1x144x32xbf16>,
    return
  }
  func.func @transform_0(%arg0: i32, %arg1: i32, %arg2: i32) -> (i32, i32, i32) {
    %c0_i32 = arith.constant 0 : i32
    %c0_i32_0 = arith.constant 0 : i32
    %c0_i32_1 = arith.constant 0 : i32
    return %arg0, %c0_i32, %c0_i32_0 : i32, i32, i32
  }
  func.func @transform_1(%arg0: i32, %arg1: i32, %arg2: i32) -> (i32, i32, i32) {
    %c0_i32 = arith.constant 0 : i32
    %c0_i32_0 = arith.constant 0 : i32
    %c0_i32_1 = arith.constant 0 : i32
    return %c0_i32, %c0_i32_0, %arg2 : i32, i32, i32
  }
  func.func @transform_2(%arg0: i32, %arg1: i32, %arg2: i32) -> (i32, i32) {
    %c0_i32 = arith.constant 0 : i32
    %c0_i32_0 = arith.constant 0 : i32
    return %c0_i32, %arg2 : i32, i32
  }
  func.func @transform_3(%arg0: i32, %arg1: i32, %arg2: i32) -> (i32, i32, i32) {
    %c0_i32 = arith.constant 0 : i32
    return %arg0, %arg1, %arg2 : i32, i32, i32
  }
}

module attributes {stable_mosaic.version = 11 : i64} {
  func.func @_inr_mlp_tail_kernel(%arg0: i32, %arg1: memref<512x32xbf16, #tpu.memory_space<vmem>>, %arg2: memref<32x32xbf16, #tpu.memory_space<vmem>>, %arg3: memref<1x32xf32, #tpu.memory_space<vmem>>, %arg4: memref<32x3xbf16, #tpu.memory_space<vmem>>, %arg5: memref<1x3xf32, #tpu.memory_space<vmem>>, %arg6: memref<512x3xf32, #tpu.memory_space<vmem>>) attributes {dimension_semantics = [#tpu.dimension_semantics<parallel>], iteration_bounds = array<i64: 1>, scalar_prefetch = 0 : i64, scratch_operands = 0 : i64, tpu.core_type = #tpu.core_type<tc>, window_params = [{transform_indices = @transform_0, window_bounds = array<i64: 512, 32>}, {pipeline_mode = #tpu.pipeline_mode<synchronous>, transform_indices = @transform_1, window_bounds = array<i64: 32, 32>}, {pipeline_mode = #tpu.pipeline_mode<synchronous>, transform_indices = @transform_2, window_bounds = array<i64: 1, 32>}, {pipeline_mode = #tpu.pipeline_mode<synchronous>, transform_indices = @transform_3, window_bounds = array<i64: 32, 3>}, {pipeline_mode = #tpu.pipeline_mode<synchronous>, transform_indices = @transform_4, window_bounds = array<i64: 1, 3>}, {transform_indices = @transform_5, window_bounds = array<i64: 512, 3>}]} {
    %c0 = arith.constant 0 : index
    %c0_0 = arith.constant 0 : index
    %0 = vector.load %arg1[%c0, %c0_0] : memref<512x32xbf16, #tpu.memory_space<vmem>>, vector<512x32xbf16>
    %c0_1 = arith.constant 0 : index
    %c0_2 = arith.constant 0 : index
    %1 = vector.load %arg2[%c0_1, %c0_2] : memref<32x32xbf16, #tpu.memory_space<vmem>>, vector<32x32xbf16>
    %cst = arith.constant dense<0.000000e+00> : vector<512x32xf32>
    %2 = tpu.matmul %0, %1, %cst {dimension_numbers = #tpu.dot_dimension_numbers<[1], [0], [0], [1], [0, 0, 1, 1], [], []>} : vector<512x32xbf16>, vector<32x32xbf16>, vector<512x32xf32> -> vector<512x32xf32>
    %c0_3 = arith.constant 0 : index
    %c0_4 = arith.constant 0 : index
    %3 = vector.load %arg3[%c0_3, %c0_4] : memref<1x32xf32, #tpu.memory_space<vmem>>, vector<1x32xf32>
    %4 = vector.broadcast %3 : vector<1x32xf32> to vector<512x32xf32>
    %5 = arith.addf %2, %4 : vector<512x32xf32>
    %cst_5 = arith.constant 0.000000e+00 : f32
    %6 = vector.broadcast %cst_5 : f32 to vector<512x32xf32>
    %7 = arith.maximumf %5, %6 : vector<512x32xf32>
    %8 = arith.truncf %7 : vector<512x32xf32> to vector<512x32xbf16>
    %c0_6 = arith.constant 0 : index
    %c0_7 = arith.constant 0 : index
    %9 = vector.load %arg4[%c0_6, %c0_7] : memref<32x3xbf16, #tpu.memory_space<vmem>>, vector<32x3xbf16>
    %cst_8 = arith.constant dense<0.000000e+00> : vector<512x3xf32>
    %10 = tpu.matmul %8, %9, %cst_8 {dimension_numbers = #tpu.dot_dimension_numbers<[1], [0], [0], [1], [0, 0, 1, 1], [], []>} : vector<512x32xbf16>, vector<32x3xbf16>, vector<512x3xf32> -> vector<512x3xf32>
    %c0_9 = arith.constant 0 : index
    %c0_10 = arith.constant 0 : index
    %11 = vector.load %arg5[%c0_9, %c0_10] : memref<1x3xf32, #tpu.memory_space<vmem>>, vector<1x3xf32>
    %12 = vector.broadcast %11 : vector<1x3xf32> to vector<512x3xf32>
    %13 = arith.addf %10, %12 : vector<512x3xf32>
    %14 = math.tanh %13 : vector<512x3xf32>
    %c0_11 = arith.constant 0 : index
    %c0_12 = arith.constant 0 : index
    %15 = vector.load %arg6[%c0_11, %c0_12] : memref<512x3xf32, #tpu.memory_space<vmem>>, vector<512x3xf32>
    tpu.vector_store %arg6[%c0_11, %c0_12], %14 {strides = array<i32>} : memref<512x3xf32, #tpu.memory_space<vmem>>, vector<512x3xf32>,
    return
  }
  func.func @transform_0(%arg0: i32) -> (i32, i32) {
    %c0_i32 = arith.constant 0 : i32
    %c0_i32_0 = arith.constant 0 : i32
    return %arg0, %c0_i32 : i32, i32
  }
  func.func @transform_1(%arg0: i32) -> (i32, i32) {
    %c0_i32 = arith.constant 0 : i32
    %c0_i32_0 = arith.constant 0 : i32
    %c0_i32_1 = arith.constant 0 : i32
    return %c0_i32, %c0_i32_0 : i32, i32
  }
  func.func @transform_2(%arg0: i32) -> (i32, i32) {
    %c0_i32 = arith.constant 0 : i32
    %c0_i32_0 = arith.constant 0 : i32
    %c0_i32_1 = arith.constant 0 : i32
    return %c0_i32, %c0_i32_0 : i32, i32
  }
  func.func @transform_3(%arg0: i32) -> (i32, i32) {
    %c0_i32 = arith.constant 0 : i32
    %c0_i32_0 = arith.constant 0 : i32
    %c0_i32_1 = arith.constant 0 : i32
    return %c0_i32, %c0_i32_0 : i32, i32
  }
  func.func @transform_4(%arg0: i32) -> (i32, i32) {
    %c0_i32 = arith.constant 0 : i32
    %c0_i32_0 = arith.constant 0 : i32
    %c0_i32_1 = arith.constant 0 : i32
    return %c0_i32, %c0_i32_0 : i32, i32
  }
  func.func @transform_5(%arg0: i32) -> (i32, i32) {
    %c0_i32 = arith.constant 0 : i32
    %c0_i32_0 = arith.constant 0 : i32
    return %arg0, %c0_i32 : i32, i32
  }
}

</mosaic_0001>

<bundles_post_ra>
// kernel: generator_forward.28
= control target key start
LH: loop header
LB: loop body
LE: loop exit
PB: predicated region body
PF: predicated region fallthrough
CT: control target
= control target key end

     0   :  { %vm14_vm0 = vcmask 253952   ;;  %v93_v0 = vmov 0.0   ;;  %vm26_vm1 = vcmask 261120   ;;  %s159_s1 = inlined_call_operand.vmem [shape: f32[1,32], index: 1, kind: output, shape index: {0}]   ;;  %s160_s2 = inlined_call_operand.vmem [shape: f32[1,32], index: 2, kind: output, shape index: {1}]   ;;  %s161_s0 = inlined_call_operand.vmem [shape: bf16[32,32], index: 0, kind: input, shape index: {}]  }
   0x1   :  { %15 = vst.msk [vmem:[%s159_s1] sm:$0x1] %vm14_vm0, %v93_v0  ;;  %v84_v1 = vld [vmem:[%s161_s0] sm:$0xff]   ;;  %v91_v2 = vld [vmem:[%s161_s0 + $0x8] sm:$0xff]  }
   0x2   :  { %16 = vst.msk [vmem:[%s160_s2] sm:$0x1] %vm14_vm0, %v93_v0  ;;  %v85_v3 = vunpack.c.l.bf16 %v84_v1  ;;  %v86_v4 = vunpack.c.h.bf16 %v84_v1  ;;  %v89_v5 = vunpack.c.l.bf16 %v91_v2  ;;  %v90_v6 = vunpack.c.h.bf16 %v91_v2 }
   0x4   :  { %v27_v7 = vsel %vm26_vm1, %v85_v3, 0.0  ;;  %v28_v8 = vsel %vm26_vm1, %v86_v4, 0.0  ;;  %v30_v9 = vsel %vm26_vm1, %v89_v5, 0.0  ;;  %v44_v11 = vmul.f32 %v85_v3, %v85_v3 }
   0x5   :  { %v29_v10 = vadd.f32 %v28_v8, %v27_v7  ;;  %v45_v12 = vmul.f32 %v86_v4, %v86_v4  ;;  %v46_v13 = vmul.f32 %v89_v5, %v89_v5  ;;  %v32_v14 = vsel %vm26_vm1, %v90_v6, 0.0 }
   0x6   :  { %v47_v15 = vmul.f32 %v90_v6, %v90_v6  ;;  %v48_v17 = vsel %vm26_vm1, %v44_v11, 0.0 }
   0x7   :  { %v31_v16 = vadd.f32 %v30_v9, %v29_v10  ;;  %v49_v18 = vsel %vm26_vm1, %v45_v12, 0.0  ;;  %v51_v19 = vsel %vm26_vm1, %v46_v13, 0.0 }
   0x8   :  { %v50_v20 = vadd.f32 %v49_v18, %v48_v17  ;;  %v53_v22 = vsel %vm26_vm1, %v47_v15, 0.0  ;;  %v25_v33 = vld [vmem:[%s159_s1] sm:$0x1] }
   0x9   :  { %v33_v21 = vadd.f32 %v32_v14, %v31_v16  ;;  %v43_v38 = vld [vmem:[%s160_s2] sm:$0x1] }
   0xa   :  { %v52_v23 = vadd.f32 %v51_v19, %v50_v20 }
   0xb   :  { %v34_v24 = vrot.slane %v33_v21, 4 }
   0xc   :  { %v54_v25 = vadd.f32 %v53_v22, %v52_v23 }
   0xd   :  { %v35_v26 = vadd.f32 %v34_v24, %v33_v21 }
   0xe   :  { %v55_v27 = vrot.slane %v54_v25, 4 }
   0xf   :  { %v36_v28 = vrot.slane %v35_v26, 2 }
  0x10   :  { %v56_v29 = vadd.f32 %v55_v27, %v54_v25 }
  0x11   :  { %v37_v30 = vadd.f32 %v36_v28, %v35_v26 }
  0x12   :  { %v57_v31 = vrot.slane %v56_v29, 2 }
  0x13   :  { %v38_v32 = vrot.slane %v37_v30, 1 }
  0x14   :  { %v58_v34 = vadd.f32 %v57_v31, %v56_v29 }
  0x15   :  { %v39_v35 = vadd.f32 %v38_v32, %v37_v30 }
  0x16   :  { %v59_v36 = vrot.slane %v58_v34, 1 }
  0x17   :  { %v40_v37 = vadd.f32 %v39_v35, %v25_v33 }
  0x18   :  { %v60_v39 = vadd.f32 %v59_v36, %v58_v34 }
  0x19   :  { %42 = vst.msk [vmem:[%s159_s1] sm:$0x1] %vm14_vm0, %v40_v37 }
  0x1a   :  { %v61_v40 = vadd.f32 %v60_v39, %v43_v38 }
  0x1c   :  { %62 = vst.msk [vmem:[%s160_s2] sm:$0x1] %vm14_vm0, %v61_v40 }
  0x20   :  { %v66_v41 = vld [vmem:[%s159_s1] sm:$0x1] }
  0x21   :  { %v67_v42 = vmul.f32 0.03125, %v66_v41 }
  0x23   :  { %v70_v43 = vmul.f32 %v67_v42, %v67_v42  ;;  %72 = vst.msk [vmem:[%s159_s1] sm:$0x1] %vm14_vm0, %v67_v42  ;;  %v68_v44 = vld [vmem:[%s160_s2] sm:$0x1] }
  0x24   :  { %v69_v45 = vmul.f32 0.03125, %v68_v44 }
  0x26   :  { %v71_v46 = vsub.f32 %v69_v45, %v70_v43 }
  0x28   :  { %v73_v47 = vmax.f32 %v71_v46, 0.0 }
  0x2a   :  { %74 = vst.msk [vmem:[%s160_s2] sm:$0x1] %vm14_vm0, %v73_v47 }

// kernel: generator_forward.25
= control target key start
LH: loop header
LB: loop body
LE: loop exit
PB: predicated region body
PF: predicated region fallthrough
CT: control target
= control target key end

     0   :  { %s653_s12 = smov 0   ;;  %s655_s13 = smov 0   ;;  %s732_s0 = inlined_call_operand.vmem [shape: bf16[16,16], index: 0, kind: input, shape index: {}]   ;;  %s733_s1 = inlined_call_operand.vmem [shape: bf16[16,512], index: 1, kind: input, shape index: {}]   ;;  %s734_s2 = inlined_call_operand.vmem [shape: f32[1,512], index: 2, kind: input, shape index: {}]   ;;  %s735_s3 = inlined_call_operand.vmem [shape: f32[16,512], index: 3, kind: output, shape index: {}]  }
   0x1   :  { %s657_s14 = smov 0   ;;  %s659_s15 = smov 0  }
   0x2   :  { %s661_s16 = smov 0  }
   0x3 LB: > { %s28_s17 = sadd.s32 1, %s627_s15  ;;  %s517_s18 = sadd.s32 4294967295, %s631_s16   ;;  %s631_s16 = sphi %s661_s16, %s13_s16   ;;  %s627_s15 = sphi %s659_s15, %s740_s15   ;;  %s623_s14 = sphi %s657_s14, %s739_s14   ;;  %s619_s13 = sphi %s655_s13, %s738_s13   ;;  %s615_s12 = sphi %s653_s12, %s737_s12  }
   0x4   : > { %p30_p0 = scmp.ge.s32.totalorder %s28_s17, 2  ;;  %p76_p1 = scmp.ne.s32.totalorder %s619_s13, %s615_s12 }
   0x5   : > { %p77_p2 = scmp.eq.s32.totalorder %s631_s16, 0  ;;  %p134_p4 = scmp.eq.s32.totalorder %s517_s18, 1 }
   0x6   : > { %s742_s17 = smov (%p30_p0, %s28_s17), 0  ;;  %s69_s20 = sadd.s32 1, %s619_s13 }
   0x7   : > { %p78_p3 = por %p77_p2, %p76_p1  ;;  %s65_s19 = ssub.s32 %s627_s15, %s742_s17 }
   0x8   : > { %p67_p5 = scmp.eq.s32.totalorder %s65_s19, 0  ;;  %p688_p6 = por %p134_p4, %p76_p1 }
   0x9   : > { %p521_p7 = scmp.ge.s32.totalorder %s631_s16, 2 }
   0xa   : > { %s693_s22 = scalar_select %p67_p5, %s619_s13, %s69_s20  }
   0xb   : > { %168 = sbr.rel (%p521_p7) target bundleno = 22 (0x16), region = 20 }
  0x10   : > { %171 = sbr.rel (!%p78_p3) target bundleno = 22 (0x16), region = 24  ;;  %s173_s23 = sand.u32 (%p78_p3), 1, %s619_s13  }
  0x11   : > { %s548_s24 = sshll.u32 (%p78_p3), %s627_s15, 3  ;;  %s522_s25 = sshll.u32 (%p78_p3), %s173_s23, 4 }
  0x12   : > { %s181_s28 = scalar_lea.vmem (%p78_p3), %s733_s1, %s548_s24  ;;  %s175_s29 = scalar_lea.vmem (%p78_p3), [#allocation3], %s522_s25 }
  0x13   : > { %v212_v0 = vld [vmem:[%s181_s28] sm:$0xff] (%p78_p3)  ;;  %v214_v1 = vld [vmem:[%s181_s28 + $0x10] sm:$0xff] (%p78_p3) }
  0x14   : > { %213 = vst [vmem:[%s175_s29] sm:$0xff] (%p78_p3), %v212_v0 }
  0x15   : > { %215 = vst [vmem:[%s175_s29 + $0x8] sm:$0xff] %v214_v1 }
  0x16 PF: > { %p525_p8 = scmp.ge.s32.totalorder %s631_s16, 1  ;;  %p228_p9 = scmp.lt.s32.totalorder %s631_s16, 3 }
  0x18   : > { %p229_p10 = pnand %p525_p8, %p228_p9 }
  0x19   : > { %s235_s30 = sand.u32 (!%p229_p10), 1, %s615_s12   ;;  %s528_s8 = sshll.u32 (!%p229_p10), %s623_s14, 1 }
  0x1a   : > { %232 = sbr.rel (%p229_p10) target bundleno = 183 (0xb7), region = 66  ;;  %s526_s4 = sshll.u32 (!%p229_p10), %s235_s30, 4 }
  0x1b   : > { %s237_s5 = scalar_lea.vmem (!%p229_p10), [#allocation3], %s526_s4  ;;  %p281_p11 = scmp.lt.s32.totalorder (!%p229_p10), %s528_s8, 3 }
  0x1c   : > { %s527_s12 = sshll.u32 (!%p229_p10), %s235_s30, 5 }
  0x1d   : > { %s268_s18 = scalar_lea.vmem (!%p229_p10), [#allocation4], %s527_s12 }
  0x1f   : > { %v535_v2 = vld [vmem:[%s237_s5] sm:$0xf]  ;;  %v551_v3 = vld [vmem:[%s237_s5 + $0x4] sm:$0xf0]  ;;  %v550_v4 = vld [vmem:[%s237_s5 + $0x4] sm:$0xf] }
  0x20   : > { %v536_v5 = vor.u32 %v551_v3, %v535_v2  ;;  %v537_v6 = vld [vmem:[%s237_s5 + $0x8] sm:$0xf0]  ;;  %v549_v8 = vld [vmem:[%s732_s0] sm:$0xff]  ;;  %vm319_vm0 = vcmask 130048   ;;  %s744_s8 = smov (!%p281_p11, %s528_s8), 3  ;;  %s552_s19 = sshll.u32 (%p688_p6), %s623_s14, 4 }
  0x21   : > { %v540_v7 = vor.u32 %v550_v4, %v537_v6  ;;  %s283_s11 = scalar_lea.vmem %s734_s2, %s744_s8  ;;  %s392_s24 = scalar_lea.vmem (%p688_p6), %s735_s3, %s552_s19 }
  0x22   : > { %330 = vmatpush.bf16.msra.mxu0 %v536_v5  ;;  %v366_v9 = vld [vmem:[%s283_s11] sm:$0x3] }
  0x23   : > { %344 = vmatpush.bf16.msra.mxu1 %v540_v7  ;;  %v368_v10 = vperm.slane %v366_v9, 0  ;;  %v369_v11 = vperm.slane %v366_v9, 1 }
  0x25   : > { %541 = vmatmul.msk.bf16.vlgmr.msra.gmra.mxu0 %vm319_vm0, %v549_v8 }
  0x26   : > { %542 = vmatmul.msk.bf16.vlgmr.msra.gmra.mxu1 %vm319_vm0, %v549_v8 }
  0xa2   : > { %v332_v12 = vpop.f32.mrf.mxu0 }
  0xa3   : > { %v372_v13 = vadd.f32 %v368_v10, %v332_v12  ;;  %v346_v14 = vpop.f32.mrf.mxu1 }
  0xa4   : > { %v373_v15 = vadd.f32 %v369_v11, %v346_v14 }
  0xa5   : > { %376 = vst [vmem:[%s268_s18] sm:$0xff] %v372_v13 }
  0xa6   : > { %377 = vst [vmem:[%s268_s18 + $0x8] sm:$0xff] %v373_v15 }
  0xaa   : > { %v334_v16 = vpop.f32.mrf.mxu0  ;;  %386 = sbr.rel (!%p688_p6) target bundleno = 183 (0xb7), region = 82 }
  0xab   : > { %v374_v17 = vadd.f32 %v368_v10, %v334_v16  ;;  %v348_v18 = vpop.f32.mrf.mxu1 }
  0xac   : > { %v375_v19 = vadd.f32 %v369_v11, %v348_v18  ;;  %v405_v20 = vld [vmem:[%s268_s18] sm:$0xff] (%p688_p6) }
  0xad   : > { %378 = vst [vmem:[%s268_s18 + $0x10] sm:$0xff] %v374_v17  ;;  %v407_v21 = vld [vmem:[%s268_s18 + $0x8] sm:$0xff] (%p688_p6) }
  0xae   : > { %379 = vst [vmem:[%s268_s18 + $0x18] sm:$0xff] %v375_v19 }
  0xaf   : > { %406 = vst [vmem:[%s392_s24] sm:$0xff] %v405_v20 }
  0xb0   : > { %408 = vst [vmem:[%s392_s24 + $0x8] sm:$0xff] %v407_v21 }
  0xb4   : > { %v409_v22 = vld [vmem:[%s268_s18 + $0x10] sm:$0xff] }
  0xb5   : > { %v411_v23 = vld [vmem:[%s268_s18 + $0x18] sm:$0xff]  ;;  %410 = vst [vmem:[%s392_s24 + $0x20] sm:$0xff] %v409_v22 }
  0xb6   : > { %412 = vst [vmem:[%s392_s24 + $0x28] sm:$0xff] %v411_v23 }
  0xb7 PF: > { %s13_s16 = sadd.s32 1, %s631_s16   ;;  %s737_s12 = smov %s619_s13 }
  0xb8   : > { %p10_p12 = scmp.ge.s32.totalorder %s13_s16, 4   ;;  %s738_s13 = smov %s693_s22 }
  0xb9   : > { %s739_s14 = smov %s627_s15  ;;  %s740_s15 = smov %s742_s17 }
  0xba   :  { %12 = sbr.rel (!%p10_p12) target bundleno = 3 (0x3), region = 142 }

// kernel: generator_forward.26
= control target key start
LH: loop header
LB: loop body
LE: loop exit
PB: predicated region body
PF: predicated region fallthrough
CT: control target
= control target key end

     0   :  { %vm19_vm0 = vcmask 261120   ;;  %v92_v1 = vmov 0.0   ;;  %vm39_vm1 = vcmask 130048   ;;  %s134_s1 = inlined_call_operand.vmem [shape: bf16[16,32], index: 1, kind: input, shape index: {}]   ;;  %s135_s0 = inlined_call_operand.vmem [shape: bf16[16,16], index: 0, kind: input, shape index: {}]   ;;  %s136_s2 = inlined_call_operand.vmem [shape: f32[1,32], index: 2, kind: input, shape index: {}]   ;;  %s137_s3 = inlined_call_operand.vmem [shape: f32[16,32], index: 3, kind: output, shape index: {}]  }
   0x1   :  { %v89_v0 = vld [vmem:[%s134_s1] sm:$0xff]  ;;  %20 = vst.msk [vmem:[#allocation2] sm:$0xff] %vm19_vm0, %v92_v1 }
   0x2   :  { %v88_v2 = vld [vmem:[%s135_s0] sm:$0xff]  ;;  %21 = vst.msk [vmem:[#allocation2 + $0x8] sm:$0xff] %vm19_vm0, %v92_v1  ;;  %50 = vmatpush.bf16.msra.mxu0 %v89_v0 }
   0x3   :  { %v91_v7 = vld [vmem:[%s136_s2] ss:$0 sm:$0xff] }
   0x5   :  { %87 = vmatmul.msk.bf16.vlgmr.msra.gmra.mxu0 %vm39_vm1, %v88_v2 }
   0x8   :  { %v22_v3 = vld [vmem:[#allocation2] sm:$0xff] }
   0x9   :  { %v23_v6 = vld [vmem:[#allocation2 + $0x8] sm:$0xff] }
  0x82   :  { %v52_v4 = vpop.f32.mrf.mxu0 }
  0x83   :  { %v57_v5 = vadd.f32 %v52_v4, %v22_v3 }
  0x85   :  { %60 = vst.msk [vmem:[#allocation2] sm:$0xff] %vm19_vm0, %v57_v5 }
  0x8a   :  { %v54_v8 = vpop.f32.mrf.mxu0 }
  0x8b   :  { %v58_v9 = vadd.f32 %v54_v8, %v23_v6 }
  0x8c   :  { %v65_v10 = vld [vmem:[#allocation2] sm:$0xff] }
  0x8d   :  { %v71_v11 = vadd.f32 %v91_v7, %v65_v10  ;;  %61 = vst.msk [vmem:[#allocation2 + $0x8] sm:$0xff] %vm19_vm0, %v58_v9 }
  0x8f   :  { %73 = vst.msk [vmem:[%s137_s3] sm:$0xff] %vm19_vm0, %v71_v11 }
  0x94   :  { %v66_v12 = vld [vmem:[#allocation2 + $0x8] sm:$0xff] }
  0x95   :  { %v72_v13 = vadd.f32 %v91_v7, %v66_v12 }
  0x97   :  { %74 = vst.msk [vmem:[%s137_s3 + $0x8] sm:$0xff] %vm19_vm0, %v72_v13 }

// kernel: generator_forward.29
= control target key start
LH: loop header
LB: loop body
LE: loop exit
PB: predicated region body
PF: predicated region fallthrough
CT: control target
= control target key end

     0   :  { %s453_s12 = smov 0   ;;  %s455_s13 = smov 0   ;;  %s492_s0 = inlined_call_operand.vmem [shape: bf16[2,16,32], index: 0, kind: input, shape index: {}]   ;;  %s493_s1 = inlined_call_operand.vmem [shape: f32[2,1,32], index: 1, kind: input, shape index: {}]   ;;  %s494_s2 = inlined_call_operand.vmem [shape: f32[2,1,32], index: 2, kind: input, shape index: {}]   ;;  %s495_s3 = inlined_call_operand.vmem [shape: bf16[2,16,32], index: 3, kind: output, shape index: {}]  }
   0x1   :  { %s457_s14 = smov 0  }
   0x2 LB: > { %s25_s15 = sadd.s32 1, %s427_s13  ;;  %p370_p0 = scmp.ge.s32.totalorder %s431_s14, 1  ;;  %s431_s14 = sphi %s457_s14, %s13_s14   ;;  %s427_s13 = sphi %s455_s13, %s497_s13   ;;  %s423_s12 = sphi %s453_s12, %s496_s12  }
   0x3   : > { %p27_p1 = scmp.ge.s32.totalorder %s25_s15, 2  ;;  %p174_p2 = scmp.lt.s32.totalorder %s431_s14, 3 }
   0x5   : > { %s499_s15 = smov (%p27_p1, %s25_s15), 0  ;;  %p175_p3 = pnand %p370_p0, %p174_p2 }
   0x6   : > { %p213_p4 = scmp.lt.s32.totalorder (!%p175_p3), %s423_s12, 1 }
   0x7   : > { %178 = sbr.rel (%p175_p3) target bundleno = 28 (0x1c), region = 32 }
   0xc   : > { %s501_s12 = smov (!%p213_p4, %s423_s12), 1  ;;  %vm258_vm0 = vcmask 257024  }
   0xd   : > { %s377_s16 = sshll.u32 %s501_s12, 3  ;;  %s224_s19 = scalar_lea.vmem %s493_s1, %s501_s12 }
   0xe   : > { %s220_s22 = scalar_lea.vmem %s492_s0, %s377_s16  ;;  %s227_s25 = scalar_lea.vmem %s494_s2, %s501_s12  ;;  %v407_v0 = vld [vmem:[%s224_s19] ss:$0 sm:$0xff] }
   0xf   : > { %v380_v1 = vld [vmem:[%s220_s22] sm:$0xff]   ;;  %s236_s28 = scalar_lea.vmem %s495_s3, %s377_s16 }
  0x10   : > { %v381_v2 = vunpack.c.l.bf16 %v380_v1  ;;  %v382_v3 = vunpack.c.h.bf16 %v380_v1  ;;  %v408_v4 = vld [vmem:[%s227_s25] ss:$0 sm:$0xff] }
  0x12   : > { %v246_v5 = vmul.f32 %v407_v0, %v381_v2  ;;  %v247_v6 = vmul.f32 %v407_v0, %v382_v3 }
  0x14   : > { %v252_v7 = vadd.f32 %v408_v4, %v246_v5  ;;  %v253_v8 = vadd.f32 %v408_v4, %v247_v6 }
  0x16   : > { %v254_v9 = vmax.f32 %v252_v7, 0.0  ;;  %v255_v10 = vmax.f32 %v253_v8, 0.0 }
  0x18   : > { %v256_v11 = vpack.c.bf16 %v254_v9, %v254_v9  ;;  %v257_v12 = vpack.c.bf16 %v255_v10, %v255_v10 }
  0x1a   : > { %259 = vst.msk [vmem:[%s236_s28] sm:$0xf] %vm258_vm0, %v256_v11 }
  0x1b   : > { %260 = vst.msk [vmem:[%s236_s28 + $0x4] sm:$0xf] %vm258_vm0, %v257_v12 }
  0x1c PF: > { %s13_s14 = sadd.s32 1, %s431_s14   ;;  %s496_s12 = smov %s427_s13 }
  0x1d   : > { %p10_p5 = scmp.ge.s32.totalorder %s13_s14, 4   ;;  %s497_s13 = smov %s499_s15 }
  0x1f   :  { %12 = sbr.rel (!%p10_p5) target bundleno = 2 (0x2), region = 68 }

// kernel: generator_forward.33
= control target key start
LH: loop header
LB: loop body
LE: loop exit
PB: predicated region body
PF: predicated region fallthrough
CT: control target
= control target key end

     0   :  { %vm14_vm0 = vcmask 122880   ;;  %v207_v0 = vmov 0.0   ;;  %vm50_vm1 = vcmask 130048   ;;  %s315_s1 = inlined_call_operand.vmem [shape: f32[1,16], index: 1, kind: output, shape index: {0}]   ;;  %s316_s2 = inlined_call_operand.vmem [shape: f32[1,16], index: 2, kind: output, shape index: {1}]   ;;  %s317_s0 = inlined_call_operand.vmem [shape: bf16[128,16], index: 0, kind: input, shape index: {}]  }
   0x1   :  { %15 = vst.msk [vmem:[%s315_s1] sm:$0x1] %vm14_vm0, %v207_v0  ;;  %v168_v1 = vld [vmem:[%s317_s0] sm:$0xff]   ;;  %v199_v2 = vld [vmem:[%s317_s0 + $0x8] sm:$0xff]   ;;  %v200_v6 = vld [vmem:[%s317_s0 + $0x10] sm:$0xff]  }
   0x2   :  { %16 = vst.msk [vmem:[%s316_s2] sm:$0x1] %vm14_vm0, %v207_v0  ;;  %v169_v3 = vunpack.c.l.bf16 %v168_v1  ;;  %v170_v4 = vunpack.c.h.bf16 %v168_v1  ;;  %v173_v5 = vunpack.c.l.bf16 %v199_v2  ;;  %v174_v7 = vunpack.c.h.bf16 %v199_v2  ;;  %v201_v12 = vld [vmem:[%s317_s0 + $0x18] sm:$0xff]   ;;  %v202_v19 = vld [vmem:[%s317_s0 + $0x20] sm:$0xff]   ;;  %v203_v31 = vld [vmem:[%s317_s0 + $0x28] sm:$0xff]  }
   0x3   :  { %v177_v8 = vunpack.c.l.bf16 %v200_v6  ;;  %v178_v14 = vunpack.c.h.bf16 %v200_v6  ;;  %v181_v17 = vunpack.c.l.bf16 %v201_v12  ;;  %v182_v24 = vunpack.c.h.bf16 %v201_v12  ;;  %v204_v45 = vld [vmem:[%s317_s0 + $0x30] sm:$0xff]   ;;  %v205_v58 = vld [vmem:[%s317_s0 + $0x38] sm:$0xff]  }
   0x4   :  { %v51_v9 = vsel %vm50_vm1, %v169_v3, 0.0  ;;  %v52_v10 = vsel %vm50_vm1, %v170_v4, 0.0  ;;  %v54_v11 = vsel %vm50_vm1, %v173_v5, 0.0  ;;  %v56_v15 = vsel %vm50_vm1, %v174_v7, 0.0 }
   0x5   :  { %v53_v13 = vadd.f32 %v52_v10, %v51_v9  ;;  %v58_v18 = vsel %vm50_vm1, %v177_v8, 0.0  ;;  %v92_v21 = vmul.f32 %v169_v3, %v169_v3  ;;  %v93_v22 = vmul.f32 %v170_v4, %v170_v4 }
   0x6   :  { %v94_v23 = vmul.f32 %v173_v5, %v173_v5  ;;  %v60_v25 = vsel %vm50_vm1, %v178_v14, 0.0  ;;  %v95_v27 = vmul.f32 %v174_v7, %v174_v7  ;;  %v185_v28 = vunpack.c.l.bf16 %v202_v19 }
   0x7   :  { %v55_v16 = vadd.f32 %v54_v11, %v53_v13  ;;  %v62_v29 = vsel %vm50_vm1, %v181_v17, 0.0  ;;  %v96_v30 = vmul.f32 %v177_v8, %v177_v8  ;;  %v108_v33 = vsel %vm50_vm1, %v92_v21, 0.0 }
   0x8   :  { %v109_v34 = vsel %vm50_vm1, %v93_v22, 0.0  ;;  %v111_v35 = vsel %vm50_vm1, %v94_v23, 0.0  ;;  %v186_v36 = vunpack.c.h.bf16 %v202_v19  ;;  %v64_v37 = vsel %vm50_vm1, %v182_v24, 0.0 }
   0x9   :  { %v57_v20 = vadd.f32 %v56_v15, %v55_v16  ;;  %v110_v38 = vadd.f32 %v109_v34, %v108_v33  ;;  %v97_v40 = vmul.f32 %v178_v14, %v178_v14  ;;  %v113_v41 = vsel %vm50_vm1, %v95_v27, 0.0 }
   0xa   :  { %v189_v42 = vunpack.c.l.bf16 %v203_v31  ;;  %v66_v43 = vsel %vm50_vm1, %v185_v28, 0.0  ;;  %v98_v47 = vmul.f32 %v181_v17, %v181_v17  ;;  %v115_v48 = vsel %vm50_vm1, %v96_v30, 0.0 }
   0xb   :  { %v59_v26 = vadd.f32 %v58_v18, %v57_v20  ;;  %v112_v44 = vadd.f32 %v111_v35, %v110_v38  ;;  %v190_v49 = vunpack.c.h.bf16 %v203_v31  ;;  %v68_v50 = vsel %vm50_vm1, %v186_v36, 0.0 }
   0xc   :  { %v99_v53 = vmul.f32 %v182_v24, %v182_v24  ;;  %v117_v54 = vsel %vm50_vm1, %v97_v40, 0.0  ;;  %v193_v55 = vunpack.c.l.bf16 %v204_v45  ;;  %v70_v56 = vsel %vm50_vm1, %v189_v42, 0.0 }
   0xd   :  { %v61_v32 = vadd.f32 %v60_v25, %v59_v26  ;;  %v114_v51 = vadd.f32 %v113_v41, %v112_v44  ;;  %v100_v60 = vmul.f32 %v185_v28, %v185_v28  ;;  %v119_v61 = vsel %vm50_vm1, %v98_v47, 0.0  ;;  %v49_v44 = vld [vmem:[%s315_s1] sm:$0x1] }
   0xe   :  { %v194_v62 = vunpack.c.h.bf16 %v204_v45  ;;  %v72_v63 = vsel %vm50_vm1, %v190_v49, 0.0  ;;  %v101_v2 = vmul.f32 %v186_v36, %v186_v36  ;;  %v121_v3 = vsel %vm50_vm1, %v99_v53, 0.0 }
   0xf   :  { %v63_v39 = vadd.f32 %v62_v29, %v61_v32  ;;  %v116_v57 = vadd.f32 %v115_v48, %v114_v51  ;;  %v197_v4 = vunpack.c.l.bf16 %v205_v58  ;;  %v74_v5 = vsel %vm50_vm1, %v193_v55, 0.0 }
  0x10   :  { %v102_v8 = vmul.f32 %v189_v42, %v189_v42  ;;  %v123_v9 = vsel %vm50_vm1, %v100_v60, 0.0  ;;  %v198_v10 = vunpack.c.h.bf16 %v205_v58  ;;  %v76_v11 = vsel %vm50_vm1, %v194_v62, 0.0 }
  0x11   :  { %v65_v46 = vadd.f32 %v64_v37, %v63_v39  ;;  %v118_v0 = vadd.f32 %v117_v54, %v116_v57  ;;  %v103_v14 = vmul.f32 %v190_v49, %v190_v49  ;;  %v125_v15 = vsel %vm50_vm1, %v101_v2, 0.0 }
  0x12   :  { %v78_v16 = vsel %vm50_vm1, %v197_v4, 0.0  ;;  %v104_v19 = vmul.f32 %v193_v55, %v193_v55  ;;  %v127_v20 = vsel %vm50_vm1, %v102_v8, 0.0  ;;  %v80_v21 = vsel %vm50_vm1, %v198_v10, 0.0 }
  0x13   :  { %v67_v52 = vadd.f32 %v66_v43, %v65_v46  ;;  %v120_v6 = vadd.f32 %v119_v61, %v118_v0  ;;  %v105_v24 = vmul.f32 %v194_v62, %v194_v62  ;;  %v129_v25 = vsel %vm50_vm1, %v103_v14, 0.0 }
  0x14   :  { %v106_v28 = vmul.f32 %v197_v4, %v197_v4  ;;  %v131_v29 = vsel %vm50_vm1, %v104_v19, 0.0  ;;  %v107_v32 = vmul.f32 %v198_v10, %v198_v10 }
  0x15   :  { %v69_v59 = vadd.f32 %v68_v50, %v67_v52  ;;  %v122_v12 = vadd.f32 %v121_v3, %v120_v6  ;;  %v133_v33 = vsel %vm50_vm1, %v105_v24, 0.0  ;;  %v91_v52 = vld [vmem:[%s316_s2] sm:$0x1] }
  0x16   :  { %v135_v36 = vsel %vm50_vm1, %v106_v28, 0.0  ;;  %v137_v39 = vsel %vm50_vm1, %v107_v32, 0.0 }
  0x17   :  { %v71_v1 = vadd.f32 %v70_v56, %v69_v59  ;;  %v124_v17 = vadd.f32 %v123_v9, %v122_v12 }
  0x19   :  { %v73_v7 = vadd.f32 %v72_v63, %v71_v1  ;;  %v126_v22 = vadd.f32 %v125_v15, %v124_v17 }
  0x1b   :  { %v75_v13 = vadd.f32 %v74_v5, %v73_v7  ;;  %v128_v26 = vadd.f32 %v127_v20, %v126_v22 }
  0x1d   :  { %v77_v18 = vadd.f32 %v76_v11, %v75_v13  ;;  %v130_v30 = vadd.f32 %v129_v25, %v128_v26 }
  0x1f   :  { %v79_v23 = vadd.f32 %v78_v16, %v77_v18  ;;  %v132_v34 = vadd.f32 %v131_v29, %v130_v30 }
  0x21   :  { %v81_v27 = vadd.f32 %v80_v21, %v79_v23  ;;  %v134_v37 = vadd.f32 %v133_v33, %v132_v34 }
  0x23   :  { %v82_v31 = vrot.slane %v81_v27, 4  ;;  %v136_v40 = vadd.f32 %v135_v36, %v134_v37 }
  0x25   :  { %v83_v35 = vadd.f32 %v82_v31, %v81_v27  ;;  %v138_v42 = vadd.f32 %v137_v39, %v136_v40 }
  0x27   :  { %v84_v38 = vrot.slane %v83_v35, 2  ;;  %v139_v45 = vrot.slane %v138_v42, 4 }
  0x29   :  { %v85_v41 = vadd.f32 %v84_v38, %v83_v35  ;;  %v140_v47 = vadd.f32 %v139_v45, %v138_v42 }
  0x2b   :  { %v86_v43 = vrot.slane %v85_v41, 1  ;;  %v141_v49 = vrot.slane %v140_v47, 2 }
  0x2d   :  { %v87_v46 = vadd.f32 %v86_v43, %v85_v41  ;;  %v142_v50 = vadd.f32 %v141_v49, %v140_v47 }
  0x2f   :  { %v88_v48 = vadd.f32 %v87_v46, %v49_v44  ;;  %v143_v51 = vrot.slane %v142_v50, 1 }
  0x31   :  { %90 = vst.msk [vmem:[%s315_s1] sm:$0x1] %vm14_vm0, %v88_v48  ;;  %v144_v53 = vadd.f32 %v143_v51, %v142_v50 }
  0x33   :  { %v145_v54 = vadd.f32 %v144_v53, %v91_v52 }
  0x35   :  { %146 = vst.msk [vmem:[%s316_s2] sm:$0x1] %vm14_vm0, %v145_v54 }
  0x38   :  { %v150_v55 = vld [vmem:[%s315_s1] sm:$0x1] }
  0x39   :  { %v151_v56 = vmul.f32 0.0078125, %v150_v55 }
  0x3b   :  { %156 = vst.msk [vmem:[%s315_s1] sm:$0x1] %vm14_vm0, %v151_v56  ;;  %v154_v57 = vmul.f32 %v151_v56, %v151_v56 }
  0x3c   :  { %v152_v58 = vld [vmem:[%s316_s2] sm:$0x1] }
  0x3d   :  { %v153_v59 = vmul.f32 0.0078125, %v152_v58 }
  0x3f   :  { %v155_v60 = vsub.f32 %v153_v59, %v154_v57 }
  0x41   :  { %v157_v61 = vmax.f32 %v155_v60, 0.0 }
  0x43   :  { %158 = vst.msk [vmem:[%s316_s2] sm:$0x1] %vm14_vm0, %v157_v61 }

// kernel: generator_forward.34
= control target key start
LH: loop header
LB: loop body
LE: loop exit
PB: predicated region body
PF: predicated region fallthrough
CT: control target
= control target key end

     0   :  { %s510_s12 = smov 0   ;;  %s512_s13 = smov 0   ;;  %s566_s0 = inlined_call_operand.vmem [shape: bf16[2,64,16], index: 0, kind: input, shape index: {}]   ;;  %s567_s1 = inlined_call_operand.vmem [shape: f32[2,1,16], index: 1, kind: input, shape index: {}]   ;;  %s568_s2 = inlined_call_operand.vmem [shape: f32[2,1,16], index: 2, kind: input, shape index: {}]   ;;  %s569_s3 = inlined_call_operand.vmem [shape: bf16[2,64,16], index: 3, kind: output, shape index: {}]  }
   0x1   :  { %s514_s14 = smov 0  }
   0x2 LB: > { %s25_s15 = sadd.s32 1, %s484_s13  ;;  %p412_p0 = scmp.ge.s32.totalorder %s488_s14, 1  ;;  %s488_s14 = sphi %s514_s14, %s13_s14   ;;  %s484_s13 = sphi %s512_s13, %s571_s13   ;;  %s480_s12 = sphi %s510_s12, %s570_s12  }
   0x3   : > { %p27_p1 = scmp.ge.s32.totalorder %s25_s15, 2  ;;  %p174_p2 = scmp.lt.s32.totalorder %s488_s14, 3 }
   0x5   : > { %s573_s15 = smov (%p27_p1, %s25_s15), 0  ;;  %p175_p3 = pnand %p412_p0, %p174_p2 }
   0x6   : > { %p213_p4 = scmp.lt.s32.totalorder (!%p175_p3), %s480_s12, 1 }
   0x7   : > { %178 = sbr.rel (%p175_p3) target bundleno = 34 (0x22), region = 32 }
   0xc   : > { %s575_s12 = smov (!%p213_p4, %s480_s12), 1  ;;  %vm294_vm0 = vcmask 125952  }
   0xd   : > { %s419_s16 = sshll.u32 %s575_s12, 5  ;;  %s224_s19 = scalar_lea.vmem %s567_s1, %s575_s12 }
   0xe   : > { %s220_s22 = scalar_lea.vmem %s566_s0, %s419_s16  ;;  %s227_s25 = scalar_lea.vmem %s568_s2, %s575_s12  ;;  %v464_v0 = vld [vmem:[%s224_s19] ss:$0 sm:$0xff] }
   0xf   : > { %v422_v1 = vld [vmem:[%s220_s22] sm:$0xff]   ;;  %v437_v5 = vld [vmem:[%s220_s22 + $0x8] sm:$0xff]   ;;  %v438_v6 = vld [vmem:[%s220_s22 + $0x10] sm:$0xff]   ;;  %s236_s28 = scalar_lea.vmem %s569_s3, %s419_s16 }
  0x10   : > { %v465_v2 = vld [vmem:[%s227_s25] ss:$0 sm:$0xff]  ;;  %v423_v3 = vunpack.c.l.bf16 %v422_v1  ;;  %v424_v4 = vunpack.c.h.bf16 %v422_v1  ;;  %v439_v7 = vld [vmem:[%s220_s22 + $0x18] sm:$0xff]   ;;  %v427_v8 = vunpack.c.l.bf16 %v437_v5  ;;  %v428_v9 = vunpack.c.h.bf16 %v437_v5 }
  0x11   : > { %v431_v10 = vunpack.c.l.bf16 %v438_v6  ;;  %v432_v11 = vunpack.c.h.bf16 %v438_v6  ;;  %v435_v14 = vunpack.c.l.bf16 %v439_v7  ;;  %v436_v15 = vunpack.c.h.bf16 %v439_v7 }
  0x12   : > { %v258_v12 = vmul.f32 %v464_v0, %v423_v3  ;;  %v259_v13 = vmul.f32 %v464_v0, %v424_v4  ;;  %v260_v16 = vmul.f32 %v464_v0, %v427_v8  ;;  %v261_v17 = vmul.f32 %v464_v0, %v428_v9 }
  0x13   : > { %v262_v18 = vmul.f32 %v464_v0, %v431_v10  ;;  %v263_v19 = vmul.f32 %v464_v0, %v432_v11  ;;  %v264_v22 = vmul.f32 %v464_v0, %v435_v14  ;;  %v265_v23 = vmul.f32 %v464_v0, %v436_v15 }
  0x14   : > { %v270_v20 = vadd.f32 %v465_v2, %v258_v12  ;;  %v271_v21 = vadd.f32 %v465_v2, %v259_v13  ;;  %v272_v24 = vadd.f32 %v465_v2, %v260_v16  ;;  %v273_v25 = vadd.f32 %v465_v2, %v261_v17 }
  0x15   : > { %v274_v26 = vadd.f32 %v465_v2, %v262_v18  ;;  %v275_v27 = vadd.f32 %v465_v2, %v263_v19  ;;  %v276_v30 = vadd.f32 %v465_v2, %v264_v22  ;;  %v277_v31 = vadd.f32 %v465_v2, %v265_v23 }
  0x16   : > { %v278_v28 = vmax.f32 %v270_v20, 0.0  ;;  %v279_v29 = vmax.f32 %v271_v21, 0.0  ;;  %v280_v32 = vmax.f32 %v272_v24, 0.0  ;;  %v281_v33 = vmax.f32 %v273_v25, 0.0 }
  0x17   : > { %v282_v34 = vmax.f32 %v274_v26, 0.0  ;;  %v283_v35 = vmax.f32 %v275_v27, 0.0  ;;  %v284_v38 = vmax.f32 %v276_v30, 0.0  ;;  %v285_v41 = vmax.f32 %v277_v31, 0.0 }
  0x18   : > { %v286_v36 = vpack.c.bf16 %v278_v28, %v278_v28  ;;  %v287_v37 = vpack.c.bf16 %v279_v29, %v279_v29  ;;  %v288_v39 = vpack.c.bf16 %v280_v32, %v280_v32  ;;  %v289_v40 = vpack.c.bf16 %v281_v33, %v281_v33 }
  0x19   : > { %v290_v42 = vpack.c.bf16 %v282_v34, %v282_v34  ;;  %v291_v43 = vpack.c.bf16 %v283_v35, %v283_v35  ;;  %v292_v44 = vpack.c.bf16 %v284_v38, %v284_v38  ;;  %v293_v45 = vpack.c.bf16 %v285_v41, %v285_v41 }
  0x1a   : > { %295 = vst.msk [vmem:[%s236_s28] sm:$0xf] %vm294_vm0, %v286_v36 }
  0x1b   : > { %296 = vst.msk [vmem:[%s236_s28 + $0x4] sm:$0xf] %vm294_vm0, %v287_v37 }
  0x1c   : > { %297 = vst.msk [vmem:[%s236_s28 + $0x8] sm:$0xf] %vm294_vm0, %v288_v39 }
  0x1d   : > { %298 = vst.msk [vmem:[%s236_s28 + $0xc] sm:$0xf] %vm294_vm0, %v289_v40 }
  0x1e   : > { %299 = vst.msk [vmem:[%s236_s28 + $0x10] sm:$0xf] %vm294_vm0, %v290_v42 }
  0x1f   : > { %300 = vst.msk [vmem:[%s236_s28 + $0x14] sm:$0xf] %vm294_vm0, %v291_v43 }
  0x20   : > { %301 = vst.msk [vmem:[%s236_s28 + $0x18] sm:$0xf] %vm294_vm0, %v292_v44 }
  0x21   : > { %302 = vst.msk [vmem:[%s236_s28 + $0x1c] sm:$0xf] %vm294_vm0, %v293_v45 }
  0x22 PF: > { %s13_s14 = sadd.s32 1, %s488_s14   ;;  %s570_s12 = smov %s484_s13 }
  0x23   : > { %p10_p5 = scmp.ge.s32.totalorder %s13_s14, 4   ;;  %s571_s13 = smov %s573_s15 }
  0x25   :  { %12 = sbr.rel (!%p10_p5) target bundleno = 2 (0x2), region = 68 }

// kernel: generator_forward.31
= control target key start
LH: loop header
LB: loop body
LE: loop exit
PB: predicated region body
PF: predicated region fallthrough
CT: control target
= control target key end

     0   :  { %vm19_vm0 = vcmask 130048   ;;  %v91_v1 = vmov 0.0   ;;  %s134_s1 = inlined_call_operand.vmem [shape: bf16[16,16], index: 1, kind: input, shape index: {}]   ;;  %s135_s0 = inlined_call_operand.vmem [shape: bf16[16,16], index: 0, kind: input, shape index: {}]   ;;  %s136_s2 = inlined_call_operand.vmem [shape: f32[1,16], index: 2, kind: input, shape index: {}]   ;;  %s137_s3 = inlined_call_operand.vmem [shape: f32[16,16], index: 3, kind: output, shape index: {}]  }
   0x1   :  { %v88_v0 = vld [vmem:[%s134_s1] sm:$0xff]  ;;  %20 = vst.msk [vmem:[#allocation2] sm:$0xff] %vm19_vm0, %v91_v1 }
   0x2   :  { %v87_v2 = vld [vmem:[%s135_s0] sm:$0xff]  ;;  %21 = vst.msk [vmem:[#allocation2 + $0x8] sm:$0xff] %vm19_vm0, %v91_v1  ;;  %50 = vmatpush.bf16.msra.mxu0 %v88_v0 }
   0x3   :  { %v90_v7 = vld [vmem:[%s136_s2] ss:$0 sm:$0xff] }
   0x5   :  { %86 = vmatmul.msk.bf16.vlgmr.msra.gmra.mxu0 %vm19_vm0, %v87_v2 }
   0x8   :  { %v22_v3 = vld [vmem:[#allocation2] sm:$0xff] }
   0x9   :  { %v23_v6 = vld [vmem:[#allocation2 + $0x8] sm:$0xff] }
  0x82   :  { %v52_v4 = vpop.f32.mrf.mxu0 }
  0x83   :  { %v57_v5 = vadd.f32 %v52_v4, %v22_v3 }
  0x85   :  { %59 = vst.msk [vmem:[#allocation2] sm:$0xff] %vm19_vm0, %v57_v5 }
  0x8a   :  { %v54_v8 = vpop.f32.mrf.mxu0 }
  0x8b   :  { %v58_v9 = vadd.f32 %v54_v8, %v23_v6 }
  0x8c   :  { %v64_v10 = vld [vmem:[#allocation2] sm:$0xff] }
  0x8d   :  { %v70_v11 = vadd.f32 %v90_v7, %v64_v10  ;;  %60 = vst.msk [vmem:[#allocation2 + $0x8] sm:$0xff] %vm19_vm0, %v58_v9 }
  0x8f   :  { %72 = vst.msk [vmem:[%s137_s3] sm:$0xff] %vm19_vm0, %v70_v11 }
  0x94   :  { %v65_v12 = vld [vmem:[#allocation2 + $0x8] sm:$0xff] }
  0x95   :  { %v71_v13 = vadd.f32 %v90_v7, %v65_v12 }
  0x97   :  { %73 = vst.msk [vmem:[%s137_s3 + $0x8] sm:$0xff] %vm19_vm0, %v71_v13 }

// kernel: generator_forward.30
= control target key start
LH: loop header
LB: loop body
LE: loop exit
PB: predicated region body
PF: predicated region fallthrough
CT: control target
= control target key end

     0   :  { %s1620_s12 = smov 0   ;;  %s1622_s13 = smov 0   ;;  %s2012_s0 = inlined_call_operand.vmem [shape: bf16[2,104,32], index: 0, kind: input, shape index: {}]   ;;  %s2013_s1 = inlined_call_operand.vmem [shape: bf16[9,32,16], index: 1, kind: input, shape index: {}]   ;;  %s2014_s2 = inlined_call_operand.vmem [shape: f32[1,16], index: 2, kind: input, shape index: {}]   ;;  %s2015_s3 = inlined_call_operand.vmem [shape: bf16[2,80,16], index: 3, kind: output, shape index: {}]  }
   0x1   :  { %s1624_s14 = smov 0  }
   0x2 LB: > { %s32_s15 = sadd.s32 1, %s1594_s13  ;;  %p1314_p0 = scmp.ge.s32.totalorder %s1598_s14, 1  ;;  %s1598_s14 = sphi %s1624_s14, %s13_s14   ;;  %s1594_s13 = sphi %s1622_s13, %s2017_s13   ;;  %s1590_s12 = sphi %s1620_s12, %s2016_s12  }
   0x3   : > { %p34_p1 = scmp.ge.s32.totalorder %s32_s15, 2  ;;  %p177_p2 = scmp.lt.s32.totalorder %s1598_s14, 3 }
   0x5   : > { %s2019_s15 = smov (%p34_p1, %s32_s15), 0  ;;  %p178_p3 = pnand %p1314_p0, %p177_p2 }
   0x6   : > { %p215_p4 = scmp.lt.s32.totalorder (!%p178_p3), %s1590_s12, 1 }
   0x7   : > { %181 = sbr.rel (%p178_p3) target bundleno = 351 (0x15f), region = 32 }
   0xc   : > { %v1471_v0 = vld [vmem:[%s2013_s1 + $0x18] sm:$0xff]  ;;  %v1470_v1 = vld [vmem:[%s2013_s1 + $0x10] sm:$0xff]  ;;  %s2021_s12 = smov (!%p215_p4, %s1590_s12), 1  ;;  %v1473_v2 = vld [vmem:[%s2013_s1 + $0x28] sm:$0xff]  ;;  %vm287_vm0 = vsmask.f32 7424 }
   0xd   : > { %1543 = vmatpush.bf16.msra.mxu1 %v1471_v0  ;;  %1544 = vmatpush.bf16.msra.mxu2 %v1471_v0  ;;  %s1549_s22 = smul.u32 52, %s2021_s12  ;;  %v1469_v3 = vld [vmem:[%s2013_s1 + $0x8] sm:$0xff]  ;;  %v1475_v4 = vld [vmem:[%s2013_s1 + $0x38] sm:$0xff]  ;;  %v1468_v6 = vld [vmem:[%s2013_s1] sm:$0xff]  ;;  %vm344_vm1 = vcmask 261120   ;;  %vm461_vm2 = vcmask 1046528  }
   0xe   : > { %1545 = vmatpush.bf16.msra.mxu3 %v1471_v0  ;;  %366 = vmatpush.bf16.msra.mxu0 %v1471_v0  ;;  %v1477_v5 = vld [vmem:[%s2013_s1 + $0x48] sm:$0xff]  ;;  %v1472_v7 = vld [vmem:[%s2013_s1 + $0x20] sm:$0xff]  ;;  %v1474_v20 = vld [vmem:[%s2013_s1 + $0x30] sm:$0xff]  ;;  %vm648_vm3 = vsmask.f32 6400  ;;  %vm778_vm4 = vcmask 1045504  }
   0xf   : > { %s1662_s4 = scalar_lea.vmem %s2012_s0, %s1549_s22  ;;  %v1476_v21 = vld [vmem:[%s2013_s1 + $0x40] sm:$0xff]  ;;  %v1481_v39 = vld [vmem:[%s2013_s1 + $0x68] sm:$0xff]  ;;  %v1483_v40 = vld [vmem:[%s2013_s1 + $0x78] sm:$0xff]  ;;  %vm957_vm5 = vsmask.f32 5376  ;;  %vm1067_vm6 = vcmask 1044480  }
  0x10   : > { %v1671_v8 = vld [vmem:[%s1662_s4 + $0x8] sm:$0xff]   ;;  %v1674_v9 = vld [vmem:[%s1662_s4 + $0x10] sm:$0xff]   ;;  %v1677_v10 = vld [vmem:[%s1662_s4 + $0x18] sm:$0xff]   ;;  %s1550_s8 = smul.u32 40, %s2021_s12  ;;  %vm1174_vm7 = vcmask 125952  }
  0x11   : > { %1546 = vmatpush.bf16.msra.mxu1 %v1470_v1  ;;  %1547 = vmatpush.bf16.msra.mxu2 %v1470_v1  ;;  %v296_v11 = vshll.u32 %v1671_v8, 16  ;;  %v300_v12 = vshrl.u32 %v1671_v8, 16  ;;  %v304_v13 = vshll.u32 %v1674_v9, 16  ;;  %v308_v14 = vshrl.u32 %v1674_v9, 16  ;;  %v1684_v15 = vld [vmem:[%s1662_s4 + $0x20] sm:$0xff]   ;;  %v1687_v16 = vld [vmem:[%s1662_s4 + $0x28] sm:$0xff]  }
  0x12   : > { %1548 = vmatpush.bf16.msra.mxu3 %v1470_v1  ;;  %367 = vmatpush.bf16.msra.mxu0 %v1470_v1  ;;  %v312_v17 = vshll.u32 %v1677_v10, 16  ;;  %v1691_v18 = vunpack.c.l.bf16 %v1687_v16  ;;  %v320_v19 = vshll.u32 %v1684_v15, 16  ;;  %v1705_v24 = vld [vmem:[%s1662_s4] sm:$0xff]   ;;  %v324_v30 = vshrl.u32 %v1684_v15, 16  ;;  %v1479_v41 = vld [vmem:[%s2013_s1 + $0x58] sm:$0xff]  ;;  %v1485_v44 = vld [vmem:[%s2013_s1 + $0x88] sm:$0xff]  ;;  %s1964_s11 = scalar_lea.vmem %s2015_s3, %s1550_s8 }
  0x13   : > { %v298_v22 = vrot.slane %v296_v11, 1  ;;  %v306_v23 = vrot.slane %v304_v13, 1  ;;  %v289_v32 = vshrl.u32 %v1705_v24, 16  ;;  %v291_v33 = vshll.u32 %v1705_v24, 16  ;;  %v1745_v46 = vld [vmem:[%s1662_s4 + $0x4] sm:$0xff]   ;;  %v1748_v47 = vld [vmem:[%s1662_s4 + $0xc] sm:$0xff]  }
  0x14   : > { %v314_v25 = vrot.slane %v312_v17, 1  ;;  %v1711_v26 = vpack.c.bf16 %v1691_v18, %v1691_v18  ;;  %v322_v27 = vrot.slane %v320_v19, 1  ;;  %v316_v48 = vshrl.u32 %v1677_v10, 16  ;;  %v1768_v1 = vld [vmem:[%s1662_s4 + $0x14] sm:$0xff]  }
  0x15   : > { %506 = vmatpush.bf16.msrb.mxu2 %v1473_v2  ;;  %422 = vmatpush.bf16.msrb.mxu1 %v1469_v3  ;;  %v302_v28 = vor.u32 %v300_v12, %v298_v22  ;;  %v310_v29 = vor.u32 %v308_v14, %v306_v23  ;;  %v293_v38 = vrot.slane %v291_v33, 1  ;;  %v650_v49 = vshrl.u32 %v1745_v46, 16 }
  0x16   : > { %605 = vmatpush.bf16.msrb.mxu3 %v1475_v4  ;;  %735 = vmatpush.bf16.msrb.mxu0 %v1477_v5  ;;  %v328_v31 = vshll.u32 %v1711_v26, 16  ;;  %v326_v36 = vor.u32 %v324_v30, %v322_v27  ;;  %v653_v50 = vshll.u32 %v1745_v46, 16  ;;  %v658_v51 = vshrl.u32 %v1748_v47, 16 }
  0x17   : > { %v307_v34 = vsel %vm287_vm0, %v302_v28, %v306_v23  ;;  %v315_v35 = vsel %vm287_vm0, %v310_v29, %v314_v25  ;;  %v294_v43 = vor.u32 %v293_v38, %v289_v32  ;;  %v661_v52 = vshll.u32 %v1748_v47, 16  ;;  %v1478_v28 = vld [vmem:[%s2013_s1 + $0x50] sm:$0xff]  ;;  %v1793_v29 = vld [vmem:[%s1662_s4 + $0x1c] sm:$0xff]  }
  0x18   : > { %1330 = vmatmul.msk.bf16.vlgmr.msra.gmra.mxu1 %vm344_vm1, %v307_v34  ;;  %1331 = vmatmul.msk.bf16.vlgmr.msra.gmra.mxu2 %vm344_vm1, %v315_v35  ;;  %v330_v37 = vrot.slane %v328_v31, 1  ;;  %v318_v53 = vor.u32 %v316_v48, %v314_v25  ;;  %v652_v54 = vrot.slane %v650_v49, 1  ;;  %v655_v55 = vrot.slane %v653_v50, 2 }
  0x19   : > { %507 = vmatpush.bf16.msrb.mxu2 %v1472_v7  ;;  %423 = vmatpush.bf16.msrb.mxu1 %v1468_v6  ;;  %v299_v45 = vsel %vm287_vm0, %v294_v43, %v298_v22  ;;  %v660_v56 = vrot.slane %v658_v51, 1  ;;  %v663_v57 = vrot.slane %v661_v52, 2  ;;  %v561_v58 = vrot.slane %v1745_v46, 1 }
  0x1a   : > { %606 = vmatpush.bf16.msrb.mxu3 %v1474_v20  ;;  %736 = vmatpush.bf16.msrb.mxu0 %v1476_v21  ;;  %v331_v42 = vsel %vm287_vm0, %v326_v36, %v330_v37  ;;  %v562_v59 = vrot.slane %v1748_v47, 1  ;;  %v323_v60 = vsel %vm287_vm0, %v318_v53, %v322_v27  ;;  %v656_v61 = vor.u32 %v655_v55, %v652_v54  ;;  %v1482_v27 = vld [vmem:[%s2013_s1 + $0x70] sm:$0xff] }
  0x1b   : > { %1333 = vmatmul.msk.bf16.vlgmr.msra.gmra.mxu3 %vm344_vm1, %v331_v42  ;;  %1329 = vmatmul.msk.bf16.vlgmr.msra.gmra.mxu0 %vm344_vm1, %v299_v45  ;;  %v664_v62 = vor.u32 %v663_v57, %v660_v56  ;;  %v667_v2 = vshrl.u32 %v1768_v1, 16  ;;  %v670_v3 = vshll.u32 %v1768_v1, 16  ;;  %v462_v4 = vrot.slane %v1705_v24, 1 }
  0x1c   : > { %v563_v63 = vsel %vm461_vm2, %v561_v58, %v562_v59  ;;  %v463_v5 = vrot.slane %v1671_v8, 1  ;;  %v564_v20 = vrot.slane %v1768_v1, 1  ;;  %v676_v31 = vshrl.u32 %v1793_v29, 16 }
  0x1d   : > { %914 = vmatpush.bf16.msra.mxu2 %v1481_v39  ;;  %823 = vmatpush.bf16.msra.mxu1 %v1479_v41  ;;  %v665_v0 = vsel %vm648_vm3, %v656_v61, %v664_v62  ;;  %v669_v6 = vrot.slane %v667_v2, 1  ;;  %v672_v7 = vrot.slane %v670_v3, 2  ;;  %v679_v32 = vshll.u32 %v1793_v29, 16  ;;  %v1484_v41 = vld [vmem:[%s2013_s1 + $0x80] sm:$0xff] }
  0x1e   : > { %1024 = vmatpush.bf16.msra.mxu3 %v1483_v40  ;;  %1112 = vmatpush.bf16.msra.mxu0 %v1485_v44  ;;  %v464_v21 = vsel %vm461_vm2, %v462_v4, %v463_v5  ;;  %v565_v23 = vsel %vm461_vm2, %v562_v59, %v564_v20  ;;  %v465_v33 = vrot.slane %v1674_v9, 1  ;;  %v678_v34 = vrot.slane %v676_v31, 1 }
  0x1f   : > { %v673_v22 = vor.u32 %v672_v7, %v669_v6  ;;  %v681_v35 = vrot.slane %v679_v32, 2  ;;  %v566_v36 = vrot.slane %v1793_v29, 1  ;;  %v1505_v39 = vunpack.c.h.bf16 %v1684_v15 }
  0x20   : > { %v466_v37 = vsel %vm461_vm2, %v463_v5, %v465_v33  ;;  %v469_v43 = vrot.slane %v1684_v15, 1  ;;  %v471_v44 = vrot.slane %v1711_v26, 1  ;;  %v467_v52 = vrot.slane %v1677_v10, 1 }
  0x21   : > { %v674_v25 = vsel %vm648_vm3, %v664_v62, %v673_v22  ;;  %824 = vmatpush.bf16.msra.mxu1 %v1478_v28  ;;  %v682_v38 = vor.u32 %v681_v35, %v678_v34  ;;  %v567_v40 = vsel %vm461_vm2, %v564_v20, %v566_v36  ;;  %v1814_v45 = vpack.c.bf16 %v1691_v18, %v1505_v39 }
  0x22   : > { %1025 = vmatpush.bf16.msra.mxu3 %v1482_v27  ;;  %1113 = vmatpush.bf16.msra.mxu0 %v1484_v41  ;;  %v472_v49 = vsel %vm461_vm2, %v469_v43, %v471_v44  ;;  %v962_v55 = vrot.slane %v304_v13, 3  ;;  %v961_v26 = vrot.slane %v308_v14, 2  ;;  %v468_v56 = vsel %vm461_vm2, %v465_v33, %v467_v52 }
  0x23   : > { %v683_v42 = vsel %vm648_vm3, %v673_v22, %v682_v38  ;;  %v685_v50 = vshrl.u32 %v1814_v45, 16  ;;  %v688_v51 = vshll.u32 %v1814_v45, 16  ;;  %v568_v18 = vrot.slane %v1814_v45, 1 }
  0x24   : > { %v779_v57 = vrot.slane %v1745_v46, 2  ;;  %v780_v58 = vrot.slane %v1748_v47, 2  ;;  %v958_v59 = vrot.slane %v300_v12, 2  ;;  %v1509_v14 = vunpack.c.h.bf16 %v1687_v16 }
  0x25   : > { %v687_v53 = vrot.slane %v685_v50, 1  ;;  %v690_v54 = vrot.slane %v688_v51, 2  ;;  %v569_v13 = vsel %vm461_vm2, %v566_v36, %v568_v18  ;;  %v959_v46 = vrot.slane %v296_v11, 3 }
  0x26   : > { %v781_v61 = vsel %vm778_vm4, %v779_v57, %v780_v58  ;;  %v963_v47 = vor.u32 %v962_v55, %v961_v26  ;;  %v470_v20 = vsel %vm461_vm2, %v467_v52, %v469_v43  ;;  %v965_v27 = vrot.slane %v316_v48, 2  ;;  %v258_v55 = vld [vmem:[%s1662_s4 + $0x30] sm:$0xf] }
  0x27   : > { %v960_v62 = vor.u32 %v959_v46, %v958_v59  ;;  %v966_v28 = vrot.slane %v312_v17, 3  ;;  %v870_v31 = vrot.slane %v1671_v8, 2  ;;  %v871_v32 = vrot.slane %v1674_v9, 2 }
  0x28   : > { %1332 = vmatmul.msk.bf16.gmra.mxu2 %vm344_vm1, %v323_v60  ;;  %1342 = vmatmul.msk.bf16.vlgmr.msrb.gmra.mxu1 %vm344_vm1, %v1705_v24  ;;  %v1480_v24 = vld [vmem:[%s2013_s1 + $0x60] sm:$0xff]  ;;  %v691_v60 = vor.u32 %v690_v54, %v687_v53  ;;  %v1071_v35 = vrot.slane %v1677_v10, 3  ;;  %v784_v17 = vrot.slane %v1793_v29, 2  ;;  %v977_v44 = vshll.u32 %v1687_v16, 16 }
  0x29   : > { %915 = vmatpush.bf16.msra.mxu2 %v1480_v24  ;;  %v964_v2 = vsel %vm957_vm5, %v960_v62, %v963_v47  ;;  %v1069_v24 = vrot.slane %v1674_v9, 3  ;;  %v967_v33 = vor.u32 %v966_v28, %v965_v27  ;;  %v872_v34 = vsel %vm778_vm4, %v870_v31, %v871_v32 }
  0x2a   : > { %v692_v12 = vsel %vm648_vm3, %v682_v38, %v691_v60  ;;  %v979_v52 = vrot.slane %v977_v44, 3  ;;  %v786_v53 = vrot.slane %v1814_v45, 2  ;;  %v875_v54 = vrot.slane %v1684_v15, 2 }
  0x2b   : > { %1376 = vmatmul.msk.bf16.vlgmr.msrb.gmra.mxu3 %vm344_vm1, %v563_v63  ;;  %1393 = vmatmul.msk.bf16.vlgmr.msrb.gmra.mxu0 %vm344_vm1, %v665_v0  ;;  %v782_v63 = vrot.slane %v1768_v1, 2  ;;  %v1842_v0 = vpack.c.bf16 %v1509_v14, %v1509_v14  ;;  %v968_v36 = vsel %vm957_vm5, %v963_v47, %v967_v33  ;;  %v1072_v48 = vsel %vm1067_vm6, %v1069_v24, %v1071_v35 }
  0x2c   : > { %v271_v57 = vunpack.c.l.bf16 %v258_v55  ;;  %v787_v59 = vsel %vm778_vm4, %v784_v17, %v786_v53  ;;  %v1075_v14 = vrot.slane %v1687_v16, 3 }
  0x2d   : > { %v783_v3 = vsel %vm778_vm4, %v780_v58, %v782_v63  ;;  %v694_v4 = vshrl.u32 %v1842_v0, 16  ;;  %v697_v11 = vshll.u32 %v1842_v0, 16  ;;  %v570_v7 = vrot.slane %v1842_v0, 1 }
  0x2e   : > { %v862_v45 = vpack.c.bf16 %v271_v57, %v271_v57 }
  0x2f   : > { %v696_v5 = vrot.slane %v694_v4, 1  ;;  %v699_v6 = vrot.slane %v697_v11, 2  ;;  %v571_v1 = vsel %vm461_vm2, %v568_v18, %v570_v7  ;;  %v877_v7 = vrot.slane %v1687_v16, 2 }
  0x30   : > { %v983_v62 = vshrl.u32 %v862_v45, 16  ;;  %v1077_v28 = vrot.slane %v862_v45, 3 }
  0x32   : > { %v985_v11 = vrot.slane %v983_v62, 2 }
  0x38   : > { %1343 = vmatmul.msk.bf16.gmra.mxu1 %vm344_vm1, %v1671_v8  ;;  %1359 = vmatmul.msk.bf16.vlgmr.msrb.gmra.mxu2 %vm344_vm1, %v464_v21  ;;  %v700_v21 = vor.u32 %v699_v6, %v696_v5  ;;  %v788_v6 = vrot.slane %v1842_v0, 2 }
  0x3a   : > { %v701_v22 = vsel %vm648_vm3, %v691_v60, %v700_v21 }
  0x3b   : > { %1377 = vmatmul.msk.bf16.gmra.mxu3 %vm344_vm1, %v565_v23  ;;  %1394 = vmatmul.msk.bf16.gmra.mxu0 %vm344_vm1, %v674_v25  ;;  %v1068_v23 = vrot.slane %v1671_v8, 3  ;;  %v969_v8 = vrot.slane %v324_v30, 2 }
  0x3d   : > { %v1070_v25 = vsel %vm1067_vm6, %v1068_v23, %v1069_v24  ;;  %v789_v23 = vsel %vm778_vm4, %v786_v53, %v788_v6  ;;  %v878_v24 = vsel %vm778_vm4, %v875_v54, %v877_v7 }
  0x48   : > { %1344 = vmatmul.msk.bf16.gmra.mxu1 %vm344_vm1, %v1674_v9  ;;  %1360 = vmatmul.msk.bf16.gmra.mxu2 %vm344_vm1, %v466_v37  ;;  %v970_v9 = vrot.slane %v320_v19, 3  ;;  %v873_v37 = vrot.slane %v1677_v10, 2 }
  0x4a   : > { %v971_v38 = vor.u32 %v970_v9, %v969_v8  ;;  %v874_v41 = vsel %vm778_vm4, %v871_v32, %v873_v37  ;;  %v876_v60 = vsel %vm778_vm4, %v873_v37, %v875_v54  ;;  %v879_v9 = vrot.slane %v862_v45, 2 }
  0x4b   : > { %1378 = vmatmul.msk.bf16.gmra.mxu3 %vm344_vm1, %v567_v40  ;;  %1395 = vmatmul.msk.bf16.gmra.mxu0 %vm344_vm1, %v683_v42  ;;  %v785_v40 = vsel %vm778_vm4, %v782_v63, %v784_v17  ;;  %v1073_v42 = vrot.slane %v1684_v15, 3  ;;  %v986_v63 = vshll.u32 %v862_v45, 16 }
  0x4c   : > { %v972_v30 = vsel %vm957_vm5, %v967_v33, %v971_v38 }
  0x4d   : > { %v1074_v29 = vsel %vm1067_vm6, %v1071_v35, %v1073_v42  ;;  %v1076_v47 = vsel %vm1067_vm6, %v1073_v42, %v1075_v14  ;;  %v988_v5 = vrot.slane %v986_v63, 3 }
  0x58   : > { %1345 = vmatmul.msk.bf16.gmra.mxu1 %vm344_vm1, %v1677_v10  ;;  %1361 = vmatmul.msk.bf16.gmra.mxu2 %vm344_vm1, %v468_v56  ;;  %v974_v10 = vshrl.u32 %v1687_v16, 16  ;;  %v1078_v16 = vsel %vm1067_vm6, %v1075_v14, %v1077_v28 }
  0x5a   : > { %v976_v51 = vrot.slane %v974_v10, 2 }
  0x5b   : > { %1379 = vmatmul.msk.bf16.gmra.mxu3 %vm344_vm1, %v569_v13  ;;  %1396 = vmatmul.msk.bf16.gmra.mxu0 %vm344_vm1, %v692_v12 }
  0x5c   : > { %v980_v56 = vor.u32 %v979_v52, %v976_v51 }
  0x68   : > { %1346 = vmatmul.msk.bf16.gmra.mxu1 %vm344_vm1, %v1684_v15  ;;  %1362 = vmatmul.msk.bf16.gmra.mxu2 %vm344_vm1, %v470_v20  ;;  %v981_v15 = vsel %vm957_vm5, %v971_v38, %v980_v56 }
  0x6b   : > { %1380 = vmatmul.msk.bf16.gmra.mxu3 %vm344_vm1, %v571_v1  ;;  %1397 = vmatmul.msk.bf16.gmra.mxu0 %vm344_vm1, %v701_v22  ;;  %v989_v1 = vor.u32 %v988_v5, %v985_v11 }
  0x6d   : > { %v990_v31 = vsel %vm957_vm5, %v980_v56, %v989_v1 }
  0x78   : > { %1363 = vmatmul.msk.bf16.gmra.mxu2 %vm344_vm1, %v472_v49  ;;  %1410 = vmatmul.msk.bf16.vlgmr.msra.gmra.mxu1 %vm344_vm1, %v781_v61 }
  0x7b   : > { %1444 = vmatmul.msk.bf16.vlgmr.msra.gmra.mxu3 %vm344_vm1, %v964_v2  ;;  %1461 = vmatmul.msk.bf16.vlgmr.msra.gmra.mxu0 %vm344_vm1, %v1070_v25 }
  0x88   : > { %1411 = vmatmul.msk.bf16.gmra.mxu1 %vm344_vm1, %v783_v3  ;;  %1427 = vmatmul.msk.bf16.vlgmr.msra.gmra.mxu2 %vm344_vm1, %v872_v34 }
  0x8b   : > { %1445 = vmatmul.msk.bf16.gmra.mxu3 %vm344_vm1, %v968_v36  ;;  %1462 = vmatmul.msk.bf16.gmra.mxu0 %vm344_vm1, %v1072_v48 }
  0x95   : > { %v374_v39 = vpop.f32.mrf.mxu1 }
  0x98   : > { %1412 = vmatmul.msk.bf16.gmra.mxu1 %vm344_vm1, %v785_v40  ;;  %1428 = vmatmul.msk.bf16.gmra.mxu2 %vm344_vm1, %v874_v41  ;;  %v369_v19 = vpop.f32.mrf.mxu0  ;;  %v880_v40 = vsel %vm778_vm4, %v877_v7, %v879_v9 }
  0x9b   : > { %v1892_v43 = vpop.f32.mrf.mxu2  ;;  %1446 = vmatmul.msk.bf16.gmra.mxu3 %vm344_vm1, %v972_v30  ;;  %1463 = vmatmul.msk.bf16.gmra.mxu0 %vm344_vm1, %v1074_v29 }
  0x9d   : > { %v376_v49 = vpop.f32.mrf.mxu1 }
  0x9e   : > { %v1898_v50 = vpop.f32.mrf.mxu3 }
  0xa0   : > { %v371_v26 = vpop.f32.mrf.mxu0 }
  0xa3   : > { %v1903_v18 = vpop.f32.mrf.mxu2 }
  0xa5   : > { %v425_v58 = vpop.f32.mrf.mxu1 }
  0xa6   : > { %v426_v61 = vadd.f32 %v425_v58, %v369_v19  ;;  %v1907_v13 = vpop.f32.mrf.mxu3 }
  0xa8   : > { %1413 = vmatmul.msk.bf16.gmra.mxu1 %vm344_vm1, %v787_v59  ;;  %1429 = vmatmul.msk.bf16.gmra.mxu2 %vm344_vm1, %v876_v60  ;;  %v738_v46 = vpop.f32.mrf.mxu0 }
  0xab   : > { %v384_v12 = vpop.f32.mrf.mxu2  ;;  %1447 = vmatmul.msk.bf16.gmra.mxu3 %vm344_vm1, %v981_v15  ;;  %1464 = vmatmul.msk.bf16.gmra.mxu0 %vm344_vm1, %v1076_v47 }
  0xad   : > { %v427_v2 = vpop.f32.mrf.mxu1 }
  0xae   : > { %v428_v3 = vadd.f32 %v427_v2, %v371_v26  ;;  %v608_v4 = vpop.f32.mrf.mxu3 }
  0xb0   : > { %v740_v20 = vpop.f32.mrf.mxu0 }
  0xb3   : > { %v386_v21 = vpop.f32.mrf.mxu2 }
  0xb5   : > { %v430_v22 = vpop.f32.mrf.mxu1 }
  0xb6   : > { %v431_v25 = vadd.f32 %v430_v22, %v374_v39  ;;  %v610_v27 = vpop.f32.mrf.mxu3 }
  0xb8   : > { %1414 = vmatmul.msk.bf16.gmra.mxu1 %vm344_vm1, %v789_v23  ;;  %1430 = vmatmul.msk.bf16.gmra.mxu2 %vm344_vm1, %v878_v24  ;;  %v743_v0 = vpop.f32.mrf.mxu0 }
  0xbb   : > { %v509_v32 = vpop.f32.mrf.mxu2  ;;  %1448 = vmatmul.msk.bf16.gmra.mxu3 %vm344_vm1, %v990_v31  ;;  %1465 = vmatmul.msk.bf16.gmra.mxu0 %vm344_vm1, %v1078_v16 }
  0xbc   : > { %v534_v33 = vadd.f32 %v509_v32, %v426_v61 }
  0xbd   : > { %v432_v34 = vpop.f32.mrf.mxu1 }
  0xbe   : > { %v633_v35 = vadd.f32 %v608_v4, %v534_v33  ;;  %v433_v36 = vadd.f32 %v432_v34, %v376_v49  ;;  %v613_v48 = vpop.f32.mrf.mxu3 }
  0xc0   : > { %v1926_v8 = vadd.f32 %v738_v46, %v633_v35  ;;  %v745_v17 = vpop.f32.mrf.mxu0 }
  0xc3   : > { %v511_v37 = vpop.f32.mrf.mxu2 }
  0xc4   : > { %v535_v38 = vadd.f32 %v511_v37, %v428_v3 }
  0xc5   : > { %v435_v39 = vpop.f32.mrf.mxu1 }
  0xc6   : > { %v634_v41 = vadd.f32 %v610_v27, %v535_v38  ;;  %v436_v42 = vadd.f32 %v435_v39, %v1892_v43  ;;  %v615_v30 = vpop.f32.mrf.mxu3 }
  0xc8   : > { %1431 = vmatmul.msk.bf16.gmra.mxu2 %vm344_vm1, %v880_v40  ;;  %v1931_v19 = vadd.f32 %v740_v20, %v634_v41  ;;  %v748_v29 = vpop.f32.mrf.mxu0 }
  0xcb   : > { %v514_v10 = vpop.f32.mrf.mxu2 }
  0xcc   : > { %v536_v44 = vadd.f32 %v514_v10, %v431_v25 }
  0xcd   : > { %v437_v49 = vpop.f32.mrf.mxu1 }
  0xce   : > { %v635_v51 = vadd.f32 %v613_v48, %v536_v44  ;;  %v438_v52 = vadd.f32 %v437_v49, %v1903_v18  ;;  %v618_v53 = vpop.f32.mrf.mxu3  ;;  %v1956_v49 = vld [vmem:[%s2014_s2] ss:$0 sm:$0xff] }
  0xd0   : > { %v1934_v54 = vadd.f32 %v743_v0, %v635_v51  ;;  %v750_v55 = vpop.f32.mrf.mxu0 }
  0xd3   : > { %v516_v26 = vpop.f32.mrf.mxu2 }
  0xd4   : > { %v537_v56 = vadd.f32 %v516_v26, %v433_v36 }
  0xd5   : > { %v440_v57 = vpop.f32.mrf.mxu1 }
  0xd6   : > { %v636_v43 = vadd.f32 %v615_v30, %v537_v56  ;;  %v441_v58 = vadd.f32 %v440_v57, %v384_v12  ;;  %v620_v59 = vpop.f32.mrf.mxu3 }
  0xd8   : > { %v1936_v60 = vadd.f32 %v745_v17, %v636_v43  ;;  %v753_v61 = vpop.f32.mrf.mxu0 }
  0xdb   : > { %v519_v14 = vpop.f32.mrf.mxu2 }
  0xdc   : > { %v538_v15 = vadd.f32 %v519_v14, %v436_v42 }
  0xdd   : > { %v442_v45 = vpop.f32.mrf.mxu1 }
  0xde   : > { %v637_v46 = vadd.f32 %v618_v53, %v538_v15  ;;  %v443_v47 = vadd.f32 %v442_v45, %v386_v21  ;;  %v623_v62 = vpop.f32.mrf.mxu3 }
  0xe0   : > { %v1938_v18 = vadd.f32 %v748_v29, %v637_v46  ;;  %v755_v63 = vpop.f32.mrf.mxu0 }
  0xe3   : > { %v521_v2 = vpop.f32.mrf.mxu2 }
  0xe4   : > { %v539_v3 = vadd.f32 %v521_v2, %v438_v52 }
  0xe5   : > { %v445_v4 = vpop.f32.mrf.mxu1 }
  0xe6   : > { %v638_v11 = vadd.f32 %v620_v59, %v539_v3  ;;  %v446_v5 = vadd.f32 %v445_v4, %v1898_v50  ;;  %v625_v12 = vpop.f32.mrf.mxu3 }
  0xe8   : > { %v1941_v6 = vadd.f32 %v750_v55, %v638_v11  ;;  %v758_v7 = vpop.f32.mrf.mxu0 }
  0xeb   : > { %v524_v20 = vpop.f32.mrf.mxu2 }
  0xec   : > { %v540_v1 = vadd.f32 %v524_v20, %v441_v58 }
  0xed   : > { %v447_v22 = vpop.f32.mrf.mxu1 }
  0xee   : > { %v639_v23 = vadd.f32 %v623_v62, %v540_v1  ;;  %v448_v21 = vadd.f32 %v447_v22, %v1907_v13  ;;  %v628_v24 = vpop.f32.mrf.mxu3 }
  0xf0   : > { %v1944_v25 = vadd.f32 %v753_v61, %v639_v23  ;;  %v760_v28 = vpop.f32.mrf.mxu0 }
  0xf3   : > { %v526_v27 = vpop.f32.mrf.mxu2 }
  0xf4   : > { %v541_v31 = vadd.f32 %v526_v27, %v443_v47 }
  0xf5   : > { %v826_v0 = vpop.f32.mrf.mxu1 }
  0xf6   : > { %v640_v16 = vadd.f32 %v625_v12, %v541_v31  ;;  %v630_v32 = vpop.f32.mrf.mxu3  ;;  %v851_v30 = vadd.f32 %v826_v0, %v1926_v8 }
  0xf8   : > { %v1946_v50 = vadd.f32 %v755_v63, %v640_v16  ;;  %v1115_v35 = vpop.f32.mrf.mxu0 }
  0xfb   : > { %v529_v33 = vpop.f32.mrf.mxu2 }
  0xfc   : > { %v542_v34 = vadd.f32 %v529_v33, %v446_v5 }
  0xfd   : > { %v828_v9 = vpop.f32.mrf.mxu1 }
  0xfe   : > { %v641_v36 = vadd.f32 %v628_v24, %v542_v34  ;;  %v1027_v48 = vpop.f32.mrf.mxu3  ;;  %v852_v55 = vadd.f32 %v828_v9, %v1931_v19 }
 0x100   : > { %v1948_v17 = vadd.f32 %v758_v7, %v641_v36  ;;  %v1117_v40 = vpop.f32.mrf.mxu0 }
 0x103   : > { %v531_v13 = vpop.f32.mrf.mxu2 }
 0x104   : > { %v543_v37 = vadd.f32 %v531_v13, %v448_v21 }
 0x105   : > { %v831_v42 = vpop.f32.mrf.mxu1 }
 0x106   : > { %v642_v38 = vadd.f32 %v630_v32, %v543_v37  ;;  %v1029_v39 = vpop.f32.mrf.mxu3  ;;  %v853_v19 = vadd.f32 %v831_v42, %v1934_v54 }
 0x108   : > { %v1950_v41 = vadd.f32 %v760_v28, %v642_v38  ;;  %v1120_v53 = vpop.f32.mrf.mxu0 }
 0x10b   : > { %v917_v29 = vpop.f32.mrf.mxu2 }
 0x10c   : > { %v942_v10 = vadd.f32 %v917_v29, %v851_v30 }
 0x10d   : > { %v833_v8 = vpop.f32.mrf.mxu1 }
 0x10e   : > { %v1052_v44 = vadd.f32 %v1027_v48, %v942_v10  ;;  %v1032_v51 = vpop.f32.mrf.mxu3  ;;  %v854_v3 = vadd.f32 %v833_v8, %v1936_v60 }
 0x110   : > { %v1140_v52 = vadd.f32 %v1115_v35, %v1052_v44  ;;  %v1122_v45 = vpop.f32.mrf.mxu0 }
 0x112   : > { %v1154_v26 = vadd.f32 %v1956_v49, %v1140_v52 }
 0x113   : > { %v919_v56 = vpop.f32.mrf.mxu2 }
 0x114   : > { %v1164_v57 = vpack.c.bf16 %v1154_v26, %v1154_v26  ;;  %v943_v43 = vadd.f32 %v919_v56, %v852_v55 }
 0x115   : > { %v836_v62 = vpop.f32.mrf.mxu1 }
 0x116   : > { %1175 = vst.msk [vmem:[%s1964_s11] sm:$0xf] %vm1174_vm7, %v1164_v57  ;;  %v1053_v58 = vadd.f32 %v1029_v39, %v943_v43  ;;  %v1034_v61 = vpop.f32.mrf.mxu3  ;;  %v855_v23 = vadd.f32 %v836_v62, %v1938_v18 }
 0x118   : > { %v1141_v59 = vadd.f32 %v1117_v40, %v1053_v58  ;;  %v1125_v7 = vpop.f32.mrf.mxu0 }
 0x11a   : > { %v1155_v14 = vadd.f32 %v1956_v49, %v1141_v59 }
 0x11b   : > { %v922_v15 = vpop.f32.mrf.mxu2 }
 0x11c   : > { %v1165_v46 = vpack.c.bf16 %v1155_v14, %v1155_v14  ;;  %v944_v47 = vadd.f32 %v922_v15, %v853_v19 }
 0x11d   : > { %v838_v1 = vpop.f32.mrf.mxu1 }
 0x11e   : > { %1176 = vst.msk [vmem:[%s1964_s11 + $0x4] sm:$0xf] %vm1174_vm7, %v1165_v46  ;;  %v1054_v63 = vadd.f32 %v1032_v51, %v944_v47  ;;  %v1037_v5 = vpop.f32.mrf.mxu3  ;;  %v856_v33 = vadd.f32 %v838_v1, %v1941_v6 }
 0x120   : > { %v1142_v2 = vadd.f32 %v1120_v53, %v1054_v63  ;;  %v1127_v0 = vpop.f32.mrf.mxu0 }
 0x122   : > { %v1156_v4 = vadd.f32 %v1956_v49, %v1142_v2 }
 0x123   : > { %v924_v11 = vpop.f32.mrf.mxu2 }
 0x124   : > { %v1166_v54 = vpack.c.bf16 %v1156_v4, %v1156_v4  ;;  %v945_v12 = vadd.f32 %v924_v11, %v854_v3 }
 0x125   : > { %v841_v32 = vpop.f32.mrf.mxu1 }
 0x126   : > { %1177 = vst.msk [vmem:[%s1964_s11 + $0x8] sm:$0xf] %vm1174_vm7, %v1166_v54  ;;  %v1055_v20 = vadd.f32 %v1034_v61, %v945_v12  ;;  %v1039_v28 = vpop.f32.mrf.mxu3  ;;  %v857_v38 = vadd.f32 %v841_v32, %v1944_v25 }
 0x128   : > { %v1143_v22 = vadd.f32 %v1122_v45, %v1055_v20  ;;  %v1130_v37 = vpop.f32.mrf.mxu0 }
 0x12a   : > { %v1157_v21 = vadd.f32 %v1956_v49, %v1143_v22 }
 0x12b   : > { %v927_v24 = vpop.f32.mrf.mxu2 }
 0x12c   : > { %v1167_v60 = vpack.c.bf16 %v1157_v21, %v1157_v21  ;;  %v946_v27 = vadd.f32 %v927_v24, %v855_v23 }
 0x12d   : > { %v843_v40 = vpop.f32.mrf.mxu1 }
 0x12e   : > { %1178 = vst.msk [vmem:[%s1964_s11 + $0xc] sm:$0xf] %vm1174_vm7, %v1167_v60  ;;  %v1056_v31 = vadd.f32 %v1037_v5, %v946_v27  ;;  %v1042_v9 = vpop.f32.mrf.mxu3  ;;  %v858_v51 = vadd.f32 %v843_v40, %v1946_v50 }
 0x130   : > { %v1144_v16 = vadd.f32 %v1125_v7, %v1056_v31  ;;  %v1132_v53 = vpop.f32.mrf.mxu0 }
 0x132   : > { %v1158_v34 = vadd.f32 %v1956_v49, %v1144_v16 }
 0x133   : > { %v929_v35 = vpop.f32.mrf.mxu2 }
 0x134   : > { %v1168_v18 = vpack.c.bf16 %v1158_v34, %v1158_v34  ;;  %v947_v36 = vadd.f32 %v929_v35, %v856_v33 }
 0x135   : > { %v846_v8 = vpop.f32.mrf.mxu1 }
 0x136   : > { %1179 = vst.msk [vmem:[%s1964_s11 + $0x10] sm:$0xf] %vm1174_vm7, %v1168_v18  ;;  %v1057_v48 = vadd.f32 %v1039_v28, %v947_v36  ;;  %v1044_v44 = vpop.f32.mrf.mxu3  ;;  %v859_v43 = vadd.f32 %v846_v8, %v1948_v17 }
 0x138   : > { %v1145_v13 = vadd.f32 %v1127_v0, %v1057_v48  ;;  %v1135_v14 = vpop.f32.mrf.mxu0 }
 0x13a   : > { %v1159_v39 = vadd.f32 %v1956_v49, %v1145_v13 }
 0x13b   : > { %v932_v42 = vpop.f32.mrf.mxu2 }
 0x13c   : > { %v1169_v6 = vpack.c.bf16 %v1159_v39, %v1159_v39  ;;  %v948_v30 = vadd.f32 %v932_v42, %v857_v38 }
 0x13d   : > { %v848_v45 = vpop.f32.mrf.mxu1 }
 0x13e   : > { %1180 = vst.msk [vmem:[%s1964_s11 + $0x14] sm:$0xf] %vm1174_vm7, %v1169_v6  ;;  %v1058_v29 = vadd.f32 %v1042_v9, %v948_v30  ;;  %v1047_v59 = vpop.f32.mrf.mxu3  ;;  %v860_v47 = vadd.f32 %v848_v45, %v1950_v41 }
 0x140   : > { %v1146_v10 = vadd.f32 %v1130_v37, %v1058_v29  ;;  %v1137_v11 = vpop.f32.mrf.mxu0 }
 0x142   : > { %v1160_v52 = vadd.f32 %v1956_v49, %v1146_v10 }
 0x143   : > { %v934_v55 = vpop.f32.mrf.mxu2 }
 0x144   : > { %v1170_v25 = vpack.c.bf16 %v1160_v52, %v1160_v52  ;;  %v949_v26 = vadd.f32 %v934_v55, %v858_v51 }
 0x146   : > { %1181 = vst.msk [vmem:[%s1964_s11 + $0x18] sm:$0xf] %vm1174_vm7, %v1170_v25  ;;  %v1059_v56 = vadd.f32 %v1044_v44, %v949_v26  ;;  %v1049_v3 = vpop.f32.mrf.mxu3 }
 0x148   : > { %v1147_v57 = vadd.f32 %v1132_v53, %v1059_v56 }
 0x14a   : > { %v1161_v58 = vadd.f32 %v1956_v49, %v1147_v57 }
 0x14b   : > { %v937_v61 = vpop.f32.mrf.mxu2 }
 0x14c   : > { %v1171_v50 = vpack.c.bf16 %v1161_v58, %v1161_v58  ;;  %v950_v19 = vadd.f32 %v937_v61, %v859_v43 }
 0x14e   : > { %1182 = vst.msk [vmem:[%s1964_s11 + $0x1c] sm:$0xf] %vm1174_vm7, %v1171_v50  ;;  %v1060_v15 = vadd.f32 %v1047_v59, %v950_v19 }
 0x150   : > { %v1148_v46 = vadd.f32 %v1135_v14, %v1060_v15 }
 0x152   : > { %v1162_v62 = vadd.f32 %v1956_v49, %v1148_v46 }
 0x153   : > { %v939_v63 = vpop.f32.mrf.mxu2 }
 0x154   : > { %v1172_v17 = vpack.c.bf16 %v1162_v62, %v1162_v62  ;;  %v951_v2 = vadd.f32 %v939_v63, %v860_v47 }
 0x156   : > { %1183 = vst.msk [vmem:[%s1964_s11 + $0x20] sm:$0xf] %vm1174_vm7, %v1172_v17  ;;  %v1061_v4 = vadd.f32 %v1049_v3, %v951_v2 }
 0x158   : > { %v1149_v5 = vadd.f32 %v1137_v11, %v1061_v4 }
 0x15a   : > { %v1163_v54 = vadd.f32 %v1956_v49, %v1149_v5 }
 0x15c   : > { %v1173_v12 = vpack.c.bf16 %v1163_v54, %v1163_v54 }
 0x15e   : > { %1184 = vst.msk [vmem:[%s1964_s11 + $0x24] sm:$0xf] %vm1174_vm7, %v1173_v12 }
 0x15f PF: > { %s13_s14 = sadd.s32 1, %s1598_s14   ;;  %s2016_s12 = smov %s1594_s13 }
 0x160   : > { %p10_p5 = scmp.ge.s32.totalorder %s13_s14, 4   ;;  %s2017_s13 = smov %s2019_s15 }
 0x162   :  { %12 = sbr.rel (!%p10_p5) target bundleno = 2 (0x2), region = 77 }

// kernel: generator_forward.36
= control target key start
LH: loop header
LB: loop body
LE: loop exit
PB: predicated region body
PF: predicated region fallthrough
CT: control target
= control target key end

     0   :  { %vm19_vm0 = vcmask 130048   ;;  %v147_v1 = vmov 0.0   ;;  %vm58_vm1 = vcmask 261120   ;;  %vm112_vm2 = vcmask 125952   ;;  %s203_s1 = inlined_call_operand.vmem [shape: bf16[32,16], index: 1, kind: input, shape index: {}]   ;;  %s204_s2 = inlined_call_operand.vmem [shape: f32[1,16], index: 2, kind: input, shape index: {}]   ;;  %s205_s0 = inlined_call_operand.vmem [shape: bf16[32,32], index: 0, kind: input, shape index: {}]   ;;  %s206_s3 = inlined_call_operand.vmem [shape: bf16[32,16], index: 3, kind: output, shape index: {}]  }
   0x1   :  { %v142_v0 = vld [vmem:[%s203_s1 + $0x8] sm:$0xff]  ;;  %20 = vst.msk [vmem:[#allocation2] sm:$0xff] %vm19_vm0, %v147_v1  ;;  %v141_v2 = vld [vmem:[%s203_s1] sm:$0xff] }
   0x2   :  { %21 = vst.msk [vmem:[#allocation2 + $0x8] sm:$0xff] %vm19_vm0, %v147_v1  ;;  %71 = vmatpush.bf16.msra.mxu0 %v142_v0  ;;  %143 = vmatpush.bf16.msra.mxu1 %v142_v0  ;;  %v139_v3 = vld [vmem:[%s205_s0] sm:$0xff]  ;;  %v140_v4 = vld [vmem:[%s205_s0 + $0x8] sm:$0xff] }
   0x3   :  { %22 = vst.msk [vmem:[#allocation2 + $0x10] sm:$0xff] %vm19_vm0, %v147_v1  ;;  %v146_v13 = vld [vmem:[%s204_s2] ss:$0 sm:$0xff] }
   0x4   :  { %23 = vst.msk [vmem:[#allocation2 + $0x18] sm:$0xff] %vm19_vm0, %v147_v1 }
   0x6   :  { %72 = vmatpush.bf16.msra.mxu0 %v141_v2  ;;  %144 = vmatpush.bf16.msra.mxu1 %v141_v2 }
   0x8   :  { %v24_v5 = vld [vmem:[#allocation2] sm:$0xff] }
   0x9   :  { %137 = vmatmul.msk.bf16.vlgmr.msra.gmra.mxu0 %vm58_vm1, %v139_v3  ;;  %138 = vmatmul.msk.bf16.vlgmr.msra.gmra.mxu1 %vm58_vm1, %v140_v4  ;;  %v25_v11 = vld [vmem:[#allocation2 + $0x8] sm:$0xff] }
   0xa   :  { %v26_v6 = vld [vmem:[#allocation2 + $0x10] sm:$0xff] }
   0xb   :  { %v27_v12 = vld [vmem:[#allocation2 + $0x18] sm:$0xff] }
  0x86   :  { %v74_v7 = vpop.f32.mrf.mxu0  ;;  %v79_v8 = vpop.f32.mrf.mxu1 }
  0x87   :  { %v84_v9 = vadd.f32 %v74_v7, %v24_v5  ;;  %v86_v10 = vadd.f32 %v79_v8, %v26_v6 }
  0x89   :  { %89 = vst.msk [vmem:[#allocation2] sm:$0xff] %vm19_vm0, %v84_v9 }
  0x8a   :  { %91 = vst.msk [vmem:[#allocation2 + $0x10] sm:$0xff] %vm19_vm0, %v86_v10 }
  0x8e   :  { %v76_v14 = vpop.f32.mrf.mxu0  ;;  %v81_v15 = vpop.f32.mrf.mxu1 }
  0x8f   :  { %v85_v16 = vadd.f32 %v76_v14, %v25_v11  ;;  %v87_v17 = vadd.f32 %v81_v15, %v27_v12 }
  0x90   :  { %v96_v18 = vld [vmem:[#allocation2] sm:$0xff] }
  0x91   :  { %v104_v19 = vadd.f32 %v146_v13, %v96_v18  ;;  %v98_v20 = vld [vmem:[#allocation2 + $0x10] sm:$0xff]  ;;  %90 = vst.msk [vmem:[#allocation2 + $0x8] sm:$0xff] %vm19_vm0, %v85_v16 }
  0x92   :  { %v106_v21 = vadd.f32 %v146_v13, %v98_v20  ;;  %92 = vst.msk [vmem:[#allocation2 + $0x18] sm:$0xff] %vm19_vm0, %v87_v17 }
  0x93   :  { %v108_v22 = vpack.c.bf16 %v104_v19, %v104_v19 }
  0x94   :  { %v110_v23 = vpack.c.bf16 %v106_v21, %v106_v21 }
  0x95   :  { %113 = vst.msk [vmem:[%s206_s3] sm:$0xf] %vm112_vm2, %v108_v22 }
  0x96   :  { %115 = vst.msk [vmem:[%s206_s3 + $0x8] sm:$0xf] %vm112_vm2, %v110_v23 }
  0x98   :  { %v97_v24 = vld [vmem:[#allocation2 + $0x8] sm:$0xff] }
  0x99   :  { %v105_v25 = vadd.f32 %v146_v13, %v97_v24  ;;  %v99_v26 = vld [vmem:[#allocation2 + $0x18] sm:$0xff] }
  0x9a   :  { %v107_v27 = vadd.f32 %v146_v13, %v99_v26 }
  0x9b   :  { %v109_v28 = vpack.c.bf16 %v105_v25, %v105_v25 }
  0x9c   :  { %v111_v29 = vpack.c.bf16 %v107_v27, %v107_v27 }
  0x9d   :  { %114 = vst.msk [vmem:[%s206_s3 + $0x4] sm:$0xf] %vm112_vm2, %v109_v28 }
  0x9e   :  { %116 = vst.msk [vmem:[%s206_s3 + $0xc] sm:$0xf] %vm112_vm2, %v111_v29 }

// kernel: generator_forward.35
= control target key start
LH: loop header
LB: loop body
LE: loop exit
PB: predicated region body
PF: predicated region fallthrough
CT: control target
= control target key end

     0   :  { %s1484_s12 = smov 0   ;;  %s1486_s13 = smov 0   ;;  %s1849_s0 = inlined_call_operand.vmem [shape: bf16[2,104,16], index: 0, kind: input, shape index: {}]   ;;  %s1850_s1 = inlined_call_operand.vmem [shape: bf16[9,16,16], index: 1, kind: input, shape index: {}]   ;;  %s1851_s2 = inlined_call_operand.vmem [shape: f32[1,16], index: 2, kind: input, shape index: {}]   ;;  %s1852_s3 = inlined_call_operand.vmem [shape: bf16[2,80,16], index: 3, kind: output, shape index: {}]  }
   0x1   :  { %s1488_s14 = smov 0  }
   0x2 LB: > { %s32_s15 = sadd.s32 1, %s1458_s13  ;;  %p1242_p0 = scmp.ge.s32.totalorder %s1462_s14, 1  ;;  %s1462_s14 = sphi %s1488_s14, %s13_s14   ;;  %s1458_s13 = sphi %s1486_s13, %s1854_s13   ;;  %s1454_s12 = sphi %s1484_s12, %s1853_s12  }
   0x3   : > { %p34_p1 = scmp.ge.s32.totalorder %s32_s15, 2  ;;  %p177_p2 = scmp.lt.s32.totalorder %s1462_s14, 3 }
   0x5   : > { %s1856_s15 = smov (%p34_p1, %s32_s15), 0  ;;  %p178_p3 = pnand %p1242_p0, %p177_p2 }
   0x6   : > { %p215_p4 = scmp.lt.s32.totalorder (!%p178_p3), %s1454_s12, 1 }
   0x7   : > { %181 = sbr.rel (%p178_p3) target bundleno = 351 (0x15f), region = 32 }
   0xc   : > { %v1345_v0 = vld [vmem:[%s1850_s1 + $0x8] sm:$0xff]  ;;  %v1346_v1 = vld [vmem:[%s1850_s1 + $0x10] sm:$0xff]  ;;  %v1344_v2 = vld [vmem:[%s1850_s1] sm:$0xff]  ;;  %s1858_s12 = smov (!%p215_p4, %s1454_s12), 1  ;;  %vm283_vm0 = vsmask.f32 7424 }
   0xd   : > { %v1347_v3 = vld [vmem:[%s1850_s1 + $0x18] sm:$0xff]  ;;  %1410 = vmatpush.bf16.msra.mxu1 %v1345_v0  ;;  %1411 = vmatpush.bf16.msra.mxu2 %v1345_v0  ;;  %v1348_v4 = vld [vmem:[%s1850_s1 + $0x20] sm:$0xff]  ;;  %s1413_s26 = smul.u32 52, %s1858_s12  ;;  %vm334_vm1 = vcmask 130048   ;;  %v1350_v34 = vld [vmem:[%s1850_s1 + $0x30] sm:$0xff]  ;;  %vm443_vm2 = vcmask 1046528  }
   0xe   : > { %1412 = vmatpush.bf16.msra.mxu3 %v1345_v0  ;;  %357 = vmatpush.bf16.msra.mxu0 %v1345_v0  ;;  %v1351_v35 = vld [vmem:[%s1850_s1 + $0x38] sm:$0xff]  ;;  %v1349_v36 = vld [vmem:[%s1850_s1 + $0x28] sm:$0xff]  ;;  %v1352_v39 = vld [vmem:[%s1850_s1 + $0x40] sm:$0xff]  ;;  %vm614_vm3 = vsmask.f32 6400  ;;  %vm736_vm4 = vcmask 1045504  }
   0xf   : > { %s1523_s29 = scalar_lea.vmem %s1849_s0, %s1413_s26  ;;  %vm899_vm5 = vsmask.f32 5376  ;;  %vm1001_vm6 = vcmask 1044480   ;;  %s1414_s17 = smul.u32 40, %s1858_s12  ;;  %vm1102_vm7 = vcmask 125952  }
  0x10   : > { %v1526_v5 = vld [vmem:[%s1523_s29 + $0x8] sm:$0xff]   ;;  %v1529_v6 = vld [vmem:[%s1523_s29 + $0x10] sm:$0xff]   ;;  %v1532_v7 = vld [vmem:[%s1523_s29 + $0x18] sm:$0xff]  }
  0x11   : > { %483 = vmatpush.bf16.msrb.mxu2 %v1346_v1  ;;  %407 = vmatpush.bf16.msrb.mxu1 %v1344_v2  ;;  %v292_v8 = vshll.u32 %v1526_v5, 16  ;;  %v296_v9 = vshrl.u32 %v1526_v5, 16  ;;  %v300_v10 = vshll.u32 %v1529_v6, 16  ;;  %v304_v11 = vshrl.u32 %v1529_v6, 16  ;;  %v1539_v12 = vld [vmem:[%s1523_s29 + $0x20] sm:$0xff]   ;;  %v1542_v13 = vld [vmem:[%s1523_s29 + $0x28] sm:$0xff]   ;;  %s1801_s20 = scalar_lea.vmem %s1852_s3, %s1414_s17 }
  0x12   : > { %574 = vmatpush.bf16.msrb.mxu3 %v1347_v3  ;;  %696 = vmatpush.bf16.msrb.mxu0 %v1348_v4  ;;  %v308_v14 = vshll.u32 %v1532_v7, 16  ;;  %v1546_v15 = vunpack.c.l.bf16 %v1542_v13  ;;  %v316_v16 = vshll.u32 %v1539_v12, 16  ;;  %v1554_v19 = vld [vmem:[%s1523_s29] sm:$0xff]   ;;  %v320_v25 = vshrl.u32 %v1539_v12, 16  ;;  %v1597_v42 = vld [vmem:[%s1523_s29 + $0xc] sm:$0xff]   ;;  %v1617_v60 = vld [vmem:[%s1523_s29 + $0x14] sm:$0xff]  }
  0x13   : > { %v294_v17 = vrot.slane %v292_v8, 1  ;;  %v302_v18 = vrot.slane %v300_v10, 1  ;;  %v285_v27 = vshrl.u32 %v1554_v19, 16  ;;  %v287_v28 = vshll.u32 %v1554_v19, 16  ;;  %v1594_v41 = vld [vmem:[%s1523_s29 + $0x4] sm:$0xff]  }
  0x14   : > { %v310_v20 = vrot.slane %v308_v14, 1  ;;  %v1560_v21 = vpack.c.bf16 %v1546_v15, %v1546_v15  ;;  %v318_v22 = vrot.slane %v316_v16, 1  ;;  %v312_v43 = vshrl.u32 %v1532_v7, 16 }
  0x15   : > { %v298_v23 = vor.u32 %v296_v9, %v294_v17  ;;  %v306_v24 = vor.u32 %v304_v11, %v302_v18  ;;  %v289_v33 = vrot.slane %v287_v28, 1  ;;  %v616_v44 = vshrl.u32 %v1594_v41, 16 }
  0x16   : > { %v324_v26 = vshll.u32 %v1560_v21, 16  ;;  %v322_v31 = vor.u32 %v320_v25, %v318_v22  ;;  %v619_v45 = vshll.u32 %v1594_v41, 16  ;;  %v624_v46 = vshrl.u32 %v1597_v42, 16 }
  0x17   : > { %v303_v29 = vsel %vm283_vm0, %v298_v23, %v302_v18  ;;  %v311_v30 = vsel %vm283_vm0, %v306_v24, %v310_v20  ;;  %v290_v38 = vor.u32 %v289_v33, %v285_v27  ;;  %v627_v47 = vshll.u32 %v1597_v42, 16 }
  0x18   : > { %1252 = vmatmul.msk.bf16.vlgmr.msra.gmra.mxu1 %vm334_vm1, %v303_v29  ;;  %1253 = vmatmul.msk.bf16.vlgmr.msra.gmra.mxu2 %vm334_vm1, %v311_v30  ;;  %v326_v32 = vrot.slane %v324_v26, 1  ;;  %v314_v48 = vor.u32 %v312_v43, %v310_v20  ;;  %v618_v49 = vrot.slane %v616_v44, 1  ;;  %v621_v50 = vrot.slane %v619_v45, 2 }
  0x19   : > { %859 = vmatpush.bf16.msra.mxu2 %v1350_v34  ;;  %776 = vmatpush.bf16.msra.mxu1 %v1349_v36  ;;  %v295_v40 = vsel %vm283_vm0, %v290_v38, %v294_v17  ;;  %v626_v51 = vrot.slane %v624_v46, 1  ;;  %v629_v52 = vrot.slane %v627_v47, 2  ;;  %v535_v53 = vrot.slane %v1594_v41, 1 }
  0x1a   : > { %v327_v37 = vsel %vm283_vm0, %v322_v31, %v326_v32  ;;  %1251 = vmatmul.msk.bf16.vlgmr.msra.gmra.mxu0 %vm334_vm1, %v295_v40  ;;  %v536_v54 = vrot.slane %v1597_v42, 1  ;;  %v319_v55 = vsel %vm283_vm0, %v314_v48, %v318_v22  ;;  %v622_v56 = vor.u32 %v621_v50, %v618_v49 }
  0x1b   : > { %1255 = vmatmul.msk.bf16.vlgmr.msra.gmra.mxu3 %vm334_vm1, %v327_v37  ;;  %1041 = vmatpush.bf16.msra.mxu0 %v1352_v39  ;;  %v630_v57 = vor.u32 %v629_v52, %v626_v51  ;;  %v633_v61 = vshrl.u32 %v1617_v60, 16  ;;  %v636_v62 = vshll.u32 %v1617_v60, 16  ;;  %v444_v63 = vrot.slane %v1554_v19, 1 }
  0x1c   : > { %961 = vmatpush.bf16.msra.mxu3 %v1351_v35  ;;  %v537_v58 = vsel %vm443_vm2, %v535_v53, %v536_v54  ;;  %v445_v0 = vrot.slane %v1526_v5, 1  ;;  %v538_v3 = vrot.slane %v1617_v60, 1  ;;  %v447_v24 = vrot.slane %v1529_v6, 1 }
  0x1d   : > { %v631_v59 = vsel %vm614_vm3, %v622_v56, %v630_v57  ;;  %v635_v1 = vrot.slane %v633_v61, 1  ;;  %v638_v2 = vrot.slane %v636_v62, 2  ;;  %v1372_v31 = vunpack.c.h.bf16 %v1539_v12 }
  0x1e   : > { %v446_v4 = vsel %vm443_vm2, %v444_v63, %v445_v0  ;;  %v539_v18 = vsel %vm443_vm2, %v536_v54, %v538_v3  ;;  %v448_v29 = vsel %vm443_vm2, %v445_v0, %v447_v24  ;;  %v451_v34 = vrot.slane %v1539_v12, 1 }
  0x1f   : > { %v639_v17 = vor.u32 %v638_v2, %v635_v1  ;;  %v453_v35 = vrot.slane %v1560_v21, 1  ;;  %v1651_v36 = vpack.c.bf16 %v1546_v15, %v1372_v31  ;;  %v449_v40 = vrot.slane %v1532_v7, 1 }
  0x20   : > { %v904_v46 = vrot.slane %v300_v10, 3  ;;  %v903_v21 = vrot.slane %v304_v11, 2  ;;  %v737_v48 = vrot.slane %v1594_v41, 2  ;;  %v738_v49 = vrot.slane %v1597_v42, 2 }
  0x21   : > { %v640_v20 = vsel %vm614_vm3, %v630_v57, %v639_v17  ;;  %v454_v37 = vsel %vm443_vm2, %v451_v34, %v453_v35  ;;  %v651_v38 = vshrl.u32 %v1651_v36, 16  ;;  %v654_v39 = vshll.u32 %v1651_v36, 16 }
  0x22   : > { %v542_v15 = vrot.slane %v1651_v36, 1  ;;  %v450_v47 = vsel %vm443_vm2, %v447_v24, %v449_v40  ;;  %v900_v50 = vrot.slane %v296_v9, 2  ;;  %v739_v52 = vsel %vm736_vm4, %v737_v48, %v738_v49 }
  0x23   : > { %v653_v44 = vrot.slane %v651_v38, 1  ;;  %v656_v45 = vrot.slane %v654_v39, 2  ;;  %v1376_v11 = vunpack.c.h.bf16 %v1542_v13  ;;  %v901_v41 = vrot.slane %v292_v8, 3 }
  0x24   : > { %v905_v42 = vor.u32 %v904_v46, %v903_v21  ;;  %v740_v54 = vrot.slane %v1617_v60, 2  ;;  %v452_v63 = vsel %vm443_vm2, %v449_v40, %v451_v34  ;;  %v1002_v2 = vrot.slane %v1526_v5, 3  ;;  %v258_v46 = vld [vmem:[%s1523_s29 + $0x30] sm:$0xf] }
  0x25   : > { %v657_v51 = vor.u32 %v656_v45, %v653_v44  ;;  %v902_v53 = vor.u32 %v901_v41, %v900_v50  ;;  %v919_v35 = vshll.u32 %v1542_v13, 16  ;;  %v744_v44 = vrot.slane %v1651_v36, 2 }
  0x26   : > { %v741_v57 = vsel %vm736_vm4, %v738_v49, %v740_v54  ;;  %v825_v45 = vrot.slane %v1539_v12, 2  ;;  %v271_v48 = vunpack.c.l.bf16 %v258_v46 }
  0x27   : > { %v906_v56 = vsel %vm899_vm5, %v902_v53, %v905_v42  ;;  %v921_v40 = vrot.slane %v919_v35, 3 }
  0x28   : > { %1254 = vmatmul.msk.bf16.gmra.mxu2 %vm334_vm1, %v319_v55  ;;  %1260 = vmatmul.msk.bf16.vlgmr.msrb.gmra.mxu1 %vm334_vm1, %v1554_v19  ;;  %v1633_v19 = vld [vmem:[%s1523_s29 + $0x1c] sm:$0xff]   ;;  %v1679_v55 = vpack.c.bf16 %v1376_v11, %v1376_v11  ;;  %v1009_v11 = vrot.slane %v1542_v13, 3  ;;  %v814_v36 = vpack.c.bf16 %v271_v48, %v271_v48 }
  0x29   : > { %v642_v22 = vshrl.u32 %v1633_v19, 16  ;;  %v645_v23 = vshll.u32 %v1633_v19, 16  ;;  %v540_v28 = vrot.slane %v1633_v19, 1 }
  0x2a   : > { %1293 = vmatmul.msk.bf16.vlgmr.msrb.gmra.mxu0 %vm334_vm1, %v631_v59  ;;  %v663_v8 = vshll.u32 %v1679_v55, 16  ;;  %v544_v62 = vrot.slane %v1679_v55, 1  ;;  %v925_v53 = vshrl.u32 %v814_v36, 16 }
  0x2b   : > { %1282 = vmatmul.msk.bf16.vlgmr.msrb.gmra.mxu3 %vm334_vm1, %v537_v58  ;;  %v644_v26 = vrot.slane %v642_v22, 1  ;;  %v647_v27 = vrot.slane %v645_v23, 2  ;;  %v541_v32 = vsel %vm443_vm2, %v538_v3, %v540_v28  ;;  %v543_v10 = vsel %vm443_vm2, %v540_v28, %v542_v15 }
  0x2c   : > { %v660_v58 = vshrl.u32 %v1679_v55, 16  ;;  %v665_v61 = vrot.slane %v663_v8, 2  ;;  %v545_v60 = vsel %vm443_vm2, %v542_v15, %v544_v62  ;;  %v1003_v3 = vrot.slane %v1529_v6, 3 }
  0x2d   : > { %v648_v30 = vor.u32 %v647_v27, %v644_v26  ;;  %v821_v22 = vrot.slane %v1529_v6, 2  ;;  %v1005_v26 = vrot.slane %v1532_v7, 3  ;;  %v823_v28 = vrot.slane %v1532_v7, 2 }
  0x2e   : > { %v662_v59 = vrot.slane %v660_v58, 1  ;;  %v927_v8 = vrot.slane %v925_v53, 2  ;;  %v827_v62 = vrot.slane %v1542_v13, 2 }
  0x2f   : > { %v649_v33 = vsel %vm614_vm3, %v639_v17, %v648_v30  ;;  %v658_v9 = vsel %vm614_vm3, %v648_v30, %v657_v51  ;;  %v907_v17 = vrot.slane %v312_v43, 2  ;;  %v1006_v43 = vsel %vm1001_vm6, %v1003_v3, %v1005_v26 }
  0x30   : > { %v666_v0 = vor.u32 %v665_v61, %v662_v59  ;;  %v746_v61 = vrot.slane %v1679_v55, 2 }
  0x32   : > { %v667_v1 = vsel %vm614_vm3, %v657_v51, %v666_v0  ;;  %v826_v51 = vsel %vm736_vm4, %v823_v28, %v825_v45 }
  0x38   : > { %1261 = vmatmul.msk.bf16.gmra.mxu1 %vm334_vm1, %v1526_v5  ;;  %1271 = vmatmul.msk.bf16.vlgmr.msrb.gmra.mxu2 %vm334_vm1, %v446_v4  ;;  %v1004_v4 = vsel %vm1001_vm6, %v1002_v2, %v1003_v3  ;;  %v747_v2 = vsel %vm736_vm4, %v744_v44, %v746_v61  ;;  %v828_v3 = vsel %vm736_vm4, %v825_v45, %v827_v62 }
  0x3a   : > { %1294 = vmatmul.msk.bf16.gmra.mxu0 %vm334_vm1, %v640_v20  ;;  %v820_v20 = vrot.slane %v1526_v5, 2  ;;  %v911_v5 = vrot.slane %v320_v25, 2 }
  0x3b   : > { %1283 = vmatmul.msk.bf16.gmra.mxu3 %vm334_vm1, %v539_v18  ;;  %v908_v18 = vrot.slane %v308_v14, 3  ;;  %v742_v14 = vrot.slane %v1633_v19, 2 }
  0x3c   : > { %v822_v24 = vsel %vm736_vm4, %v820_v20, %v821_v22 }
  0x3d   : > { %v909_v23 = vor.u32 %v908_v18, %v907_v17  ;;  %v743_v31 = vsel %vm736_vm4, %v740_v54, %v742_v14  ;;  %v745_v50 = vsel %vm736_vm4, %v742_v14, %v744_v44  ;;  %v928_v54 = vshll.u32 %v814_v36, 16 }
  0x3e   : > { %v1011_v18 = vrot.slane %v814_v36, 3 }
  0x3f   : > { %v910_v27 = vsel %vm899_vm5, %v905_v42, %v909_v23  ;;  %v930_v59 = vrot.slane %v928_v54, 3 }
  0x48   : > { %1262 = vmatmul.msk.bf16.gmra.mxu1 %vm334_vm1, %v1529_v6  ;;  %1272 = vmatmul.msk.bf16.gmra.mxu2 %vm334_vm1, %v448_v29  ;;  %v912_v6 = vrot.slane %v316_v16, 3 }
  0x4a   : > { %1295 = vmatmul.msk.bf16.gmra.mxu0 %vm334_vm1, %v649_v33  ;;  %v913_v29 = vor.u32 %v912_v6, %v911_v5  ;;  %v1007_v33 = vrot.slane %v1539_v12, 3  ;;  %v829_v6 = vrot.slane %v814_v36, 2 }
  0x4b   : > { %1284 = vmatmul.msk.bf16.gmra.mxu3 %vm334_vm1, %v541_v32  ;;  %v824_v32 = vsel %vm736_vm4, %v821_v22, %v823_v28 }
  0x4c   : > { %v914_v25 = vsel %vm899_vm5, %v909_v23, %v913_v29  ;;  %v1008_v19 = vsel %vm1001_vm6, %v1005_v26, %v1007_v33  ;;  %v1010_v42 = vsel %vm1001_vm6, %v1007_v33, %v1009_v11 }
  0x58   : > { %1263 = vmatmul.msk.bf16.gmra.mxu1 %vm334_vm1, %v1532_v7  ;;  %1273 = vmatmul.msk.bf16.gmra.mxu2 %vm334_vm1, %v450_v47  ;;  %v916_v7 = vshrl.u32 %v1542_v13, 16  ;;  %v1012_v13 = vsel %vm1001_vm6, %v1009_v11, %v1011_v18 }
  0x5a   : > { %1296 = vmatmul.msk.bf16.gmra.mxu0 %vm334_vm1, %v658_v9  ;;  %v918_v39 = vrot.slane %v916_v7, 2 }
  0x5b   : > { %1285 = vmatmul.msk.bf16.gmra.mxu3 %vm334_vm1, %v543_v10 }
  0x5c   : > { %v922_v47 = vor.u32 %v921_v40, %v918_v39 }
  0x68   : > { %1264 = vmatmul.msk.bf16.gmra.mxu1 %vm334_vm1, %v1539_v12  ;;  %1274 = vmatmul.msk.bf16.gmra.mxu2 %vm334_vm1, %v452_v63  ;;  %v923_v12 = vsel %vm899_vm5, %v913_v29, %v922_v47 }
  0x6a   : > { %1297 = vmatmul.msk.bf16.gmra.mxu0 %vm334_vm1, %v667_v1 }
  0x6b   : > { %1286 = vmatmul.msk.bf16.gmra.mxu3 %vm334_vm1, %v545_v60  ;;  %v931_v60 = vor.u32 %v930_v59, %v927_v8 }
  0x6d   : > { %v932_v20 = vsel %vm899_vm5, %v922_v47, %v931_v60 }
  0x78   : > { %1275 = vmatmul.msk.bf16.gmra.mxu2 %vm334_vm1, %v454_v37  ;;  %1304 = vmatmul.msk.bf16.vlgmr.msra.gmra.mxu1 %vm334_vm1, %v739_v52 }
  0x7a   : > { %1337 = vmatmul.msk.bf16.vlgmr.msra.gmra.mxu0 %vm334_vm1, %v1004_v4 }
  0x7b   : > { %1326 = vmatmul.msk.bf16.vlgmr.msra.gmra.mxu3 %vm334_vm1, %v906_v56 }
  0x88   : > { %1305 = vmatmul.msk.bf16.gmra.mxu1 %vm334_vm1, %v741_v57  ;;  %1315 = vmatmul.msk.bf16.vlgmr.msra.gmra.mxu2 %vm334_vm1, %v822_v24 }
  0x8a   : > { %1338 = vmatmul.msk.bf16.gmra.mxu0 %vm334_vm1, %v1006_v43 }
  0x8b   : > { %1327 = vmatmul.msk.bf16.gmra.mxu3 %vm334_vm1, %v910_v27 }
  0x95   : > { %v364_v30 = vpop.f32.mrf.mxu1 }
  0x97   : > { %v359_v16 = vpop.f32.mrf.mxu0 }
  0x98   : > { %1306 = vmatmul.msk.bf16.gmra.mxu1 %vm334_vm1, %v743_v31  ;;  %1316 = vmatmul.msk.bf16.gmra.mxu2 %vm334_vm1, %v824_v32  ;;  %v830_v31 = vsel %vm736_vm4, %v827_v62, %v829_v6 }
  0x9a   : > { %1339 = vmatmul.msk.bf16.gmra.mxu0 %vm334_vm1, %v1008_v19 }
  0x9b   : > { %v1729_v34 = vpop.f32.mrf.mxu2  ;;  %1328 = vmatmul.msk.bf16.gmra.mxu3 %vm334_vm1, %v914_v25 }
  0x9d   : > { %v366_v37 = vpop.f32.mrf.mxu1 }
  0x9e   : > { %v1735_v38 = vpop.f32.mrf.mxu3 }
  0x9f   : > { %v361_v21 = vpop.f32.mrf.mxu0 }
  0xa3   : > { %v1740_v15 = vpop.f32.mrf.mxu2 }
  0xa5   : > { %v409_v49 = vpop.f32.mrf.mxu1 }
  0xa6   : > { %v410_v52 = vadd.f32 %v409_v49, %v359_v16  ;;  %v1744_v10 = vpop.f32.mrf.mxu3 }
  0xa7   : > { %v698_v41 = vpop.f32.mrf.mxu0 }
  0xa8   : > { %1307 = vmatmul.msk.bf16.gmra.mxu1 %vm334_vm1, %v745_v50  ;;  %1317 = vmatmul.msk.bf16.gmra.mxu2 %vm334_vm1, %v826_v51 }
  0xaa   : > { %1340 = vmatmul.msk.bf16.gmra.mxu0 %vm334_vm1, %v1010_v42 }
  0xab   : > { %v374_v9 = vpop.f32.mrf.mxu2  ;;  %1329 = vmatmul.msk.bf16.gmra.mxu3 %vm334_vm1, %v923_v12 }
  0xad   : > { %v411_v56 = vpop.f32.mrf.mxu1 }
  0xae   : > { %v412_v57 = vadd.f32 %v411_v56, %v361_v21  ;;  %v576_v58 = vpop.f32.mrf.mxu3 }
  0xaf   : > { %v700_v63 = vpop.f32.mrf.mxu0 }
  0xb3   : > { %v376_v0 = vpop.f32.mrf.mxu2 }
  0xb5   : > { %v414_v1 = vpop.f32.mrf.mxu1 }
  0xb6   : > { %v415_v4 = vadd.f32 %v414_v1, %v364_v30  ;;  %v578_v17 = vpop.f32.mrf.mxu3 }
  0xb7   : > { %v703_v55 = vpop.f32.mrf.mxu0 }
  0xb8   : > { %1308 = vmatmul.msk.bf16.gmra.mxu1 %vm334_vm1, %v747_v2  ;;  %1318 = vmatmul.msk.bf16.gmra.mxu2 %vm334_vm1, %v828_v3 }
  0xba   : > { %1341 = vmatmul.msk.bf16.gmra.mxu0 %vm334_vm1, %v1012_v13 }
  0xbb   : > { %v485_v22 = vpop.f32.mrf.mxu2  ;;  %1330 = vmatmul.msk.bf16.gmra.mxu3 %vm334_vm1, %v932_v20 }
  0xbc   : > { %v510_v23 = vadd.f32 %v485_v22, %v410_v52 }
  0xbd   : > { %v416_v24 = vpop.f32.mrf.mxu1 }
  0xbe   : > { %v601_v26 = vadd.f32 %v576_v58, %v510_v23  ;;  %v417_v27 = vadd.f32 %v416_v24, %v366_v37  ;;  %v581_v43 = vpop.f32.mrf.mxu3 }
  0xbf   : > { %v705_v14 = vpop.f32.mrf.mxu0 }
  0xc0   : > { %v1763_v5 = vadd.f32 %v698_v41, %v601_v26 }
  0xc3   : > { %v487_v28 = vpop.f32.mrf.mxu2 }
  0xc4   : > { %v511_v29 = vadd.f32 %v487_v28, %v412_v57 }
  0xc5   : > { %v419_v30 = vpop.f32.mrf.mxu1 }
  0xc6   : > { %v602_v32 = vadd.f32 %v578_v17, %v511_v29  ;;  %v420_v33 = vadd.f32 %v419_v30, %v1729_v34  ;;  %v583_v25 = vpop.f32.mrf.mxu3 }
  0xc7   : > { %v708_v19 = vpop.f32.mrf.mxu0 }
  0xc8   : > { %1319 = vmatmul.msk.bf16.gmra.mxu2 %vm334_vm1, %v830_v31  ;;  %v1768_v16 = vadd.f32 %v700_v63, %v602_v32 }
  0xcb   : > { %v490_v7 = vpop.f32.mrf.mxu2 }
  0xcc   : > { %v512_v35 = vadd.f32 %v490_v7, %v415_v4 }
  0xcd   : > { %v421_v37 = vpop.f32.mrf.mxu1 }
  0xce   : > { %v603_v39 = vadd.f32 %v581_v43, %v512_v35  ;;  %v422_v40 = vadd.f32 %v421_v37, %v1740_v15  ;;  %v586_v44 = vpop.f32.mrf.mxu3  ;;  %v1793_v37 = vld [vmem:[%s1851_s2] ss:$0 sm:$0xff] }
  0xcf   : > { %v710_v46 = vpop.f32.mrf.mxu0 }
  0xd0   : > { %v1771_v45 = vadd.f32 %v703_v55, %v603_v39 }
  0xd3   : > { %v492_v21 = vpop.f32.mrf.mxu2 }
  0xd4   : > { %v513_v47 = vadd.f32 %v492_v21, %v417_v27 }
  0xd5   : > { %v424_v48 = vpop.f32.mrf.mxu1 }
  0xd6   : > { %v604_v34 = vadd.f32 %v583_v25, %v513_v47  ;;  %v425_v49 = vadd.f32 %v424_v48, %v374_v9  ;;  %v588_v50 = vpop.f32.mrf.mxu3 }
  0xd7   : > { %v713_v52 = vpop.f32.mrf.mxu0 }
  0xd8   : > { %v1773_v51 = vadd.f32 %v705_v14, %v604_v34 }
  0xdb   : > { %v495_v11 = vpop.f32.mrf.mxu2 }
  0xdc   : > { %v514_v12 = vadd.f32 %v495_v11, %v420_v33 }
  0xdd   : > { %v426_v36 = vpop.f32.mrf.mxu1 }
  0xde   : > { %v605_v41 = vadd.f32 %v586_v44, %v514_v12  ;;  %v427_v42 = vadd.f32 %v426_v36, %v376_v0  ;;  %v591_v53 = vpop.f32.mrf.mxu3 }
  0xdf   : > { %v715_v54 = vpop.f32.mrf.mxu0 }
  0xe0   : > { %v1775_v15 = vadd.f32 %v708_v19, %v605_v41 }
  0xe3   : > { %v497_v56 = vpop.f32.mrf.mxu2 }
  0xe4   : > { %v515_v57 = vadd.f32 %v497_v56, %v422_v40 }
  0xe5   : > { %v429_v58 = vpop.f32.mrf.mxu1 }
  0xe6   : > { %v606_v8 = vadd.f32 %v588_v50, %v515_v57  ;;  %v430_v59 = vadd.f32 %v429_v58, %v1735_v38  ;;  %v593_v9 = vpop.f32.mrf.mxu3 }
  0xe7   : > { %v718_v62 = vpop.f32.mrf.mxu0 }
  0xe8   : > { %v1778_v61 = vadd.f32 %v710_v46, %v606_v8 }
  0xeb   : > { %v500_v63 = vpop.f32.mrf.mxu2 }
  0xec   : > { %v516_v60 = vadd.f32 %v500_v63, %v425_v49 }
  0xed   : > { %v431_v1 = vpop.f32.mrf.mxu1 }
  0xee   : > { %v607_v2 = vadd.f32 %v591_v53, %v516_v60  ;;  %v432_v0 = vadd.f32 %v431_v1, %v1744_v10  ;;  %v596_v3 = vpop.f32.mrf.mxu3 }
  0xef   : > { %v720_v18 = vpop.f32.mrf.mxu0 }
  0xf0   : > { %v1781_v4 = vadd.f32 %v713_v52, %v607_v2 }
  0xf3   : > { %v502_v17 = vpop.f32.mrf.mxu2 }
  0xf4   : > { %v517_v20 = vadd.f32 %v502_v17, %v427_v42 }
  0xf5   : > { %v778_v55 = vpop.f32.mrf.mxu1 }
  0xf6   : > { %v608_v13 = vadd.f32 %v593_v9, %v517_v20  ;;  %v598_v22 = vpop.f32.mrf.mxu3  ;;  %v803_v25 = vadd.f32 %v778_v55, %v1763_v5 }
  0xf7   : > { %v1043_v26 = vpop.f32.mrf.mxu0 }
  0xf8   : > { %v1783_v38 = vadd.f32 %v715_v54, %v608_v13 }
  0xfb   : > { %v505_v23 = vpop.f32.mrf.mxu2 }
  0xfc   : > { %v518_v24 = vadd.f32 %v505_v23, %v430_v59 }
  0xfd   : > { %v780_v6 = vpop.f32.mrf.mxu1 }
  0xfe   : > { %v609_v27 = vadd.f32 %v596_v3, %v518_v24  ;;  %v963_v43 = vpop.f32.mrf.mxu3  ;;  %v804_v46 = vadd.f32 %v780_v6, %v1768_v16 }
  0xff   : > { %v1045_v31 = vpop.f32.mrf.mxu0 }
 0x100   : > { %v1785_v14 = vadd.f32 %v718_v62, %v609_v27 }
 0x103   : > { %v507_v10 = vpop.f32.mrf.mxu2 }
 0x104   : > { %v519_v28 = vadd.f32 %v507_v10, %v432_v0 }
 0x105   : > { %v783_v33 = vpop.f32.mrf.mxu1 }
 0x106   : > { %v610_v29 = vadd.f32 %v598_v22, %v519_v28  ;;  %v965_v30 = vpop.f32.mrf.mxu3  ;;  %v805_v16 = vadd.f32 %v783_v33, %v1771_v45 }
 0x107   : > { %v1048_v44 = vpop.f32.mrf.mxu0 }
 0x108   : > { %v1787_v32 = vadd.f32 %v720_v18, %v610_v29 }
 0x10b   : > { %v861_v19 = vpop.f32.mrf.mxu2 }
 0x10c   : > { %v886_v7 = vadd.f32 %v861_v19, %v803_v25 }
 0x10d   : > { %v785_v5 = vpop.f32.mrf.mxu1 }
 0x10e   : > { %v988_v35 = vadd.f32 %v963_v43, %v886_v7  ;;  %v968_v39 = vpop.f32.mrf.mxu3  ;;  %v806_v57 = vadd.f32 %v785_v5, %v1773_v51 }
 0x10f   : > { %v1050_v36 = vpop.f32.mrf.mxu0 }
 0x110   : > { %v1068_v40 = vadd.f32 %v1043_v26, %v988_v35 }
 0x112   : > { %v1082_v21 = vadd.f32 %v1793_v37, %v1068_v40 }
 0x113   : > { %v863_v47 = vpop.f32.mrf.mxu2 }
 0x114   : > { %v1092_v48 = vpack.c.bf16 %v1082_v21, %v1082_v21  ;;  %v887_v34 = vadd.f32 %v863_v47, %v804_v46 }
 0x115   : > { %v788_v53 = vpop.f32.mrf.mxu1 }
 0x116   : > { %1103 = vst.msk [vmem:[%s1801_s20] sm:$0xf] %vm1102_vm7, %v1092_v48  ;;  %v989_v49 = vadd.f32 %v965_v30, %v887_v34  ;;  %v970_v52 = vpop.f32.mrf.mxu3  ;;  %v807_v2 = vadd.f32 %v788_v53, %v1775_v15 }
 0x117   : > { %v1053_v62 = vpop.f32.mrf.mxu0 }
 0x118   : > { %v1069_v50 = vadd.f32 %v1045_v31, %v989_v49 }
 0x11a   : > { %v1083_v11 = vadd.f32 %v1793_v37, %v1069_v50 }
 0x11b   : > { %v866_v12 = vpop.f32.mrf.mxu2 }
 0x11c   : > { %v1093_v41 = vpack.c.bf16 %v1083_v11, %v1083_v11  ;;  %v888_v42 = vadd.f32 %v866_v12, %v805_v16 }
 0x11d   : > { %v790_v60 = vpop.f32.mrf.mxu1 }
 0x11e   : > { %1104 = vst.msk [vmem:[%s1801_s20 + $0x4] sm:$0xf] %vm1102_vm7, %v1093_v41  ;;  %v990_v54 = vadd.f32 %v968_v39, %v888_v42  ;;  %v973_v59 = vpop.f32.mrf.mxu3  ;;  %v808_v23 = vadd.f32 %v790_v60, %v1778_v61 }
 0x11f   : > { %v1055_v55 = vpop.f32.mrf.mxu0 }
 0x120   : > { %v1070_v56 = vadd.f32 %v1048_v44, %v990_v54 }
 0x122   : > { %v1084_v58 = vadd.f32 %v1793_v37, %v1070_v56 }
 0x123   : > { %v868_v8 = vpop.f32.mrf.mxu2 }
 0x124   : > { %v1094_v45 = vpack.c.bf16 %v1084_v58, %v1084_v58  ;;  %v889_v9 = vadd.f32 %v868_v8, %v806_v57 }
 0x125   : > { %v793_v22 = vpop.f32.mrf.mxu1 }
 0x126   : > { %1105 = vst.msk [vmem:[%s1801_s20 + $0x8] sm:$0xf] %vm1102_vm7, %v1094_v45  ;;  %v991_v63 = vadd.f32 %v970_v52, %v889_v9  ;;  %v975_v18 = vpop.f32.mrf.mxu3  ;;  %v809_v29 = vadd.f32 %v793_v22, %v1781_v4 }
 0x127   : > { %v1058_v28 = vpop.f32.mrf.mxu0 }
 0x128   : > { %v1071_v1 = vadd.f32 %v1050_v36, %v991_v63 }
 0x12a   : > { %v1085_v0 = vadd.f32 %v1793_v37, %v1071_v1 }
 0x12b   : > { %v871_v3 = vpop.f32.mrf.mxu2 }
 0x12c   : > { %v1095_v51 = vpack.c.bf16 %v1085_v0, %v1085_v0  ;;  %v890_v17 = vadd.f32 %v871_v3, %v807_v2 }
 0x12d   : > { %v795_v31 = vpop.f32.mrf.mxu1 }
 0x12e   : > { %1106 = vst.msk [vmem:[%s1801_s20 + $0xc] sm:$0xf] %vm1102_vm7, %v1095_v51  ;;  %v992_v20 = vadd.f32 %v973_v59, %v890_v17  ;;  %v978_v6 = vpop.f32.mrf.mxu3  ;;  %v810_v39 = vadd.f32 %v795_v31, %v1783_v38 }
 0x12f   : > { %v1060_v44 = vpop.f32.mrf.mxu0 }
 0x130   : > { %v1072_v13 = vadd.f32 %v1053_v62, %v992_v20 }
 0x132   : > { %v1086_v24 = vadd.f32 %v1793_v37, %v1072_v13 }
 0x133   : > { %v873_v26 = vpop.f32.mrf.mxu2 }
 0x134   : > { %v1096_v15 = vpack.c.bf16 %v1086_v24, %v1086_v24  ;;  %v891_v27 = vadd.f32 %v873_v26, %v808_v23 }
 0x135   : > { %v798_v5 = vpop.f32.mrf.mxu1 }
 0x136   : > { %1107 = vst.msk [vmem:[%s1801_s20 + $0x10] sm:$0xf] %vm1102_vm7, %v1096_v15  ;;  %v993_v43 = vadd.f32 %v975_v18, %v891_v27  ;;  %v980_v35 = vpop.f32.mrf.mxu3  ;;  %v811_v34 = vadd.f32 %v798_v5, %v1785_v14 }
 0x137   : > { %v1063_v11 = vpop.f32.mrf.mxu0 }
 0x138   : > { %v1073_v10 = vadd.f32 %v1055_v55, %v993_v43 }
 0x13a   : > { %v1087_v30 = vadd.f32 %v1793_v37, %v1073_v10 }
 0x13b   : > { %v876_v33 = vpop.f32.mrf.mxu2 }
 0x13c   : > { %v1097_v61 = vpack.c.bf16 %v1087_v30, %v1087_v30  ;;  %v892_v25 = vadd.f32 %v876_v33, %v809_v29 }
 0x13d   : > { %v800_v36 = vpop.f32.mrf.mxu1 }
 0x13e   : > { %1108 = vst.msk [vmem:[%s1801_s20 + $0x14] sm:$0xf] %vm1102_vm7, %v1097_v61  ;;  %v994_v19 = vadd.f32 %v978_v6, %v892_v25  ;;  %v983_v50 = vpop.f32.mrf.mxu3  ;;  %v812_v42 = vadd.f32 %v800_v36, %v1787_v32 }
 0x13f   : > { %v1065_v8 = vpop.f32.mrf.mxu0 }
 0x140   : > { %v1074_v7 = vadd.f32 %v1058_v28, %v994_v19 }
 0x142   : > { %v1088_v40 = vadd.f32 %v1793_v37, %v1074_v7 }
 0x143   : > { %v878_v46 = vpop.f32.mrf.mxu2 }
 0x144   : > { %v1098_v4 = vpack.c.bf16 %v1088_v40, %v1088_v40  ;;  %v893_v21 = vadd.f32 %v878_v46, %v810_v39 }
 0x146   : > { %1109 = vst.msk [vmem:[%s1801_s20 + $0x18] sm:$0xf] %vm1102_vm7, %v1098_v4  ;;  %v995_v47 = vadd.f32 %v980_v35, %v893_v21  ;;  %v985_v57 = vpop.f32.mrf.mxu3 }
 0x148   : > { %v1075_v48 = vadd.f32 %v1060_v44, %v995_v47 }
 0x14a   : > { %v1089_v49 = vadd.f32 %v1793_v37, %v1075_v48 }
 0x14b   : > { %v881_v52 = vpop.f32.mrf.mxu2 }
 0x14c   : > { %v1099_v38 = vpack.c.bf16 %v1089_v49, %v1089_v49  ;;  %v894_v16 = vadd.f32 %v881_v52, %v811_v34 }
 0x14e   : > { %1110 = vst.msk [vmem:[%s1801_s20 + $0x1c] sm:$0xf] %vm1102_vm7, %v1099_v38  ;;  %v996_v12 = vadd.f32 %v983_v50, %v894_v16 }
 0x150   : > { %v1076_v41 = vadd.f32 %v1063_v11, %v996_v12 }
 0x152   : > { %v1090_v53 = vadd.f32 %v1793_v37, %v1076_v41 }
 0x153   : > { %v883_v54 = vpop.f32.mrf.mxu2 }
 0x154   : > { %v1100_v14 = vpack.c.bf16 %v1090_v53, %v1090_v53  ;;  %v895_v56 = vadd.f32 %v883_v54, %v812_v42 }
 0x156   : > { %1111 = vst.msk [vmem:[%s1801_s20 + $0x20] sm:$0xf] %vm1102_vm7, %v1100_v14  ;;  %v997_v58 = vadd.f32 %v985_v57, %v895_v56 }
 0x158   : > { %v1077_v59 = vadd.f32 %v1065_v8, %v997_v58 }
 0x15a   : > { %v1091_v45 = vadd.f32 %v1793_v37, %v1077_v59 }
 0x15c   : > { %v1101_v9 = vpack.c.bf16 %v1091_v45, %v1091_v45 }
 0x15e   : > { %1112 = vst.msk [vmem:[%s1801_s20 + $0x24] sm:$0xf] %vm1102_vm7, %v1101_v9 }
 0x15f PF: > { %s13_s14 = sadd.s32 1, %s1462_s14   ;;  %s1853_s12 = smov %s1458_s13 }
 0x160   : > { %p10_p5 = scmp.ge.s32.totalorder %s13_s14, 4   ;;  %s1854_s13 = smov %s1856_s15 }
 0x162   :  { %12 = sbr.rel (!%p10_p5) target bundleno = 2 (0x2), region = 77 }

// kernel: generator_forward.42
= control target key start
LH: loop header
LB: loop body
LE: loop exit
PB: predicated region body
PF: predicated region fallthrough
CT: control target
= control target key end

     0   :  { %vm19_vm0 = vcmask 64512   ;;  %v92_v1 = vmov 0.0   ;;  %vm39_vm1 = vcmask 130048   ;;  %s134_s1 = inlined_call_operand.vmem [shape: bf16[16,8], index: 1, kind: input, shape index: {}]   ;;  %s135_s0 = inlined_call_operand.vmem [shape: bf16[16,16], index: 0, kind: input, shape index: {}]   ;;  %s136_s2 = inlined_call_operand.vmem [shape: f32[1,8], index: 2, kind: input, shape index: {}]   ;;  %s137_s3 = inlined_call_operand.vmem [shape: f32[16,8], index: 3, kind: output, shape index: {}]  }
   0x1   :  { %v89_v0 = vld [vmem:[%s134_s1] sm:$0xff]  ;;  %20 = vst.msk [vmem:[#allocation2] sm:$0xff] %vm19_vm0, %v92_v1 }
   0x2   :  { %v88_v2 = vld [vmem:[%s135_s0] sm:$0xff]  ;;  %21 = vst.msk [vmem:[#allocation2 + $0x8] sm:$0xff] %vm19_vm0, %v92_v1  ;;  %50 = vmatpush.bf16.msra.mxu0 %v89_v0 }
   0x3   :  { %v91_v7 = vld [vmem:[%s136_s2] ss:$0 sm:$0xff] }
   0x5   :  { %87 = vmatmul.msk.bf16.vlgmr.msra.gmra.mxu0 %vm39_vm1, %v88_v2 }
   0x8   :  { %v22_v3 = vld [vmem:[#allocation2] sm:$0xff] }
   0x9   :  { %v23_v6 = vld [vmem:[#allocation2 + $0x8] sm:$0xff] }
  0x82   :  { %v52_v4 = vpop.f32.mrf.mxu0 }
  0x83   :  { %v57_v5 = vadd.f32 %v52_v4, %v22_v3 }
  0x85   :  { %60 = vst.msk [vmem:[#allocation2] sm:$0xff] %vm19_vm0, %v57_v5 }
  0x8a   :  { %v54_v8 = vpop.f32.mrf.mxu0 }
  0x8b   :  { %v58_v9 = vadd.f32 %v54_v8, %v23_v6 }
  0x8c   :  { %v65_v10 = vld [vmem:[#allocation2] sm:$0xff] }
  0x8d   :  { %v71_v11 = vadd.f32 %v91_v7, %v65_v10  ;;  %61 = vst.msk [vmem:[#allocation2 + $0x8] sm:$0xff] %vm19_vm0, %v58_v9 }
  0x8f   :  { %73 = vst.msk [vmem:[%s137_s3] sm:$0xff] %vm19_vm0, %v71_v11 }
  0x94   :  { %v66_v12 = vld [vmem:[#allocation2 + $0x8] sm:$0xff] }
  0x95   :  { %v72_v13 = vadd.f32 %v91_v7, %v66_v12 }
  0x97   :  { %74 = vst.msk [vmem:[%s137_s3 + $0x8] sm:$0xff] %vm19_vm0, %v72_v13 }

// kernel: generator_forward.41
= control target key start
LH: loop header
LB: loop body
LE: loop exit
PB: predicated region body
PF: predicated region fallthrough
CT: control target
= control target key end

     0   :  { %s1950_s12 = smov 0   ;;  %s1952_s13 = smov 0   ;;  %s2554_s0 = inlined_call_operand.vmem [shape: bf16[2,328,16], index: 0, kind: input, shape index: {}]   ;;  %s2555_s1 = inlined_call_operand.vmem [shape: bf16[9,16,8], index: 1, kind: input, shape index: {}]   ;;  %s2556_s2 = inlined_call_operand.vmem [shape: f32[1,8], index: 2, kind: input, shape index: {}]   ;;  %s2557_s3 = inlined_call_operand.vmem [shape: bf16[2,288,8], index: 3, kind: output, shape index: {}]  }
   0x1   :  { %s1954_s14 = smov 0   ;;  %s1956_s15 = smov 0  }
   0x2   :  { %s1958_s16 = smov 0  }
   0x3 LB: > { %s28_s17 = sadd.s32 1, %s1920_s14  ;;  %s32_s18 = sadd.s32 1, %s1924_s15  ;;  %s1928_s16 = sphi %s1958_s16, %s13_s16   ;;  %s1924_s15 = sphi %s1956_s15, %s2561_s15   ;;  %s1920_s14 = sphi %s1954_s14, %s2560_s14   ;;  %s1916_s13 = sphi %s1952_s13, %s2559_s13   ;;  %s1912_s12 = sphi %s1950_s12, %s2558_s12  }
   0x4   : > { %p30_p0 = scmp.ge.s32.totalorder %s28_s17, 2  ;;  %p1641_p1 = scmp.ge.s32.totalorder %s1928_s16, 1 }
   0x5   : > { %p177_p2 = scmp.lt.s32.totalorder %s1928_s16, 5 }
   0x6   : > { %s2563_s17 = smov (%p30_p0, %s28_s17), 0  ;;  %s2565_s18 = smov (!%p30_p0, %s32_s18), %s1924_s15 }
   0x7   : > { %p178_p3 = pnand %p1641_p1, %p177_p2  ;;  %p34_p4 = scmp.ge.s32.totalorder %s2565_s18, 2 }
   0x8   : > { %p215_p5 = scmp.lt.s32.totalorder (!%p178_p3), %s1916_s13, 1  ;;  %s241_s21 = smul.u32 (!%p178_p3), 144, %s1912_s12 }
   0x9   : > { %s2567_s18 = smov (%p34_p4, %s2565_s18), 0  ;;  %181 = sbr.rel (%p178_p3) target bundleno = 499 (0x1f3), region = 32 }
   0xa   : > { %s242_s28 = sshra.s32 (!%p178_p3), %s241_s21, 3  ;;  %s227_s25 = smul.u32 (!%p178_p3), 18, %s1912_s12 }
   0xb   : > { %s1644_s30 = sshll.u32 (!%p178_p3), %s242_s28, 2 }
   0xc   : > { %p230_p6 = scmp.lt.s32.totalorder (!%p178_p3), %s227_s25, 35 }
   0xe   : > { %v1826_v0 = vld [vmem:[%s2555_s1 + $0x8] sm:$0xff]  ;;  %v1827_v1 = vld [vmem:[%s2555_s1 + $0x10] sm:$0xff]  ;;  %v1825_v2 = vld [vmem:[%s2555_s1] sm:$0xff]  ;;  %s2569_s13 = smov (!%p215_p5, %s1916_s13), 1  ;;  %vm307_vm0 = vsmask.f32 7424 }
   0xf   : > { %v1828_v3 = vld [vmem:[%s2555_s1 + $0x18] sm:$0xff]  ;;  %1844 = vmatpush.bf16.msra.mxu1 %v1826_v0  ;;  %1845 = vmatpush.bf16.msra.mxu2 %v1826_v0  ;;  %s1847_s29 = smul.u32 164, %s2569_s13  ;;  %vm390_vm1 = vcmask 130048   ;;  %v1829_v37 = vld [vmem:[%s2555_s1 + $0x20] sm:$0xff]  ;;  %v1831_v62 = vld [vmem:[%s2555_s1 + $0x30] sm:$0xff]  ;;  %vm563_vm3 = vcmask 1046528  }
  0x10   : > { %1846 = vmatpush.bf16.msra.mxu3 %v1826_v0  ;;  %425 = vmatpush.bf16.msra.mxu0 %v1826_v0  ;;  %v1832_v63 = vld [vmem:[%s2555_s1 + $0x38] sm:$0xff]  ;;  %v1830_v0 = vld [vmem:[%s2555_s1 + $0x28] sm:$0xff]  ;;  %vm786_vm2 = vsmask.f32 6400  ;;  %vm1325_vm4 = vcmask 1044480   ;;  %vm944_vm6 = vcmask 1045504  }
  0x11   : > { %s219_s6 = scalar_lea.vmem %s2554_s0, %s1847_s29  ;;  %vm1167_vm5 = vsmask.f32 5376  ;;  %s1848_s26 = smul.u32 36, %s2569_s13  ;;  %vm1490_vm7 = vcmask 60416  }
  0x12   : > { %s2001_s7 = scalar_lea.vmem %s219_s6, %s1644_s30  ;;  %s2571_s25 = smov (!%p230_p6, %s227_s25), 35 }
  0x13   : > { %623 = vmatpush.bf16.msrb.mxu2 %v1827_v1  ;;  %503 = vmatpush.bf16.msrb.mxu1 %v1825_v2  ;;  %v2004_v4 = vld [vmem:[%s2001_s7 + $0x8] sm:$0xff]  ;;  %v2007_v5 = vld [vmem:[%s2001_s7 + $0x10] sm:$0xff]  ;;  %v2010_v6 = vld [vmem:[%s2001_s7 + $0x20] sm:$0xff]  ;;  %s236_s12 = sadd.s32 %s1848_s26, %s2571_s25 }
  0x14   : > { %718 = vmatpush.bf16.msrb.mxu3 %v1828_v3  ;;  %v2013_v7 = vld [vmem:[%s2001_s7 + $0x28] sm:$0xff]  ;;  %v2016_v8 = vld [vmem:[%s2001_s7 + $0x38] sm:$0xff]  ;;  %v2019_v9 = vld [vmem:[%s2001_s7 + $0x40] sm:$0xff]  ;;  %v316_v10 = vshll.u32 %v2004_v4, 16  ;;  %v320_v11 = vshrl.u32 %v2004_v4, 16  ;;  %v2024_v12 = vshll.u32 %v2007_v5, 16  ;;  %876 = vmatpush.bf16.msrb.mxu0 %v1829_v37 }
  0x15   : > { %v2027_v13 = vshll.u32 %v2010_v6, 16  ;;  %v2030_v14 = vshrl.u32 %v2010_v6, 16  ;;  %v2033_v15 = vshll.u32 %v2013_v7, 16  ;;  %v2036_v16 = vshll.u32 %v2016_v8, 16  ;;  %v2049_v24 = vld [vmem:[%s2001_s7 + $0x48] sm:$0xff]   ;;  %v2059_v29 = vld [vmem:[%s2001_s7] sm:$0xff] }
  0x16   : > { %v2039_v17 = vshrl.u32 %v2016_v8, 16  ;;  %v318_v18 = vrot.slane %v316_v10, 1  ;;  %v326_v19 = vrot.slane %v2024_v12, 1  ;;  %v2044_v21 = vshll.u32 %v2019_v9, 16  ;;  %v2068_v34 = vld [vmem:[%s2001_s7 + $0x18] sm:$0xff]  ;;  %v2072_v35 = vld [vmem:[%s2001_s7 + $0x30] sm:$0xff] }
  0x17   : > { %v342_v20 = vrot.slane %v2027_v13, 1  ;;  %v350_v22 = vrot.slane %v2033_v15, 1  ;;  %v366_v23 = vrot.slane %v2036_v16, 1  ;;  %v1836_v32 = vunpack.c.l.bf16 %v2049_v24  ;;  %v1833_v1 = vld [vmem:[%s2555_s1 + $0x40] sm:$0xff]  ;;  %s1643_s29 = sshll.u32 %s236_s12, 2 }
  0x18   : > { %v322_v25 = vor.u32 %v320_v11, %v318_v18  ;;  %v374_v27 = vrot.slane %v2044_v21, 1  ;;  %v309_v38 = vshrl.u32 %v2059_v29, 16  ;;  %v311_v39 = vshll.u32 %v2059_v29, 16  ;;  %s2468_s4 = scalar_lea.vmem %s2557_s3, %s1643_s29 }
  0x19   : > { %v346_v26 = vor.u32 %v2030_v14, %v342_v20  ;;  %v370_v28 = vor.u32 %v2039_v17, %v366_v23  ;;  %v2074_v36 = vpack.c.bf16 %v1836_v32, %v1836_v32  ;;  %v2082_v40 = vshrl.u32 %v2007_v5, 16 }
  0x1a   : > { %v327_v30 = vsel %vm307_vm0, %v322_v25, %v326_v19  ;;  %v2085_v41 = vshll.u32 %v2068_v34, 16  ;;  %v313_v42 = vrot.slane %v311_v39, 1  ;;  %v2088_v43 = vshrl.u32 %v2013_v7, 16 }
  0x1b   : > { %v351_v31 = vsel %vm307_vm0, %v346_v26, %v350_v22  ;;  %1688 = vmatmul.msk.bf16.vlgmr.msra.gmra.mxu1 %vm390_vm1, %v327_v30  ;;  %v375_v33 = vsel %vm307_vm0, %v370_v28, %v374_v27  ;;  %v2091_v44 = vshll.u32 %v2072_v35, 16  ;;  %v2094_v45 = vshrl.u32 %v2019_v9, 16 }
  0x1c   : > { %1691 = vmatmul.msk.bf16.vlgmr.msra.gmra.mxu2 %vm390_vm1, %v351_v31  ;;  %1694 = vmatmul.msk.bf16.vlgmr.msra.gmra.mxu3 %vm390_vm1, %v375_v33  ;;  %v380_v46 = vshll.u32 %v2074_v36, 16  ;;  %v314_v47 = vor.u32 %v313_v42, %v309_v38  ;;  %v330_v48 = vor.u32 %v2082_v40, %v326_v19  ;;  %v334_v49 = vrot.slane %v2085_v41, 1 }
  0x1d   : > { %v354_v51 = vor.u32 %v2088_v43, %v350_v22  ;;  %v358_v52 = vrot.slane %v2091_v44, 1  ;;  %v378_v53 = vor.u32 %v2094_v45, %v374_v27  ;;  %v787_v58 = vrot.slane %v320_v11, 1  ;;  %1099 = vmatpush.bf16.msra.mxu2 %v1831_v62  ;;  %1257 = vmatpush.bf16.msra.mxu3 %v1832_v63 }
  0x1e   : > { %v319_v50 = vsel %vm307_vm0, %v314_v47, %v318_v18  ;;  %v382_v54 = vrot.slane %v380_v46, 1  ;;  %v335_v55 = vsel %vm307_vm0, %v330_v48, %v334_v49  ;;  %v788_v59 = vrot.slane %v316_v10, 2  ;;  %1004 = vmatpush.bf16.msra.mxu1 %v1830_v0 }
  0x1f   : > { %1687 = vmatmul.msk.bf16.vlgmr.msra.gmra.mxu0 %vm390_vm1, %v319_v50  ;;  %v359_v56 = vsel %vm307_vm0, %v354_v51, %v358_v52  ;;  %v790_v60 = vrot.slane %v2082_v40, 1  ;;  %v791_v61 = vrot.slane %v2024_v12, 2  ;;  %v2125_v10 = vshrl.u32 %v2068_v34, 16 }
  0x20   : > { %v383_v57 = vsel %vm307_vm0, %v378_v53, %v382_v54  ;;  %v789_v2 = vor.u32 %v788_v59, %v787_v58  ;;  %1385 = vmatpush.bf16.msra.mxu0 %v1833_v1  ;;  %v2128_v11 = vshrl.u32 %v2072_v35, 16  ;;  %v565_v25 = vrot.slane %v2004_v4, 1 }
  0x21   : > { %v792_v3 = vor.u32 %v791_v61, %v790_v60  ;;  %v338_v19 = vor.u32 %v2125_v10, %v334_v49  ;;  %v567_v26 = vrot.slane %v2007_v5, 1  ;;  %v794_v31 = vrot.slane %v2125_v10, 1 }
  0x22   : > { %v362_v22 = vor.u32 %v2128_v11, %v358_v52  ;;  %v795_v32 = vrot.slane %v2085_v41, 2  ;;  %v798_v42 = vrot.slane %v2030_v14, 1  ;;  %v799_v46 = vrot.slane %v2027_v13, 2 }
  0x23   : > { %v793_v18 = vsel %vm786_vm2, %v789_v2, %v792_v3  ;;  %v343_v27 = vsel %vm307_vm0, %v338_v19, %v342_v20  ;;  %v568_v30 = vsel %vm563_vm3, %v565_v25, %v567_v26  ;;  %v564_v20 = vrot.slane %v2059_v29, 1 }
  0x24   : > { %v367_v28 = vsel %vm307_vm0, %v362_v22, %v366_v23  ;;  %v796_v33 = vor.u32 %v795_v32, %v794_v31  ;;  %v569_v23 = vrot.slane %v2068_v34, 1  ;;  %v800_v47 = vor.u32 %v799_v46, %v798_v42 }
  0x25   : > { %v566_v38 = vsel %vm563_vm3, %v564_v20, %v565_v25  ;;  %v571_v49 = vrot.slane %v2010_v6, 1  ;;  %v802_v51 = vrot.slane %v2088_v43, 1  ;;  %v803_v52 = vrot.slane %v2033_v15, 2  ;;  %v2220_v20 = vld [vmem:[%s2001_s7 + $0x50] sm:$0xff]  }
  0x26   : > { %v797_v37 = vsel %vm786_vm2, %v792_v3, %v796_v33  ;;  %v570_v39 = vsel %vm563_vm3, %v567_v26, %v569_v23  ;;  %v801_v48 = vsel %vm786_vm2, %v796_v33, %v800_v47  ;;  %v573_v54 = vrot.slane %v2013_v7, 1 }
  0x27   : > { %v572_v50 = vsel %vm563_vm3, %v569_v23, %v571_v49  ;;  %v575_v60 = vrot.slane %v2072_v35, 1  ;;  %v810_v62 = vrot.slane %v2039_v17, 1  ;;  %v811_v63 = vrot.slane %v2036_v16, 2 }
  0x28   : > { %v577_v2 = vrot.slane %v2016_v8, 1  ;;  %v815_v19 = vrot.slane %v2044_v21, 2  ;;  %v2203_v26 = vrot.slane %v2019_v9, 1  ;;  %v1840_v42 = vunpack.c.l.bf16 %v2220_v20 }
  0x29   : > { %v576_v61 = vsel %vm563_vm3, %v573_v54, %v575_v60  ;;  %v812_v0 = vor.u32 %v811_v63, %v810_v62 }
  0x2a   : > { %v578_v3 = vsel %vm563_vm3, %v575_v60, %v577_v2  ;;  %v580_v31 = vsel %vm563_vm3, %v577_v2, %v2203_v26 }
  0x2b   : > { %1689 = vmatmul.msk.bf16.gmra.mxu1 %vm390_vm1, %v335_v55  ;;  %v574_v55 = vsel %vm563_vm3, %v571_v49, %v573_v54  ;;  %v695_v49 = vrot.slane %v2049_v24, 1 }
  0x2c   : > { %1692 = vmatmul.msk.bf16.gmra.mxu2 %vm390_vm1, %v359_v56  ;;  %1695 = vmatmul.msk.bf16.gmra.mxu3 %vm390_vm1, %v383_v57  ;;  %v806_v56 = vrot.slane %v2128_v11, 1  ;;  %v807_v57 = vrot.slane %v2091_v44, 2 }
  0x2d   : > { %v696_v54 = vsel %vm563_vm3, %v2203_v26, %v695_v49 }
  0x2e   : > { %v808_v58 = vor.u32 %v807_v57, %v806_v56 }
  0x2f   : > { %1745 = vmatmul.msk.bf16.vlgmr.msrb.gmra.mxu0 %vm390_vm1, %v793_v18  ;;  %v814_v18 = vrot.slane %v2094_v45, 1 }
  0x30   : > { %v813_v1 = vsel %vm786_vm2, %v808_v58, %v812_v0 }
  0x31   : > { %v816_v22 = vor.u32 %v815_v19, %v814_v18 }
  0x33   : > { %v817_v25 = vsel %vm786_vm2, %v812_v0, %v816_v22 }
  0x3b   : > { %1690 = vmatmul.msk.bf16.gmra.mxu1 %vm390_vm1, %v343_v27  ;;  %v819_v27 = vshrl.u32 %v2049_v24, 16 }
  0x3c   : > { %1693 = vmatmul.msk.bf16.gmra.mxu2 %vm390_vm1, %v367_v28  ;;  %1730 = vmatmul.msk.bf16.vlgmr.msrb.gmra.mxu3 %vm390_vm1, %v568_v30  ;;  %v822_v28 = vshll.u32 %v2049_v24, 16 }
  0x3d   : > { %v821_v32 = vrot.slane %v819_v27, 1 }
  0x3e   : > { %v824_v33 = vrot.slane %v822_v28, 2 }
  0x3f   : > { %1746 = vmatmul.msk.bf16.gmra.mxu0 %vm390_vm1, %v797_v37 }
  0x40   : > { %v825_v37 = vor.u32 %v824_v33, %v821_v32 }
  0x4b   : > { %1700 = vmatmul.msk.bf16.vlgmr.msrb.gmra.mxu1 %vm390_vm1, %v2059_v29  ;;  %v804_v29 = vor.u32 %v803_v52, %v802_v51 }
  0x4c   : > { %1715 = vmatmul.msk.bf16.vlgmr.msrb.gmra.mxu2 %vm390_vm1, %v566_v38  ;;  %1731 = vmatmul.msk.bf16.gmra.mxu3 %vm390_vm1, %v570_v39 }
  0x4d   : > { %v805_v53 = vsel %vm786_vm2, %v800_v47, %v804_v29  ;;  %v809_v59 = vsel %vm786_vm2, %v804_v29, %v808_v58  ;;  %v826_v47 = vsel %vm786_vm2, %v816_v22, %v825_v37  ;;  %v1326_v22 = vrot.slane %v2007_v5, 3 }
  0x4f   : > { %1747 = vmatmul.msk.bf16.gmra.mxu0 %vm390_vm1, %v801_v48  ;;  %v2231_v48 = vpack.c.bf16 %v1840_v42, %v1840_v42  ;;  %v1168_v42 = vrot.slane %v2082_v40, 2 }
  0x51   : > { %v828_v51 = vshrl.u32 %v2231_v48, 16  ;;  %v831_v52 = vshll.u32 %v2231_v48, 16  ;;  %v697_v0 = vrot.slane %v2231_v48, 1 }
  0x53   : > { %v830_v56 = vrot.slane %v828_v51, 1  ;;  %v833_v57 = vrot.slane %v831_v52, 2  ;;  %v698_v18 = vsel %vm563_vm3, %v695_v49, %v697_v0  ;;  %v1171_v49 = vrot.slane %v2125_v10, 2 }
  0x55   : > { %v834_v58 = vor.u32 %v833_v57, %v830_v56 }
  0x57   : > { %v835_v63 = vsel %vm786_vm2, %v825_v37, %v834_v58 }
  0x5b   : > { %1701 = vmatmul.msk.bf16.gmra.mxu1 %vm390_vm1, %v2004_v4 }
  0x5c   : > { %1716 = vmatmul.msk.bf16.gmra.mxu2 %vm390_vm1, %v568_v30  ;;  %1732 = vmatmul.msk.bf16.gmra.mxu3 %vm390_vm1, %v572_v50 }
  0x5f   : > { %1748 = vmatmul.msk.bf16.gmra.mxu0 %vm390_vm1, %v805_v53 }
  0x6b   : > { %1702 = vmatmul.msk.bf16.gmra.mxu1 %vm390_vm1, %v2007_v5 }
  0x6c   : > { %1717 = vmatmul.msk.bf16.gmra.mxu2 %vm390_vm1, %v570_v39  ;;  %1733 = vmatmul.msk.bf16.gmra.mxu3 %vm390_vm1, %v574_v55 }
  0x6f   : > { %1749 = vmatmul.msk.bf16.gmra.mxu0 %vm390_vm1, %v809_v59 }
  0x7b   : > { %1703 = vmatmul.msk.bf16.gmra.mxu1 %vm390_vm1, %v2068_v34 }
  0x7c   : > { %1718 = vmatmul.msk.bf16.gmra.mxu2 %vm390_vm1, %v572_v50  ;;  %1734 = vmatmul.msk.bf16.gmra.mxu3 %vm390_vm1, %v576_v61 }
  0x7f   : > { %1750 = vmatmul.msk.bf16.gmra.mxu0 %vm390_vm1, %v813_v1 }
  0x8b   : > { %1704 = vmatmul.msk.bf16.gmra.mxu1 %vm390_vm1, %v2010_v6 }
  0x8c   : > { %1719 = vmatmul.msk.bf16.gmra.mxu2 %vm390_vm1, %v574_v55  ;;  %1735 = vmatmul.msk.bf16.gmra.mxu3 %vm390_vm1, %v578_v3 }
  0x8f   : > { %1751 = vmatmul.msk.bf16.gmra.mxu0 %vm390_vm1, %v817_v25  ;;  %v1327_v25 = vrot.slane %v2068_v34, 3 }
  0x91   : > { %v1328_v52 = vsel %vm1325_vm4, %v1326_v22, %v1327_v25 }
  0x98   : > { %v2207_v30 = vpop.f32.mrf.mxu1 }
  0x9b   : > { %1705 = vmatmul.msk.bf16.gmra.mxu1 %vm390_vm1, %v2013_v7 }
  0x9c   : > { %1720 = vmatmul.msk.bf16.gmra.mxu2 %vm390_vm1, %v576_v61  ;;  %1736 = vmatmul.msk.bf16.gmra.mxu3 %vm390_vm1, %v580_v31  ;;  %v427_v46 = vpop.f32.mrf.mxu0 }
  0x9f   : > { %v2222_v23 = vpop.f32.mrf.mxu2  ;;  %v2224_v38 = vpop.f32.mrf.mxu3  ;;  %1752 = vmatmul.msk.bf16.gmra.mxu0 %vm390_vm1, %v826_v47  ;;  %v1169_v47 = vrot.slane %v2024_v12, 3 }
  0xa0   : > { %v2226_v39 = vpop.f32.mrf.mxu1 }
  0xa1   : > { %v1170_v56 = vor.u32 %v1169_v47, %v1168_v42 }
  0xa4   : > { %v429_v55 = vpop.f32.mrf.mxu0 }
  0xa7   : > { %v2234_v50 = vpop.f32.mrf.mxu2  ;;  %v2238_v29 = vpop.f32.mrf.mxu3 }
  0xa8   : > { %v2240_v53 = vpop.f32.mrf.mxu1 }
  0xab   : > { %1706 = vmatmul.msk.bf16.gmra.mxu1 %vm390_vm1, %v2072_v35 }
  0xac   : > { %1721 = vmatmul.msk.bf16.gmra.mxu2 %vm390_vm1, %v578_v3  ;;  %1737 = vmatmul.msk.bf16.gmra.mxu3 %vm390_vm1, %v696_v54  ;;  %v878_v62 = vpop.f32.mrf.mxu0  ;;  %v581_v54 = vrot.slane %v2074_v36, 1  ;;  %v1329_v36 = vrot.slane %v2010_v6, 3 }
  0xae   : > { %v582_v12 = vsel %vm563_vm3, %v2203_v26, %v581_v54  ;;  %v1330_v54 = vsel %vm1325_vm4, %v1327_v25, %v1329_v36 }
  0xaf   : > { %v2248_v59 = vpop.f32.mrf.mxu2  ;;  %v2250_v60 = vpop.f32.mrf.mxu3  ;;  %1753 = vmatmul.msk.bf16.gmra.mxu0 %vm390_vm1, %v835_v63 }
  0xb0   : > { %v2252_v61 = vpop.f32.mrf.mxu1 }
  0xb4   : > { %v880_v19 = vpop.f32.mrf.mxu0 }
  0xb7   : > { %v2257_v1 = vpop.f32.mrf.mxu2  ;;  %v2259_v2 = vpop.f32.mrf.mxu3 }
  0xb8   : > { %v2261_v3 = vpop.f32.mrf.mxu1 }
  0xbb   : > { %1707 = vmatmul.msk.bf16.gmra.mxu1 %vm390_vm1, %v2016_v8 }
  0xbc   : > { %1722 = vmatmul.msk.bf16.gmra.mxu2 %vm390_vm1, %v580_v31  ;;  %1738 = vmatmul.msk.bf16.gmra.mxu3 %vm390_vm1, %v698_v18  ;;  %v1172_v31 = vrot.slane %v2085_v41, 3  ;;  %v883_v51 = vpop.f32.mrf.mxu0 }
  0xbe   : > { %v1173_v57 = vor.u32 %v1172_v31, %v1171_v49  ;;  %v1175_v49 = vrot.slane %v2030_v14, 2  ;;  %v1176_v31 = vrot.slane %v2027_v13, 3 }
  0xbf   : > { %v2270_v32 = vpop.f32.mrf.mxu2  ;;  %v720_v33 = vpop.f32.mrf.mxu3  ;;  %1805 = vmatmul.msk.bf16.vlgmr.msra.gmra.mxu0 %vm390_vm1, %v1328_v52 }
  0xc0   : > { %v2272_v37 = vpop.f32.mrf.mxu1  ;;  %v1174_v41 = vsel %vm1167_vm5, %v1170_v56, %v1173_v57  ;;  %v1177_v14 = vor.u32 %v1176_v31, %v1175_v49 }
  0xc4   : > { %v885_v0 = vpop.f32.mrf.mxu0 }
  0xc7   : > { %v2281_v58 = vpop.f32.mrf.mxu2  ;;  %v722_v63 = vpop.f32.mrf.mxu3 }
  0xc8   : > { %v505_v40 = vpop.f32.mrf.mxu1 }
  0xc9   : > { %v506_v10 = vadd.f32 %v505_v40, %v427_v46  ;;  %v945_v40 = vrot.slane %v2004_v4, 2  ;;  %v1178_v4 = vsel %vm1167_vm5, %v1173_v57, %v1177_v14 }
  0xcb   : > { %1708 = vmatmul.msk.bf16.gmra.mxu1 %vm390_vm1, %v2019_v9 }
  0xcc   : > { %1723 = vmatmul.msk.bf16.gmra.mxu2 %vm390_vm1, %v582_v12  ;;  %1790 = vmatmul.msk.bf16.vlgmr.msra.gmra.mxu3 %vm390_vm1, %v1174_v41  ;;  %v2293_v52 = vpop.f32.mrf.mxu0  ;;  %v946_v12 = vrot.slane %v2007_v5, 2 }
  0xcf   : > { %v625_v18 = vpop.f32.mrf.mxu2  ;;  %v725_v42 = vpop.f32.mrf.mxu3  ;;  %1806 = vmatmul.msk.bf16.gmra.mxu0 %vm390_vm1, %v1330_v54  ;;  %v1180_v54 = vrot.slane %v2033_v15, 3 }
  0xd0   : > { %v670_v22 = vadd.f32 %v625_v18, %v506_v10  ;;  %v507_v47 = vpop.f32.mrf.mxu1  ;;  %v948_v10 = vrot.slane %v2068_v34, 2  ;;  %v947_v18 = vsel %vm944_vm6, %v945_v40, %v946_v12 }
  0xd1   : > { %v508_v46 = vadd.f32 %v507_v47, %v429_v55  ;;  %v1331_v47 = vrot.slane %v2013_v7, 3 }
  0xd2   : > { %v765_v26 = vadd.f32 %v720_v33, %v670_v22  ;;  %v949_v25 = vsel %vm944_vm6, %v946_v12, %v948_v10 }
  0xd3   : > { %v1332_v12 = vsel %vm1325_vm4, %v1329_v36, %v1331_v47 }
  0xd4   : > { %v2296_v56 = vadd.f32 %v878_v62, %v765_v26  ;;  %v890_v5 = vpop.f32.mrf.mxu0 }
  0xd7   : > { %v627_v33 = vpop.f32.mrf.mxu2  ;;  %v727_v41 = vpop.f32.mrf.mxu3 }
  0xd8   : > { %v671_v55 = vadd.f32 %v627_v33, %v508_v46  ;;  %v510_v13 = vpop.f32.mrf.mxu1  ;;  %v950_v33 = vrot.slane %v2010_v6, 2 }
  0xd9   : > { %v511_v22 = vadd.f32 %v510_v13, %v2207_v30 }
  0xda   : > { %v766_v62 = vadd.f32 %v722_v63, %v671_v55  ;;  %v1179_v63 = vrot.slane %v2088_v43, 2  ;;  %v951_v43 = vsel %vm944_vm6, %v948_v10, %v950_v33 }
  0xdb   : > { %1760 = vmatmul.msk.bf16.vlgmr.msra.gmra.mxu1 %vm390_vm1, %v947_v18 }
  0xdc   : > { %1775 = vmatmul.msk.bf16.vlgmr.msra.gmra.mxu2 %vm390_vm1, %v949_v25  ;;  %v2308_v34 = vadd.f32 %v880_v19, %v766_v62  ;;  %1791 = vmatmul.msk.bf16.gmra.mxu3 %vm390_vm1, %v1178_v4  ;;  %v893_v40 = vpop.f32.mrf.mxu0  ;;  %v1181_v55 = vor.u32 %v1180_v54, %v1179_v63 }
  0xde   : > { %v1182_v15 = vsel %vm1167_vm5, %v1177_v14, %v1181_v55 }
  0xdf   : > { %v630_v49 = vpop.f32.mrf.mxu2  ;;  %v730_v46 = vpop.f32.mrf.mxu3  ;;  %1807 = vmatmul.msk.bf16.gmra.mxu0 %vm390_vm1, %v1332_v12 }
  0xe0   : > { %v672_v26 = vadd.f32 %v630_v49, %v511_v22  ;;  %v512_v31 = vpop.f32.mrf.mxu1 }
  0xe1   : > { %v513_v57 = vadd.f32 %v512_v31, %v2226_v39  ;;  %v1184_v31 = vrot.slane %v2091_v44, 3 }
  0xe2   : > { %v767_v30 = vadd.f32 %v725_v42, %v672_v26 }
  0xe4   : > { %v2316_v19 = vadd.f32 %v883_v51, %v767_v30  ;;  %v895_v4 = vpop.f32.mrf.mxu0  ;;  %v1333_v51 = vrot.slane %v2072_v35, 3  ;;  %v952_v30 = vrot.slane %v2013_v7, 2 }
  0xe6   : > { %v1334_v63 = vsel %vm1325_vm4, %v1331_v47, %v1333_v51 }
  0xe7   : > { %v632_v13 = vpop.f32.mrf.mxu2  ;;  %v732_v62 = vpop.f32.mrf.mxu3 }
  0xe8   : > { %v673_v18 = vadd.f32 %v632_v13, %v513_v57  ;;  %v515_v22 = vpop.f32.mrf.mxu1 }
  0xe9   : > { %v516_v39 = vadd.f32 %v515_v22, %v2240_v53 }
  0xea   : > { %v768_v42 = vadd.f32 %v727_v41, %v673_v18  ;;  %v1183_v41 = vrot.slane %v2128_v11, 2 }
  0xeb   : > { %1761 = vmatmul.msk.bf16.gmra.mxu1 %vm390_vm1, %v949_v25 }
  0xec   : > { %1776 = vmatmul.msk.bf16.gmra.mxu2 %vm390_vm1, %v951_v43  ;;  %v2325_v6 = vadd.f32 %v885_v0, %v768_v42  ;;  %1792 = vmatmul.msk.bf16.gmra.mxu3 %vm390_vm1, %v1182_v15  ;;  %v898_v25 = vpop.f32.mrf.mxu0  ;;  %v1185_v57 = vor.u32 %v1184_v31, %v1183_v41  ;;  %v1188_v15 = vrot.slane %v2036_v16, 3 }
  0xee   : > { %v1186_v18 = vsel %vm1167_vm5, %v1181_v55, %v1185_v57 }
  0xef   : > { %v635_v36 = vpop.f32.mrf.mxu2  ;;  %v735_v26 = vpop.f32.mrf.mxu3  ;;  %1808 = vmatmul.msk.bf16.gmra.mxu0 %vm390_vm1, %v1334_v63 }
  0xf0   : > { %v674_v49 = vadd.f32 %v635_v36, %v516_v39  ;;  %v517_v10 = vpop.f32.mrf.mxu1 }
  0xf1   : > { %v518_v14 = vadd.f32 %v517_v10, %v2252_v61 }
  0xf2   : > { %v769_v53 = vadd.f32 %v730_v46, %v674_v49  ;;  %v953_v46 = vsel %vm944_vm6, %v950_v33, %v952_v30  ;;  %v954_v49 = vrot.slane %v2072_v35, 2 }
  0xf4   : > { %v2334_v0 = vadd.f32 %v2293_v52, %v769_v53  ;;  %v900_v47 = vpop.f32.mrf.mxu0  ;;  %v1335_v52 = vrot.slane %v2016_v8, 3 }
  0xf6   : > { %v1336_v36 = vsel %vm1325_vm4, %v1333_v51, %v1335_v52  ;;  %v1337_v51 = vrot.slane %v2019_v9, 3 }
  0xf7   : > { %v637_v54 = vpop.f32.mrf.mxu2  ;;  %v737_v13 = vpop.f32.mrf.mxu3 }
  0xf8   : > { %v675_v12 = vadd.f32 %v637_v54, %v518_v14  ;;  %v520_v11 = vpop.f32.mrf.mxu1 }
  0xf9   : > { %v521_v44 = vadd.f32 %v520_v11, %v2261_v3  ;;  %v1192_v11 = vrot.slane %v2044_v21, 3 }
  0xfa   : > { %v770_v61 = vadd.f32 %v732_v62, %v675_v12  ;;  %v1187_v62 = vrot.slane %v2039_v17, 2  ;;  %v955_v17 = vsel %vm944_vm6, %v952_v30, %v954_v49 }
  0xfb   : > { %1762 = vmatmul.msk.bf16.gmra.mxu1 %vm390_vm1, %v951_v43 }
  0xfc   : > { %1777 = vmatmul.msk.bf16.gmra.mxu2 %vm390_vm1, %v953_v46  ;;  %v2343_v7 = vadd.f32 %v890_v5, %v770_v61  ;;  %1793 = vmatmul.msk.bf16.gmra.mxu3 %vm390_vm1, %v1186_v18  ;;  %v903_v43 = vpop.f32.mrf.mxu0  ;;  %v1189_v10 = vor.u32 %v1188_v15, %v1187_v62  ;;  %v1338_v61 = vsel %vm1325_vm4, %v1335_v52, %v1337_v51 }
  0xff   : > { %v640_v22 = vpop.f32.mrf.mxu2  ;;  %v740_v39 = vpop.f32.mrf.mxu3  ;;  %1809 = vmatmul.msk.bf16.gmra.mxu0 %vm390_vm1, %v1336_v36 }
 0x100   : > { %v676_v42 = vadd.f32 %v640_v22, %v521_v44  ;;  %v522_v33 = vpop.f32.mrf.mxu1  ;;  %v956_v44 = vrot.slane %v2016_v8, 2 }
 0x101   : > { %v523_v55 = vadd.f32 %v522_v33, %v2272_v37  ;;  %v1190_v37 = vsel %vm1167_vm5, %v1185_v57, %v1189_v10  ;;  %v1191_v57 = vrot.slane %v2094_v45, 2 }
 0x102   : > { %v771_v3 = vadd.f32 %v735_v26, %v676_v42  ;;  %v957_v45 = vsel %vm944_vm6, %v954_v49, %v956_v44 }
 0x103   : > { %v1193_v18 = vor.u32 %v1192_v11, %v1191_v57 }
 0x104   : > { %v2351_v5 = vadd.f32 %v893_v40, %v771_v3  ;;  %v905_v16 = vpop.f32.mrf.mxu0 }
 0x105   : > { %v1194_v21 = vsel %vm1167_vm5, %v1189_v10, %v1193_v18  ;;  %v1195_v10 = vrot.slane %v819_v27, 2 }
 0x107   : > { %v642_v41 = vpop.f32.mrf.mxu2  ;;  %v742_v14 = vpop.f32.mrf.mxu3 }
 0x108   : > { %v677_v53 = vadd.f32 %v642_v41, %v523_v55  ;;  %v525_v31 = vpop.f32.mrf.mxu1  ;;  %v1196_v41 = vrot.slane %v822_v28, 3 }
 0x109   : > { %v526_v35 = vadd.f32 %v525_v31, %v2222_v23 }
 0x10a   : > { %v772_v26 = vadd.f32 %v737_v13, %v677_v53 }
 0x10b   : > { %1763 = vmatmul.msk.bf16.gmra.mxu1 %vm390_vm1, %v953_v46 }
 0x10c   : > { %1778 = vmatmul.msk.bf16.gmra.mxu2 %vm390_vm1, %v955_v17  ;;  %v2359_v40 = vadd.f32 %v895_v4, %v772_v26  ;;  %1794 = vmatmul.msk.bf16.gmra.mxu3 %vm390_vm1, %v1190_v37  ;;  %v908_v46 = vpop.f32.mrf.mxu0 }
 0x10f   : > { %v645_v63 = vpop.f32.mrf.mxu2  ;;  %v745_v12 = vpop.f32.mrf.mxu3  ;;  %1810 = vmatmul.msk.bf16.gmra.mxu0 %vm390_vm1, %v1338_v61 }
 0x110   : > { %v678_v54 = vadd.f32 %v645_v63, %v526_v35  ;;  %v527_v30 = vpop.f32.mrf.mxu1 }
 0x111   : > { %v528_v23 = vadd.f32 %v527_v30, %v2234_v50  ;;  %v1341_v30 = vrot.slane %v2220_v20, 3 }
 0x112   : > { %v773_v13 = vadd.f32 %v740_v39, %v678_v54 }
 0x114   : > { %v2367_v4 = vadd.f32 %v898_v25, %v773_v13  ;;  %v2374_v3 = vpop.f32.mrf.mxu0  ;;  %v1339_v25 = vrot.slane %v2049_v24, 3 }
 0x117   : > { %v647_v22 = vpop.f32.mrf.mxu2  ;;  %v747_v33 = vpop.f32.mrf.mxu3 }
 0x118   : > { %v679_v42 = vadd.f32 %v647_v22, %v528_v23  ;;  %v530_v39 = vpop.f32.mrf.mxu1 }
 0x119   : > { %v531_v50 = vadd.f32 %v530_v39, %v2248_v59  ;;  %v958_v59 = vrot.slane %v2019_v9, 2 }
 0x11a   : > { %v774_v62 = vadd.f32 %v742_v14, %v679_v42  ;;  %v268_v42 = vld [vmem:[%s2001_s7 + $0x58] sm:$0xf] }
 0x11b   : > { %1764 = vmatmul.msk.bf16.gmra.mxu1 %vm390_vm1, %v955_v17  ;;  %v1197_v17 = vor.u32 %v1196_v41, %v1195_v10  ;;  %v959_v63 = vsel %vm944_vm6, %v956_v44, %v958_v59 }
 0x11c   : > { %1779 = vmatmul.msk.bf16.gmra.mxu2 %vm390_vm1, %v957_v45  ;;  %v2378_v8 = vadd.f32 %v900_v47, %v774_v62  ;;  %1795 = vmatmul.msk.bf16.gmra.mxu3 %vm390_vm1, %v1194_v21  ;;  %v2387_v53 = vpop.f32.mrf.mxu0  ;;  %v1340_v47 = vsel %vm1325_vm4, %v1337_v51, %v1339_v25  ;;  %v1203_v51 = vshll.u32 %v2220_v20, 16  ;;  %v291_v62 = vunpack.c.l.bf16 %v268_v42 }
 0x11d   : > { %v1198_v54 = vsel %vm1167_vm5, %v1193_v18, %v1197_v17 }
 0x11e   : > { %v1205_v18 = vrot.slane %v1203_v51, 3 }
 0x11f   : > { %v650_v52 = vpop.f32.mrf.mxu2  ;;  %v750_v15 = vpop.f32.mrf.mxu3  ;;  %1811 = vmatmul.msk.bf16.gmra.mxu0 %vm390_vm1, %v1340_v47 }
 0x120   : > { %v680_v55 = vadd.f32 %v650_v52, %v531_v50  ;;  %v532_v36 = vpop.f32.mrf.mxu1 }
 0x121   : > { %v533_v31 = vadd.f32 %v532_v36, %v2257_v1 }
 0x122   : > { %v775_v49 = vadd.f32 %v745_v12, %v680_v55 }
 0x124   : > { %v2390_v14 = vadd.f32 %v903_v43, %v775_v49  ;;  %v2397_v12 = vpop.f32.mrf.mxu0  ;;  %v1200_v43 = vshrl.u32 %v2220_v20, 16  ;;  %v1070_v49 = vpack.c.bf16 %v291_v62, %v291_v62 }
 0x126   : > { %v1202_v23 = vrot.slane %v1200_v43, 2  ;;  %v1209_v10 = vshrl.u32 %v1070_v49, 16  ;;  %v1212_v41 = vshll.u32 %v1070_v49, 16  ;;  %v1343_v47 = vrot.slane %v1070_v49, 3 }
 0x127   : > { %v652_v26 = vpop.f32.mrf.mxu2  ;;  %v752_v35 = vpop.f32.mrf.mxu3  ;;  %v1078_v62 = vrot.slane %v1070_v49, 2 }
 0x128   : > { %v681_v37 = vadd.f32 %v652_v26, %v533_v31  ;;  %v535_v27 = vpop.f32.mrf.mxu1 }
 0x129   : > { %v536_v1 = vadd.f32 %v535_v27, %v2270_v32  ;;  %v2413_v32 = vrot.slane %v2049_v24, 2  ;;  %v1214_v27 = vrot.slane %v1212_v41, 3 }
 0x12a   : > { %v776_v28 = vadd.f32 %v747_v33, %v681_v37 }
 0x12b   : > { %1765 = vmatmul.msk.bf16.gmra.mxu1 %vm390_vm1, %v957_v45  ;;  %v1206_v45 = vor.u32 %v1205_v18, %v1202_v23 }
 0x12c   : > { %1780 = vmatmul.msk.bf16.gmra.mxu2 %vm390_vm1, %v959_v63  ;;  %v2401_v9 = vadd.f32 %v905_v16, %v776_v28  ;;  %1796 = vmatmul.msk.bf16.gmra.mxu3 %vm390_vm1, %v1198_v54  ;;  %v918_v22 = vpop.f32.mrf.mxu0  ;;  %v1342_v16 = vsel %vm1325_vm4, %v1339_v25, %v1341_v30  ;;  %v1344_v28 = vsel %vm1325_vm4, %v1341_v30, %v1343_v47  ;;  %v1076_v54 = vrot.slane %v2220_v20, 2  ;;  %v2461_v47 = vld [vmem:[%s2556_s2] ss:$0 sm:$0xff] }
 0x12f   : > { %v655_v13 = vpop.f32.mrf.mxu2  ;;  %v755_v11 = vpop.f32.mrf.mxu3  ;;  %1812 = vmatmul.msk.bf16.gmra.mxu0 %vm390_vm1, %v1342_v16 }
 0x130   : > { %v682_v57 = vadd.f32 %v655_v13, %v536_v1  ;;  %v537_v61 = vpop.f32.mrf.mxu1 }
 0x131   : > { %v538_v39 = vadd.f32 %v537_v61, %v2281_v58 }
 0x132   : > { %v777_v44 = vadd.f32 %v750_v15, %v682_v57  ;;  %v961_v15 = vsel %vm944_vm6, %v958_v59, %v2413_v32 }
 0x134   : > { %v2410_v33 = vadd.f32 %v908_v46, %v777_v44  ;;  %v1207_v46 = vsel %vm1167_vm5, %v1197_v17, %v1206_v45  ;;  %v920_v36 = vpop.f32.mrf.mxu0 }
 0x137   : > { %v657_v21 = vpop.f32.mrf.mxu2  ;;  %v757_v52 = vpop.f32.mrf.mxu3 }
 0x138   : > { %v683_v50 = vadd.f32 %v657_v21, %v538_v39  ;;  %v540_v55 = vpop.f32.mrf.mxu1 }
 0x139   : > { %v541_v58 = vadd.f32 %v540_v55, %v2224_v38 }
 0x13a   : > { %v778_v25 = vadd.f32 %v752_v35, %v683_v50  ;;  %v1211_v35 = vrot.slane %v1209_v10, 2 }
 0x13b   : > { %1766 = vmatmul.msk.bf16.gmra.mxu1 %vm390_vm1, %v959_v63 }
 0x13c   : > { %1781 = vmatmul.msk.bf16.gmra.mxu2 %vm390_vm1, %v961_v15  ;;  %v2423_v24 = vadd.f32 %v2374_v3, %v778_v25  ;;  %1797 = vmatmul.msk.bf16.gmra.mxu3 %vm390_vm1, %v1207_v46  ;;  %v1387_v63 = vpop.f32.mrf.mxu0  ;;  %v1215_v1 = vor.u32 %v1214_v27, %v1211_v35  ;;  %v1079_v25 = vsel %vm944_vm6, %v1076_v54, %v1078_v62 }
 0x13e   : > { %v1216_v30 = vsel %vm1167_vm5, %v1206_v45, %v1215_v1  ;;  %v962_v45 = vrot.slane %v2231_v48, 2 }
 0x13f   : > { %v660_v59 = vpop.f32.mrf.mxu2  ;;  %v760_v26 = vpop.f32.mrf.mxu3  ;;  %1813 = vmatmul.msk.bf16.gmra.mxu0 %vm390_vm1, %v1344_v28 }
 0x140   : > { %v684_v31 = vadd.f32 %v660_v59, %v541_v58  ;;  %v542_v17 = vpop.f32.mrf.mxu1 }
 0x141   : > { %v543_v38 = vadd.f32 %v542_v17, %v2238_v29 }
 0x142   : > { %v779_v37 = vadd.f32 %v755_v11, %v684_v31  ;;  %v1077_v11 = vsel %vm944_vm6, %v2413_v32, %v1076_v54 }
 0x144   : > { %v2429_v3 = vadd.f32 %v2387_v53, %v779_v37  ;;  %v1389_v53 = vpop.f32.mrf.mxu0 }
 0x147   : > { %v662_v43 = vpop.f32.mrf.mxu2  ;;  %v762_v13 = vpop.f32.mrf.mxu3 }
 0x148   : > { %v685_v51 = vadd.f32 %v662_v43, %v543_v38  ;;  %v545_v57 = vpop.f32.mrf.mxu1 }
 0x149   : > { %v546_v29 = vadd.f32 %v545_v57, %v2250_v60  ;;  %v963_v60 = vsel %vm944_vm6, %v2413_v32, %v962_v45 }
 0x14a   : > { %v780_v61 = vadd.f32 %v757_v52, %v685_v51 }
 0x14b   : > { %1767 = vmatmul.msk.bf16.gmra.mxu1 %vm390_vm1, %v961_v15 }
 0x14c   : > { %1782 = vmatmul.msk.bf16.gmra.mxu2 %vm390_vm1, %v1077_v11  ;;  %v2440_v20 = vadd.f32 %v2397_v12, %v780_v61  ;;  %1798 = vmatmul.msk.bf16.gmra.mxu3 %vm390_vm1, %v1216_v30  ;;  %v1392_v21 = vpop.f32.mrf.mxu0 }
 0x14f   : > { %v665_v44 = vpop.f32.mrf.mxu2  ;;  %v1259_v18 = vpop.f32.mrf.mxu3 }
 0x150   : > { %v686_v23 = vadd.f32 %v665_v44, %v546_v29  ;;  %v547_v16 = vpop.f32.mrf.mxu1 }
 0x151   : > { %v548_v12 = vadd.f32 %v547_v16, %v2259_v2 }
 0x152   : > { %v781_v42 = vadd.f32 %v760_v26, %v686_v23 }
 0x154   : > { %v2444_v39 = vadd.f32 %v918_v22, %v781_v42  ;;  %v1394_v49 = vpop.f32.mrf.mxu0 }
 0x157   : > { %v667_v50 = vpop.f32.mrf.mxu2  ;;  %v1261_v55 = vpop.f32.mrf.mxu3 }
 0x158   : > { %v687_v52 = vadd.f32 %v667_v50, %v548_v12  ;;  %v1006_v15 = vpop.f32.mrf.mxu1 }
 0x159   : > { %v1051_v2 = vadd.f32 %v1006_v15, %v2296_v56 }
 0x15a   : > { %v782_v22 = vadd.f32 %v762_v13, %v687_v52 }
 0x15b   : > { %1768 = vmatmul.msk.bf16.gmra.mxu1 %vm390_vm1, %v963_v60 }
 0x15c   : > { %1783 = vmatmul.msk.bf16.gmra.mxu2 %vm390_vm1, %v1079_v25  ;;  %v2455_v48 = vadd.f32 %v920_v36, %v782_v22  ;;  %v1397_v27 = vpop.f32.mrf.mxu0 }
 0x15f   : > { %v1101_v46 = vpop.f32.mrf.mxu2  ;;  %v1264_v10 = vpop.f32.mrf.mxu3 }
 0x160   : > { %v1146_v58 = vadd.f32 %v1101_v46, %v1051_v2  ;;  %v1008_v32 = vpop.f32.mrf.mxu1 }
 0x161   : > { %v1052_v31 = vadd.f32 %v1008_v32, %v2308_v34 }
 0x162   : > { %v1304_v41 = vadd.f32 %v1259_v18, %v1146_v58 }
 0x164   : > { %v1432_v59 = vadd.f32 %v1387_v63, %v1304_v41  ;;  %v1399_v11 = vpop.f32.mrf.mxu0 }
 0x166   : > { %v1454_v36 = vadd.f32 %v2461_v47, %v1432_v59 }
 0x167   : > { %v1103_v56 = vpop.f32.mrf.mxu2  ;;  %v1266_v37 = vpop.f32.mrf.mxu3 }
 0x168   : > { %v1472_v26 = vpack.c.bf16 %v1454_v36, %v1454_v36  ;;  %v1147_v17 = vadd.f32 %v1103_v56, %v1052_v31  ;;  %v1011_v35 = vpop.f32.mrf.mxu1 }
 0x169   : > { %v1053_v54 = vadd.f32 %v1011_v35, %v2316_v19 }
 0x16a   : > { %1491 = vst.msk [vmem:[%s2468_s4] sm:$0xf] %vm1490_vm7, %v1472_v26  ;;  %v1305_v63 = vadd.f32 %v1261_v55, %v1147_v17 }
 0x16c   : > { %v1433_v28 = vadd.f32 %v1389_v53, %v1305_v63  ;;  %v1402_v45 = vpop.f32.mrf.mxu0 }
 0x16e   : > { %v1455_v34 = vadd.f32 %v2461_v47, %v1433_v28 }
 0x16f   : > { %v1106_v38 = vpop.f32.mrf.mxu2  ;;  %v1269_v51 = vpop.f32.mrf.mxu3 }
 0x170   : > { %v1473_v1 = vpack.c.bf16 %v1455_v34, %v1455_v34  ;;  %v1148_v43 = vadd.f32 %v1106_v38, %v1053_v54  ;;  %v1013_v13 = vpop.f32.mrf.mxu1 }
 0x171   : > { %v1054_v29 = vadd.f32 %v1013_v13, %v2325_v6 }
 0x172   : > { %1492 = vst.msk [vmem:[%s2468_s4 + $0x4] sm:$0xf] %vm1490_vm7, %v1473_v1  ;;  %v1306_v57 = vadd.f32 %v1264_v10, %v1148_v43 }
 0x174   : > { %v1434_v61 = vadd.f32 %v1392_v21, %v1306_v57  ;;  %v1404_v46 = vpop.f32.mrf.mxu0 }
 0x176   : > { %v1456_v30 = vadd.f32 %v2461_v47, %v1434_v61 }
 0x177   : > { %v1108_v53 = vpop.f32.mrf.mxu2  ;;  %v1271_v19 = vpop.f32.mrf.mxu3 }
 0x178   : > { %v1474_v44 = vpack.c.bf16 %v1456_v30, %v1456_v30  ;;  %v1149_v23 = vadd.f32 %v1108_v53, %v1054_v29  ;;  %v1016_v18 = vpop.f32.mrf.mxu1 }
 0x179   : > { %v1055_v12 = vadd.f32 %v1016_v18, %v2334_v0 }
 0x17a   : > { %1493 = vst.msk [vmem:[%s2468_s4 + $0x8] sm:$0xf] %vm1490_vm7, %v1474_v44  ;;  %v1307_v16 = vadd.f32 %v1266_v37, %v1149_v23 }
 0x17c   : > { %v1435_v42 = vadd.f32 %v1394_v49, %v1307_v16  ;;  %v1407_v37 = vpop.f32.mrf.mxu0 }
 0x17e   : > { %v1457_v62 = vadd.f32 %v2461_v47, %v1435_v42 }
 0x17f   : > { %v1111_v21 = vpop.f32.mrf.mxu2  ;;  %v1274_v6 = vpop.f32.mrf.mxu3 }
 0x180   : > { %v1475_v50 = vpack.c.bf16 %v1457_v62, %v1457_v62  ;;  %v1150_v52 = vadd.f32 %v1111_v21, %v1055_v12  ;;  %v1018_v55 = vpop.f32.mrf.mxu1 }
 0x181   : > { %v1056_v22 = vadd.f32 %v1018_v55, %v2343_v7 }
 0x182   : > { %1494 = vst.msk [vmem:[%s2468_s4 + $0xc] sm:$0xf] %vm1490_vm7, %v1475_v50  ;;  %v1308_v15 = vadd.f32 %v1269_v51, %v1150_v52 }
 0x184   : > { %v1436_v60 = vadd.f32 %v1397_v27, %v1308_v15  ;;  %v1409_v51 = vpop.f32.mrf.mxu0 }
 0x186   : > { %v1458_v25 = vadd.f32 %v2461_v47, %v1436_v60 }
 0x187   : > { %v1113_v2 = vpop.f32.mrf.mxu2  ;;  %v1276_v0 = vpop.f32.mrf.mxu3 }
 0x188   : > { %v1476_v49 = vpack.c.bf16 %v1458_v25, %v1458_v25  ;;  %v1151_v58 = vadd.f32 %v1113_v2, %v1056_v22  ;;  %v1021_v10 = vpop.f32.mrf.mxu1 }
 0x189   : > { %v1057_v36 = vadd.f32 %v1021_v10, %v2351_v5 }
 0x18a   : > { %1495 = vst.msk [vmem:[%s2468_s4 + $0x10] sm:$0xf] %vm1490_vm7, %v1476_v49  ;;  %v1309_v32 = vadd.f32 %v1271_v19, %v1151_v58 }
 0x18c   : > { %v1437_v41 = vadd.f32 %v1399_v11, %v1309_v32  ;;  %v1412_v19 = vpop.f32.mrf.mxu0 }
 0x18e   : > { %v1459_v59 = vadd.f32 %v2461_v47, %v1437_v41 }
 0x18f   : > { %v1116_v31 = vpop.f32.mrf.mxu2  ;;  %v1279_v7 = vpop.f32.mrf.mxu3 }
 0x190   : > { %v1477_v56 = vpack.c.bf16 %v1459_v59, %v1459_v59  ;;  %v1152_v26 = vadd.f32 %v1116_v31, %v1057_v36  ;;  %v1023_v17 = vpop.f32.mrf.mxu1 }
 0x191   : > { %v1058_v28 = vadd.f32 %v1023_v17, %v2359_v40 }
 0x192   : > { %1496 = vst.msk [vmem:[%s2468_s4 + $0x14] sm:$0xf] %vm1490_vm7, %v1477_v56  ;;  %v1310_v35 = vadd.f32 %v1274_v6, %v1152_v26 }
 0x194   : > { %v1438_v27 = vadd.f32 %v1402_v45, %v1310_v35  ;;  %v1414_v15 = vpop.f32.mrf.mxu0 }
 0x196   : > { %v1460_v63 = vadd.f32 %v2461_v47, %v1438_v27 }
 0x197   : > { %v1118_v34 = vpop.f32.mrf.mxu2  ;;  %v1281_v1 = vpop.f32.mrf.mxu3 }
 0x198   : > { %v1478_v54 = vpack.c.bf16 %v1460_v63, %v1460_v63  ;;  %v1153_v38 = vadd.f32 %v1118_v34, %v1058_v28  ;;  %v1026_v5 = vpop.f32.mrf.mxu1 }
 0x199   : > { %v1059_v11 = vadd.f32 %v1026_v5, %v2367_v4 }
 0x19a   : > { %1497 = vst.msk [vmem:[%s2468_s4 + $0x18] sm:$0xf] %vm1490_vm7, %v1478_v54  ;;  %v1311_v43 = vadd.f32 %v1276_v0, %v1153_v38 }
 0x19c   : > { %v1439_v13 = vadd.f32 %v1404_v46, %v1311_v43  ;;  %v1417_v41 = vpop.f32.mrf.mxu0 }
 0x19e   : > { %v1461_v57 = vadd.f32 %v2461_v47, %v1439_v13 }
 0x19f   : > { %v1121_v61 = vpop.f32.mrf.mxu2  ;;  %v1284_v44 = vpop.f32.mrf.mxu3 }
 0x1a0   : > { %v1479_v30 = vpack.c.bf16 %v1461_v57, %v1461_v57  ;;  %v1154_v29 = vadd.f32 %v1121_v61, %v1059_v11  ;;  %v1028_v40 = vpop.f32.mrf.mxu1 }
 0x1a1   : > { %v1060_v16 = vadd.f32 %v1028_v40, %v2378_v8 }
 0x1a2   : > { %1498 = vst.msk [vmem:[%s2468_s4 + $0x1c] sm:$0xf] %vm1490_vm7, %v1479_v30  ;;  %v1312_v53 = vadd.f32 %v1279_v7, %v1154_v29 }
 0x1a4   : > { %v1440_v23 = vadd.f32 %v1407_v37, %v1312_v53  ;;  %v1419_v27 = vpop.f32.mrf.mxu0 }
 0x1a6   : > { %v1462_v18 = vadd.f32 %v2461_v47, %v1440_v23 }
 0x1a7   : > { %v1123_v42 = vpop.f32.mrf.mxu2  ;;  %v1286_v50 = vpop.f32.mrf.mxu3 }
 0x1a8   : > { %v1480_v45 = vpack.c.bf16 %v1462_v18, %v1462_v18  ;;  %v1155_v62 = vadd.f32 %v1123_v42, %v1060_v16  ;;  %v1031_v4 = vpop.f32.mrf.mxu1 }
 0x1a9   : > { %v1061_v6 = vadd.f32 %v1031_v4, %v2390_v14 }
 0x1aa   : > { %1499 = vst.msk [vmem:[%s2468_s4 + $0x20] sm:$0xf] %vm1490_vm7, %v1480_v45  ;;  %v1313_v12 = vadd.f32 %v1281_v1, %v1155_v62 }
 0x1ac   : > { %v1441_v21 = vadd.f32 %v1409_v51, %v1313_v12  ;;  %v1422_v13 = vpop.f32.mrf.mxu0 }
 0x1ae   : > { %v1463_v52 = vadd.f32 %v2461_v47, %v1441_v21 }
 0x1af   : > { %v1126_v55 = vpop.f32.mrf.mxu2  ;;  %v1289_v0 = vpop.f32.mrf.mxu3 }
 0x1b0   : > { %v1481_v60 = vpack.c.bf16 %v1463_v52, %v1463_v52  ;;  %v1156_v25 = vadd.f32 %v1126_v55, %v1061_v6  ;;  %v1033_v8 = vpop.f32.mrf.mxu1 }
 0x1b1   : > { %v1062_v49 = vadd.f32 %v1033_v8, %v2401_v9 }
 0x1b2   : > { %1500 = vst.msk [vmem:[%s2468_s4 + $0x24] sm:$0xf] %vm1490_vm7, %v1481_v60  ;;  %v1314_v22 = vadd.f32 %v1284_v44, %v1156_v25 }
 0x1b4   : > { %v1442_v2 = vadd.f32 %v1412_v19, %v1314_v22  ;;  %v1424_v18 = vpop.f32.mrf.mxu0 }
 0x1b6   : > { %v1464_v46 = vadd.f32 %v2461_v47, %v1442_v2 }
 0x1b7   : > { %v1128_v58 = vpop.f32.mrf.mxu2  ;;  %v1291_v37 = vpop.f32.mrf.mxu3 }
 0x1b8   : > { %v1482_v10 = vpack.c.bf16 %v1464_v46, %v1464_v46  ;;  %v1157_v32 = vadd.f32 %v1128_v58, %v1062_v49  ;;  %v1036_v14 = vpop.f32.mrf.mxu1 }
 0x1b9   : > { %v1063_v56 = vadd.f32 %v1036_v14, %v2410_v33 }
 0x1ba   : > { %1501 = vst.msk [vmem:[%s2468_s4 + $0x28] sm:$0xf] %vm1490_vm7, %v1482_v10  ;;  %v1315_v59 = vadd.f32 %v1286_v50, %v1157_v32 }
 0x1bc   : > { %v1443_v36 = vadd.f32 %v1414_v15, %v1315_v59 }
 0x1be   : > { %v1465_v31 = vadd.f32 %v2461_v47, %v1443_v36 }
 0x1bf   : > { %v1131_v26 = vpop.f32.mrf.mxu2  ;;  %v1294_v43 = vpop.f32.mrf.mxu3 }
 0x1c0   : > { %v1483_v7 = vpack.c.bf16 %v1465_v31, %v1465_v31  ;;  %v1158_v17 = vadd.f32 %v1131_v26, %v1063_v56  ;;  %v1038_v9 = vpop.f32.mrf.mxu1 }
 0x1c1   : > { %v1064_v34 = vadd.f32 %v1038_v9, %v2423_v24 }
 0x1c2   : > { %1502 = vst.msk [vmem:[%s2468_s4 + $0x2c] sm:$0xf] %vm1490_vm7, %v1483_v7  ;;  %v1316_v35 = vadd.f32 %v1289_v0, %v1158_v17 }
 0x1c4   : > { %v1444_v63 = vadd.f32 %v1417_v41, %v1316_v35 }
 0x1c6   : > { %v1466_v28 = vadd.f32 %v2461_v47, %v1444_v63 }
 0x1c7   : > { %v1133_v54 = vpop.f32.mrf.mxu2  ;;  %v1296_v44 = vpop.f32.mrf.mxu3 }
 0x1c8   : > { %v1484_v38 = vpack.c.bf16 %v1466_v28, %v1466_v28  ;;  %v1159_v5 = vadd.f32 %v1133_v54, %v1064_v34  ;;  %v1041_v33 = vpop.f32.mrf.mxu1 }
 0x1c9   : > { %v1065_v11 = vadd.f32 %v1041_v33, %v2429_v3 }
 0x1ca   : > { %1503 = vst.msk [vmem:[%s2468_s4 + $0x30] sm:$0xf] %vm1490_vm7, %v1484_v38  ;;  %v1317_v1 = vadd.f32 %v1291_v37, %v1159_v5 }
 0x1cc   : > { %v1445_v51 = vadd.f32 %v1419_v27, %v1317_v1 }
 0x1ce   : > { %v1467_v57 = vadd.f32 %v2461_v47, %v1445_v51 }
 0x1cf   : > { %v1136_v61 = vpop.f32.mrf.mxu2  ;;  %v1299_v50 = vpop.f32.mrf.mxu3 }
 0x1d0   : > { %v1485_v30 = vpack.c.bf16 %v1467_v57, %v1467_v57  ;;  %v1160_v29 = vadd.f32 %v1136_v61, %v1065_v11  ;;  %v1043_v24 = vpop.f32.mrf.mxu1 }
 0x1d1   : > { %v1066_v19 = vadd.f32 %v1043_v24, %v2440_v20  ;;  %v1427_v20 = vpop.f32.mrf.mxu0 }
 0x1d2   : > { %1504 = vst.msk [vmem:[%s2468_s4 + $0x34] sm:$0xf] %vm1490_vm7, %v1485_v30  ;;  %v1318_v40 = vadd.f32 %v1294_v43, %v1160_v29 }
 0x1d4   : > { %v1446_v53 = vadd.f32 %v1422_v13, %v1318_v40 }
 0x1d6   : > { %v1468_v23 = vadd.f32 %v2461_v47, %v1446_v53 }
 0x1d7   : > { %v1138_v16 = vpop.f32.mrf.mxu2 }
 0x1d8   : > { %v1486_v42 = vpack.c.bf16 %v1468_v23, %v1468_v23  ;;  %v1161_v45 = vadd.f32 %v1138_v16, %v1066_v19  ;;  %v1046_v3 = vpop.f32.mrf.mxu1 }
 0x1d9   : > { %v1067_v21 = vadd.f32 %v1046_v3, %v2444_v39  ;;  %v1301_v39 = vpop.f32.mrf.mxu3  ;;  %v1429_v0 = vpop.f32.mrf.mxu0 }
 0x1da   : > { %1505 = vst.msk [vmem:[%s2468_s4 + $0x38] sm:$0xf] %vm1490_vm7, %v1486_v42  ;;  %v1319_v62 = vadd.f32 %v1296_v44, %v1161_v45 }
 0x1dc   : > { %v1447_v4 = vadd.f32 %v1424_v18, %v1319_v62 }
 0x1de   : > { %v1469_v12 = vadd.f32 %v2461_v47, %v1447_v4 }
 0x1df   : > { %v1141_v52 = vpop.f32.mrf.mxu2 }
 0x1e0   : > { %v1487_v6 = vpack.c.bf16 %v1469_v12, %v1469_v12  ;;  %v1162_v55 = vadd.f32 %v1141_v52, %v1067_v21  ;;  %v1048_v60 = vpop.f32.mrf.mxu1 }
 0x1e1   : > { %v1068_v22 = vadd.f32 %v1048_v60, %v2455_v48 }
 0x1e2   : > { %1506 = vst.msk [vmem:[%s2468_s4 + $0x3c] sm:$0xf] %vm1490_vm7, %v1487_v6  ;;  %v1320_v15 = vadd.f32 %v1299_v50, %v1162_v55 }
 0x1e4   : > { %v1448_v25 = vadd.f32 %v1427_v20, %v1320_v15 }
 0x1e6   : > { %v1470_v8 = vadd.f32 %v2461_v47, %v1448_v25 }
 0x1e7   : > { %v1143_v2 = vpop.f32.mrf.mxu2 }
 0x1e8   : > { %v1488_v46 = vpack.c.bf16 %v1470_v8, %v1470_v8  ;;  %v1163_v49 = vadd.f32 %v1143_v2, %v1068_v22 }
 0x1ea   : > { %1507 = vst.msk [vmem:[%s2468_s4 + $0x40] sm:$0xf] %vm1490_vm7, %v1488_v46  ;;  %v1321_v58 = vadd.f32 %v1301_v39, %v1163_v49 }
 0x1ec   : > { %v1449_v10 = vadd.f32 %v1429_v0, %v1321_v58 }
 0x1ee   : > { %v1471_v32 = vadd.f32 %v2461_v47, %v1449_v10 }
 0x1f0   : > { %v1489_v14 = vpack.c.bf16 %v1471_v32, %v1471_v32 }
 0x1f2   : > { %1508 = vst.msk [vmem:[%s2468_s4 + $0x44] sm:$0xf] %vm1490_vm7, %v1489_v14 }
 0x1f3 PF: > { %s13_s16 = sadd.s32 1, %s1928_s16   ;;  %s2558_s12 = smov %s1920_s14 }
 0x1f4   : > { %p10_p7 = scmp.ge.s32.totalorder %s13_s16, 6   ;;  %s2559_s13 = smov %s1924_s15 }
 0x1f5   : > { %s2560_s14 = smov %s2563_s17  ;;  %s2561_s15 = smov %s2567_s18 }
 0x1f6   :  { %12 = sbr.rel (!%p10_p7) target bundleno = 3 (0x3), region = 77 }

// kernel: generator_forward.44
= control target key start
LH: loop header
LB: loop body
LE: loop exit
PB: predicated region body
PF: predicated region fallthrough
CT: control target
= control target key end

     0   :  { %vm14_vm0 = vcmask 57344   ;;  %v663_v0 = vmov 0.0   ;;  %vm146_vm1 = vcmask 64512   ;;  %s939_s1 = inlined_call_operand.vmem [shape: f32[1,8], index: 1, kind: output, shape index: {0}]   ;;  %s940_s2 = inlined_call_operand.vmem [shape: f32[1,8], index: 2, kind: output, shape index: {1}]   ;;  %s941_s0 = inlined_call_operand.vmem [shape: bf16[512,8], index: 0, kind: input, shape index: {}]  }
   0x1   :  { %15 = vst.msk [vmem:[%s939_s1] sm:$0x1] %vm14_vm0, %v663_v0  ;;  %v504_v1 = vld [vmem:[%s941_s0] sm:$0xff]   ;;  %v631_v2 = vld [vmem:[%s941_s0 + $0x8] sm:$0xff]   ;;  %v632_v6 = vld [vmem:[%s941_s0 + $0x10] sm:$0xff]  }
   0x2   :  { %16 = vst.msk [vmem:[%s940_s2] sm:$0x1] %vm14_vm0, %v663_v0  ;;  %v505_v3 = vunpack.c.l.bf16 %v504_v1  ;;  %v506_v4 = vunpack.c.h.bf16 %v504_v1  ;;  %v509_v5 = vunpack.c.l.bf16 %v631_v2  ;;  %v510_v7 = vunpack.c.h.bf16 %v631_v2  ;;  %v633_v12 = vld [vmem:[%s941_s0 + $0x18] sm:$0xff]   ;;  %v634_v19 = vld [vmem:[%s941_s0 + $0x20] sm:$0xff]   ;;  %v635_v27 = vld [vmem:[%s941_s0 + $0x28] sm:$0xff]  }
   0x3   :  { %v513_v8 = vunpack.c.l.bf16 %v632_v6  ;;  %v514_v14 = vunpack.c.h.bf16 %v632_v6  ;;  %v517_v17 = vunpack.c.l.bf16 %v633_v12  ;;  %v518_v21 = vunpack.c.h.bf16 %v633_v12  ;;  %v636_v38 = vld [vmem:[%s941_s0 + $0x30] sm:$0xff]   ;;  %v637_v52 = vld [vmem:[%s941_s0 + $0x38] sm:$0xff]   ;;  %v638_v1 = vld [vmem:[%s941_s0 + $0x40] sm:$0xff]  }
   0x4   :  { %v147_v9 = vsel %vm146_vm1, %v505_v3, 0.0  ;;  %v148_v10 = vsel %vm146_vm1, %v506_v4, 0.0  ;;  %v150_v11 = vsel %vm146_vm1, %v509_v5, 0.0  ;;  %v152_v15 = vsel %vm146_vm1, %v510_v7, 0.0 }
   0x5   :  { %v149_v13 = vadd.f32 %v148_v10, %v147_v9  ;;  %v154_v18 = vsel %vm146_vm1, %v513_v8, 0.0  ;;  %v156_v22 = vsel %vm146_vm1, %v514_v14, 0.0  ;;  %v521_v24 = vunpack.c.l.bf16 %v634_v19 }
   0x6   :  { %v158_v25 = vsel %vm146_vm1, %v517_v17, 0.0  ;;  %v284_v26 = vmul.f32 %v505_v3, %v505_v3  ;;  %v285_v29 = vmul.f32 %v506_v4, %v506_v4  ;;  %v286_v30 = vmul.f32 %v509_v5, %v509_v5 }
   0x7   :  { %v151_v16 = vadd.f32 %v150_v11, %v149_v13  ;;  %v522_v31 = vunpack.c.h.bf16 %v634_v19  ;;  %v160_v32 = vsel %vm146_vm1, %v518_v21, 0.0  ;;  %v287_v34 = vmul.f32 %v510_v7, %v510_v7 }
   0x8   :  { %v525_v35 = vunpack.c.l.bf16 %v635_v27  ;;  %v162_v36 = vsel %vm146_vm1, %v521_v24, 0.0  ;;  %v348_v37 = vsel %vm146_vm1, %v284_v26, 0.0  ;;  %v288_v40 = vmul.f32 %v513_v8, %v513_v8 }
   0x9   :  { %v153_v20 = vadd.f32 %v152_v15, %v151_v16  ;;  %v349_v41 = vsel %vm146_vm1, %v285_v29, 0.0  ;;  %v351_v42 = vsel %vm146_vm1, %v286_v30, 0.0  ;;  %v526_v43 = vunpack.c.h.bf16 %v635_v27  ;;  %v640_v27 = vld [vmem:[%s941_s0 + $0x50] sm:$0xff]  }
   0xa   :  { %v164_v44 = vsel %vm146_vm1, %v522_v31, 0.0  ;;  %v350_v45 = vadd.f32 %v349_v41, %v348_v37  ;;  %v289_v47 = vmul.f32 %v514_v14, %v514_v14  ;;  %v353_v48 = vsel %vm146_vm1, %v287_v34, 0.0  ;;  %v639_v14 = vld [vmem:[%s941_s0 + $0x48] sm:$0xff]  }
   0xb   :  { %v155_v23 = vadd.f32 %v154_v18, %v153_v20  ;;  %v529_v49 = vunpack.c.l.bf16 %v636_v38  ;;  %v166_v50 = vsel %vm146_vm1, %v525_v35, 0.0  ;;  %v290_v54 = vmul.f32 %v517_v17, %v517_v17 }
   0xc   :  { %v352_v51 = vadd.f32 %v351_v42, %v350_v45  ;;  %v355_v55 = vsel %vm146_vm1, %v288_v40, 0.0  ;;  %v530_v56 = vunpack.c.h.bf16 %v636_v38  ;;  %v168_v57 = vsel %vm146_vm1, %v526_v43, 0.0  ;;  %v641_v40 = vld [vmem:[%s941_s0 + $0x58] sm:$0xff]  }
   0xd   :  { %v157_v28 = vadd.f32 %v156_v22, %v155_v23  ;;  %v291_v60 = vmul.f32 %v518_v21, %v518_v21  ;;  %v357_v61 = vsel %vm146_vm1, %v289_v47, 0.0  ;;  %v533_v62 = vunpack.c.l.bf16 %v637_v52 }
   0xe   :  { %v354_v58 = vadd.f32 %v353_v48, %v352_v51  ;;  %v170_v63 = vsel %vm146_vm1, %v529_v49, 0.0  ;;  %v292_v3 = vmul.f32 %v521_v24, %v521_v24  ;;  %v359_v4 = vsel %vm146_vm1, %v290_v54, 0.0 }
   0xf   :  { %v159_v33 = vadd.f32 %v158_v25, %v157_v28  ;;  %v534_v5 = vunpack.c.h.bf16 %v637_v52  ;;  %v172_v6 = vsel %vm146_vm1, %v530_v56, 0.0  ;;  %v293_v9 = vmul.f32 %v522_v31, %v522_v31 }
  0x10   :  { %v356_v0 = vadd.f32 %v355_v55, %v354_v58  ;;  %v361_v10 = vsel %vm146_vm1, %v291_v60, 0.0  ;;  %v537_v11 = vunpack.c.l.bf16 %v638_v1  ;;  %v174_v12 = vsel %vm146_vm1, %v533_v62, 0.0 }
  0x11   :  { %v161_v39 = vadd.f32 %v160_v32, %v159_v33  ;;  %v294_v16 = vmul.f32 %v525_v35, %v525_v35  ;;  %v363_v17 = vsel %vm146_vm1, %v292_v3, 0.0  ;;  %v538_v18 = vunpack.c.h.bf16 %v638_v1 }
  0x12   :  { %v358_v7 = vadd.f32 %v357_v61, %v356_v0  ;;  %v176_v19 = vsel %vm146_vm1, %v534_v5, 0.0  ;;  %v295_v22 = vmul.f32 %v526_v43, %v526_v43  ;;  %v365_v23 = vsel %vm146_vm1, %v293_v9, 0.0 }
  0x13   :  { %v163_v46 = vadd.f32 %v162_v36, %v161_v39  ;;  %v541_v24 = vunpack.c.l.bf16 %v639_v14  ;;  %v178_v25 = vsel %vm146_vm1, %v537_v11, 0.0  ;;  %v296_v29 = vmul.f32 %v529_v49, %v529_v49 }
  0x14   :  { %v360_v13 = vadd.f32 %v359_v4, %v358_v7  ;;  %v367_v30 = vsel %vm146_vm1, %v294_v16, 0.0  ;;  %v542_v31 = vunpack.c.h.bf16 %v639_v14  ;;  %v180_v32 = vsel %vm146_vm1, %v538_v18, 0.0 }
  0x15   :  { %v165_v53 = vadd.f32 %v164_v44, %v163_v46  ;;  %v297_v35 = vmul.f32 %v530_v56, %v530_v56  ;;  %v369_v36 = vsel %vm146_vm1, %v295_v22, 0.0  ;;  %v545_v37 = vunpack.c.l.bf16 %v640_v27 }
  0x16   :  { %v362_v20 = vadd.f32 %v361_v10, %v360_v13  ;;  %v182_v38 = vsel %vm146_vm1, %v541_v24, 0.0  ;;  %v298_v42 = vmul.f32 %v533_v62, %v533_v62  ;;  %v371_v43 = vsel %vm146_vm1, %v296_v29, 0.0 }
  0x17   :  { %v167_v59 = vadd.f32 %v166_v50, %v165_v53  ;;  %v546_v44 = vunpack.c.h.bf16 %v640_v27  ;;  %v184_v45 = vsel %vm146_vm1, %v542_v31, 0.0  ;;  %v299_v48 = vmul.f32 %v534_v5, %v534_v5  ;;  %v642_v53 = vld [vmem:[%s941_s0 + $0x60] sm:$0xff]  }
  0x18   :  { %v364_v26 = vadd.f32 %v363_v17, %v362_v20  ;;  %v373_v49 = vsel %vm146_vm1, %v297_v35, 0.0  ;;  %v549_v50 = vunpack.c.l.bf16 %v641_v40  ;;  %v186_v51 = vsel %vm146_vm1, %v545_v37, 0.0 }
  0x19   :  { %v169_v2 = vadd.f32 %v168_v57, %v167_v59  ;;  %v300_v55 = vmul.f32 %v537_v11, %v537_v11  ;;  %v375_v56 = vsel %vm146_vm1, %v298_v42, 0.0  ;;  %v550_v57 = vunpack.c.h.bf16 %v641_v40 }
  0x1a   :  { %v366_v33 = vadd.f32 %v365_v23, %v364_v26  ;;  %v188_v58 = vsel %vm146_vm1, %v546_v44, 0.0  ;;  %v301_v61 = vmul.f32 %v538_v18, %v538_v18  ;;  %v377_v62 = vsel %vm146_vm1, %v299_v48, 0.0 }
  0x1b   :  { %v171_v8 = vadd.f32 %v170_v63, %v169_v2  ;;  %v553_v63 = vunpack.c.l.bf16 %v642_v53  ;;  %v190_v0 = vsel %vm146_vm1, %v549_v50, 0.0  ;;  %v643_v2 = vld [vmem:[%s941_s0 + $0x68] sm:$0xff]   ;;  %v302_v4 = vmul.f32 %v541_v24, %v541_v24 }
  0x1c   :  { %v368_v39 = vadd.f32 %v367_v30, %v366_v33  ;;  %v379_v5 = vsel %vm146_vm1, %v300_v55, 0.0  ;;  %v192_v7 = vsel %vm146_vm1, %v550_v57, 0.0  ;;  %v303_v10 = vmul.f32 %v542_v31, %v542_v31 }
  0x1d   :  { %v173_v15 = vadd.f32 %v172_v6, %v171_v8  ;;  %v554_v6 = vunpack.c.h.bf16 %v642_v53  ;;  %v381_v11 = vsel %vm146_vm1, %v301_v61, 0.0  ;;  %v194_v13 = vsel %vm146_vm1, %v553_v63, 0.0 }
  0x1e   :  { %v370_v46 = vadd.f32 %v369_v36, %v368_v39  ;;  %v304_v17 = vmul.f32 %v545_v37, %v545_v37  ;;  %v383_v18 = vsel %vm146_vm1, %v302_v4, 0.0  ;;  %v305_v23 = vmul.f32 %v546_v44, %v546_v44 }
  0x1f   :  { %v175_v21 = vadd.f32 %v174_v12, %v173_v15  ;;  %v557_v12 = vunpack.c.l.bf16 %v643_v2  ;;  %v644_v15 = vld [vmem:[%s941_s0 + $0x70] sm:$0xff]   ;;  %v196_v20 = vsel %vm146_vm1, %v554_v6, 0.0  ;;  %v385_v24 = vsel %vm146_vm1, %v303_v10, 0.0 }
  0x20   :  { %v372_v52 = vadd.f32 %v371_v43, %v370_v46  ;;  %v306_v30 = vmul.f32 %v549_v50, %v549_v50  ;;  %v387_v31 = vsel %vm146_vm1, %v304_v17, 0.0  ;;  %v307_v36 = vmul.f32 %v550_v57, %v550_v57 }
  0x21   :  { %v177_v28 = vadd.f32 %v176_v19, %v175_v21  ;;  %v558_v19 = vunpack.c.h.bf16 %v643_v2  ;;  %v198_v26 = vsel %vm146_vm1, %v557_v12, 0.0  ;;  %v389_v37 = vsel %vm146_vm1, %v305_v23, 0.0 }
  0x22   :  { %v374_v59 = vadd.f32 %v373_v49, %v372_v52  ;;  %v308_v43 = vmul.f32 %v553_v63, %v553_v63  ;;  %v391_v44 = vsel %vm146_vm1, %v306_v30, 0.0  ;;  %v309_v49 = vmul.f32 %v554_v6, %v554_v6 }
  0x23   :  { %v179_v34 = vadd.f32 %v178_v25, %v177_v28  ;;  %v561_v25 = vunpack.c.l.bf16 %v644_v15  ;;  %v645_v28 = vld [vmem:[%s941_s0 + $0x78] sm:$0xff]   ;;  %v200_v33 = vsel %vm146_vm1, %v558_v19, 0.0  ;;  %v393_v50 = vsel %vm146_vm1, %v307_v36, 0.0 }
  0x24   :  { %v376_v1 = vadd.f32 %v375_v56, %v374_v59  ;;  %v310_v56 = vmul.f32 %v557_v12, %v557_v12  ;;  %v395_v57 = vsel %vm146_vm1, %v308_v43, 0.0  ;;  %v397_v63 = vsel %vm146_vm1, %v309_v49, 0.0 }
  0x25   :  { %v181_v41 = vadd.f32 %v180_v32, %v179_v34  ;;  %v562_v32 = vunpack.c.h.bf16 %v644_v15  ;;  %v202_v39 = vsel %vm146_vm1, %v561_v25, 0.0 }
  0x26   :  { %v378_v8 = vadd.f32 %v377_v62, %v376_v1  ;;  %v311_v62 = vmul.f32 %v558_v19, %v558_v19  ;;  %v399_v6 = vsel %vm146_vm1, %v310_v56, 0.0 }
  0x27   :  { %v183_v47 = vadd.f32 %v182_v38, %v181_v41  ;;  %v565_v38 = vunpack.c.l.bf16 %v645_v28  ;;  %v646_v41 = vld [vmem:[%s941_s0 + $0x80] sm:$0xff]   ;;  %v204_v46 = vsel %vm146_vm1, %v562_v32, 0.0 }
  0x28   :  { %v380_v14 = vadd.f32 %v379_v5, %v378_v8  ;;  %v312_v5 = vmul.f32 %v561_v25, %v561_v25  ;;  %v401_v12 = vsel %vm146_vm1, %v311_v62, 0.0 }
  0x29   :  { %v185_v54 = vadd.f32 %v184_v45, %v183_v47  ;;  %v566_v45 = vunpack.c.h.bf16 %v645_v28  ;;  %v206_v52 = vsel %vm146_vm1, %v565_v38, 0.0 }
  0x2a   :  { %v382_v21 = vadd.f32 %v381_v11, %v380_v14  ;;  %v313_v11 = vmul.f32 %v562_v32, %v562_v32  ;;  %v403_v19 = vsel %vm146_vm1, %v312_v5, 0.0 }
  0x2b   :  { %v187_v60 = vadd.f32 %v186_v51, %v185_v54  ;;  %v569_v51 = vunpack.c.l.bf16 %v646_v41  ;;  %v647_v54 = vld [vmem:[%s941_s0 + $0x88] sm:$0xff]   ;;  %v208_v59 = vsel %vm146_vm1, %v566_v45, 0.0 }
  0x2c   :  { %v384_v27 = vadd.f32 %v383_v18, %v382_v21  ;;  %v314_v18 = vmul.f32 %v565_v38, %v565_v38  ;;  %v405_v25 = vsel %vm146_vm1, %v313_v11, 0.0 }
  0x2d   :  { %v189_v3 = vadd.f32 %v188_v58, %v187_v60  ;;  %v570_v58 = vunpack.c.h.bf16 %v646_v41  ;;  %v210_v1 = vsel %vm146_vm1, %v569_v51, 0.0 }
  0x2e   :  { %v386_v34 = vadd.f32 %v385_v24, %v384_v27  ;;  %v315_v24 = vmul.f32 %v566_v45, %v566_v45  ;;  %v407_v32 = vsel %vm146_vm1, %v314_v18, 0.0 }
  0x2f   :  { %v191_v9 = vadd.f32 %v190_v0, %v189_v3  ;;  %v573_v0 = vunpack.c.l.bf16 %v647_v54  ;;  %v648_v3 = vld [vmem:[%s941_s0 + $0x90] sm:$0xff]   ;;  %v212_v8 = vsel %vm146_vm1, %v570_v58, 0.0 }
  0x30   :  { %v388_v40 = vadd.f32 %v387_v31, %v386_v34  ;;  %v316_v31 = vmul.f32 %v569_v51, %v569_v51  ;;  %v409_v38 = vsel %vm146_vm1, %v315_v24, 0.0 }
  0x31   :  { %v193_v16 = vadd.f32 %v192_v7, %v191_v9  ;;  %v574_v7 = vunpack.c.h.bf16 %v647_v54  ;;  %v214_v14 = vsel %vm146_vm1, %v573_v0, 0.0 }
  0x32   :  { %v390_v47 = vadd.f32 %v389_v37, %v388_v40  ;;  %v317_v37 = vmul.f32 %v570_v58, %v570_v58  ;;  %v411_v45 = vsel %vm146_vm1, %v316_v31, 0.0 }
  0x33   :  { %v195_v22 = vadd.f32 %v194_v13, %v193_v16  ;;  %v577_v13 = vunpack.c.l.bf16 %v648_v3  ;;  %v649_v16 = vld [vmem:[%s941_s0 + $0x98] sm:$0xff]   ;;  %v216_v21 = vsel %vm146_vm1, %v574_v7, 0.0 }
  0x34   :  { %v392_v53 = vadd.f32 %v391_v44, %v390_v47  ;;  %v318_v44 = vmul.f32 %v573_v0, %v573_v0  ;;  %v413_v51 = vsel %vm146_vm1, %v317_v37, 0.0 }
  0x35   :  { %v197_v29 = vadd.f32 %v196_v20, %v195_v22  ;;  %v578_v20 = vunpack.c.h.bf16 %v648_v3  ;;  %v218_v27 = vsel %vm146_vm1, %v577_v13, 0.0 }
  0x36   :  { %v394_v60 = vadd.f32 %v393_v50, %v392_v53  ;;  %v319_v50 = vmul.f32 %v574_v7, %v574_v7  ;;  %v415_v58 = vsel %vm146_vm1, %v318_v44, 0.0 }
  0x37   :  { %v199_v35 = vadd.f32 %v198_v26, %v197_v29  ;;  %v581_v26 = vunpack.c.l.bf16 %v649_v16  ;;  %v650_v29 = vld [vmem:[%s941_s0 + $0xa0] sm:$0xff]   ;;  %v220_v34 = vsel %vm146_vm1, %v578_v20, 0.0 }
  0x38   :  { %v396_v2 = vadd.f32 %v395_v57, %v394_v60  ;;  %v320_v57 = vmul.f32 %v577_v13, %v577_v13  ;;  %v417_v0 = vsel %vm146_vm1, %v319_v50, 0.0 }
  0x39   :  { %v201_v42 = vadd.f32 %v200_v33, %v199_v35  ;;  %v582_v33 = vunpack.c.h.bf16 %v649_v16  ;;  %v222_v40 = vsel %vm146_vm1, %v581_v26, 0.0 }
  0x3a   :  { %v398_v9 = vadd.f32 %v397_v63, %v396_v2  ;;  %v321_v63 = vmul.f32 %v578_v20, %v578_v20  ;;  %v419_v7 = vsel %vm146_vm1, %v320_v57, 0.0 }
  0x3b   :  { %v203_v48 = vadd.f32 %v202_v39, %v201_v42  ;;  %v585_v39 = vunpack.c.l.bf16 %v650_v29  ;;  %v651_v42 = vld [vmem:[%s941_s0 + $0xa8] sm:$0xff]   ;;  %v224_v47 = vsel %vm146_vm1, %v582_v33, 0.0 }
  0x3c   :  { %v400_v15 = vadd.f32 %v399_v6, %v398_v9  ;;  %v322_v6 = vmul.f32 %v581_v26, %v581_v26  ;;  %v421_v13 = vsel %vm146_vm1, %v321_v63, 0.0 }
  0x3d   :  { %v205_v55 = vadd.f32 %v204_v46, %v203_v48  ;;  %v586_v46 = vunpack.c.h.bf16 %v650_v29  ;;  %v226_v53 = vsel %vm146_vm1, %v585_v39, 0.0 }
  0x3e   :  { %v402_v22 = vadd.f32 %v401_v12, %v400_v15  ;;  %v323_v12 = vmul.f32 %v582_v33, %v582_v33  ;;  %v423_v20 = vsel %vm146_vm1, %v322_v6, 0.0 }
  0x3f   :  { %v207_v61 = vadd.f32 %v206_v52, %v205_v55  ;;  %v589_v52 = vunpack.c.l.bf16 %v651_v42  ;;  %v652_v55 = vld [vmem:[%s941_s0 + $0xb0] sm:$0xff]   ;;  %v228_v60 = vsel %vm146_vm1, %v586_v46, 0.0 }
  0x40   :  { %v404_v28 = vadd.f32 %v403_v19, %v402_v22  ;;  %v324_v19 = vmul.f32 %v585_v39, %v585_v39  ;;  %v425_v26 = vsel %vm146_vm1, %v323_v12, 0.0 }
  0x41   :  { %v209_v4 = vadd.f32 %v208_v59, %v207_v61  ;;  %v590_v59 = vunpack.c.h.bf16 %v651_v42  ;;  %v230_v2 = vsel %vm146_vm1, %v589_v52, 0.0 }
  0x42   :  { %v406_v35 = vadd.f32 %v405_v25, %v404_v28  ;;  %v325_v25 = vmul.f32 %v586_v46, %v586_v46  ;;  %v427_v33 = vsel %vm146_vm1, %v324_v19, 0.0 }
  0x43   :  { %v211_v10 = vadd.f32 %v210_v1, %v209_v4  ;;  %v593_v1 = vunpack.c.l.bf16 %v652_v55  ;;  %v653_v4 = vld [vmem:[%s941_s0 + $0xb8] sm:$0xff]   ;;  %v232_v9 = vsel %vm146_vm1, %v590_v59, 0.0 }
  0x44   :  { %v408_v41 = vadd.f32 %v407_v32, %v406_v35  ;;  %v326_v32 = vmul.f32 %v589_v52, %v589_v52  ;;  %v429_v39 = vsel %vm146_vm1, %v325_v25, 0.0 }
  0x45   :  { %v213_v17 = vadd.f32 %v212_v8, %v211_v10  ;;  %v594_v8 = vunpack.c.h.bf16 %v652_v55  ;;  %v234_v15 = vsel %vm146_vm1, %v593_v1, 0.0 }
  0x46   :  { %v410_v48 = vadd.f32 %v409_v38, %v408_v41  ;;  %v327_v38 = vmul.f32 %v590_v59, %v590_v59  ;;  %v431_v46 = vsel %vm146_vm1, %v326_v32, 0.0 }
  0x47   :  { %v215_v23 = vadd.f32 %v214_v14, %v213_v17  ;;  %v597_v14 = vunpack.c.l.bf16 %v653_v4  ;;  %v654_v17 = vld [vmem:[%s941_s0 + $0xc0] sm:$0xff]   ;;  %v236_v22 = vsel %vm146_vm1, %v594_v8, 0.0 }
  0x48   :  { %v412_v54 = vadd.f32 %v411_v45, %v410_v48  ;;  %v328_v45 = vmul.f32 %v593_v1, %v593_v1  ;;  %v433_v52 = vsel %vm146_vm1, %v327_v38, 0.0 }
  0x49   :  { %v217_v30 = vadd.f32 %v216_v21, %v215_v23  ;;  %v598_v21 = vunpack.c.h.bf16 %v653_v4  ;;  %v238_v28 = vsel %vm146_vm1, %v597_v14, 0.0 }
  0x4a   :  { %v414_v61 = vadd.f32 %v413_v51, %v412_v54  ;;  %v329_v51 = vmul.f32 %v594_v8, %v594_v8  ;;  %v435_v59 = vsel %vm146_vm1, %v328_v45, 0.0 }
  0x4b   :  { %v219_v36 = vadd.f32 %v218_v27, %v217_v30  ;;  %v601_v27 = vunpack.c.l.bf16 %v654_v17  ;;  %v655_v30 = vld [vmem:[%s941_s0 + $0xc8] sm:$0xff]   ;;  %v240_v35 = vsel %vm146_vm1, %v598_v21, 0.0 }
  0x4c   :  { %v416_v3 = vadd.f32 %v415_v58, %v414_v61  ;;  %v330_v58 = vmul.f32 %v597_v14, %v597_v14  ;;  %v437_v1 = vsel %vm146_vm1, %v329_v51, 0.0 }
  0x4d   :  { %v221_v43 = vadd.f32 %v220_v34, %v219_v36  ;;  %v602_v34 = vunpack.c.h.bf16 %v654_v17  ;;  %v242_v41 = vsel %vm146_vm1, %v601_v27, 0.0 }
  0x4e   :  { %v418_v10 = vadd.f32 %v417_v0, %v416_v3  ;;  %v331_v0 = vmul.f32 %v598_v21, %v598_v21  ;;  %v439_v8 = vsel %vm146_vm1, %v330_v58, 0.0 }
  0x4f   :  { %v223_v49 = vadd.f32 %v222_v40, %v221_v43  ;;  %v605_v40 = vunpack.c.l.bf16 %v655_v30  ;;  %v656_v43 = vld [vmem:[%s941_s0 + $0xd0] sm:$0xff]   ;;  %v244_v48 = vsel %vm146_vm1, %v602_v34, 0.0 }
  0x50   :  { %v420_v16 = vadd.f32 %v419_v7, %v418_v10  ;;  %v332_v7 = vmul.f32 %v601_v27, %v601_v27  ;;  %v441_v14 = vsel %vm146_vm1, %v331_v0, 0.0 }
  0x51   :  { %v225_v56 = vadd.f32 %v224_v47, %v223_v49  ;;  %v606_v47 = vunpack.c.h.bf16 %v655_v30  ;;  %v246_v54 = vsel %vm146_vm1, %v605_v40, 0.0 }
  0x52   :  { %v422_v23 = vadd.f32 %v421_v13, %v420_v16  ;;  %v333_v13 = vmul.f32 %v602_v34, %v602_v34  ;;  %v443_v21 = vsel %vm146_vm1, %v332_v7, 0.0 }
  0x53   :  { %v227_v62 = vadd.f32 %v226_v53, %v225_v56  ;;  %v609_v53 = vunpack.c.l.bf16 %v656_v43  ;;  %v657_v56 = vld [vmem:[%s941_s0 + $0xd8] sm:$0xff]   ;;  %v248_v61 = vsel %vm146_vm1, %v606_v47, 0.0 }
  0x54   :  { %v424_v29 = vadd.f32 %v423_v20, %v422_v23  ;;  %v334_v20 = vmul.f32 %v605_v40, %v605_v40  ;;  %v445_v27 = vsel %vm146_vm1, %v333_v13, 0.0 }
  0x55   :  { %v229_v5 = vadd.f32 %v228_v60, %v227_v62  ;;  %v610_v60 = vunpack.c.h.bf16 %v656_v43  ;;  %v250_v3 = vsel %vm146_vm1, %v609_v53, 0.0 }
  0x56   :  { %v426_v36 = vadd.f32 %v425_v26, %v424_v29  ;;  %v335_v26 = vmul.f32 %v606_v47, %v606_v47  ;;  %v447_v34 = vsel %vm146_vm1, %v334_v20, 0.0 }
  0x57   :  { %v231_v11 = vadd.f32 %v230_v2, %v229_v5  ;;  %v613_v2 = vunpack.c.l.bf16 %v657_v56  ;;  %v658_v5 = vld [vmem:[%s941_s0 + $0xe0] sm:$0xff]   ;;  %v252_v10 = vsel %vm146_vm1, %v610_v60, 0.0 }
  0x58   :  { %v428_v42 = vadd.f32 %v427_v33, %v426_v36  ;;  %v336_v33 = vmul.f32 %v609_v53, %v609_v53  ;;  %v449_v40 = vsel %vm146_vm1, %v335_v26, 0.0 }
  0x59   :  { %v233_v18 = vadd.f32 %v232_v9, %v231_v11  ;;  %v614_v9 = vunpack.c.h.bf16 %v657_v56  ;;  %v254_v16 = vsel %vm146_vm1, %v613_v2, 0.0 }
  0x5a   :  { %v430_v49 = vadd.f32 %v429_v39, %v428_v42  ;;  %v337_v39 = vmul.f32 %v610_v60, %v610_v60  ;;  %v451_v47 = vsel %vm146_vm1, %v336_v33, 0.0 }
  0x5b   :  { %v235_v24 = vadd.f32 %v234_v15, %v233_v18  ;;  %v617_v15 = vunpack.c.l.bf16 %v658_v5  ;;  %v659_v18 = vld [vmem:[%s941_s0 + $0xe8] sm:$0xff]   ;;  %v256_v23 = vsel %vm146_vm1, %v614_v9, 0.0 }
  0x5c   :  { %v432_v55 = vadd.f32 %v431_v46, %v430_v49  ;;  %v338_v46 = vmul.f32 %v613_v2, %v613_v2  ;;  %v453_v53 = vsel %vm146_vm1, %v337_v39, 0.0 }
  0x5d   :  { %v237_v31 = vadd.f32 %v236_v22, %v235_v24  ;;  %v618_v22 = vunpack.c.h.bf16 %v658_v5  ;;  %v258_v29 = vsel %vm146_vm1, %v617_v15, 0.0  ;;  %v340_v58 = vmul.f32 %v617_v15, %v617_v15 }
  0x5e   :  { %v434_v62 = vadd.f32 %v433_v52, %v432_v55  ;;  %v339_v52 = vmul.f32 %v614_v9, %v614_v9 }
  0x5f   :  { %v239_v37 = vadd.f32 %v238_v28, %v237_v31  ;;  %v621_v28 = vunpack.c.l.bf16 %v659_v18  ;;  %v660_v31 = vld [vmem:[%s941_s0 + $0xf0] sm:$0xff]   ;;  %v260_v36 = vsel %vm146_vm1, %v618_v22, 0.0  ;;  %v341_v0 = vmul.f32 %v618_v22, %v618_v22 }
  0x60   :  { %v436_v4 = vadd.f32 %v435_v59, %v434_v62  ;;  %v455_v59 = vsel %vm146_vm1, %v338_v46, 0.0 }
  0x61   :  { %v241_v44 = vadd.f32 %v240_v35, %v239_v37  ;;  %v622_v35 = vunpack.c.h.bf16 %v659_v18  ;;  %v262_v42 = vsel %vm146_vm1, %v621_v28, 0.0  ;;  %v342_v5 = vmul.f32 %v621_v28, %v621_v28 }
  0x62   :  { %v438_v11 = vadd.f32 %v437_v1, %v436_v4  ;;  %v457_v1 = vsel %vm146_vm1, %v339_v52, 0.0 }
  0x63   :  { %v243_v50 = vadd.f32 %v242_v41, %v241_v44  ;;  %v625_v41 = vunpack.c.l.bf16 %v660_v31  ;;  %v661_v44 = vld [vmem:[%s941_s0 + $0xf8] sm:$0xff]   ;;  %v264_v49 = vsel %vm146_vm1, %v622_v35, 0.0  ;;  %v463_v15 = vsel %vm146_vm1, %v342_v5, 0.0 }
  0x64   :  { %v440_v17 = vadd.f32 %v439_v8, %v438_v11  ;;  %v630_v60 = vunpack.c.h.bf16 %v661_v44  ;;  %v461_v11 = vsel %vm146_vm1, %v341_v0, 0.0 }
  0x65   :  { %v245_v57 = vadd.f32 %v244_v48, %v243_v50  ;;  %v626_v48 = vunpack.c.h.bf16 %v660_v31  ;;  %v266_v55 = vsel %vm146_vm1, %v625_v41, 0.0 }
  0x66   :  { %v442_v24 = vadd.f32 %v441_v14, %v440_v17  ;;  %v272_v7 = vsel %vm146_vm1, %v630_v60, 0.0  ;;  %v344_v14 = vmul.f32 %v625_v41, %v625_v41  ;;  %v347_v26 = vmul.f32 %v630_v60, %v630_v60 }
  0x67   :  { %v247_v63 = vadd.f32 %v246_v54, %v245_v57  ;;  %v629_v54 = vunpack.c.l.bf16 %v661_v44  ;;  %v345_v18 = vmul.f32 %v626_v48, %v626_v48 }
  0x68   :  { %v444_v30 = vadd.f32 %v443_v21, %v442_v24  ;;  %v473_v33 = vsel %vm146_vm1, %v347_v26, 0.0 }
  0x69   :  { %v249_v6 = vadd.f32 %v248_v61, %v247_v63  ;;  %v268_v61 = vsel %vm146_vm1, %v626_v48, 0.0  ;;  %v270_v2 = vsel %vm146_vm1, %v629_v54, 0.0  ;;  %v346_v22 = vmul.f32 %v629_v54, %v629_v54 }
  0x6a   :  { %v446_v37 = vadd.f32 %v445_v27, %v444_v30  ;;  %v469_v27 = vsel %vm146_vm1, %v345_v18, 0.0 }
  0x6b   :  { %v251_v12 = vadd.f32 %v250_v3, %v249_v6  ;;  %v459_v6 = vsel %vm146_vm1, %v340_v58, 0.0  ;;  %v471_v30 = vsel %vm146_vm1, %v346_v22, 0.0 }
  0x6c   :  { %v448_v43 = vadd.f32 %v447_v34, %v446_v37  ;;  %v145_v34 = vld [vmem:[%s939_s1] sm:$0x1] }
  0x6d   :  { %v253_v19 = vadd.f32 %v252_v10, %v251_v12  ;;  %v343_v10 = vmul.f32 %v622_v35, %v622_v35 }
  0x6e   :  { %v450_v50 = vadd.f32 %v449_v40, %v448_v43 }
  0x6f   :  { %v255_v25 = vadd.f32 %v254_v16, %v253_v19  ;;  %v465_v19 = vsel %vm146_vm1, %v343_v10, 0.0 }
  0x70   :  { %v452_v56 = vadd.f32 %v451_v47, %v450_v50 }
  0x71   :  { %v257_v32 = vadd.f32 %v256_v23, %v255_v25  ;;  %v467_v23 = vsel %vm146_vm1, %v344_v14, 0.0 }
  0x72   :  { %v454_v62 = vadd.f32 %v453_v53, %v452_v56 }
  0x73   :  { %v259_v38 = vadd.f32 %v258_v29, %v257_v32 }
  0x74   :  { %v456_v3 = vadd.f32 %v455_v59, %v454_v62 }
  0x75   :  { %v261_v45 = vadd.f32 %v260_v36, %v259_v38 }
  0x76   :  { %v458_v8 = vadd.f32 %v457_v1, %v456_v3 }
  0x77   :  { %v263_v51 = vadd.f32 %v262_v42, %v261_v45  ;;  %v283_v45 = vld [vmem:[%s940_s2] sm:$0x1] }
  0x78   :  { %v460_v12 = vadd.f32 %v459_v6, %v458_v8 }
  0x79   :  { %v265_v57 = vadd.f32 %v264_v49, %v263_v51 }
  0x7a   :  { %v462_v16 = vadd.f32 %v461_v11, %v460_v12 }
  0x7b   :  { %v267_v63 = vadd.f32 %v266_v55, %v265_v57 }
  0x7c   :  { %v464_v20 = vadd.f32 %v463_v15, %v462_v16 }
  0x7d   :  { %v269_v4 = vadd.f32 %v268_v61, %v267_v63 }
  0x7e   :  { %v466_v24 = vadd.f32 %v465_v19, %v464_v20 }
  0x7f   :  { %v271_v9 = vadd.f32 %v270_v2, %v269_v4 }
  0x80   :  { %v468_v28 = vadd.f32 %v467_v23, %v466_v24 }
  0x81   :  { %v273_v13 = vadd.f32 %v272_v7, %v271_v9 }
  0x82   :  { %v470_v31 = vadd.f32 %v469_v27, %v468_v28 }
  0x83   :  { %v274_v17 = vrot.slane %v273_v13, 4 }
  0x84   :  { %v472_v35 = vadd.f32 %v471_v30, %v470_v31 }
  0x85   :  { %v275_v21 = vadd.f32 %v274_v17, %v273_v13 }
  0x86   :  { %v474_v37 = vadd.f32 %v473_v33, %v472_v35 }
  0x87   :  { %v276_v25 = vrot.slane %v275_v21, 2 }
  0x88   :  { %v475_v39 = vrot.slane %v474_v37, 4 }
  0x89   :  { %v277_v29 = vadd.f32 %v276_v25, %v275_v21 }
  0x8a   :  { %v476_v40 = vadd.f32 %v475_v39, %v474_v37 }
  0x8b   :  { %v278_v32 = vrot.slane %v277_v29, 1 }
  0x8c   :  { %v477_v41 = vrot.slane %v476_v40, 2 }
  0x8d   :  { %v279_v36 = vadd.f32 %v278_v32, %v277_v29 }
  0x8e   :  { %v478_v42 = vadd.f32 %v477_v41, %v476_v40 }
  0x8f   :  { %v280_v38 = vadd.f32 %v279_v36, %v145_v34 }
  0x90   :  { %v479_v43 = vrot.slane %v478_v42, 1 }
  0x91   :  { %282 = vst.msk [vmem:[%s939_s1] sm:$0x1] %vm14_vm0, %v280_v38 }
  0x92   :  { %v480_v47 = vadd.f32 %v479_v43, %v478_v42 }
  0x94   :  { %v481_v48 = vadd.f32 %v480_v47, %v283_v45 }
  0x96   :  { %482 = vst.msk [vmem:[%s940_s2] sm:$0x1] %vm14_vm0, %v481_v48 }
  0x98   :  { %v486_v44 = vld [vmem:[%s939_s1] sm:$0x1] }
  0x99   :  { %v487_v46 = vmul.f32 0.001953125, %v486_v44 }
  0x9b   :  { %492 = vst.msk [vmem:[%s939_s1] sm:$0x1] %vm14_vm0, %v487_v46  ;;  %v490_v49 = vmul.f32 %v487_v46, %v487_v46 }
  0x9d   :  { %v488_v50 = vld [vmem:[%s940_s2] sm:$0x1] }
  0x9e   :  { %v489_v51 = vmul.f32 0.001953125, %v488_v50 }
  0xa0   :  { %v491_v52 = vsub.f32 %v489_v51, %v490_v49 }
  0xa2   :  { %v493_v53 = vmax.f32 %v491_v52, 0.0 }
  0xa4   :  { %494 = vst.msk [vmem:[%s940_s2] sm:$0x1] %vm14_vm0, %v493_v53 }

// kernel: generator_forward.45
= control target key start
LH: loop header
LB: loop body
LE: loop exit
PB: predicated region body
PF: predicated region fallthrough
CT: control target
= control target key end

     0   :  { %s738_s12 = smov 0   ;;  %s740_s13 = smov 0   ;;  %s938_s0 = inlined_call_operand.vmem [shape: bf16[2,256,8], index: 0, kind: input, shape index: {}]   ;;  %s939_s1 = inlined_call_operand.vmem [shape: f32[2,1,8], index: 1, kind: input, shape index: {}]   ;;  %s940_s2 = inlined_call_operand.vmem [shape: f32[2,1,8], index: 2, kind: input, shape index: {}]   ;;  %s941_s3 = inlined_call_operand.vmem [shape: bf16[2,256,8], index: 3, kind: output, shape index: {}]  }
   0x1   :  { %s742_s14 = smov 0  }
   0x2 LB: > { %s25_s15 = sadd.s32 1, %s712_s13  ;;  %p580_p0 = scmp.ge.s32.totalorder %s716_s14, 1  ;;  %s716_s14 = sphi %s742_s14, %s13_s14   ;;  %s712_s13 = sphi %s740_s13, %s943_s13   ;;  %s708_s12 = sphi %s738_s12, %s942_s12  }
   0x3   : > { %p27_p1 = scmp.ge.s32.totalorder %s25_s15, 2  ;;  %p174_p2 = scmp.lt.s32.totalorder %s716_s14, 3 }
   0x5   : > { %s945_s15 = smov (%p27_p1, %s25_s15), 0  ;;  %p175_p3 = pnand %p580_p0, %p174_p2 }
   0x6   : > { %p213_p4 = scmp.lt.s32.totalorder (!%p175_p3), %s708_s12, 1 }
   0x7   : > { %178 = sbr.rel (%p175_p3) target bundleno = 64 (0x40), region = 32 }
   0xc   : > { %s947_s12 = smov (!%p213_p4, %s708_s12), 1  ;;  %vm438_vm0 = vcmask 60416  }
   0xd   : > { %s587_s16 = sshll.u32 %s947_s12, 7  ;;  %s224_s19 = scalar_lea.vmem %s939_s1, %s947_s12 }
   0xe   : > { %s768_s22 = scalar_lea.vmem %s938_s0, %s587_s16  ;;  %s227_s25 = scalar_lea.vmem %s940_s2, %s947_s12  ;;  %v774_v0 = vld [vmem:[%s224_s19] ss:$0 sm:$0xff] }
   0xf   : > { %v590_v1 = vld [vmem:[%s768_s22] sm:$0xff]   ;;  %v653_v5 = vld [vmem:[%s768_s22 + $0x8] sm:$0xff]   ;;  %v654_v6 = vld [vmem:[%s768_s22 + $0x10] sm:$0xff]   ;;  %s803_s28 = scalar_lea.vmem %s941_s3, %s587_s16 }
  0x10   : > { %v777_v2 = vld [vmem:[%s227_s25] ss:$0 sm:$0xff]  ;;  %v591_v3 = vunpack.c.l.bf16 %v590_v1  ;;  %v592_v4 = vunpack.c.h.bf16 %v590_v1  ;;  %v655_v7 = vld [vmem:[%s768_s22 + $0x18] sm:$0xff]   ;;  %v595_v8 = vunpack.c.l.bf16 %v653_v5  ;;  %v596_v9 = vunpack.c.h.bf16 %v653_v5  ;;  %v657_v41 = vld [vmem:[%s768_s22 + $0x28] sm:$0xff]  }
  0x11   : > { %v599_v10 = vunpack.c.l.bf16 %v654_v6  ;;  %v600_v11 = vunpack.c.h.bf16 %v654_v6  ;;  %v603_v14 = vunpack.c.l.bf16 %v655_v7  ;;  %v604_v15 = vunpack.c.h.bf16 %v655_v7  ;;  %v656_v36 = vld [vmem:[%s768_s22 + $0x20] sm:$0xff]   ;;  %v658_v42 = vld [vmem:[%s768_s22 + $0x30] sm:$0xff]   ;;  %v659_v47 = vld [vmem:[%s768_s22 + $0x38] sm:$0xff]  }
  0x12   : > { %v306_v12 = vmul.f32 %v774_v0, %v591_v3  ;;  %v307_v13 = vmul.f32 %v774_v0, %v592_v4  ;;  %v308_v16 = vmul.f32 %v774_v0, %v595_v8  ;;  %v309_v17 = vmul.f32 %v774_v0, %v596_v9 }
  0x13   : > { %v310_v18 = vmul.f32 %v774_v0, %v599_v10  ;;  %v311_v19 = vmul.f32 %v774_v0, %v600_v11  ;;  %v312_v22 = vmul.f32 %v774_v0, %v603_v14  ;;  %v313_v23 = vmul.f32 %v774_v0, %v604_v15  ;;  %v660_v14 = vld [vmem:[%s768_s22 + $0x40] sm:$0xff]  }
  0x14   : > { %v342_v20 = vadd.f32 %v777_v2, %v306_v12  ;;  %v343_v21 = vadd.f32 %v777_v2, %v307_v13  ;;  %v344_v24 = vadd.f32 %v777_v2, %v308_v16  ;;  %v345_v25 = vadd.f32 %v777_v2, %v309_v17 }
  0x15   : > { %v346_v26 = vadd.f32 %v777_v2, %v310_v18  ;;  %v347_v27 = vadd.f32 %v777_v2, %v311_v19  ;;  %v348_v30 = vadd.f32 %v777_v2, %v312_v22  ;;  %v349_v31 = vadd.f32 %v777_v2, %v313_v23  ;;  %v661_v23 = vld [vmem:[%s768_s22 + $0x48] sm:$0xff]  }
  0x16   : > { %v374_v28 = vmax.f32 %v342_v20, 0.0  ;;  %v375_v29 = vmax.f32 %v343_v21, 0.0  ;;  %v376_v32 = vmax.f32 %v344_v24, 0.0  ;;  %v377_v33 = vmax.f32 %v345_v25, 0.0  ;;  %v662_v24 = vld [vmem:[%s768_s22 + $0x50] sm:$0xff]  }
  0x17   : > { %v378_v34 = vmax.f32 %v346_v26, 0.0  ;;  %v379_v35 = vmax.f32 %v347_v27, 0.0  ;;  %v380_v39 = vmax.f32 %v348_v30, 0.0  ;;  %v381_v40 = vmax.f32 %v349_v31, 0.0 }
  0x18   : > { %v406_v37 = vpack.c.bf16 %v374_v28, %v374_v28  ;;  %v407_v38 = vpack.c.bf16 %v375_v29, %v375_v29  ;;  %v408_v43 = vpack.c.bf16 %v376_v32, %v376_v32  ;;  %v409_v44 = vpack.c.bf16 %v377_v33, %v377_v33  ;;  %v663_v29 = vld [vmem:[%s768_s22 + $0x58] sm:$0xff]  }
  0x19   : > { %v410_v45 = vpack.c.bf16 %v378_v34, %v378_v34  ;;  %v411_v46 = vpack.c.bf16 %v379_v35, %v379_v35  ;;  %v412_v48 = vpack.c.bf16 %v380_v39, %v380_v39  ;;  %v413_v49 = vpack.c.bf16 %v381_v40, %v381_v40 }
  0x1a   : > { %439 = vst.msk [vmem:[%s803_s28] sm:$0xf] %vm438_vm0, %v406_v37  ;;  %v607_v50 = vunpack.c.l.bf16 %v656_v36  ;;  %v608_v51 = vunpack.c.h.bf16 %v656_v36  ;;  %v611_v52 = vunpack.c.l.bf16 %v657_v41  ;;  %v612_v53 = vunpack.c.h.bf16 %v657_v41 }
  0x1b   : > { %440 = vst.msk [vmem:[%s803_s28 + $0x4] sm:$0xf] %vm438_vm0, %v407_v38  ;;  %v615_v54 = vunpack.c.l.bf16 %v658_v42  ;;  %v616_v55 = vunpack.c.h.bf16 %v658_v42  ;;  %v619_v58 = vunpack.c.l.bf16 %v659_v47  ;;  %v620_v59 = vunpack.c.h.bf16 %v659_v47 }
  0x1c   : > { %441 = vst.msk [vmem:[%s803_s28 + $0x8] sm:$0xf] %vm438_vm0, %v408_v43  ;;  %v314_v56 = vmul.f32 %v774_v0, %v607_v50  ;;  %v315_v57 = vmul.f32 %v774_v0, %v608_v51  ;;  %v316_v60 = vmul.f32 %v774_v0, %v611_v52  ;;  %v317_v61 = vmul.f32 %v774_v0, %v612_v53 }
  0x1d   : > { %442 = vst.msk [vmem:[%s803_s28 + $0xc] sm:$0xf] %vm438_vm0, %v409_v44  ;;  %v318_v62 = vmul.f32 %v774_v0, %v615_v54  ;;  %v319_v63 = vmul.f32 %v774_v0, %v616_v55  ;;  %v320_v4 = vmul.f32 %v774_v0, %v619_v58  ;;  %v321_v5 = vmul.f32 %v774_v0, %v620_v59  ;;  %v664_v58 = vld [vmem:[%s768_s22 + $0x60] sm:$0xff]  }
  0x1e   : > { %443 = vst.msk [vmem:[%s803_s28 + $0x10] sm:$0xf] %vm438_vm0, %v410_v45  ;;  %v350_v1 = vadd.f32 %v777_v2, %v314_v56  ;;  %v351_v3 = vadd.f32 %v777_v2, %v315_v57  ;;  %v352_v6 = vadd.f32 %v777_v2, %v316_v60  ;;  %v353_v7 = vadd.f32 %v777_v2, %v317_v61 }
  0x1f   : > { %444 = vst.msk [vmem:[%s803_s28 + $0x14] sm:$0xf] %vm438_vm0, %v411_v46  ;;  %v354_v8 = vadd.f32 %v777_v2, %v318_v62  ;;  %v355_v9 = vadd.f32 %v777_v2, %v319_v63  ;;  %v356_v12 = vadd.f32 %v777_v2, %v320_v4  ;;  %v357_v13 = vadd.f32 %v777_v2, %v321_v5  ;;  %v665_v5 = vld [vmem:[%s768_s22 + $0x68] sm:$0xff]  }
  0x20   : > { %445 = vst.msk [vmem:[%s803_s28 + $0x18] sm:$0xf] %vm438_vm0, %v412_v48  ;;  %v382_v10 = vmax.f32 %v350_v1, 0.0  ;;  %v383_v11 = vmax.f32 %v351_v3, 0.0  ;;  %v384_v15 = vmax.f32 %v352_v6, 0.0  ;;  %v385_v16 = vmax.f32 %v353_v7, 0.0 }
  0x21   : > { %446 = vst.msk [vmem:[%s803_s28 + $0x1c] sm:$0xf] %vm438_vm0, %v413_v49  ;;  %v386_v17 = vmax.f32 %v354_v8, 0.0  ;;  %v387_v18 = vmax.f32 %v355_v9, 0.0  ;;  %v388_v21 = vmax.f32 %v356_v12, 0.0  ;;  %v389_v22 = vmax.f32 %v357_v13, 0.0 }
  0x22   : > { %v414_v19 = vpack.c.bf16 %v382_v10, %v382_v10  ;;  %v415_v20 = vpack.c.bf16 %v383_v11, %v383_v11  ;;  %v416_v25 = vpack.c.bf16 %v384_v15, %v384_v15  ;;  %v417_v26 = vpack.c.bf16 %v385_v16, %v385_v16  ;;  %v666_v6 = vld [vmem:[%s768_s22 + $0x70] sm:$0xff]   ;;  %v667_v11 = vld [vmem:[%s768_s22 + $0x78] sm:$0xff]  }
  0x23   : > { %v418_v27 = vpack.c.bf16 %v386_v17, %v386_v17  ;;  %v419_v28 = vpack.c.bf16 %v387_v18, %v387_v18  ;;  %v420_v30 = vpack.c.bf16 %v388_v21, %v388_v21  ;;  %v421_v31 = vpack.c.bf16 %v389_v22, %v389_v22 }
  0x24   : > { %447 = vst.msk [vmem:[%s803_s28 + $0x20] sm:$0xf] %vm438_vm0, %v414_v19  ;;  %v623_v32 = vunpack.c.l.bf16 %v660_v14  ;;  %v624_v33 = vunpack.c.h.bf16 %v660_v14  ;;  %v627_v34 = vunpack.c.l.bf16 %v661_v23  ;;  %v628_v35 = vunpack.c.h.bf16 %v661_v23 }
  0x25   : > { %448 = vst.msk [vmem:[%s803_s28 + $0x24] sm:$0xf] %vm438_vm0, %v415_v20  ;;  %v631_v36 = vunpack.c.l.bf16 %v662_v24  ;;  %v632_v37 = vunpack.c.h.bf16 %v662_v24  ;;  %v635_v40 = vunpack.c.l.bf16 %v663_v29  ;;  %v636_v41 = vunpack.c.h.bf16 %v663_v29 }
  0x26   : > { %449 = vst.msk [vmem:[%s803_s28 + $0x28] sm:$0xf] %vm438_vm0, %v416_v25  ;;  %v322_v38 = vmul.f32 %v774_v0, %v623_v32  ;;  %v323_v39 = vmul.f32 %v774_v0, %v624_v33  ;;  %v324_v42 = vmul.f32 %v774_v0, %v627_v34  ;;  %v325_v43 = vmul.f32 %v774_v0, %v628_v35 }
  0x27   : > { %450 = vst.msk [vmem:[%s803_s28 + $0x2c] sm:$0xf] %vm438_vm0, %v417_v26  ;;  %v326_v44 = vmul.f32 %v774_v0, %v631_v36  ;;  %v327_v45 = vmul.f32 %v774_v0, %v632_v37  ;;  %v328_v48 = vmul.f32 %v774_v0, %v635_v40  ;;  %v329_v49 = vmul.f32 %v774_v0, %v636_v41 }
  0x28   : > { %451 = vst.msk [vmem:[%s803_s28 + $0x30] sm:$0xf] %vm438_vm0, %v418_v27  ;;  %v358_v46 = vadd.f32 %v777_v2, %v322_v38  ;;  %v359_v47 = vadd.f32 %v777_v2, %v323_v39  ;;  %v360_v50 = vadd.f32 %v777_v2, %v324_v42  ;;  %v361_v51 = vadd.f32 %v777_v2, %v325_v43 }
  0x29   : > { %452 = vst.msk [vmem:[%s803_s28 + $0x34] sm:$0xf] %vm438_vm0, %v419_v28  ;;  %v362_v52 = vadd.f32 %v777_v2, %v326_v44  ;;  %v363_v53 = vadd.f32 %v777_v2, %v327_v45  ;;  %v364_v56 = vadd.f32 %v777_v2, %v328_v48  ;;  %v365_v57 = vadd.f32 %v777_v2, %v329_v49 }
  0x2a   : > { %453 = vst.msk [vmem:[%s803_s28 + $0x38] sm:$0xf] %vm438_vm0, %v420_v30  ;;  %v390_v54 = vmax.f32 %v358_v46, 0.0  ;;  %v391_v55 = vmax.f32 %v359_v47, 0.0  ;;  %v392_v59 = vmax.f32 %v360_v50, 0.0  ;;  %v393_v60 = vmax.f32 %v361_v51, 0.0 }
  0x2b   : > { %454 = vst.msk [vmem:[%s803_s28 + $0x3c] sm:$0xf] %vm438_vm0, %v421_v31  ;;  %v394_v61 = vmax.f32 %v362_v52, 0.0  ;;  %v395_v62 = vmax.f32 %v363_v53, 0.0  ;;  %v396_v3 = vmax.f32 %v364_v56, 0.0  ;;  %v397_v4 = vmax.f32 %v365_v57, 0.0 }
  0x2c   : > { %v422_v63 = vpack.c.bf16 %v390_v54, %v390_v54  ;;  %v423_v1 = vpack.c.bf16 %v391_v55, %v391_v55  ;;  %v424_v7 = vpack.c.bf16 %v392_v59, %v392_v59  ;;  %v425_v8 = vpack.c.bf16 %v393_v60, %v393_v60 }
  0x2d   : > { %v426_v9 = vpack.c.bf16 %v394_v61, %v394_v61  ;;  %v427_v10 = vpack.c.bf16 %v395_v62, %v395_v62  ;;  %v428_v12 = vpack.c.bf16 %v396_v3, %v396_v3  ;;  %v429_v13 = vpack.c.bf16 %v397_v4, %v397_v4 }
  0x2e   : > { %455 = vst.msk [vmem:[%s803_s28 + $0x40] sm:$0xf] %vm438_vm0, %v422_v63  ;;  %v639_v14 = vunpack.c.l.bf16 %v664_v58  ;;  %v640_v15 = vunpack.c.h.bf16 %v664_v58  ;;  %v643_v16 = vunpack.c.l.bf16 %v665_v5  ;;  %v644_v17 = vunpack.c.h.bf16 %v665_v5 }
  0x2f   : > { %456 = vst.msk [vmem:[%s803_s28 + $0x44] sm:$0xf] %vm438_vm0, %v423_v1  ;;  %v647_v18 = vunpack.c.l.bf16 %v666_v6  ;;  %v648_v19 = vunpack.c.h.bf16 %v666_v6  ;;  %v651_v22 = vunpack.c.l.bf16 %v667_v11  ;;  %v652_v23 = vunpack.c.h.bf16 %v667_v11 }
  0x30   : > { %457 = vst.msk [vmem:[%s803_s28 + $0x48] sm:$0xf] %vm438_vm0, %v424_v7  ;;  %v330_v20 = vmul.f32 %v774_v0, %v639_v14  ;;  %v331_v21 = vmul.f32 %v774_v0, %v640_v15  ;;  %v332_v24 = vmul.f32 %v774_v0, %v643_v16  ;;  %v333_v25 = vmul.f32 %v774_v0, %v644_v17 }
  0x31   : > { %458 = vst.msk [vmem:[%s803_s28 + $0x4c] sm:$0xf] %vm438_vm0, %v425_v8  ;;  %v334_v26 = vmul.f32 %v774_v0, %v647_v18  ;;  %v335_v27 = vmul.f32 %v774_v0, %v648_v19  ;;  %v336_v30 = vmul.f32 %v774_v0, %v651_v22  ;;  %v337_v31 = vmul.f32 %v774_v0, %v652_v23 }
  0x32   : > { %459 = vst.msk [vmem:[%s803_s28 + $0x50] sm:$0xf] %vm438_vm0, %v426_v9  ;;  %v366_v28 = vadd.f32 %v777_v2, %v330_v20  ;;  %v367_v29 = vadd.f32 %v777_v2, %v331_v21  ;;  %v368_v32 = vadd.f32 %v777_v2, %v332_v24  ;;  %v369_v33 = vadd.f32 %v777_v2, %v333_v25 }
  0x33   : > { %460 = vst.msk [vmem:[%s803_s28 + $0x54] sm:$0xf] %vm438_vm0, %v427_v10  ;;  %v370_v34 = vadd.f32 %v777_v2, %v334_v26  ;;  %v371_v35 = vadd.f32 %v777_v2, %v335_v27  ;;  %v372_v38 = vadd.f32 %v777_v2, %v336_v30  ;;  %v373_v0 = vadd.f32 %v777_v2, %v337_v31 }
  0x34   : > { %461 = vst.msk [vmem:[%s803_s28 + $0x58] sm:$0xf] %vm438_vm0, %v428_v12  ;;  %v398_v36 = vmax.f32 %v366_v28, 0.0  ;;  %v399_v37 = vmax.f32 %v367_v29, 0.0  ;;  %v400_v39 = vmax.f32 %v368_v32, 0.0  ;;  %v401_v40 = vmax.f32 %v369_v33, 0.0 }
  0x35   : > { %462 = vst.msk [vmem:[%s803_s28 + $0x5c] sm:$0xf] %vm438_vm0, %v429_v13  ;;  %v402_v41 = vmax.f32 %v370_v34, 0.0  ;;  %v403_v42 = vmax.f32 %v371_v35, 0.0  ;;  %v404_v45 = vmax.f32 %v372_v38, 0.0  ;;  %v405_v48 = vmax.f32 %v373_v0, 0.0 }
  0x36   : > { %v430_v43 = vpack.c.bf16 %v398_v36, %v398_v36  ;;  %v431_v44 = vpack.c.bf16 %v399_v37, %v399_v37  ;;  %v432_v46 = vpack.c.bf16 %v400_v39, %v400_v39  ;;  %v433_v47 = vpack.c.bf16 %v401_v40, %v401_v40 }
  0x37   : > { %v434_v2 = vpack.c.bf16 %v402_v41, %v402_v41  ;;  %v435_v49 = vpack.c.bf16 %v403_v42, %v403_v42  ;;  %v436_v50 = vpack.c.bf16 %v404_v45, %v404_v45  ;;  %v437_v51 = vpack.c.bf16 %v405_v48, %v405_v48 }
  0x38   : > { %463 = vst.msk [vmem:[%s803_s28 + $0x60] sm:$0xf] %vm438_vm0, %v430_v43 }
  0x39   : > { %464 = vst.msk [vmem:[%s803_s28 + $0x64] sm:$0xf] %vm438_vm0, %v431_v44 }
  0x3a   : > { %465 = vst.msk [vmem:[%s803_s28 + $0x68] sm:$0xf] %vm438_vm0, %v432_v46 }
  0x3b   : > { %466 = vst.msk [vmem:[%s803_s28 + $0x6c] sm:$0xf] %vm438_vm0, %v433_v47 }
  0x3c   : > { %467 = vst.msk [vmem:[%s803_s28 + $0x70] sm:$0xf] %vm438_vm0, %v434_v2 }
  0x3d   : > { %468 = vst.msk [vmem:[%s803_s28 + $0x74] sm:$0xf] %vm438_vm0, %v435_v49 }
  0x3e   : > { %469 = vst.msk [vmem:[%s803_s28 + $0x78] sm:$0xf] %vm438_vm0, %v436_v50 }
  0x3f   : > { %470 = vst.msk [vmem:[%s803_s28 + $0x7c] sm:$0xf] %vm438_vm0, %v437_v51 }
  0x40 PF: > { %s13_s14 = sadd.s32 1, %s716_s14   ;;  %s942_s12 = smov %s712_s13 }
  0x41   : > { %p10_p5 = scmp.ge.s32.totalorder %s13_s14, 4   ;;  %s943_s13 = smov %s945_s15 }
  0x43   :  { %12 = sbr.rel (!%p10_p5) target bundleno = 2 (0x2), region = 68 }

// kernel: generator_forward.47
= control target key start
LH: loop header
LB: loop body
LE: loop exit
PB: predicated region body
PF: predicated region fallthrough
CT: control target
= control target key end

     0   :  { %vm19_vm0 = vcmask 64512   ;;  %v357_v1 = vmov 0.0   ;;  %vm116_vm1 = vcmask 130048   ;;  %vm278_vm2 = vcmask 60416   ;;  %s530_s1 = inlined_call_operand.vmem [shape: bf16[16,8], index: 1, kind: input, shape index: {}]   ;;  %s531_s0 = inlined_call_operand.vmem [shape: bf16[128,16], index: 0, kind: input, shape index: {}]   ;;  %s532_s2 = inlined_call_operand.vmem [shape: f32[1,8], index: 2, kind: input, shape index: {}]   ;;  %s533_s3 = inlined_call_operand.vmem [shape: bf16[128,8], index: 3, kind: output, shape index: {}]  }
   0x1   :  { %v351_v0 = vld [vmem:[%s530_s1] sm:$0xff]  ;;  %20 = vst.msk [vmem:[#allocation2] sm:$0xff] %vm19_vm0, %v357_v1  ;;  %v345_v3 = vld [vmem:[%s531_s0 + $0x10] sm:$0xff]  ;;  %v344_v6 = vld [vmem:[%s531_s0 + $0x8] sm:$0xff] }
   0x2   :  { %v343_v2 = vld [vmem:[%s531_s0] sm:$0xff]  ;;  %21 = vst.msk [vmem:[#allocation2 + $0x8] sm:$0xff] %vm19_vm0, %v357_v1  ;;  %148 = vmatpush.bf16.msra.mxu0 %v351_v0  ;;  %352 = vmatpush.bf16.msra.mxu1 %v351_v0  ;;  %v349_v5 = vld [vmem:[%s531_s0 + $0x30] sm:$0xff]  ;;  %v346_v7 = vld [vmem:[%s531_s0 + $0x18] sm:$0xff] }
   0x3   :  { %v347_v4 = vld [vmem:[%s531_s0 + $0x20] sm:$0xff]  ;;  %22 = vst.msk [vmem:[#allocation2 + $0x10] sm:$0xff] %vm19_vm0, %v357_v1  ;;  %353 = vmatpush.bf16.msra.mxu2 %v351_v0  ;;  %354 = vmatpush.bf16.msra.mxu3 %v351_v0  ;;  %v348_v8 = vld [vmem:[%s531_s0 + $0x28] sm:$0xff]  ;;  %v350_v9 = vld [vmem:[%s531_s0 + $0x38] sm:$0xff] }
   0x4   :  { %23 = vst.msk [vmem:[#allocation2 + $0x18] sm:$0xff] %vm19_vm0, %v357_v1  ;;  %v434_v20 = vld [vmem:[%s532_s2] ss:$0 sm:$0xff] }
   0x5   :  { %24 = vst.msk [vmem:[#allocation2 + $0x20] sm:$0xff] %vm19_vm0, %v357_v1  ;;  %335 = vmatmul.msk.bf16.vlgmr.msra.gmra.mxu0 %vm116_vm1, %v343_v2  ;;  %337 = vmatmul.msk.bf16.vlgmr.msra.gmra.mxu1 %vm116_vm1, %v345_v3 }
   0x6   :  { %25 = vst.msk [vmem:[#allocation2 + $0x28] sm:$0xff] %vm19_vm0, %v357_v1  ;;  %339 = vmatmul.msk.bf16.vlgmr.msra.gmra.mxu2 %vm116_vm1, %v347_v4  ;;  %341 = vmatmul.msk.bf16.vlgmr.msra.gmra.mxu3 %vm116_vm1, %v349_v5 }
   0x7   :  { %26 = vst.msk [vmem:[#allocation2 + $0x30] sm:$0xff] %vm19_vm0, %v357_v1 }
   0x8   :  { %27 = vst.msk [vmem:[#allocation2 + $0x38] sm:$0xff] %vm19_vm0, %v357_v1  ;;  %v36_v10 = vld [vmem:[#allocation2] sm:$0xff] }
   0x9   :  { %28 = vst.msk [vmem:[#allocation2 + $0x40] sm:$0xff] %vm19_vm0, %v357_v1  ;;  %v37_v18 = vld [vmem:[#allocation2 + $0x8] sm:$0xff] }
   0xa   :  { %29 = vst.msk [vmem:[#allocation2 + $0x48] sm:$0xff] %vm19_vm0, %v357_v1  ;;  %v38_v37 = vld [vmem:[#allocation2 + $0x10] sm:$0xff] }
   0xb   :  { %30 = vst.msk [vmem:[#allocation2 + $0x50] sm:$0xff] %vm19_vm0, %v357_v1  ;;  %v39_v60 = vld [vmem:[#allocation2 + $0x18] sm:$0xff] }
   0xc   :  { %31 = vst.msk [vmem:[#allocation2 + $0x58] sm:$0xff] %vm19_vm0, %v357_v1  ;;  %v40_v11 = vld [vmem:[#allocation2 + $0x20] sm:$0xff] }
   0xd   :  { %32 = vst.msk [vmem:[#allocation2 + $0x60] sm:$0xff] %vm19_vm0, %v357_v1  ;;  %v41_v19 = vld [vmem:[#allocation2 + $0x28] sm:$0xff] }
   0xe   :  { %33 = vst.msk [vmem:[#allocation2 + $0x68] sm:$0xff] %vm19_vm0, %v357_v1  ;;  %v42_v38 = vld [vmem:[#allocation2 + $0x30] sm:$0xff] }
   0xf   :  { %34 = vst.msk [vmem:[#allocation2 + $0x70] sm:$0xff] %vm19_vm0, %v357_v1  ;;  %v43_v61 = vld [vmem:[#allocation2 + $0x38] sm:$0xff] }
  0x10   :  { %35 = vst.msk [vmem:[#allocation2 + $0x78] sm:$0xff] %vm19_vm0, %v357_v1  ;;  %v44_v16 = vld [vmem:[#allocation2 + $0x40] sm:$0xff] }
  0x11   :  { %v45_v34 = vld [vmem:[#allocation2 + $0x48] sm:$0xff] }
  0x12   :  { %v46_v57 = vld [vmem:[#allocation2 + $0x50] sm:$0xff] }
  0x14   :  { %v48_v17 = vld [vmem:[#allocation2 + $0x60] sm:$0xff] }
  0x15   :  { %336 = vmatmul.msk.bf16.gmra.mxu0 %vm116_vm1, %v344_v6  ;;  %338 = vmatmul.msk.bf16.gmra.mxu1 %vm116_vm1, %v346_v7  ;;  %v49_v35 = vld [vmem:[#allocation2 + $0x68] sm:$0xff] }
  0x16   :  { %340 = vmatmul.msk.bf16.gmra.mxu2 %vm116_vm1, %v348_v8  ;;  %342 = vmatmul.msk.bf16.gmra.mxu3 %vm116_vm1, %v350_v9  ;;  %v50_v58 = vld [vmem:[#allocation2 + $0x70] sm:$0xff] }
  0x82   :  { %v150_v12 = vpop.f32.mrf.mxu0  ;;  %v160_v13 = vpop.f32.mrf.mxu1 }
  0x83   :  { %v190_v14 = vadd.f32 %v150_v12, %v36_v10  ;;  %v194_v15 = vadd.f32 %v160_v13, %v40_v11 }
  0x85   :  { %207 = vst.msk [vmem:[#allocation2] sm:$0xff] %vm19_vm0, %v190_v14 }
  0x86   :  { %211 = vst.msk [vmem:[#allocation2 + $0x20] sm:$0xff] %vm19_vm0, %v194_v15 }
  0x89   :  { %v170_v21 = vpop.f32.mrf.mxu2  ;;  %v180_v22 = vpop.f32.mrf.mxu3 }
  0x8a   :  { %v198_v23 = vadd.f32 %v170_v21, %v44_v16  ;;  %v202_v24 = vadd.f32 %v180_v22, %v48_v17  ;;  %v152_v25 = vpop.f32.mrf.mxu0  ;;  %v162_v26 = vpop.f32.mrf.mxu1  ;;  %v47_v17 = vld [vmem:[#allocation2 + $0x58] sm:$0xff] }
  0x8b   :  { %v191_v27 = vadd.f32 %v152_v25, %v37_v18  ;;  %v195_v28 = vadd.f32 %v162_v26, %v41_v19  ;;  %v51_v18 = vld [vmem:[#allocation2 + $0x78] sm:$0xff] }
  0x8c   :  { %v226_v29 = vld [vmem:[#allocation2] sm:$0xff]  ;;  %215 = vst.msk [vmem:[#allocation2 + $0x40] sm:$0xff] %vm19_vm0, %v198_v23 }
  0x8d   :  { %v246_v30 = vadd.f32 %v434_v20, %v226_v29  ;;  %v230_v31 = vld [vmem:[#allocation2 + $0x20] sm:$0xff]  ;;  %219 = vst.msk [vmem:[#allocation2 + $0x60] sm:$0xff] %vm19_vm0, %v202_v24 }
  0x8e   :  { %v250_v32 = vadd.f32 %v434_v20, %v230_v31  ;;  %208 = vst.msk [vmem:[#allocation2 + $0x8] sm:$0xff] %vm19_vm0, %v191_v27 }
  0x8f   :  { %v262_v33 = vpack.c.bf16 %v246_v30, %v246_v30  ;;  %212 = vst.msk [vmem:[#allocation2 + $0x28] sm:$0xff] %vm19_vm0, %v195_v28 }
  0x90   :  { %v266_v36 = vpack.c.bf16 %v250_v32, %v250_v32 }
  0x91   :  { %279 = vst.msk [vmem:[%s533_s3] sm:$0xf] %vm278_vm2, %v262_v33  ;;  %v172_v39 = vpop.f32.mrf.mxu2  ;;  %v182_v40 = vpop.f32.mrf.mxu3 }
  0x92   :  { %283 = vst.msk [vmem:[%s533_s3 + $0x10] sm:$0xf] %vm278_vm2, %v266_v36  ;;  %v199_v41 = vadd.f32 %v172_v39, %v45_v34  ;;  %v203_v42 = vadd.f32 %v182_v40, %v49_v35  ;;  %v155_v43 = vpop.f32.mrf.mxu0  ;;  %v165_v44 = vpop.f32.mrf.mxu1 }
  0x93   :  { %v234_v45 = vld [vmem:[#allocation2 + $0x40] sm:$0xff]  ;;  %v192_v46 = vadd.f32 %v155_v43, %v38_v37  ;;  %v196_v47 = vadd.f32 %v165_v44, %v42_v38 }
  0x94   :  { %v254_v48 = vadd.f32 %v434_v20, %v234_v45  ;;  %v238_v49 = vld [vmem:[#allocation2 + $0x60] sm:$0xff]  ;;  %216 = vst.msk [vmem:[#allocation2 + $0x48] sm:$0xff] %vm19_vm0, %v199_v41 }
  0x95   :  { %v258_v50 = vadd.f32 %v434_v20, %v238_v49  ;;  %v227_v51 = vld [vmem:[#allocation2 + $0x8] sm:$0xff]  ;;  %220 = vst.msk [vmem:[#allocation2 + $0x68] sm:$0xff] %vm19_vm0, %v203_v42 }
  0x96   :  { %v270_v52 = vpack.c.bf16 %v254_v48, %v254_v48  ;;  %v247_v53 = vadd.f32 %v434_v20, %v227_v51  ;;  %v231_v54 = vld [vmem:[#allocation2 + $0x28] sm:$0xff]  ;;  %209 = vst.msk [vmem:[#allocation2 + $0x10] sm:$0xff] %vm19_vm0, %v192_v46 }
  0x97   :  { %v274_v55 = vpack.c.bf16 %v258_v50, %v258_v50  ;;  %v251_v56 = vadd.f32 %v434_v20, %v231_v54  ;;  %213 = vst.msk [vmem:[#allocation2 + $0x30] sm:$0xff] %vm19_vm0, %v196_v47 }
  0x98   :  { %287 = vst.msk [vmem:[%s533_s3 + $0x20] sm:$0xf] %vm278_vm2, %v270_v52  ;;  %v263_v59 = vpack.c.bf16 %v247_v53, %v247_v53 }
  0x99   :  { %291 = vst.msk [vmem:[%s533_s3 + $0x30] sm:$0xf] %vm278_vm2, %v274_v55  ;;  %v267_v62 = vpack.c.bf16 %v251_v56, %v251_v56  ;;  %v175_v63 = vpop.f32.mrf.mxu2  ;;  %v185_v0 = vpop.f32.mrf.mxu3 }
  0x9a   :  { %280 = vst.msk [vmem:[%s533_s3 + $0x4] sm:$0xf] %vm278_vm2, %v263_v59  ;;  %v200_v1 = vadd.f32 %v175_v63, %v46_v57  ;;  %v204_v2 = vadd.f32 %v185_v0, %v50_v58  ;;  %v157_v3 = vpop.f32.mrf.mxu0  ;;  %v167_v4 = vpop.f32.mrf.mxu1 }
  0x9b   :  { %284 = vst.msk [vmem:[%s533_s3 + $0x14] sm:$0xf] %vm278_vm2, %v267_v62  ;;  %v235_v5 = vld [vmem:[#allocation2 + $0x48] sm:$0xff]  ;;  %v193_v6 = vadd.f32 %v157_v3, %v39_v60  ;;  %v197_v7 = vadd.f32 %v167_v4, %v43_v61 }
  0x9c   :  { %v255_v8 = vadd.f32 %v434_v20, %v235_v5  ;;  %v239_v9 = vld [vmem:[#allocation2 + $0x68] sm:$0xff]  ;;  %217 = vst.msk [vmem:[#allocation2 + $0x50] sm:$0xff] %vm19_vm0, %v200_v1 }
  0x9d   :  { %v259_v10 = vadd.f32 %v434_v20, %v239_v9  ;;  %v228_v11 = vld [vmem:[#allocation2 + $0x10] sm:$0xff]  ;;  %221 = vst.msk [vmem:[#allocation2 + $0x70] sm:$0xff] %vm19_vm0, %v204_v2 }
  0x9e   :  { %v271_v12 = vpack.c.bf16 %v255_v8, %v255_v8  ;;  %v248_v13 = vadd.f32 %v434_v20, %v228_v11  ;;  %v232_v14 = vld [vmem:[#allocation2 + $0x30] sm:$0xff]  ;;  %210 = vst.msk [vmem:[#allocation2 + $0x18] sm:$0xff] %vm19_vm0, %v193_v6 }
  0x9f   :  { %v275_v15 = vpack.c.bf16 %v259_v10, %v259_v10  ;;  %v252_v16 = vadd.f32 %v434_v20, %v232_v14  ;;  %214 = vst.msk [vmem:[#allocation2 + $0x38] sm:$0xff] %vm19_vm0, %v197_v7 }
  0xa0   :  { %288 = vst.msk [vmem:[%s533_s3 + $0x24] sm:$0xf] %vm278_vm2, %v271_v12  ;;  %v264_v19 = vpack.c.bf16 %v248_v13, %v248_v13 }
  0xa1   :  { %292 = vst.msk [vmem:[%s533_s3 + $0x34] sm:$0xf] %vm278_vm2, %v275_v15  ;;  %v268_v21 = vpack.c.bf16 %v252_v16, %v252_v16  ;;  %v177_v22 = vpop.f32.mrf.mxu2  ;;  %v187_v23 = vpop.f32.mrf.mxu3 }
  0xa2   :  { %281 = vst.msk [vmem:[%s533_s3 + $0x8] sm:$0xf] %vm278_vm2, %v264_v19  ;;  %v201_v24 = vadd.f32 %v177_v22, %v47_v17  ;;  %v205_v25 = vadd.f32 %v187_v23, %v51_v18 }
  0xa3   :  { %285 = vst.msk [vmem:[%s533_s3 + $0x18] sm:$0xf] %vm278_vm2, %v268_v21  ;;  %v236_v26 = vld [vmem:[#allocation2 + $0x50] sm:$0xff] }
  0xa4   :  { %v256_v27 = vadd.f32 %v434_v20, %v236_v26  ;;  %v240_v28 = vld [vmem:[#allocation2 + $0x70] sm:$0xff]  ;;  %218 = vst.msk [vmem:[#allocation2 + $0x58] sm:$0xff] %vm19_vm0, %v201_v24 }
  0xa5   :  { %v260_v29 = vadd.f32 %v434_v20, %v240_v28  ;;  %v229_v30 = vld [vmem:[#allocation2 + $0x18] sm:$0xff]  ;;  %222 = vst.msk [vmem:[#allocation2 + $0x78] sm:$0xff] %vm19_vm0, %v205_v25 }
  0xa6   :  { %v272_v31 = vpack.c.bf16 %v256_v27, %v256_v27  ;;  %v249_v32 = vadd.f32 %v434_v20, %v229_v30  ;;  %v233_v33 = vld [vmem:[#allocation2 + $0x38] sm:$0xff] }
  0xa7   :  { %v276_v34 = vpack.c.bf16 %v260_v29, %v260_v29  ;;  %v253_v35 = vadd.f32 %v434_v20, %v233_v33 }
  0xa8   :  { %289 = vst.msk [vmem:[%s533_s3 + $0x28] sm:$0xf] %vm278_vm2, %v272_v31  ;;  %v265_v36 = vpack.c.bf16 %v249_v32, %v249_v32 }
  0xa9   :  { %293 = vst.msk [vmem:[%s533_s3 + $0x38] sm:$0xf] %vm278_vm2, %v276_v34  ;;  %v269_v37 = vpack.c.bf16 %v253_v35, %v253_v35 }
  0xaa   :  { %282 = vst.msk [vmem:[%s533_s3 + $0xc] sm:$0xf] %vm278_vm2, %v265_v36 }
  0xab   :  { %286 = vst.msk [vmem:[%s533_s3 + $0x1c] sm:$0xf] %vm278_vm2, %v269_v37  ;;  %v237_v38 = vld [vmem:[#allocation2 + $0x58] sm:$0xff] }
  0xac   :  { %v257_v39 = vadd.f32 %v434_v20, %v237_v38  ;;  %v241_v40 = vld [vmem:[#allocation2 + $0x78] sm:$0xff] }
  0xad   :  { %v261_v41 = vadd.f32 %v434_v20, %v241_v40 }
  0xae   :  { %v273_v42 = vpack.c.bf16 %v257_v39, %v257_v39 }
  0xaf   :  { %v277_v43 = vpack.c.bf16 %v261_v41, %v261_v41 }
  0xb0   :  { %290 = vst.msk [vmem:[%s533_s3 + $0x2c] sm:$0xf] %vm278_vm2, %v273_v42 }
  0xb1   :  { %294 = vst.msk [vmem:[%s533_s3 + $0x3c] sm:$0xf] %vm278_vm2, %v277_v43 }

// kernel: generator_forward.46
= control target key start
LH: loop header
LB: loop body
LE: loop exit
PB: predicated region body
PF: predicated region fallthrough
CT: control target
= control target key end

     0   :  { %s1862_s12 = smov 0   ;;  %s1864_s13 = smov 0   ;;  %s2475_s0 = inlined_call_operand.vmem [shape: bf16[2,328,8], index: 0, kind: input, shape index: {}]   ;;  %s2476_s1 = inlined_call_operand.vmem [shape: bf16[9,8,8], index: 1, kind: input, shape index: {}]   ;;  %s2477_s2 = inlined_call_operand.vmem [shape: f32[1,8], index: 2, kind: input, shape index: {}]   ;;  %s2478_s3 = inlined_call_operand.vmem [shape: bf16[2,288,8], index: 3, kind: output, shape index: {}]  }
   0x1   :  { %s1866_s14 = smov 0   ;;  %s1868_s15 = smov 0  }
   0x2   :  { %s1870_s16 = smov 0  }
   0x3 LB: > { %s28_s17 = sadd.s32 1, %s1832_s14  ;;  %s32_s18 = sadd.s32 1, %s1836_s15  ;;  %s1840_s16 = sphi %s1870_s16, %s13_s16   ;;  %s1836_s15 = sphi %s1868_s15, %s2482_s15   ;;  %s1832_s14 = sphi %s1866_s14, %s2481_s14   ;;  %s1828_s13 = sphi %s1864_s13, %s2480_s13   ;;  %s1824_s12 = sphi %s1862_s12, %s2479_s12  }
   0x4   : > { %p30_p0 = scmp.ge.s32.totalorder %s28_s17, 2  ;;  %p1606_p1 = scmp.ge.s32.totalorder %s1840_s16, 1 }
   0x5   : > { %p177_p2 = scmp.lt.s32.totalorder %s1840_s16, 5 }
   0x6   : > { %s2484_s17 = smov (%p30_p0, %s28_s17), 0  ;;  %s2486_s18 = smov (!%p30_p0, %s32_s18), %s1836_s15 }
   0x7   : > { %p178_p3 = pnand %p1606_p1, %p177_p2  ;;  %p34_p4 = scmp.ge.s32.totalorder %s2486_s18, 2 }
   0x8   : > { %p215_p5 = scmp.lt.s32.totalorder (!%p178_p3), %s1828_s13, 1  ;;  %s241_s21 = smul.u32 (!%p178_p3), 144, %s1824_s12 }
   0x9   : > { %s2488_s18 = smov (%p34_p4, %s2486_s18), 0  ;;  %181 = sbr.rel (%p178_p3) target bundleno = 500 (0x1f4), region = 32 }
   0xa   : > { %s242_s28 = sshra.s32 (!%p178_p3), %s241_s21, 3  ;;  %s227_s25 = smul.u32 (!%p178_p3), 18, %s1824_s12 }
   0xb   : > { %s1609_s30 = sshll.u32 (!%p178_p3), %s242_s28, 2 }
   0xc   : > { %p230_p6 = scmp.lt.s32.totalorder (!%p178_p3), %s227_s25, 35 }
   0xe   : > { %v1646_v0 = vld [vmem:[%s2476_s1 + $0x4] sm:$0xf]  ;;  %vm410_vm0 = vcmask 1043456   ;;  %v1665_v2 = vld [vmem:[%s2476_s1 + $0x8] sm:$0xf]  ;;  %s2490_s13 = smov (!%p215_p5, %s1828_s13), 1 }
   0xf   : > { %v412_v1 = vsel %vm410_vm0, %v1646_v0, 0  ;;  %v603_v3 = vsel %vm410_vm0, %v1665_v2, 0  ;;  %v301_v4 = vld [vmem:[%s2476_s1] sm:$0xf]  ;;  %v1675_v5 = vld [vmem:[%s2476_s1 + $0xc] sm:$0xf] }
  0x10   : > { %1756 = vmatpush.bf16.msra.mxu1 %v412_v1  ;;  %1757 = vmatpush.bf16.msra.mxu2 %v412_v1  ;;  %v487_v6 = vsel %vm410_vm0, %v301_v4, 0  ;;  %v694_v7 = vsel %vm410_vm0, %v1675_v5, 0  ;;  %s1759_s29 = smul.u32 164, %s2490_s13  ;;  %vm305_vm1 = vsmask.f32 7424  ;;  %vm382_vm2 = vcmask 64512  }
  0x11   : > { %1758 = vmatpush.bf16.msra.mxu3 %v412_v1  ;;  %421 = vmatpush.bf16.msra.mxu0 %v412_v1  ;;  %v1685_v41 = vld [vmem:[%s2476_s1 + $0x10] sm:$0xf]  ;;  %v1715_v4 = vld [vmem:[%s2476_s1 + $0x1c] sm:$0xf]  ;;  %vm770_vm3 = vsmask.f32 6400 }
  0x12   : > { %s219_s6 = scalar_lea.vmem %s2475_s0, %s1759_s29  ;;  %v848_v47 = vsel %vm410_vm0, %v1685_v41, 0  ;;  %vm555_vm4 = vcmask 1046528   ;;  %vm1293_vm5 = vcmask 1044480   ;;  %vm1139_vm6 = vsmask.f32 5376  ;;  %s1760_s26 = smul.u32 36, %s2490_s13 }
  0x13   : > { %s1917_s7 = scalar_lea.vmem %s219_s6, %s1609_s30  ;;  %vm924_vm7 = vcmask 1045504   ;;  %s2492_s25 = smov (!%p230_p6, %s227_s25), 35  ;;  %vm1455_vm8 = vcmask 60416  }
  0x14   : > { %612 = vmatpush.bf16.msrb.mxu2 %v603_v3  ;;  %496 = vmatpush.bf16.msrb.mxu1 %v487_v6  ;;  %v1920_v8 = vld [vmem:[%s1917_s7 + $0x8] sm:$0xff]  ;;  %v1923_v9 = vld [vmem:[%s1917_s7 + $0x10] sm:$0xff]  ;;  %v1926_v10 = vld [vmem:[%s1917_s7 + $0x20] sm:$0xff]  ;;  %v1217_v6 = vsel %vm410_vm0, %v1715_v4, 0  ;;  %s236_s12 = sadd.s32 %s1760_s26, %s2492_s25 }
  0x15   : > { %703 = vmatpush.bf16.msrb.mxu3 %v694_v7  ;;  %v1929_v11 = vld [vmem:[%s1917_s7 + $0x28] sm:$0xff]  ;;  %v1932_v12 = vld [vmem:[%s1917_s7 + $0x38] sm:$0xff]  ;;  %v1935_v13 = vld [vmem:[%s1917_s7 + $0x40] sm:$0xff]  ;;  %v314_v14 = vshll.u32 %v1920_v8, 16  ;;  %v318_v15 = vshrl.u32 %v1920_v8, 16  ;;  %v1940_v16 = vshll.u32 %v1923_v9, 16  ;;  %857 = vmatpush.bf16.msrb.mxu0 %v848_v47 }
  0x16   : > { %v1943_v17 = vshll.u32 %v1926_v10, 16  ;;  %v1946_v18 = vshrl.u32 %v1926_v10, 16  ;;  %v1949_v19 = vshll.u32 %v1929_v11, 16  ;;  %v1952_v20 = vshll.u32 %v1932_v12, 16  ;;  %v1965_v28 = vld [vmem:[%s1917_s7 + $0x48] sm:$0xff]   ;;  %v1975_v33 = vld [vmem:[%s1917_s7] sm:$0xff] }
  0x17   : > { %v1955_v21 = vshrl.u32 %v1932_v12, 16  ;;  %v316_v22 = vrot.slane %v314_v14, 1  ;;  %v324_v23 = vrot.slane %v1940_v16, 1  ;;  %v1960_v25 = vshll.u32 %v1935_v13, 16  ;;  %v1984_v38 = vld [vmem:[%s1917_s7 + $0x18] sm:$0xff]  ;;  %v1988_v39 = vld [vmem:[%s1917_s7 + $0x30] sm:$0xff] }
  0x18   : > { %v340_v24 = vrot.slane %v1943_v17, 1  ;;  %v348_v26 = vrot.slane %v1949_v19, 1  ;;  %v364_v27 = vrot.slane %v1952_v20, 1  ;;  %v1748_v36 = vunpack.c.l.bf16 %v1965_v28  ;;  %v1705_v3 = vld [vmem:[%s2476_s1 + $0x18] sm:$0xf]  ;;  %s1608_s29 = sshll.u32 %s236_s12, 2 }
  0x19   : > { %v320_v29 = vor.u32 %v318_v15, %v316_v22  ;;  %v372_v31 = vrot.slane %v1960_v25, 1  ;;  %v307_v42 = vshrl.u32 %v1975_v33, 16  ;;  %v309_v43 = vshll.u32 %v1975_v33, 16  ;;  %v1695_v7 = vld [vmem:[%s2476_s1 + $0x14] sm:$0xf]  ;;  %s2389_s4 = scalar_lea.vmem %s2478_s3, %s1608_s29 }
  0x1a   : > { %v344_v30 = vor.u32 %v1946_v18, %v340_v24  ;;  %v368_v32 = vor.u32 %v1955_v21, %v364_v27  ;;  %v1990_v40 = vpack.c.bf16 %v1748_v36, %v1748_v36  ;;  %v1998_v44 = vshrl.u32 %v1923_v9, 16 }
  0x1b   : > { %v325_v34 = vsel %vm305_vm1, %v320_v29, %v324_v23  ;;  %v2001_v45 = vshll.u32 %v1984_v38, 16  ;;  %v311_v46 = vrot.slane %v309_v43, 1  ;;  %v2005_v48 = vshrl.u32 %v1929_v11, 16 }
  0x1c   : > { %v349_v35 = vsel %vm305_vm1, %v344_v30, %v348_v26  ;;  %1648 = vmatmul.msk.bf16.vlgmr.msra.gmra.mxu1 %vm382_vm2, %v325_v34  ;;  %v373_v37 = vsel %vm305_vm1, %v368_v32, %v372_v31  ;;  %v2008_v49 = vshll.u32 %v1988_v39, 16  ;;  %v2011_v50 = vshrl.u32 %v1935_v13, 16 }
  0x1d   : > { %1651 = vmatmul.msk.bf16.vlgmr.msra.gmra.mxu2 %vm382_vm2, %v349_v35  ;;  %1654 = vmatmul.msk.bf16.vlgmr.msra.gmra.mxu3 %vm382_vm2, %v373_v37  ;;  %v378_v51 = vshll.u32 %v1990_v40, 16  ;;  %v312_v52 = vor.u32 %v311_v46, %v307_v42  ;;  %v328_v53 = vor.u32 %v1998_v44, %v324_v23  ;;  %v332_v54 = vrot.slane %v2001_v45, 1  ;;  %v1725_v23 = vld [vmem:[%s2476_s1 + $0x20] sm:$0xf] }
  0x1e   : > { %v352_v56 = vor.u32 %v2005_v48, %v348_v26  ;;  %v356_v57 = vrot.slane %v2008_v49, 1  ;;  %v376_v58 = vor.u32 %v2011_v50, %v372_v31  ;;  %v771_v63 = vrot.slane %v318_v15, 1  ;;  %1226 = vmatpush.bf16.msra.mxu3 %v1217_v6 }
  0x1f   : > { %v317_v55 = vsel %vm305_vm1, %v312_v52, %v316_v22  ;;  %v380_v59 = vrot.slane %v378_v51, 1  ;;  %v333_v60 = vsel %vm305_vm1, %v328_v53, %v332_v54  ;;  %v772_v0 = vrot.slane %v314_v14, 2 }
  0x20   : > { %1647 = vmatmul.msk.bf16.vlgmr.msra.gmra.mxu0 %vm382_vm2, %v317_v55  ;;  %v357_v61 = vsel %vm305_vm1, %v352_v56, %v356_v57  ;;  %v774_v1 = vrot.slane %v1998_v44, 1  ;;  %v775_v2 = vrot.slane %v1940_v16, 2  ;;  %v1063_v5 = vsel %vm410_vm0, %v1705_v3, 0 }
  0x21   : > { %v381_v62 = vsel %vm305_vm1, %v376_v58, %v380_v59  ;;  %1072 = vmatpush.bf16.msra.mxu2 %v1063_v5  ;;  %v773_v14 = vor.u32 %v772_v0, %v771_v63  ;;  %v972_v22 = vsel %vm410_vm0, %v1695_v7, 0  ;;  %v1341_v26 = vsel %vm410_vm0, %v1725_v23, 0 }
  0x22   : > { %v776_v15 = vor.u32 %v775_v2, %v774_v1  ;;  %981 = vmatpush.bf16.msra.mxu1 %v972_v22  ;;  %1350 = vmatpush.bf16.msra.mxu0 %v1341_v26  ;;  %v2046_v29 = vshrl.u32 %v1984_v38, 16  ;;  %v2049_v30 = vshrl.u32 %v1988_v39, 16  ;;  %v557_v35 = vrot.slane %v1920_v8, 1 }
  0x23   : > { %v559_v36 = vrot.slane %v1923_v9, 1  ;;  %v779_v46 = vrot.slane %v2001_v45, 2  ;;  %v783_v55 = vrot.slane %v1943_v17, 2  ;;  %v563_v58 = vrot.slane %v1926_v10, 1 }
  0x24   : > { %v777_v31 = vsel %vm770_vm3, %v773_v14, %v776_v15  ;;  %v336_v32 = vor.u32 %v2046_v29, %v332_v54  ;;  %v360_v34 = vor.u32 %v2049_v30, %v356_v57  ;;  %v778_v43 = vrot.slane %v2046_v29, 1 }
  0x25   : > { %v560_v42 = vsel %vm555_vm4, %v557_v35, %v559_v36  ;;  %v782_v54 = vrot.slane %v1946_v18, 1  ;;  %v565_v63 = vrot.slane %v1929_v11, 1  ;;  %v790_v1 = vrot.slane %v2049_v30, 1 }
  0x26   : > { %v341_v37 = vsel %vm305_vm1, %v336_v32, %v340_v24  ;;  %v365_v41 = vsel %vm305_vm1, %v360_v34, %v364_v27  ;;  %v780_v47 = vor.u32 %v779_v46, %v778_v43  ;;  %v556_v24 = vrot.slane %v1975_v33, 1 }
  0x27   : > { %v561_v27 = vrot.slane %v1984_v38, 1  ;;  %v784_v56 = vor.u32 %v783_v55, %v782_v54  ;;  %v566_v0 = vsel %vm555_vm4, %v563_v58, %v565_v63  ;;  %v791_v2 = vrot.slane %v2008_v49, 2 }
  0x28   : > { %v781_v51 = vsel %vm770_vm3, %v776_v15, %v780_v47  ;;  %v558_v52 = vsel %vm555_vm4, %v556_v24, %v557_v35  ;;  %v567_v5 = vrot.slane %v1988_v39, 1  ;;  %v794_v7 = vrot.slane %v1955_v21, 1  ;;  %v2141_v24 = vld [vmem:[%s1917_s7 + $0x50] sm:$0xff]  }
  0x29   : > { %v562_v53 = vsel %vm555_vm4, %v559_v36, %v561_v27  ;;  %v785_v57 = vsel %vm770_vm3, %v780_v47, %v784_v56  ;;  %v564_v59 = vsel %vm555_vm4, %v561_v27, %v563_v58  ;;  %v792_v3 = vor.u32 %v791_v2, %v790_v1 }
  0x2a   : > { %v568_v6 = vsel %vm555_vm4, %v565_v63, %v567_v5  ;;  %v795_v14 = vrot.slane %v1952_v20, 2  ;;  %v569_v23 = vrot.slane %v1932_v12, 1  ;;  %v799_v32 = vrot.slane %v1960_v25, 2 }
  0x2b   : > { %v2124_v36 = vrot.slane %v1935_v13, 1  ;;  %v1752_v54 = vunpack.c.l.bf16 %v2141_v24  ;;  %v683_v58 = vrot.slane %v1965_v28, 1 }
  0x2c   : > { %1649 = vmatmul.msk.bf16.gmra.mxu1 %vm382_vm2, %v333_v60  ;;  %v786_v60 = vrot.slane %v2005_v48, 1  ;;  %v796_v15 = vor.u32 %v795_v14, %v794_v7  ;;  %v570_v26 = vsel %vm555_vm4, %v567_v5, %v569_v23 }
  0x2d   : > { %1652 = vmatmul.msk.bf16.gmra.mxu2 %vm382_vm2, %v357_v61  ;;  %1655 = vmatmul.msk.bf16.gmra.mxu3 %vm382_vm2, %v381_v62  ;;  %v787_v61 = vrot.slane %v1949_v19, 2  ;;  %v572_v43 = vsel %vm555_vm4, %v569_v23, %v2124_v36  ;;  %v684_v63 = vsel %vm555_vm4, %v2124_v36, %v683_v58 }
  0x2e   : > { %v797_v22 = vsel %vm770_vm3, %v792_v3, %v796_v15 }
  0x30   : > { %1686 = vmatmul.msk.bf16.vlgmr.msrb.gmra.mxu0 %vm382_vm2, %v777_v31  ;;  %v798_v31 = vrot.slane %v2011_v50, 1 }
  0x32   : > { %v800_v34 = vor.u32 %v799_v32, %v798_v31 }
  0x34   : > { %v801_v35 = vsel %vm770_vm3, %v796_v15, %v800_v34 }
  0x3c   : > { %1650 = vmatmul.msk.bf16.gmra.mxu1 %vm382_vm2, %v341_v37  ;;  %v803_v37 = vshrl.u32 %v1965_v28, 16 }
  0x3d   : > { %1653 = vmatmul.msk.bf16.gmra.mxu2 %vm382_vm2, %v365_v41  ;;  %1676 = vmatmul.msk.bf16.vlgmr.msrb.gmra.mxu3 %vm382_vm2, %v560_v42  ;;  %v806_v41 = vshll.u32 %v1965_v28, 16 }
  0x3e   : > { %v805_v46 = vrot.slane %v803_v37, 1 }
  0x3f   : > { %v808_v47 = vrot.slane %v806_v41, 2 }
  0x40   : > { %1687 = vmatmul.msk.bf16.gmra.mxu0 %vm382_vm2, %v781_v51 }
  0x41   : > { %v809_v51 = vor.u32 %v808_v47, %v805_v46 }
  0x4c   : > { %1656 = vmatmul.msk.bf16.vlgmr.msrb.gmra.mxu1 %vm382_vm2, %v1975_v33  ;;  %v788_v33 = vor.u32 %v787_v61, %v786_v60 }
  0x4d   : > { %1666 = vmatmul.msk.bf16.vlgmr.msrb.gmra.mxu2 %vm382_vm2, %v558_v52  ;;  %1677 = vmatmul.msk.bf16.gmra.mxu3 %vm382_vm2, %v562_v53 }
  0x4e   : > { %v789_v62 = vsel %vm770_vm3, %v784_v56, %v788_v33  ;;  %v793_v4 = vsel %vm770_vm3, %v788_v33, %v792_v3  ;;  %v810_v56 = vsel %vm770_vm3, %v800_v34, %v809_v51  ;;  %v1294_v34 = vrot.slane %v1923_v9, 3 }
  0x50   : > { %1688 = vmatmul.msk.bf16.gmra.mxu0 %vm382_vm2, %v785_v57  ;;  %v2152_v57 = vpack.c.bf16 %v1752_v54, %v1752_v54  ;;  %v1140_v54 = vrot.slane %v1998_v44, 2 }
  0x52   : > { %v812_v60 = vshrl.u32 %v2152_v57, 16  ;;  %v815_v61 = vshll.u32 %v2152_v57, 16  ;;  %v685_v15 = vrot.slane %v2152_v57, 1 }
  0x54   : > { %v814_v1 = vrot.slane %v812_v60, 1  ;;  %v817_v2 = vrot.slane %v815_v61, 2  ;;  %v686_v31 = vsel %vm555_vm4, %v683_v58, %v685_v15  ;;  %v1143_v58 = vrot.slane %v2046_v29, 2 }
  0x56   : > { %v818_v3 = vor.u32 %v817_v2, %v814_v1 }
  0x58   : > { %v819_v14 = vsel %vm770_vm3, %v809_v51, %v818_v3 }
  0x5c   : > { %1657 = vmatmul.msk.bf16.gmra.mxu1 %vm382_vm2, %v1920_v8 }
  0x5d   : > { %1667 = vmatmul.msk.bf16.gmra.mxu2 %vm382_vm2, %v560_v42  ;;  %1678 = vmatmul.msk.bf16.gmra.mxu3 %vm382_vm2, %v564_v59 }
  0x60   : > { %1689 = vmatmul.msk.bf16.gmra.mxu0 %vm382_vm2, %v789_v62 }
  0x6c   : > { %1658 = vmatmul.msk.bf16.gmra.mxu1 %vm382_vm2, %v1923_v9 }
  0x6d   : > { %1668 = vmatmul.msk.bf16.gmra.mxu2 %vm382_vm2, %v562_v53  ;;  %1679 = vmatmul.msk.bf16.gmra.mxu3 %vm382_vm2, %v566_v0 }
  0x70   : > { %1690 = vmatmul.msk.bf16.gmra.mxu0 %vm382_vm2, %v793_v4 }
  0x7c   : > { %1659 = vmatmul.msk.bf16.gmra.mxu1 %vm382_vm2, %v1984_v38 }
  0x7d   : > { %1669 = vmatmul.msk.bf16.gmra.mxu2 %vm382_vm2, %v564_v59  ;;  %1680 = vmatmul.msk.bf16.gmra.mxu3 %vm382_vm2, %v568_v6 }
  0x80   : > { %1691 = vmatmul.msk.bf16.gmra.mxu0 %vm382_vm2, %v797_v22 }
  0x8c   : > { %1660 = vmatmul.msk.bf16.gmra.mxu1 %vm382_vm2, %v1926_v10 }
  0x8d   : > { %1670 = vmatmul.msk.bf16.gmra.mxu2 %vm382_vm2, %v566_v0  ;;  %1681 = vmatmul.msk.bf16.gmra.mxu3 %vm382_vm2, %v570_v26 }
  0x90   : > { %1692 = vmatmul.msk.bf16.gmra.mxu0 %vm382_vm2, %v801_v35  ;;  %v1295_v35 = vrot.slane %v1984_v38, 3 }
  0x92   : > { %v1296_v61 = vsel %vm1293_vm5, %v1294_v34, %v1295_v35 }
  0x99   : > { %v2128_v42 = vpop.f32.mrf.mxu1 }
  0x9c   : > { %1661 = vmatmul.msk.bf16.gmra.mxu1 %vm382_vm2, %v1929_v11 }
  0x9d   : > { %1671 = vmatmul.msk.bf16.gmra.mxu2 %vm382_vm2, %v568_v6  ;;  %1682 = vmatmul.msk.bf16.gmra.mxu3 %vm382_vm2, %v572_v43  ;;  %v423_v55 = vpop.f32.mrf.mxu0 }
  0xa0   : > { %v2143_v27 = vpop.f32.mrf.mxu2  ;;  %v2145_v52 = vpop.f32.mrf.mxu3  ;;  %1693 = vmatmul.msk.bf16.gmra.mxu0 %vm382_vm2, %v810_v56  ;;  %v1141_v56 = vrot.slane %v1940_v16, 3 }
  0xa1   : > { %v2147_v53 = vpop.f32.mrf.mxu1 }
  0xa2   : > { %v1142_v1 = vor.u32 %v1141_v56, %v1140_v54 }
  0xa5   : > { %v425_v0 = vpop.f32.mrf.mxu0 }
  0xa8   : > { %v2155_v59 = vpop.f32.mrf.mxu2  ;;  %v2159_v33 = vpop.f32.mrf.mxu3 }
  0xa9   : > { %v2161_v62 = vpop.f32.mrf.mxu1 }
  0xac   : > { %1662 = vmatmul.msk.bf16.gmra.mxu1 %vm382_vm2, %v1988_v39 }
  0xad   : > { %1672 = vmatmul.msk.bf16.gmra.mxu2 %vm382_vm2, %v570_v26  ;;  %1683 = vmatmul.msk.bf16.gmra.mxu3 %vm382_vm2, %v684_v63  ;;  %v859_v7 = vpop.f32.mrf.mxu0  ;;  %v573_v63 = vrot.slane %v1990_v40, 1  ;;  %v1297_v40 = vrot.slane %v1926_v10, 3 }
  0xaf   : > { %v574_v16 = vsel %vm555_vm4, %v2124_v36, %v573_v63  ;;  %v1298_v63 = vsel %vm1293_vm5, %v1295_v35, %v1297_v40 }
  0xb0   : > { %v2169_v4 = vpop.f32.mrf.mxu2  ;;  %v2171_v5 = vpop.f32.mrf.mxu3  ;;  %1694 = vmatmul.msk.bf16.gmra.mxu0 %vm382_vm2, %v819_v14 }
  0xb1   : > { %v2173_v6 = vpop.f32.mrf.mxu1 }
  0xb5   : > { %v861_v32 = vpop.f32.mrf.mxu0 }
  0xb8   : > { %v2178_v22 = vpop.f32.mrf.mxu2  ;;  %v2180_v23 = vpop.f32.mrf.mxu3 }
  0xb9   : > { %v2182_v26 = vpop.f32.mrf.mxu1 }
  0xbc   : > { %1663 = vmatmul.msk.bf16.gmra.mxu1 %vm382_vm2, %v1932_v12 }
  0xbd   : > { %1673 = vmatmul.msk.bf16.gmra.mxu2 %vm382_vm2, %v572_v43  ;;  %1684 = vmatmul.msk.bf16.gmra.mxu3 %vm382_vm2, %v686_v31  ;;  %v1144_v43 = vrot.slane %v2001_v45, 3  ;;  %v864_v60 = vpop.f32.mrf.mxu0 }
  0xbf   : > { %v1145_v2 = vor.u32 %v1144_v43, %v1143_v58  ;;  %v1147_v58 = vrot.slane %v1946_v18, 2  ;;  %v1148_v43 = vrot.slane %v1943_v17, 3 }
  0xc0   : > { %v2191_v46 = vpop.f32.mrf.mxu2  ;;  %v705_v47 = vpop.f32.mrf.mxu3  ;;  %1726 = vmatmul.msk.bf16.vlgmr.msra.gmra.mxu0 %vm382_vm2, %v1296_v61 }
  0xc1   : > { %v2193_v51 = vpop.f32.mrf.mxu1  ;;  %v1146_v45 = vsel %vm1139_vm6, %v1142_v1, %v1145_v2  ;;  %v1149_v18 = vor.u32 %v1148_v43, %v1147_v58 }
  0xc5   : > { %v866_v15 = vpop.f32.mrf.mxu0 }
  0xc8   : > { %v2202_v3 = vpop.f32.mrf.mxu2  ;;  %v707_v14 = vpop.f32.mrf.mxu3 }
  0xc9   : > { %v498_v44 = vpop.f32.mrf.mxu1 }
  0xca   : > { %v499_v29 = vadd.f32 %v498_v44, %v423_v55  ;;  %v925_v44 = vrot.slane %v1920_v8, 2  ;;  %v1150_v8 = vsel %vm1139_vm6, %v1145_v2, %v1149_v18 }
  0xcc   : > { %1664 = vmatmul.msk.bf16.gmra.mxu1 %vm382_vm2, %v1935_v13 }
  0xcd   : > { %1674 = vmatmul.msk.bf16.gmra.mxu2 %vm382_vm2, %v574_v16  ;;  %1716 = vmatmul.msk.bf16.vlgmr.msra.gmra.mxu3 %vm382_vm2, %v1146_v45  ;;  %v2214_v61 = vpop.f32.mrf.mxu0  ;;  %v926_v16 = vrot.slane %v1923_v9, 2 }
  0xd0   : > { %v614_v31 = vpop.f32.mrf.mxu2  ;;  %v710_v54 = vpop.f32.mrf.mxu3  ;;  %1727 = vmatmul.msk.bf16.gmra.mxu0 %vm382_vm2, %v1298_v63  ;;  %v1152_v63 = vrot.slane %v1949_v19, 3 }
  0xd1   : > { %v659_v34 = vadd.f32 %v614_v31, %v499_v29  ;;  %v500_v56 = vpop.f32.mrf.mxu1  ;;  %v928_v29 = vrot.slane %v1984_v38, 2  ;;  %v927_v31 = vsel %vm924_vm7, %v925_v44, %v926_v16 }
  0xd2   : > { %v501_v55 = vadd.f32 %v500_v56, %v425_v0  ;;  %v1299_v56 = vrot.slane %v1929_v11, 3 }
  0xd3   : > { %v750_v36 = vadd.f32 %v705_v47, %v659_v34  ;;  %v929_v35 = vsel %vm924_vm7, %v926_v16, %v928_v29 }
  0xd4   : > { %v1300_v16 = vsel %vm1293_vm5, %v1297_v40, %v1299_v56 }
  0xd5   : > { %v2217_v1 = vadd.f32 %v859_v7, %v750_v36  ;;  %v871_v9 = vpop.f32.mrf.mxu0 }
  0xd8   : > { %v616_v47 = vpop.f32.mrf.mxu2  ;;  %v712_v45 = vpop.f32.mrf.mxu3 }
  0xd9   : > { %v660_v0 = vadd.f32 %v616_v47, %v501_v55  ;;  %v503_v17 = vpop.f32.mrf.mxu1  ;;  %v930_v47 = vrot.slane %v1926_v10, 2 }
  0xda   : > { %v504_v34 = vadd.f32 %v503_v17, %v2128_v42 }
  0xdb   : > { %v751_v7 = vadd.f32 %v707_v14, %v660_v0  ;;  %v1151_v14 = vrot.slane %v2005_v48, 2  ;;  %v931_v48 = vsel %vm924_vm7, %v928_v29, %v930_v47 }
  0xdc   : > { %1696 = vmatmul.msk.bf16.vlgmr.msra.gmra.mxu1 %vm382_vm2, %v927_v31 }
  0xdd   : > { %1706 = vmatmul.msk.bf16.vlgmr.msra.gmra.mxu2 %vm382_vm2, %v929_v35  ;;  %v2229_v38 = vadd.f32 %v861_v32, %v751_v7  ;;  %1717 = vmatmul.msk.bf16.gmra.mxu3 %vm382_vm2, %v1150_v8  ;;  %v874_v44 = vpop.f32.mrf.mxu0  ;;  %v1153_v0 = vor.u32 %v1152_v63, %v1151_v14 }
  0xdf   : > { %v1154_v19 = vsel %vm1139_vm6, %v1149_v18, %v1153_v0 }
  0xe0   : > { %v619_v58 = vpop.f32.mrf.mxu2  ;;  %v715_v55 = vpop.f32.mrf.mxu3  ;;  %1728 = vmatmul.msk.bf16.gmra.mxu0 %vm382_vm2, %v1300_v16 }
  0xe1   : > { %v661_v36 = vadd.f32 %v619_v58, %v504_v34  ;;  %v505_v43 = vpop.f32.mrf.mxu1 }
  0xe2   : > { %v506_v2 = vadd.f32 %v505_v43, %v2147_v53  ;;  %v1156_v43 = vrot.slane %v2008_v49, 3 }
  0xe3   : > { %v752_v42 = vadd.f32 %v710_v54, %v661_v36 }
  0xe5   : > { %v2237_v32 = vadd.f32 %v864_v60, %v752_v42  ;;  %v876_v8 = vpop.f32.mrf.mxu0  ;;  %v1301_v60 = vrot.slane %v1988_v39, 3  ;;  %v932_v42 = vrot.slane %v1929_v11, 2 }
  0xe7   : > { %v1302_v14 = vsel %vm1293_vm5, %v1299_v56, %v1301_v60 }
  0xe8   : > { %v621_v17 = vpop.f32.mrf.mxu2  ;;  %v717_v7 = vpop.f32.mrf.mxu3 }
  0xe9   : > { %v662_v31 = vadd.f32 %v621_v17, %v506_v2  ;;  %v508_v34 = vpop.f32.mrf.mxu1 }
  0xea   : > { %v509_v53 = vadd.f32 %v508_v34, %v2161_v62 }
  0xeb   : > { %v753_v54 = vadd.f32 %v712_v45, %v662_v31  ;;  %v1155_v45 = vrot.slane %v2049_v30, 2 }
  0xec   : > { %1697 = vmatmul.msk.bf16.gmra.mxu1 %vm382_vm2, %v929_v35 }
  0xed   : > { %1707 = vmatmul.msk.bf16.gmra.mxu2 %vm382_vm2, %v931_v48  ;;  %v2246_v10 = vadd.f32 %v866_v15, %v753_v54  ;;  %1718 = vmatmul.msk.bf16.gmra.mxu3 %vm382_vm2, %v1154_v19  ;;  %v879_v35 = vpop.f32.mrf.mxu0  ;;  %v1157_v2 = vor.u32 %v1156_v43, %v1155_v45  ;;  %v1160_v19 = vrot.slane %v1952_v20, 3 }
  0xef   : > { %v1158_v31 = vsel %vm1139_vm6, %v1153_v0, %v1157_v2 }
  0xf0   : > { %v624_v40 = vpop.f32.mrf.mxu2  ;;  %v720_v36 = vpop.f32.mrf.mxu3  ;;  %1729 = vmatmul.msk.bf16.gmra.mxu0 %vm382_vm2, %v1302_v14 }
  0xf1   : > { %v663_v58 = vadd.f32 %v624_v40, %v509_v53  ;;  %v510_v29 = vpop.f32.mrf.mxu1 }
  0xf2   : > { %v511_v18 = vadd.f32 %v510_v29, %v2173_v6 }
  0xf3   : > { %v754_v62 = vadd.f32 %v715_v55, %v663_v58  ;;  %v933_v55 = vsel %vm924_vm7, %v930_v47, %v932_v42  ;;  %v934_v58 = vrot.slane %v1988_v39, 2 }
  0xf5   : > { %v2255_v15 = vadd.f32 %v2214_v61, %v754_v62  ;;  %v881_v56 = vpop.f32.mrf.mxu0  ;;  %v1303_v61 = vrot.slane %v1932_v12, 3 }
  0xf7   : > { %v1304_v40 = vsel %vm1293_vm5, %v1301_v60, %v1303_v61  ;;  %v1305_v60 = vrot.slane %v1935_v13, 3 }
  0xf8   : > { %v626_v63 = vpop.f32.mrf.mxu2  ;;  %v722_v17 = vpop.f32.mrf.mxu3 }
  0xf9   : > { %v664_v16 = vadd.f32 %v626_v63, %v511_v18  ;;  %v513_v30 = vpop.f32.mrf.mxu1 }
  0xfa   : > { %v514_v49 = vadd.f32 %v513_v30, %v2182_v26  ;;  %v1164_v30 = vrot.slane %v1960_v25, 3 }
  0xfb   : > { %v755_v6 = vadd.f32 %v717_v7, %v664_v16  ;;  %v1159_v7 = vrot.slane %v1955_v21, 2  ;;  %v935_v21 = vsel %vm924_vm7, %v932_v42, %v934_v58 }
  0xfc   : > { %1698 = vmatmul.msk.bf16.gmra.mxu1 %vm382_vm2, %v931_v48 }
  0xfd   : > { %1708 = vmatmul.msk.bf16.gmra.mxu2 %vm382_vm2, %v933_v55  ;;  %v2264_v11 = vadd.f32 %v871_v9, %v755_v6  ;;  %1719 = vmatmul.msk.bf16.gmra.mxu3 %vm382_vm2, %v1158_v31  ;;  %v884_v48 = vpop.f32.mrf.mxu0  ;;  %v1161_v29 = vor.u32 %v1160_v19, %v1159_v7  ;;  %v1306_v6 = vsel %vm1293_vm5, %v1303_v61, %v1305_v60 }
 0x100   : > { %v629_v34 = vpop.f32.mrf.mxu2  ;;  %v725_v53 = vpop.f32.mrf.mxu3  ;;  %1730 = vmatmul.msk.bf16.gmra.mxu0 %vm382_vm2, %v1304_v40 }
 0x101   : > { %v665_v54 = vadd.f32 %v629_v34, %v514_v49  ;;  %v515_v47 = vpop.f32.mrf.mxu1  ;;  %v936_v49 = vrot.slane %v1932_v12, 2 }
 0x102   : > { %v516_v0 = vadd.f32 %v515_v47, %v2193_v51  ;;  %v1162_v51 = vsel %vm1139_vm6, %v1157_v2, %v1161_v29  ;;  %v1163_v2 = vrot.slane %v2011_v50, 2 }
 0x103   : > { %v756_v26 = vadd.f32 %v720_v36, %v665_v54  ;;  %v937_v50 = vsel %vm924_vm7, %v934_v58, %v936_v49 }
 0x104   : > { %v1165_v31 = vor.u32 %v1164_v30, %v1163_v2 }
 0x105   : > { %v2272_v9 = vadd.f32 %v874_v44, %v756_v26  ;;  %v886_v20 = vpop.f32.mrf.mxu0 }
 0x106   : > { %v1166_v25 = vsel %vm1139_vm6, %v1161_v29, %v1165_v31  ;;  %v1167_v29 = vrot.slane %v803_v37, 2 }
 0x108   : > { %v631_v45 = vpop.f32.mrf.mxu2  ;;  %v727_v18 = vpop.f32.mrf.mxu3 }
 0x109   : > { %v666_v62 = vadd.f32 %v631_v45, %v516_v0  ;;  %v518_v43 = vpop.f32.mrf.mxu1  ;;  %v1168_v45 = vrot.slane %v806_v41, 3 }
 0x10a   : > { %v519_v39 = vadd.f32 %v518_v43, %v2143_v27 }
 0x10b   : > { %v757_v36 = vadd.f32 %v722_v17, %v666_v62 }
 0x10c   : > { %1699 = vmatmul.msk.bf16.gmra.mxu1 %vm382_vm2, %v933_v55 }
 0x10d   : > { %1709 = vmatmul.msk.bf16.gmra.mxu2 %vm382_vm2, %v935_v21  ;;  %v2280_v44 = vadd.f32 %v876_v8, %v757_v36  ;;  %1720 = vmatmul.msk.bf16.gmra.mxu3 %vm382_vm2, %v1162_v51  ;;  %v889_v55 = vpop.f32.mrf.mxu0 }
 0x110   : > { %v634_v14 = vpop.f32.mrf.mxu2  ;;  %v730_v16 = vpop.f32.mrf.mxu3  ;;  %1731 = vmatmul.msk.bf16.gmra.mxu0 %vm382_vm2, %v1306_v6 }
 0x111   : > { %v667_v63 = vadd.f32 %v634_v14, %v519_v39  ;;  %v520_v42 = vpop.f32.mrf.mxu1 }
 0x112   : > { %v521_v27 = vadd.f32 %v520_v42, %v2155_v59  ;;  %v1309_v42 = vrot.slane %v2141_v24, 3 }
 0x113   : > { %v758_v17 = vadd.f32 %v725_v53, %v667_v63 }
 0x115   : > { %v2288_v8 = vadd.f32 %v879_v35, %v758_v17  ;;  %v2295_v26 = vpop.f32.mrf.mxu0  ;;  %v1307_v35 = vrot.slane %v1965_v28, 3 }
 0x118   : > { %v636_v34 = vpop.f32.mrf.mxu2  ;;  %v732_v47 = vpop.f32.mrf.mxu3 }
 0x119   : > { %v668_v54 = vadd.f32 %v636_v34, %v521_v27  ;;  %v523_v53 = vpop.f32.mrf.mxu1 }
 0x11a   : > { %v524_v59 = vadd.f32 %v523_v53, %v2169_v4  ;;  %v938_v4 = vrot.slane %v1935_v13, 2 }
 0x11b   : > { %v759_v7 = vadd.f32 %v727_v18, %v668_v54  ;;  %v268_v54 = vld [vmem:[%s1917_s7 + $0x58] sm:$0xf] }
 0x11c   : > { %1700 = vmatmul.msk.bf16.gmra.mxu1 %vm382_vm2, %v935_v21  ;;  %v1169_v21 = vor.u32 %v1168_v45, %v1167_v29  ;;  %v939_v14 = vsel %vm924_vm7, %v936_v49, %v938_v4 }
 0x11d   : > { %1710 = vmatmul.msk.bf16.gmra.mxu2 %vm382_vm2, %v937_v50  ;;  %v2299_v12 = vadd.f32 %v881_v56, %v759_v7  ;;  %1721 = vmatmul.msk.bf16.gmra.mxu3 %vm382_vm2, %v1166_v25  ;;  %v2308_v62 = vpop.f32.mrf.mxu0  ;;  %v1308_v56 = vsel %vm1293_vm5, %v1305_v60, %v1307_v35  ;;  %v1175_v60 = vshll.u32 %v2141_v24, 16  ;;  %v291_v7 = vunpack.c.l.bf16 %v268_v54 }
 0x11e   : > { %v1170_v63 = vsel %vm1139_vm6, %v1165_v31, %v1169_v21 }
 0x11f   : > { %v1177_v31 = vrot.slane %v1175_v60, 3 }
 0x120   : > { %v639_v61 = vpop.f32.mrf.mxu2  ;;  %v735_v19 = vpop.f32.mrf.mxu3  ;;  %1732 = vmatmul.msk.bf16.gmra.mxu0 %vm382_vm2, %v1308_v56 }
 0x121   : > { %v669_v0 = vadd.f32 %v639_v61, %v524_v59  ;;  %v525_v40 = vpop.f32.mrf.mxu1 }
 0x122   : > { %v526_v43 = vadd.f32 %v525_v40, %v2178_v22 }
 0x123   : > { %v760_v58 = vadd.f32 %v730_v16, %v669_v0 }
 0x125   : > { %v2311_v18 = vadd.f32 %v884_v48, %v760_v58  ;;  %v2318_v16 = vpop.f32.mrf.mxu0  ;;  %v1172_v48 = vshrl.u32 %v2141_v24, 16  ;;  %v1047_v58 = vpack.c.bf16 %v291_v7, %v291_v7 }
 0x127   : > { %v1174_v27 = vrot.slane %v1172_v48, 2  ;;  %v1181_v29 = vshrl.u32 %v1047_v58, 16  ;;  %v1184_v45 = vshll.u32 %v1047_v58, 16  ;;  %v1311_v56 = vrot.slane %v1047_v58, 3 }
 0x128   : > { %v641_v36 = vpop.f32.mrf.mxu2  ;;  %v737_v39 = vpop.f32.mrf.mxu3  ;;  %v1054_v7 = vrot.slane %v1047_v58, 2 }
 0x129   : > { %v670_v51 = vadd.f32 %v641_v36, %v526_v43  ;;  %v528_v37 = vpop.f32.mrf.mxu1 }
 0x12a   : > { %v529_v22 = vadd.f32 %v528_v37, %v2191_v46  ;;  %v2334_v46 = vrot.slane %v1965_v28, 2  ;;  %v1186_v37 = vrot.slane %v1184_v45, 3 }
 0x12b   : > { %v761_v41 = vadd.f32 %v732_v47, %v670_v51 }
 0x12c   : > { %1701 = vmatmul.msk.bf16.gmra.mxu1 %vm382_vm2, %v937_v50  ;;  %v1178_v50 = vor.u32 %v1177_v31, %v1174_v27 }
 0x12d   : > { %1711 = vmatmul.msk.bf16.gmra.mxu2 %vm382_vm2, %v939_v14  ;;  %v2322_v13 = vadd.f32 %v886_v20, %v761_v41  ;;  %1722 = vmatmul.msk.bf16.gmra.mxu3 %vm382_vm2, %v1170_v63  ;;  %v899_v34 = vpop.f32.mrf.mxu0  ;;  %v1310_v20 = vsel %vm1293_vm5, %v1307_v35, %v1309_v42  ;;  %v1312_v41 = vsel %vm1293_vm5, %v1309_v42, %v1311_v56  ;;  %v1052_v63 = vrot.slane %v2141_v24, 2  ;;  %v2382_v56 = vld [vmem:[%s2477_s2] ss:$0 sm:$0xff] }
 0x130   : > { %v644_v17 = vpop.f32.mrf.mxu2  ;;  %v740_v30 = vpop.f32.mrf.mxu3  ;;  %1733 = vmatmul.msk.bf16.gmra.mxu0 %vm382_vm2, %v1310_v20 }
 0x131   : > { %v671_v2 = vadd.f32 %v644_v17, %v529_v22  ;;  %v530_v6 = vpop.f32.mrf.mxu1 }
 0x132   : > { %v531_v53 = vadd.f32 %v530_v6, %v2202_v3 }
 0x133   : > { %v762_v49 = vadd.f32 %v735_v19, %v671_v2  ;;  %v941_v19 = vsel %vm924_vm7, %v938_v4, %v2334_v46 }
 0x135   : > { %v2331_v47 = vadd.f32 %v889_v55, %v762_v49  ;;  %v1179_v55 = vsel %vm1139_vm6, %v1169_v21, %v1178_v50  ;;  %v901_v40 = vpop.f32.mrf.mxu0 }
 0x138   : > { %v646_v25 = vpop.f32.mrf.mxu2  ;;  %v742_v61 = vpop.f32.mrf.mxu3 }
 0x139   : > { %v672_v59 = vadd.f32 %v646_v25, %v531_v53  ;;  %v533_v0 = vpop.f32.mrf.mxu1 }
 0x13a   : > { %v534_v3 = vadd.f32 %v533_v0, %v2145_v52 }
 0x13b   : > { %v763_v35 = vadd.f32 %v737_v39, %v672_v59  ;;  %v1183_v39 = vrot.slane %v1181_v29, 2 }
 0x13c   : > { %1702 = vmatmul.msk.bf16.gmra.mxu1 %vm382_vm2, %v939_v14 }
 0x13d   : > { %1712 = vmatmul.msk.bf16.gmra.mxu2 %vm382_vm2, %v941_v19  ;;  %v2344_v28 = vadd.f32 %v2295_v26, %v763_v35  ;;  %1723 = vmatmul.msk.bf16.gmra.mxu3 %vm382_vm2, %v1179_v55  ;;  %v1352_v14 = vpop.f32.mrf.mxu0  ;;  %v1187_v22 = vor.u32 %v1186_v37, %v1183_v39  ;;  %v1055_v35 = vsel %vm924_vm7, %v1052_v63, %v1054_v7 }
 0x13f   : > { %v1188_v42 = vsel %vm1139_vm6, %v1178_v50, %v1187_v22  ;;  %v942_v50 = vrot.slane %v2152_v57, 2 }
 0x140   : > { %v649_v4 = vpop.f32.mrf.mxu2  ;;  %v745_v36 = vpop.f32.mrf.mxu3  ;;  %1734 = vmatmul.msk.bf16.gmra.mxu0 %vm382_vm2, %v1312_v41 }
 0x141   : > { %v673_v43 = vadd.f32 %v649_v4, %v534_v3  ;;  %v535_v21 = vpop.f32.mrf.mxu1 }
 0x142   : > { %v536_v52 = vadd.f32 %v535_v21, %v2159_v33 }
 0x143   : > { %v764_v51 = vadd.f32 %v740_v30, %v673_v43  ;;  %v1053_v30 = vsel %vm924_vm7, %v2334_v46, %v1052_v63 }
 0x145   : > { %v2350_v26 = vadd.f32 %v2308_v62, %v764_v51  ;;  %v1354_v62 = vpop.f32.mrf.mxu0 }
 0x148   : > { %v651_v48 = vpop.f32.mrf.mxu2  ;;  %v747_v17 = vpop.f32.mrf.mxu3 }
 0x149   : > { %v674_v60 = vadd.f32 %v651_v48, %v536_v52  ;;  %v538_v2 = vpop.f32.mrf.mxu1 }
 0x14a   : > { %v539_v33 = vadd.f32 %v538_v2, %v2171_v5  ;;  %v943_v5 = vsel %vm924_vm7, %v2334_v46, %v942_v50 }
 0x14b   : > { %v765_v6 = vadd.f32 %v742_v61, %v674_v60 }
 0x14c   : > { %1703 = vmatmul.msk.bf16.gmra.mxu1 %vm382_vm2, %v941_v19 }
 0x14d   : > { %1713 = vmatmul.msk.bf16.gmra.mxu2 %vm382_vm2, %v1053_v30  ;;  %v2361_v24 = vadd.f32 %v2318_v16, %v765_v6  ;;  %1724 = vmatmul.msk.bf16.gmra.mxu3 %vm382_vm2, %v1188_v42  ;;  %v1357_v25 = vpop.f32.mrf.mxu0 }
 0x150   : > { %v654_v49 = vpop.f32.mrf.mxu2  ;;  %v1228_v31 = vpop.f32.mrf.mxu3 }
 0x151   : > { %v675_v27 = vadd.f32 %v654_v49, %v539_v33  ;;  %v540_v20 = vpop.f32.mrf.mxu1 }
 0x152   : > { %v541_v16 = vadd.f32 %v540_v20, %v2180_v23 }
 0x153   : > { %v766_v54 = vadd.f32 %v745_v36, %v675_v27 }
 0x155   : > { %v2365_v53 = vadd.f32 %v899_v34, %v766_v54  ;;  %v1359_v58 = vpop.f32.mrf.mxu0 }
 0x158   : > { %v656_v59 = vpop.f32.mrf.mxu2  ;;  %v1230_v0 = vpop.f32.mrf.mxu3 }
 0x159   : > { %v676_v61 = vadd.f32 %v656_v59, %v541_v16  ;;  %v983_v19 = vpop.f32.mrf.mxu1 }
 0x15a   : > { %v1028_v23 = vadd.f32 %v983_v19, %v2217_v1 }
 0x15b   : > { %v767_v34 = vadd.f32 %v747_v17, %v676_v61 }
 0x15c   : > { %1704 = vmatmul.msk.bf16.gmra.mxu1 %vm382_vm2, %v943_v5 }
 0x15d   : > { %1714 = vmatmul.msk.bf16.gmra.mxu2 %vm382_vm2, %v1055_v35  ;;  %v2376_v57 = vadd.f32 %v901_v40, %v767_v34  ;;  %v1362_v37 = vpop.f32.mrf.mxu0 }
 0x160   : > { %v1074_v55 = vpop.f32.mrf.mxu2  ;;  %v1233_v29 = vpop.f32.mrf.mxu3 }
 0x161   : > { %v1119_v3 = vadd.f32 %v1074_v55, %v1028_v23  ;;  %v985_v46 = vpop.f32.mrf.mxu1 }
 0x162   : > { %v1029_v43 = vadd.f32 %v985_v46, %v2229_v38 }
 0x163   : > { %v1273_v45 = vadd.f32 %v1228_v31, %v1119_v3 }
 0x165   : > { %v1397_v4 = vadd.f32 %v1352_v14, %v1273_v45  ;;  %v1364_v30 = vpop.f32.mrf.mxu0 }
 0x167   : > { %v1419_v40 = vadd.f32 %v2382_v56, %v1397_v4 }
 0x168   : > { %v1076_v1 = vpop.f32.mrf.mxu2  ;;  %v1235_v51 = vpop.f32.mrf.mxu3 }
 0x169   : > { %v1437_v36 = vpack.c.bf16 %v1419_v40, %v1419_v40  ;;  %v1120_v21 = vadd.f32 %v1076_v1, %v1029_v43  ;;  %v988_v39 = vpop.f32.mrf.mxu1 }
 0x16a   : > { %v1030_v63 = vadd.f32 %v988_v39, %v2237_v32 }
 0x16b   : > { %1456 = vst.msk [vmem:[%s2389_s4] sm:$0xf] %vm1455_vm8, %v1437_v36  ;;  %v1274_v14 = vadd.f32 %v1230_v0, %v1120_v21 }
 0x16d   : > { %v1398_v41 = vadd.f32 %v1354_v62, %v1274_v14  ;;  %v1367_v50 = vpop.f32.mrf.mxu0 }
 0x16f   : > { %v1420_v38 = vadd.f32 %v2382_v56, %v1398_v41 }
 0x170   : > { %v1079_v52 = vpop.f32.mrf.mxu2  ;;  %v1238_v60 = vpop.f32.mrf.mxu3 }
 0x171   : > { %v1438_v22 = vpack.c.bf16 %v1420_v38, %v1420_v38  ;;  %v1121_v48 = vadd.f32 %v1079_v52, %v1030_v63  ;;  %v990_v17 = vpop.f32.mrf.mxu1 }
 0x172   : > { %v1031_v33 = vadd.f32 %v990_v17, %v2246_v10 }
 0x173   : > { %1457 = vst.msk [vmem:[%s2389_s4 + $0x4] sm:$0xf] %vm1455_vm8, %v1438_v22  ;;  %v1275_v2 = vadd.f32 %v1233_v29, %v1121_v48 }
 0x175   : > { %v1399_v6 = vadd.f32 %v1357_v25, %v1275_v2  ;;  %v1369_v55 = vpop.f32.mrf.mxu0 }
 0x177   : > { %v1421_v42 = vadd.f32 %v2382_v56, %v1399_v6 }
 0x178   : > { %v1081_v62 = vpop.f32.mrf.mxu2  ;;  %v1240_v32 = vpop.f32.mrf.mxu3 }
 0x179   : > { %v1439_v49 = vpack.c.bf16 %v1421_v42, %v1421_v42  ;;  %v1122_v27 = vadd.f32 %v1081_v62, %v1031_v33  ;;  %v993_v31 = vpop.f32.mrf.mxu1 }
 0x17a   : > { %v1032_v16 = vadd.f32 %v993_v31, %v2255_v15 }
 0x17b   : > { %1458 = vst.msk [vmem:[%s2389_s4 + $0x8] sm:$0xf] %vm1455_vm8, %v1439_v49  ;;  %v1276_v20 = vadd.f32 %v1235_v51, %v1122_v27 }
 0x17d   : > { %v1400_v54 = vadd.f32 %v1359_v58, %v1276_v20  ;;  %v1372_v51 = vpop.f32.mrf.mxu0 }
 0x17f   : > { %v1422_v7 = vadd.f32 %v2382_v56, %v1400_v54 }
 0x180   : > { %v1084_v25 = vpop.f32.mrf.mxu2  ;;  %v1243_v10 = vpop.f32.mrf.mxu3 }
 0x181   : > { %v1440_v59 = vpack.c.bf16 %v1422_v7, %v1422_v7  ;;  %v1123_v61 = vadd.f32 %v1084_v25, %v1032_v16  ;;  %v995_v0 = vpop.f32.mrf.mxu1 }
 0x182   : > { %v1033_v34 = vadd.f32 %v995_v0, %v2264_v11 }
 0x183   : > { %1459 = vst.msk [vmem:[%s2389_s4 + $0xc] sm:$0xf] %vm1455_vm8, %v1440_v59  ;;  %v1277_v19 = vadd.f32 %v1238_v60, %v1123_v61 }
 0x185   : > { %v1401_v5 = vadd.f32 %v1362_v37, %v1277_v19  ;;  %v1374_v60 = vpop.f32.mrf.mxu0 }
 0x187   : > { %v1423_v35 = vadd.f32 %v2382_v56, %v1401_v5 }
 0x188   : > { %v1086_v23 = vpop.f32.mrf.mxu2  ;;  %v1245_v15 = vpop.f32.mrf.mxu3 }
 0x189   : > { %v1441_v58 = vpack.c.bf16 %v1423_v35, %v1423_v35  ;;  %v1124_v3 = vadd.f32 %v1086_v23, %v1033_v34  ;;  %v998_v29 = vpop.f32.mrf.mxu1 }
 0x18a   : > { %v1034_v40 = vadd.f32 %v998_v29, %v2272_v9 }
 0x18b   : > { %1460 = vst.msk [vmem:[%s2389_s4 + $0x10] sm:$0xf] %vm1455_vm8, %v1441_v58  ;;  %v1278_v46 = vadd.f32 %v1240_v32, %v1124_v3 }
 0x18d   : > { %v1402_v45 = vadd.f32 %v1364_v30, %v1278_v46  ;;  %v1377_v32 = vpop.f32.mrf.mxu0 }
 0x18f   : > { %v1424_v4 = vadd.f32 %v2382_v56, %v1402_v45 }
 0x190   : > { %v1089_v43 = vpop.f32.mrf.mxu2  ;;  %v1248_v11 = vpop.f32.mrf.mxu3 }
 0x191   : > { %v1442_v1 = vpack.c.bf16 %v1424_v4, %v1424_v4  ;;  %v1125_v36 = vadd.f32 %v1089_v43, %v1034_v40  ;;  %v1000_v21 = vpop.f32.mrf.mxu1 }
 0x192   : > { %v1035_v41 = vadd.f32 %v1000_v21, %v2280_v44 }
 0x193   : > { %1461 = vst.msk [vmem:[%s2389_s4 + $0x14] sm:$0xf] %vm1455_vm8, %v1442_v1  ;;  %v1279_v39 = vadd.f32 %v1243_v10, %v1125_v36 }
 0x195   : > { %v1403_v37 = vadd.f32 %v1367_v50, %v1279_v39  ;;  %v1379_v19 = vpop.f32.mrf.mxu0 }
 0x197   : > { %v1425_v14 = vadd.f32 %v2382_v56, %v1403_v37 }
 0x198   : > { %v1091_v38 = vpop.f32.mrf.mxu2  ;;  %v1250_v22 = vpop.f32.mrf.mxu3 }
 0x199   : > { %v1443_v63 = vpack.c.bf16 %v1425_v14, %v1425_v14  ;;  %v1126_v52 = vadd.f32 %v1091_v38, %v1035_v41  ;;  %v1003_v9 = vpop.f32.mrf.mxu1 }
 0x19a   : > { %v1036_v30 = vadd.f32 %v1003_v9, %v2288_v8 }
 0x19b   : > { %1462 = vst.msk [vmem:[%s2389_s4 + $0x18] sm:$0xf] %vm1455_vm8, %v1443_v63  ;;  %v1280_v48 = vadd.f32 %v1245_v15, %v1126_v52 }
 0x19d   : > { %v1404_v17 = vadd.f32 %v1369_v55, %v1280_v48  ;;  %v1382_v45 = vpop.f32.mrf.mxu0 }
 0x19f   : > { %v1426_v2 = vadd.f32 %v2382_v56, %v1404_v17 }
 0x1a0   : > { %v1094_v6 = vpop.f32.mrf.mxu2  ;;  %v1253_v49 = vpop.f32.mrf.mxu3 }
 0x1a1   : > { %v1444_v42 = vpack.c.bf16 %v1426_v2, %v1426_v2  ;;  %v1127_v33 = vadd.f32 %v1094_v6, %v1036_v30  ;;  %v1005_v44 = vpop.f32.mrf.mxu1 }
 0x1a2   : > { %v1037_v20 = vadd.f32 %v1005_v44, %v2299_v12 }
 0x1a3   : > { %1463 = vst.msk [vmem:[%s2389_s4 + $0x1c] sm:$0xf] %vm1455_vm8, %v1444_v42  ;;  %v1281_v62 = vadd.f32 %v1248_v11, %v1127_v33 }
 0x1a5   : > { %v1405_v27 = vadd.f32 %v1372_v51, %v1281_v62  ;;  %v1384_v37 = vpop.f32.mrf.mxu0 }
 0x1a7   : > { %v1427_v31 = vadd.f32 %v2382_v56, %v1405_v27 }
 0x1a8   : > { %v1096_v54 = vpop.f32.mrf.mxu2  ;;  %v1255_v59 = vpop.f32.mrf.mxu3 }
 0x1a9   : > { %v1445_v50 = vpack.c.bf16 %v1427_v31, %v1427_v31  ;;  %v1128_v7 = vadd.f32 %v1096_v54, %v1037_v20  ;;  %v1008_v8 = vpop.f32.mrf.mxu1 }
 0x1aa   : > { %v1038_v10 = vadd.f32 %v1008_v8, %v2311_v18 }
 0x1ab   : > { %1464 = vst.msk [vmem:[%s2389_s4 + $0x20] sm:$0xf] %vm1455_vm8, %v1445_v50  ;;  %v1282_v16 = vadd.f32 %v1250_v22, %v1128_v7 }
 0x1ad   : > { %v1406_v25 = vadd.f32 %v1374_v60, %v1282_v16  ;;  %v1387_v17 = vpop.f32.mrf.mxu0 }
 0x1af   : > { %v1428_v61 = vadd.f32 %v2382_v56, %v1406_v25 }
 0x1b0   : > { %v1099_v0 = vpop.f32.mrf.mxu2  ;;  %v1258_v15 = vpop.f32.mrf.mxu3 }
 0x1b1   : > { %v1446_v5 = vpack.c.bf16 %v1428_v61, %v1428_v61  ;;  %v1129_v35 = vadd.f32 %v1099_v0, %v1038_v10  ;;  %v1010_v12 = vpop.f32.mrf.mxu1 }
 0x1b2   : > { %v1039_v58 = vadd.f32 %v1010_v12, %v2322_v13 }
 0x1b3   : > { %1465 = vst.msk [vmem:[%s2389_s4 + $0x24] sm:$0xf] %vm1455_vm8, %v1446_v5  ;;  %v1283_v34 = vadd.f32 %v1253_v49, %v1129_v35 }
 0x1b5   : > { %v1407_v23 = vadd.f32 %v1377_v32, %v1283_v34  ;;  %v1389_v31 = vpop.f32.mrf.mxu0 }
 0x1b7   : > { %v1429_v55 = vadd.f32 %v2382_v56, %v1407_v23 }
 0x1b8   : > { %v1101_v3 = vpop.f32.mrf.mxu2  ;;  %v1260_v51 = vpop.f32.mrf.mxu3 }
 0x1b9   : > { %v1447_v29 = vpack.c.bf16 %v1429_v55, %v1429_v55  ;;  %v1130_v46 = vadd.f32 %v1101_v3, %v1039_v58  ;;  %v1013_v18 = vpop.f32.mrf.mxu1 }
 0x1ba   : > { %v1040_v1 = vadd.f32 %v1013_v18, %v2331_v47 }
 0x1bb   : > { %1466 = vst.msk [vmem:[%s2389_s4 + $0x28] sm:$0xf] %vm1455_vm8, %v1447_v29  ;;  %v1284_v4 = vadd.f32 %v1255_v59, %v1130_v46 }
 0x1bd   : > { %v1408_v40 = vadd.f32 %v1379_v19, %v1284_v4 }
 0x1bf   : > { %v1430_v43 = vadd.f32 %v2382_v56, %v1408_v40 }
 0x1c0   : > { %v1104_v36 = vpop.f32.mrf.mxu2  ;;  %v1263_v48 = vpop.f32.mrf.mxu3 }
 0x1c1   : > { %v1448_v11 = vpack.c.bf16 %v1430_v43, %v1430_v43  ;;  %v1131_v21 = vadd.f32 %v1104_v36, %v1040_v1  ;;  %v1015_v13 = vpop.f32.mrf.mxu1 }
 0x1c2   : > { %v1041_v38 = vadd.f32 %v1015_v13, %v2344_v28 }
 0x1c3   : > { %1467 = vst.msk [vmem:[%s2389_s4 + $0x2c] sm:$0xf] %vm1455_vm8, %v1448_v11  ;;  %v1285_v39 = vadd.f32 %v1258_v15, %v1131_v21 }
 0x1c5   : > { %v1409_v14 = vadd.f32 %v1382_v45, %v1285_v39 }
 0x1c7   : > { %v1431_v41 = vadd.f32 %v2382_v56, %v1409_v14 }
 0x1c8   : > { %v1106_v63 = vpop.f32.mrf.mxu2  ;;  %v1265_v49 = vpop.f32.mrf.mxu3 }
 0x1c9   : > { %v1449_v52 = vpack.c.bf16 %v1431_v41, %v1431_v41  ;;  %v1132_v9 = vadd.f32 %v1106_v63, %v1041_v38  ;;  %v1018_v47 = vpop.f32.mrf.mxu1 }
 0x1ca   : > { %v1042_v30 = vadd.f32 %v1018_v47, %v2350_v26 }
 0x1cb   : > { %1468 = vst.msk [vmem:[%s2389_s4 + $0x30] sm:$0xf] %vm1455_vm8, %v1449_v52  ;;  %v1286_v22 = vadd.f32 %v1260_v51, %v1132_v9 }
 0x1cd   : > { %v1410_v60 = vadd.f32 %v1384_v37, %v1286_v22 }
 0x1cf   : > { %v1432_v2 = vadd.f32 %v2382_v56, %v1410_v60 }
 0x1d0   : > { %v1109_v6 = vpop.f32.mrf.mxu2  ;;  %v1268_v59 = vpop.f32.mrf.mxu3 }
 0x1d1   : > { %v1450_v42 = vpack.c.bf16 %v1432_v2, %v1432_v2  ;;  %v1133_v33 = vadd.f32 %v1109_v6, %v1042_v30  ;;  %v1020_v28 = vpop.f32.mrf.mxu1 }
 0x1d2   : > { %v1043_v32 = vadd.f32 %v1020_v28, %v2361_v24  ;;  %v1392_v24 = vpop.f32.mrf.mxu0 }
 0x1d3   : > { %1469 = vst.msk [vmem:[%s2389_s4 + $0x34] sm:$0xf] %vm1455_vm8, %v1450_v42  ;;  %v1287_v44 = vadd.f32 %v1263_v48, %v1133_v33 }
 0x1d5   : > { %v1411_v62 = vadd.f32 %v1387_v17, %v1287_v44 }
 0x1d7   : > { %v1433_v27 = vadd.f32 %v2382_v56, %v1411_v62 }
 0x1d8   : > { %v1111_v20 = vpop.f32.mrf.mxu2 }
 0x1d9   : > { %v1451_v54 = vpack.c.bf16 %v1433_v27, %v1433_v27  ;;  %v1134_v50 = vadd.f32 %v1111_v20, %v1043_v32  ;;  %v1023_v26 = vpop.f32.mrf.mxu1 }
 0x1da   : > { %v1044_v25 = vadd.f32 %v1023_v26, %v2365_v53  ;;  %v1270_v53 = vpop.f32.mrf.mxu3  ;;  %v1394_v15 = vpop.f32.mrf.mxu0 }
 0x1db   : > { %1470 = vst.msk [vmem:[%s2389_s4 + $0x38] sm:$0xf] %vm1455_vm8, %v1451_v54  ;;  %v1288_v7 = vadd.f32 %v1265_v49, %v1134_v50 }
 0x1dd   : > { %v1412_v8 = vadd.f32 %v1389_v31, %v1288_v7 }
 0x1df   : > { %v1434_v16 = vadd.f32 %v2382_v56, %v1412_v8 }
 0x1e0   : > { %v1114_v61 = vpop.f32.mrf.mxu2 }
 0x1e1   : > { %v1452_v10 = vpack.c.bf16 %v1434_v16, %v1434_v16  ;;  %v1135_v0 = vadd.f32 %v1114_v61, %v1044_v25  ;;  %v1025_v5 = vpop.f32.mrf.mxu1 }
 0x1e2   : > { %v1045_v34 = vadd.f32 %v1025_v5, %v2376_v57 }
 0x1e3   : > { %1471 = vst.msk [vmem:[%s2389_s4 + $0x3c] sm:$0xf] %vm1455_vm8, %v1452_v10  ;;  %v1289_v19 = vadd.f32 %v1268_v59, %v1135_v0 }
 0x1e5   : > { %v1413_v35 = vadd.f32 %v1392_v24, %v1289_v19 }
 0x1e7   : > { %v1435_v12 = vadd.f32 %v2382_v56, %v1413_v35 }
 0x1e8   : > { %v1116_v23 = vpop.f32.mrf.mxu2 }
 0x1e9   : > { %v1453_v55 = vpack.c.bf16 %v1435_v12, %v1435_v12  ;;  %v1136_v58 = vadd.f32 %v1116_v23, %v1045_v34 }
 0x1eb   : > { %1472 = vst.msk [vmem:[%s2389_s4 + $0x40] sm:$0xf] %vm1455_vm8, %v1453_v55  ;;  %v1290_v3 = vadd.f32 %v1270_v53, %v1136_v58 }
 0x1ed   : > { %v1414_v29 = vadd.f32 %v1394_v15, %v1290_v3 }
 0x1ef   : > { %v1436_v46 = vadd.f32 %v2382_v56, %v1414_v29 }
 0x1f1   : > { %v1454_v18 = vpack.c.bf16 %v1436_v46, %v1436_v46 }
 0x1f3   : > { %1473 = vst.msk [vmem:[%s2389_s4 + $0x44] sm:$0xf] %vm1455_vm8, %v1454_v18 }
 0x1f4 PF: > { %s13_s16 = sadd.s32 1, %s1840_s16   ;;  %s2479_s12 = smov %s1832_s14 }
 0x1f5   : > { %p10_p7 = scmp.ge.s32.totalorder %s13_s16, 6   ;;  %s2480_s13 = smov %s1836_s15 }
 0x1f6   : > { %s2481_s14 = smov %s2484_s17  ;;  %s2482_s15 = smov %s2488_s18 }
 0x1f7   :  { %12 = sbr.rel (!%p10_p7) target bundleno = 3 (0x3), region = 77 }

// kernel: generator_forward.48
= control target key start
LH: loop header
LB: loop body
LE: loop exit
PB: predicated region body
PF: predicated region fallthrough
CT: control target
= control target key end

     0   :  { %s1862_s12 = smov 0   ;;  %s1864_s13 = smov 0   ;;  %s2475_s0 = inlined_call_operand.vmem [shape: bf16[2,328,8], index: 0, kind: input, shape index: {}]   ;;  %s2476_s1 = inlined_call_operand.vmem [shape: bf16[9,8,32], index: 1, kind: input, shape index: {}]   ;;  %s2477_s2 = inlined_call_operand.vmem [shape: f32[1,32], index: 2, kind: input, shape index: {}]   ;;  %s2478_s3 = inlined_call_operand.vmem [shape: bf16[2,288,32], index: 3, kind: output, shape index: {}]  }
   0x1   :  { %s1866_s14 = smov 0   ;;  %s1868_s15 = smov 0  }
   0x2   :  { %s1870_s16 = smov 0  }
   0x3 LB: > { %s28_s17 = sadd.s32 1, %s1832_s14  ;;  %s32_s18 = sadd.s32 1, %s1836_s15  ;;  %s1840_s16 = sphi %s1870_s16, %s13_s16   ;;  %s1836_s15 = sphi %s1868_s15, %s2482_s15   ;;  %s1832_s14 = sphi %s1866_s14, %s2481_s14   ;;  %s1828_s13 = sphi %s1864_s13, %s2480_s13   ;;  %s1824_s12 = sphi %s1862_s12, %s2479_s12  }
   0x4   : > { %p30_p0 = scmp.ge.s32.totalorder %s28_s17, 2  ;;  %p1606_p1 = scmp.ge.s32.totalorder %s1840_s16, 1 }
   0x5   : > { %p177_p2 = scmp.lt.s32.totalorder %s1840_s16, 5 }
   0x6   : > { %s2484_s17 = smov (%p30_p0, %s28_s17), 0  ;;  %s2486_s18 = smov (!%p30_p0, %s32_s18), %s1836_s15 }
   0x7   : > { %p178_p3 = pnand %p1606_p1, %p177_p2  ;;  %p34_p4 = scmp.ge.s32.totalorder %s2486_s18, 2 }
   0x8   : > { %p215_p5 = scmp.lt.s32.totalorder (!%p178_p3), %s1828_s13, 1  ;;  %s241_s21 = smul.u32 (!%p178_p3), 144, %s1824_s12 }
   0x9   : > { %s2488_s18 = smov (%p34_p4, %s2486_s18), 0  ;;  %181 = sbr.rel (%p178_p3) target bundleno = 500 (0x1f4), region = 32 }
   0xa   : > { %s242_s28 = sshra.s32 (!%p178_p3), %s241_s21, 3  ;;  %s227_s25 = smul.u32 (!%p178_p3), 18, %s1824_s12 }
   0xb   : > { %s1609_s30 = sshll.u32 (!%p178_p3), %s242_s28, 2 }
   0xc   : > { %p230_p6 = scmp.lt.s32.totalorder (!%p178_p3), %s227_s25, 35 }
   0xe   : > { %v1646_v0 = vld [vmem:[%s2476_s1 + $0x4] sm:$0xf]  ;;  %vm410_vm0 = vcmask 1043456   ;;  %v1665_v2 = vld [vmem:[%s2476_s1 + $0x8] sm:$0xf]  ;;  %s2490_s13 = smov (!%p215_p5, %s1828_s13), 1 }
   0xf   : > { %v412_v1 = vsel %vm410_vm0, %v1646_v0, 0  ;;  %v603_v3 = vsel %vm410_vm0, %v1665_v2, 0  ;;  %v301_v4 = vld [vmem:[%s2476_s1] sm:$0xf]  ;;  %v1675_v5 = vld [vmem:[%s2476_s1 + $0xc] sm:$0xf] }
  0x10   : > { %1756 = vmatpush.bf16.msra.mxu1 %v412_v1  ;;  %1757 = vmatpush.bf16.msra.mxu2 %v412_v1  ;;  %v487_v6 = vsel %vm410_vm0, %v301_v4, 0  ;;  %v694_v7 = vsel %vm410_vm0, %v1675_v5, 0  ;;  %s1759_s29 = smul.u32 164, %s2490_s13  ;;  %vm305_vm1 = vsmask.f32 7424  ;;  %vm382_vm2 = vcmask 64512  }
  0x11   : > { %1758 = vmatpush.bf16.msra.mxu3 %v412_v1  ;;  %421 = vmatpush.bf16.msra.mxu0 %v412_v1  ;;  %v1685_v41 = vld [vmem:[%s2476_s1 + $0x10] sm:$0xf]  ;;  %v1715_v4 = vld [vmem:[%s2476_s1 + $0x1c] sm:$0xf]  ;;  %vm770_vm3 = vsmask.f32 6400 }
  0x12   : > { %s219_s6 = scalar_lea.vmem %s2475_s0, %s1759_s29  ;;  %v848_v47 = vsel %vm410_vm0, %v1685_v41, 0  ;;  %vm555_vm4 = vcmask 1046528   ;;  %vm1293_vm5 = vcmask 1044480   ;;  %vm1139_vm6 = vsmask.f32 5376  ;;  %s1760_s26 = smul.u32 36, %s2490_s13 }
  0x13   : > { %s1917_s7 = scalar_lea.vmem %s219_s6, %s1609_s30  ;;  %vm924_vm7 = vcmask 1045504   ;;  %s2492_s25 = smov (!%p230_p6, %s227_s25), 35  ;;  %vm1455_vm8 = vcmask 257024  }
  0x14   : > { %612 = vmatpush.bf16.msrb.mxu2 %v603_v3  ;;  %496 = vmatpush.bf16.msrb.mxu1 %v487_v6  ;;  %v1920_v8 = vld [vmem:[%s1917_s7 + $0x8] sm:$0xff]  ;;  %v1923_v9 = vld [vmem:[%s1917_s7 + $0x10] sm:$0xff]  ;;  %v1926_v10 = vld [vmem:[%s1917_s7 + $0x20] sm:$0xff]  ;;  %v1217_v6 = vsel %vm410_vm0, %v1715_v4, 0  ;;  %s236_s12 = sadd.s32 %s1760_s26, %s2492_s25 }
  0x15   : > { %703 = vmatpush.bf16.msrb.mxu3 %v694_v7  ;;  %v1929_v11 = vld [vmem:[%s1917_s7 + $0x28] sm:$0xff]  ;;  %v1932_v12 = vld [vmem:[%s1917_s7 + $0x38] sm:$0xff]  ;;  %v1935_v13 = vld [vmem:[%s1917_s7 + $0x40] sm:$0xff]  ;;  %v314_v14 = vshll.u32 %v1920_v8, 16  ;;  %v318_v15 = vshrl.u32 %v1920_v8, 16  ;;  %v1940_v16 = vshll.u32 %v1923_v9, 16  ;;  %857 = vmatpush.bf16.msrb.mxu0 %v848_v47 }
  0x16   : > { %v1943_v17 = vshll.u32 %v1926_v10, 16  ;;  %v1946_v18 = vshrl.u32 %v1926_v10, 16  ;;  %v1949_v19 = vshll.u32 %v1929_v11, 16  ;;  %v1952_v20 = vshll.u32 %v1932_v12, 16  ;;  %v1965_v28 = vld [vmem:[%s1917_s7 + $0x48] sm:$0xff]   ;;  %v1975_v33 = vld [vmem:[%s1917_s7] sm:$0xff] }
  0x17   : > { %v1955_v21 = vshrl.u32 %v1932_v12, 16  ;;  %v316_v22 = vrot.slane %v314_v14, 1  ;;  %v324_v23 = vrot.slane %v1940_v16, 1  ;;  %v1960_v25 = vshll.u32 %v1935_v13, 16  ;;  %v1984_v38 = vld [vmem:[%s1917_s7 + $0x18] sm:$0xff]  ;;  %v1988_v39 = vld [vmem:[%s1917_s7 + $0x30] sm:$0xff] }
  0x18   : > { %v340_v24 = vrot.slane %v1943_v17, 1  ;;  %v348_v26 = vrot.slane %v1949_v19, 1  ;;  %v364_v27 = vrot.slane %v1952_v20, 1  ;;  %v1748_v36 = vunpack.c.l.bf16 %v1965_v28  ;;  %v1705_v3 = vld [vmem:[%s2476_s1 + $0x18] sm:$0xf]  ;;  %s1608_s29 = sshll.u32 %s236_s12, 2 }
  0x19   : > { %v320_v29 = vor.u32 %v318_v15, %v316_v22  ;;  %v372_v31 = vrot.slane %v1960_v25, 1  ;;  %v307_v42 = vshrl.u32 %v1975_v33, 16  ;;  %v309_v43 = vshll.u32 %v1975_v33, 16  ;;  %v1695_v7 = vld [vmem:[%s2476_s1 + $0x14] sm:$0xf]  ;;  %s2389_s4 = scalar_lea.vmem %s2478_s3, %s1608_s29 }
  0x1a   : > { %v344_v30 = vor.u32 %v1946_v18, %v340_v24  ;;  %v368_v32 = vor.u32 %v1955_v21, %v364_v27  ;;  %v1990_v40 = vpack.c.bf16 %v1748_v36, %v1748_v36  ;;  %v1998_v44 = vshrl.u32 %v1923_v9, 16 }
  0x1b   : > { %v325_v34 = vsel %vm305_vm1, %v320_v29, %v324_v23  ;;  %v2001_v45 = vshll.u32 %v1984_v38, 16  ;;  %v311_v46 = vrot.slane %v309_v43, 1  ;;  %v2005_v48 = vshrl.u32 %v1929_v11, 16 }
  0x1c   : > { %v349_v35 = vsel %vm305_vm1, %v344_v30, %v348_v26  ;;  %1648 = vmatmul.msk.bf16.vlgmr.msra.gmra.mxu1 %vm382_vm2, %v325_v34  ;;  %v373_v37 = vsel %vm305_vm1, %v368_v32, %v372_v31  ;;  %v2008_v49 = vshll.u32 %v1988_v39, 16  ;;  %v2011_v50 = vshrl.u32 %v1935_v13, 16 }
  0x1d   : > { %1651 = vmatmul.msk.bf16.vlgmr.msra.gmra.mxu2 %vm382_vm2, %v349_v35  ;;  %1654 = vmatmul.msk.bf16.vlgmr.msra.gmra.mxu3 %vm382_vm2, %v373_v37  ;;  %v378_v51 = vshll.u32 %v1990_v40, 16  ;;  %v312_v52 = vor.u32 %v311_v46, %v307_v42  ;;  %v328_v53 = vor.u32 %v1998_v44, %v324_v23  ;;  %v332_v54 = vrot.slane %v2001_v45, 1  ;;  %v1725_v23 = vld [vmem:[%s2476_s1 + $0x20] sm:$0xf] }
  0x1e   : > { %v352_v56 = vor.u32 %v2005_v48, %v348_v26  ;;  %v356_v57 = vrot.slane %v2008_v49, 1  ;;  %v376_v58 = vor.u32 %v2011_v50, %v372_v31  ;;  %v771_v63 = vrot.slane %v318_v15, 1  ;;  %1226 = vmatpush.bf16.msra.mxu3 %v1217_v6 }
  0x1f   : > { %v317_v55 = vsel %vm305_vm1, %v312_v52, %v316_v22  ;;  %v380_v59 = vrot.slane %v378_v51, 1  ;;  %v333_v60 = vsel %vm305_vm1, %v328_v53, %v332_v54  ;;  %v772_v0 = vrot.slane %v314_v14, 2 }
  0x20   : > { %1647 = vmatmul.msk.bf16.vlgmr.msra.gmra.mxu0 %vm382_vm2, %v317_v55  ;;  %v357_v61 = vsel %vm305_vm1, %v352_v56, %v356_v57  ;;  %v774_v1 = vrot.slane %v1998_v44, 1  ;;  %v775_v2 = vrot.slane %v1940_v16, 2  ;;  %v1063_v5 = vsel %vm410_vm0, %v1705_v3, 0 }
  0x21   : > { %v381_v62 = vsel %vm305_vm1, %v376_v58, %v380_v59  ;;  %1072 = vmatpush.bf16.msra.mxu2 %v1063_v5  ;;  %v773_v14 = vor.u32 %v772_v0, %v771_v63  ;;  %v972_v22 = vsel %vm410_vm0, %v1695_v7, 0  ;;  %v1341_v26 = vsel %vm410_vm0, %v1725_v23, 0 }
  0x22   : > { %v776_v15 = vor.u32 %v775_v2, %v774_v1  ;;  %981 = vmatpush.bf16.msra.mxu1 %v972_v22  ;;  %1350 = vmatpush.bf16.msra.mxu0 %v1341_v26  ;;  %v2046_v29 = vshrl.u32 %v1984_v38, 16  ;;  %v2049_v30 = vshrl.u32 %v1988_v39, 16  ;;  %v557_v35 = vrot.slane %v1920_v8, 1 }
  0x23   : > { %v559_v36 = vrot.slane %v1923_v9, 1  ;;  %v779_v46 = vrot.slane %v2001_v45, 2  ;;  %v783_v55 = vrot.slane %v1943_v17, 2  ;;  %v563_v58 = vrot.slane %v1926_v10, 1 }
  0x24   : > { %v777_v31 = vsel %vm770_vm3, %v773_v14, %v776_v15  ;;  %v336_v32 = vor.u32 %v2046_v29, %v332_v54  ;;  %v360_v34 = vor.u32 %v2049_v30, %v356_v57  ;;  %v778_v43 = vrot.slane %v2046_v29, 1 }
  0x25   : > { %v560_v42 = vsel %vm555_vm4, %v557_v35, %v559_v36  ;;  %v782_v54 = vrot.slane %v1946_v18, 1  ;;  %v565_v63 = vrot.slane %v1929_v11, 1  ;;  %v790_v1 = vrot.slane %v2049_v30, 1 }
  0x26   : > { %v341_v37 = vsel %vm305_vm1, %v336_v32, %v340_v24  ;;  %v365_v41 = vsel %vm305_vm1, %v360_v34, %v364_v27  ;;  %v780_v47 = vor.u32 %v779_v46, %v778_v43  ;;  %v556_v24 = vrot.slane %v1975_v33, 1 }
  0x27   : > { %v561_v27 = vrot.slane %v1984_v38, 1  ;;  %v784_v56 = vor.u32 %v783_v55, %v782_v54  ;;  %v566_v0 = vsel %vm555_vm4, %v563_v58, %v565_v63  ;;  %v791_v2 = vrot.slane %v2008_v49, 2 }
  0x28   : > { %v781_v51 = vsel %vm770_vm3, %v776_v15, %v780_v47  ;;  %v558_v52 = vsel %vm555_vm4, %v556_v24, %v557_v35  ;;  %v567_v5 = vrot.slane %v1988_v39, 1  ;;  %v794_v7 = vrot.slane %v1955_v21, 1  ;;  %v2141_v24 = vld [vmem:[%s1917_s7 + $0x50] sm:$0xff]  }
  0x29   : > { %v562_v53 = vsel %vm555_vm4, %v559_v36, %v561_v27  ;;  %v785_v57 = vsel %vm770_vm3, %v780_v47, %v784_v56  ;;  %v564_v59 = vsel %vm555_vm4, %v561_v27, %v563_v58  ;;  %v792_v3 = vor.u32 %v791_v2, %v790_v1 }
  0x2a   : > { %v568_v6 = vsel %vm555_vm4, %v565_v63, %v567_v5  ;;  %v795_v14 = vrot.slane %v1952_v20, 2  ;;  %v569_v23 = vrot.slane %v1932_v12, 1  ;;  %v799_v32 = vrot.slane %v1960_v25, 2 }
  0x2b   : > { %v2124_v36 = vrot.slane %v1935_v13, 1  ;;  %v1752_v54 = vunpack.c.l.bf16 %v2141_v24  ;;  %v683_v58 = vrot.slane %v1965_v28, 1 }
  0x2c   : > { %1649 = vmatmul.msk.bf16.gmra.mxu1 %vm382_vm2, %v333_v60  ;;  %v786_v60 = vrot.slane %v2005_v48, 1  ;;  %v796_v15 = vor.u32 %v795_v14, %v794_v7  ;;  %v570_v26 = vsel %vm555_vm4, %v567_v5, %v569_v23 }
  0x2d   : > { %1652 = vmatmul.msk.bf16.gmra.mxu2 %vm382_vm2, %v357_v61  ;;  %1655 = vmatmul.msk.bf16.gmra.mxu3 %vm382_vm2, %v381_v62  ;;  %v787_v61 = vrot.slane %v1949_v19, 2  ;;  %v572_v43 = vsel %vm555_vm4, %v569_v23, %v2124_v36  ;;  %v684_v63 = vsel %vm555_vm4, %v2124_v36, %v683_v58 }
  0x2e   : > { %v797_v22 = vsel %vm770_vm3, %v792_v3, %v796_v15 }
  0x30   : > { %1686 = vmatmul.msk.bf16.vlgmr.msrb.gmra.mxu0 %vm382_vm2, %v777_v31  ;;  %v798_v31 = vrot.slane %v2011_v50, 1 }
  0x32   : > { %v800_v34 = vor.u32 %v799_v32, %v798_v31 }
  0x34   : > { %v801_v35 = vsel %vm770_vm3, %v796_v15, %v800_v34 }
  0x3c   : > { %1650 = vmatmul.msk.bf16.gmra.mxu1 %vm382_vm2, %v341_v37  ;;  %v803_v37 = vshrl.u32 %v1965_v28, 16 }
  0x3d   : > { %1653 = vmatmul.msk.bf16.gmra.mxu2 %vm382_vm2, %v365_v41  ;;  %1676 = vmatmul.msk.bf16.vlgmr.msrb.gmra.mxu3 %vm382_vm2, %v560_v42  ;;  %v806_v41 = vshll.u32 %v1965_v28, 16 }
  0x3e   : > { %v805_v46 = vrot.slane %v803_v37, 1 }
  0x3f   : > { %v808_v47 = vrot.slane %v806_v41, 2 }
  0x40   : > { %1687 = vmatmul.msk.bf16.gmra.mxu0 %vm382_vm2, %v781_v51 }
  0x41   : > { %v809_v51 = vor.u32 %v808_v47, %v805_v46 }
  0x4c   : > { %1656 = vmatmul.msk.bf16.vlgmr.msrb.gmra.mxu1 %vm382_vm2, %v1975_v33  ;;  %v788_v33 = vor.u32 %v787_v61, %v786_v60 }
  0x4d   : > { %1666 = vmatmul.msk.bf16.vlgmr.msrb.gmra.mxu2 %vm382_vm2, %v558_v52  ;;  %1677 = vmatmul.msk.bf16.gmra.mxu3 %vm382_vm2, %v562_v53 }
  0x4e   : > { %v789_v62 = vsel %vm770_vm3, %v784_v56, %v788_v33  ;;  %v793_v4 = vsel %vm770_vm3, %v788_v33, %v792_v3  ;;  %v810_v56 = vsel %vm770_vm3, %v800_v34, %v809_v51  ;;  %v1294_v34 = vrot.slane %v1923_v9, 3 }
  0x50   : > { %1688 = vmatmul.msk.bf16.gmra.mxu0 %vm382_vm2, %v785_v57  ;;  %v2152_v57 = vpack.c.bf16 %v1752_v54, %v1752_v54  ;;  %v1140_v54 = vrot.slane %v1998_v44, 2 }
  0x52   : > { %v812_v60 = vshrl.u32 %v2152_v57, 16  ;;  %v815_v61 = vshll.u32 %v2152_v57, 16  ;;  %v685_v15 = vrot.slane %v2152_v57, 1 }
  0x54   : > { %v814_v1 = vrot.slane %v812_v60, 1  ;;  %v817_v2 = vrot.slane %v815_v61, 2  ;;  %v686_v31 = vsel %vm555_vm4, %v683_v58, %v685_v15  ;;  %v1143_v58 = vrot.slane %v2046_v29, 2 }
  0x56   : > { %v818_v3 = vor.u32 %v817_v2, %v814_v1 }
  0x58   : > { %v819_v14 = vsel %vm770_vm3, %v809_v51, %v818_v3 }
  0x5c   : > { %1657 = vmatmul.msk.bf16.gmra.mxu1 %vm382_vm2, %v1920_v8 }
  0x5d   : > { %1667 = vmatmul.msk.bf16.gmra.mxu2 %vm382_vm2, %v560_v42  ;;  %1678 = vmatmul.msk.bf16.gmra.mxu3 %vm382_vm2, %v564_v59 }
  0x60   : > { %1689 = vmatmul.msk.bf16.gmra.mxu0 %vm382_vm2, %v789_v62 }
  0x6c   : > { %1658 = vmatmul.msk.bf16.gmra.mxu1 %vm382_vm2, %v1923_v9 }
  0x6d   : > { %1668 = vmatmul.msk.bf16.gmra.mxu2 %vm382_vm2, %v562_v53  ;;  %1679 = vmatmul.msk.bf16.gmra.mxu3 %vm382_vm2, %v566_v0 }
  0x70   : > { %1690 = vmatmul.msk.bf16.gmra.mxu0 %vm382_vm2, %v793_v4 }
  0x7c   : > { %1659 = vmatmul.msk.bf16.gmra.mxu1 %vm382_vm2, %v1984_v38 }
  0x7d   : > { %1669 = vmatmul.msk.bf16.gmra.mxu2 %vm382_vm2, %v564_v59  ;;  %1680 = vmatmul.msk.bf16.gmra.mxu3 %vm382_vm2, %v568_v6 }
  0x80   : > { %1691 = vmatmul.msk.bf16.gmra.mxu0 %vm382_vm2, %v797_v22 }
  0x8c   : > { %1660 = vmatmul.msk.bf16.gmra.mxu1 %vm382_vm2, %v1926_v10 }
  0x8d   : > { %1670 = vmatmul.msk.bf16.gmra.mxu2 %vm382_vm2, %v566_v0  ;;  %1681 = vmatmul.msk.bf16.gmra.mxu3 %vm382_vm2, %v570_v26 }
  0x90   : > { %1692 = vmatmul.msk.bf16.gmra.mxu0 %vm382_vm2, %v801_v35  ;;  %v1295_v35 = vrot.slane %v1984_v38, 3 }
  0x92   : > { %v1296_v61 = vsel %vm1293_vm5, %v1294_v34, %v1295_v35 }
  0x99   : > { %v2128_v42 = vpop.f32.mrf.mxu1 }
  0x9c   : > { %1661 = vmatmul.msk.bf16.gmra.mxu1 %vm382_vm2, %v1929_v11 }
  0x9d   : > { %1671 = vmatmul.msk.bf16.gmra.mxu2 %vm382_vm2, %v568_v6  ;;  %1682 = vmatmul.msk.bf16.gmra.mxu3 %vm382_vm2, %v572_v43  ;;  %v423_v55 = vpop.f32.mrf.mxu0 }
  0xa0   : > { %v2143_v27 = vpop.f32.mrf.mxu2  ;;  %v2145_v52 = vpop.f32.mrf.mxu3  ;;  %1693 = vmatmul.msk.bf16.gmra.mxu0 %vm382_vm2, %v810_v56  ;;  %v1141_v56 = vrot.slane %v1940_v16, 3 }
  0xa1   : > { %v2147_v53 = vpop.f32.mrf.mxu1 }
  0xa2   : > { %v1142_v1 = vor.u32 %v1141_v56, %v1140_v54 }
  0xa5   : > { %v425_v0 = vpop.f32.mrf.mxu0 }
  0xa8   : > { %v2155_v59 = vpop.f32.mrf.mxu2  ;;  %v2159_v33 = vpop.f32.mrf.mxu3 }
  0xa9   : > { %v2161_v62 = vpop.f32.mrf.mxu1 }
  0xac   : > { %1662 = vmatmul.msk.bf16.gmra.mxu1 %vm382_vm2, %v1988_v39 }
  0xad   : > { %1672 = vmatmul.msk.bf16.gmra.mxu2 %vm382_vm2, %v570_v26  ;;  %1683 = vmatmul.msk.bf16.gmra.mxu3 %vm382_vm2, %v684_v63  ;;  %v859_v7 = vpop.f32.mrf.mxu0  ;;  %v573_v63 = vrot.slane %v1990_v40, 1  ;;  %v1297_v40 = vrot.slane %v1926_v10, 3 }
  0xaf   : > { %v574_v16 = vsel %vm555_vm4, %v2124_v36, %v573_v63  ;;  %v1298_v63 = vsel %vm1293_vm5, %v1295_v35, %v1297_v40 }
  0xb0   : > { %v2169_v4 = vpop.f32.mrf.mxu2  ;;  %v2171_v5 = vpop.f32.mrf.mxu3  ;;  %1694 = vmatmul.msk.bf16.gmra.mxu0 %vm382_vm2, %v819_v14 }
  0xb1   : > { %v2173_v6 = vpop.f32.mrf.mxu1 }
  0xb5   : > { %v861_v32 = vpop.f32.mrf.mxu0 }
  0xb8   : > { %v2178_v22 = vpop.f32.mrf.mxu2  ;;  %v2180_v23 = vpop.f32.mrf.mxu3 }
  0xb9   : > { %v2182_v26 = vpop.f32.mrf.mxu1 }
  0xbc   : > { %1663 = vmatmul.msk.bf16.gmra.mxu1 %vm382_vm2, %v1932_v12 }
  0xbd   : > { %1673 = vmatmul.msk.bf16.gmra.mxu2 %vm382_vm2, %v572_v43  ;;  %1684 = vmatmul.msk.bf16.gmra.mxu3 %vm382_vm2, %v686_v31  ;;  %v1144_v43 = vrot.slane %v2001_v45, 3  ;;  %v864_v60 = vpop.f32.mrf.mxu0 }
  0xbf   : > { %v1145_v2 = vor.u32 %v1144_v43, %v1143_v58  ;;  %v1147_v58 = vrot.slane %v1946_v18, 2  ;;  %v1148_v43 = vrot.slane %v1943_v17, 3 }
  0xc0   : > { %v2191_v46 = vpop.f32.mrf.mxu2  ;;  %v705_v47 = vpop.f32.mrf.mxu3  ;;  %1726 = vmatmul.msk.bf16.vlgmr.msra.gmra.mxu0 %vm382_vm2, %v1296_v61 }
  0xc1   : > { %v2193_v51 = vpop.f32.mrf.mxu1  ;;  %v1146_v45 = vsel %vm1139_vm6, %v1142_v1, %v1145_v2  ;;  %v1149_v18 = vor.u32 %v1148_v43, %v1147_v58 }
  0xc5   : > { %v866_v15 = vpop.f32.mrf.mxu0 }
  0xc8   : > { %v2202_v3 = vpop.f32.mrf.mxu2  ;;  %v707_v14 = vpop.f32.mrf.mxu3 }
  0xc9   : > { %v498_v44 = vpop.f32.mrf.mxu1 }
  0xca   : > { %v499_v29 = vadd.f32 %v498_v44, %v423_v55  ;;  %v925_v44 = vrot.slane %v1920_v8, 2  ;;  %v1150_v8 = vsel %vm1139_vm6, %v1145_v2, %v1149_v18 }
  0xcc   : > { %1664 = vmatmul.msk.bf16.gmra.mxu1 %vm382_vm2, %v1935_v13 }
  0xcd   : > { %1674 = vmatmul.msk.bf16.gmra.mxu2 %vm382_vm2, %v574_v16  ;;  %1716 = vmatmul.msk.bf16.vlgmr.msra.gmra.mxu3 %vm382_vm2, %v1146_v45  ;;  %v2214_v61 = vpop.f32.mrf.mxu0  ;;  %v926_v16 = vrot.slane %v1923_v9, 2 }
  0xd0   : > { %v614_v31 = vpop.f32.mrf.mxu2  ;;  %v710_v54 = vpop.f32.mrf.mxu3  ;;  %1727 = vmatmul.msk.bf16.gmra.mxu0 %vm382_vm2, %v1298_v63  ;;  %v1152_v63 = vrot.slane %v1949_v19, 3 }
  0xd1   : > { %v659_v34 = vadd.f32 %v614_v31, %v499_v29  ;;  %v500_v56 = vpop.f32.mrf.mxu1  ;;  %v928_v29 = vrot.slane %v1984_v38, 2  ;;  %v927_v31 = vsel %vm924_vm7, %v925_v44, %v926_v16 }
  0xd2   : > { %v501_v55 = vadd.f32 %v500_v56, %v425_v0  ;;  %v1299_v56 = vrot.slane %v1929_v11, 3 }
  0xd3   : > { %v750_v36 = vadd.f32 %v705_v47, %v659_v34  ;;  %v929_v35 = vsel %vm924_vm7, %v926_v16, %v928_v29 }
  0xd4   : > { %v1300_v16 = vsel %vm1293_vm5, %v1297_v40, %v1299_v56 }
  0xd5   : > { %v2217_v1 = vadd.f32 %v859_v7, %v750_v36  ;;  %v871_v9 = vpop.f32.mrf.mxu0 }
  0xd8   : > { %v616_v47 = vpop.f32.mrf.mxu2  ;;  %v712_v45 = vpop.f32.mrf.mxu3 }
  0xd9   : > { %v660_v0 = vadd.f32 %v616_v47, %v501_v55  ;;  %v503_v17 = vpop.f32.mrf.mxu1  ;;  %v930_v47 = vrot.slane %v1926_v10, 2 }
  0xda   : > { %v504_v34 = vadd.f32 %v503_v17, %v2128_v42 }
  0xdb   : > { %v751_v7 = vadd.f32 %v707_v14, %v660_v0  ;;  %v1151_v14 = vrot.slane %v2005_v48, 2  ;;  %v931_v48 = vsel %vm924_vm7, %v928_v29, %v930_v47 }
  0xdc   : > { %1696 = vmatmul.msk.bf16.vlgmr.msra.gmra.mxu1 %vm382_vm2, %v927_v31 }
  0xdd   : > { %1706 = vmatmul.msk.bf16.vlgmr.msra.gmra.mxu2 %vm382_vm2, %v929_v35  ;;  %v2229_v38 = vadd.f32 %v861_v32, %v751_v7  ;;  %1717 = vmatmul.msk.bf16.gmra.mxu3 %vm382_vm2, %v1150_v8  ;;  %v874_v44 = vpop.f32.mrf.mxu0  ;;  %v1153_v0 = vor.u32 %v1152_v63, %v1151_v14 }
  0xdf   : > { %v1154_v19 = vsel %vm1139_vm6, %v1149_v18, %v1153_v0 }
  0xe0   : > { %v619_v58 = vpop.f32.mrf.mxu2  ;;  %v715_v55 = vpop.f32.mrf.mxu3  ;;  %1728 = vmatmul.msk.bf16.gmra.mxu0 %vm382_vm2, %v1300_v16 }
  0xe1   : > { %v661_v36 = vadd.f32 %v619_v58, %v504_v34  ;;  %v505_v43 = vpop.f32.mrf.mxu1 }
  0xe2   : > { %v506_v2 = vadd.f32 %v505_v43, %v2147_v53  ;;  %v1156_v43 = vrot.slane %v2008_v49, 3 }
  0xe3   : > { %v752_v42 = vadd.f32 %v710_v54, %v661_v36 }
  0xe5   : > { %v2237_v32 = vadd.f32 %v864_v60, %v752_v42  ;;  %v876_v8 = vpop.f32.mrf.mxu0  ;;  %v1301_v60 = vrot.slane %v1988_v39, 3  ;;  %v932_v42 = vrot.slane %v1929_v11, 2 }
  0xe7   : > { %v1302_v14 = vsel %vm1293_vm5, %v1299_v56, %v1301_v60 }
  0xe8   : > { %v621_v17 = vpop.f32.mrf.mxu2  ;;  %v717_v7 = vpop.f32.mrf.mxu3 }
  0xe9   : > { %v662_v31 = vadd.f32 %v621_v17, %v506_v2  ;;  %v508_v34 = vpop.f32.mrf.mxu1 }
  0xea   : > { %v509_v53 = vadd.f32 %v508_v34, %v2161_v62 }
  0xeb   : > { %v753_v54 = vadd.f32 %v712_v45, %v662_v31  ;;  %v1155_v45 = vrot.slane %v2049_v30, 2 }
  0xec   : > { %1697 = vmatmul.msk.bf16.gmra.mxu1 %vm382_vm2, %v929_v35 }
  0xed   : > { %1707 = vmatmul.msk.bf16.gmra.mxu2 %vm382_vm2, %v931_v48  ;;  %v2246_v10 = vadd.f32 %v866_v15, %v753_v54  ;;  %1718 = vmatmul.msk.bf16.gmra.mxu3 %vm382_vm2, %v1154_v19  ;;  %v879_v35 = vpop.f32.mrf.mxu0  ;;  %v1157_v2 = vor.u32 %v1156_v43, %v1155_v45  ;;  %v1160_v19 = vrot.slane %v1952_v20, 3 }
  0xef   : > { %v1158_v31 = vsel %vm1139_vm6, %v1153_v0, %v1157_v2 }
  0xf0   : > { %v624_v40 = vpop.f32.mrf.mxu2  ;;  %v720_v36 = vpop.f32.mrf.mxu3  ;;  %1729 = vmatmul.msk.bf16.gmra.mxu0 %vm382_vm2, %v1302_v14 }
  0xf1   : > { %v663_v58 = vadd.f32 %v624_v40, %v509_v53  ;;  %v510_v29 = vpop.f32.mrf.mxu1 }
  0xf2   : > { %v511_v18 = vadd.f32 %v510_v29, %v2173_v6 }
  0xf3   : > { %v754_v62 = vadd.f32 %v715_v55, %v663_v58  ;;  %v933_v55 = vsel %vm924_vm7, %v930_v47, %v932_v42  ;;  %v934_v58 = vrot.slane %v1988_v39, 2 }
  0xf5   : > { %v2255_v15 = vadd.f32 %v2214_v61, %v754_v62  ;;  %v881_v56 = vpop.f32.mrf.mxu0  ;;  %v1303_v61 = vrot.slane %v1932_v12, 3 }
  0xf7   : > { %v1304_v40 = vsel %vm1293_vm5, %v1301_v60, %v1303_v61  ;;  %v1305_v60 = vrot.slane %v1935_v13, 3 }
  0xf8   : > { %v626_v63 = vpop.f32.mrf.mxu2  ;;  %v722_v17 = vpop.f32.mrf.mxu3 }
  0xf9   : > { %v664_v16 = vadd.f32 %v626_v63, %v511_v18  ;;  %v513_v30 = vpop.f32.mrf.mxu1 }
  0xfa   : > { %v514_v49 = vadd.f32 %v513_v30, %v2182_v26  ;;  %v1164_v30 = vrot.slane %v1960_v25, 3 }
  0xfb   : > { %v755_v6 = vadd.f32 %v717_v7, %v664_v16  ;;  %v1159_v7 = vrot.slane %v1955_v21, 2  ;;  %v935_v21 = vsel %vm924_vm7, %v932_v42, %v934_v58 }
  0xfc   : > { %1698 = vmatmul.msk.bf16.gmra.mxu1 %vm382_vm2, %v931_v48 }
  0xfd   : > { %1708 = vmatmul.msk.bf16.gmra.mxu2 %vm382_vm2, %v933_v55  ;;  %v2264_v11 = vadd.f32 %v871_v9, %v755_v6  ;;  %1719 = vmatmul.msk.bf16.gmra.mxu3 %vm382_vm2, %v1158_v31  ;;  %v884_v48 = vpop.f32.mrf.mxu0  ;;  %v1161_v29 = vor.u32 %v1160_v19, %v1159_v7  ;;  %v1306_v6 = vsel %vm1293_vm5, %v1303_v61, %v1305_v60 }
 0x100   : > { %v629_v34 = vpop.f32.mrf.mxu2  ;;  %v725_v53 = vpop.f32.mrf.mxu3  ;;  %1730 = vmatmul.msk.bf16.gmra.mxu0 %vm382_vm2, %v1304_v40 }
 0x101   : > { %v665_v54 = vadd.f32 %v629_v34, %v514_v49  ;;  %v515_v47 = vpop.f32.mrf.mxu1  ;;  %v936_v49 = vrot.slane %v1932_v12, 2 }
 0x102   : > { %v516_v0 = vadd.f32 %v515_v47, %v2193_v51  ;;  %v1162_v51 = vsel %vm1139_vm6, %v1157_v2, %v1161_v29  ;;  %v1163_v2 = vrot.slane %v2011_v50, 2 }
 0x103   : > { %v756_v26 = vadd.f32 %v720_v36, %v665_v54  ;;  %v937_v50 = vsel %vm924_vm7, %v934_v58, %v936_v49 }
 0x104   : > { %v1165_v31 = vor.u32 %v1164_v30, %v1163_v2 }
 0x105   : > { %v2272_v9 = vadd.f32 %v874_v44, %v756_v26  ;;  %v886_v20 = vpop.f32.mrf.mxu0 }
 0x106   : > { %v1166_v25 = vsel %vm1139_vm6, %v1161_v29, %v1165_v31  ;;  %v1167_v29 = vrot.slane %v803_v37, 2 }
 0x108   : > { %v631_v45 = vpop.f32.mrf.mxu2  ;;  %v727_v18 = vpop.f32.mrf.mxu3 }
 0x109   : > { %v666_v62 = vadd.f32 %v631_v45, %v516_v0  ;;  %v518_v43 = vpop.f32.mrf.mxu1  ;;  %v1168_v45 = vrot.slane %v806_v41, 3 }
 0x10a   : > { %v519_v39 = vadd.f32 %v518_v43, %v2143_v27 }
 0x10b   : > { %v757_v36 = vadd.f32 %v722_v17, %v666_v62 }
 0x10c   : > { %1699 = vmatmul.msk.bf16.gmra.mxu1 %vm382_vm2, %v933_v55 }
 0x10d   : > { %1709 = vmatmul.msk.bf16.gmra.mxu2 %vm382_vm2, %v935_v21  ;;  %v2280_v44 = vadd.f32 %v876_v8, %v757_v36  ;;  %1720 = vmatmul.msk.bf16.gmra.mxu3 %vm382_vm2, %v1162_v51  ;;  %v889_v55 = vpop.f32.mrf.mxu0 }
 0x110   : > { %v634_v14 = vpop.f32.mrf.mxu2  ;;  %v730_v16 = vpop.f32.mrf.mxu3  ;;  %1731 = vmatmul.msk.bf16.gmra.mxu0 %vm382_vm2, %v1306_v6 }
 0x111   : > { %v667_v63 = vadd.f32 %v634_v14, %v519_v39  ;;  %v520_v42 = vpop.f32.mrf.mxu1 }
 0x112   : > { %v521_v27 = vadd.f32 %v520_v42, %v2155_v59  ;;  %v1309_v42 = vrot.slane %v2141_v24, 3 }
 0x113   : > { %v758_v17 = vadd.f32 %v725_v53, %v667_v63 }
 0x115   : > { %v2288_v8 = vadd.f32 %v879_v35, %v758_v17  ;;  %v2295_v26 = vpop.f32.mrf.mxu0  ;;  %v1307_v35 = vrot.slane %v1965_v28, 3 }
 0x118   : > { %v636_v34 = vpop.f32.mrf.mxu2  ;;  %v732_v47 = vpop.f32.mrf.mxu3 }
 0x119   : > { %v668_v54 = vadd.f32 %v636_v34, %v521_v27  ;;  %v523_v53 = vpop.f32.mrf.mxu1 }
 0x11a   : > { %v524_v59 = vadd.f32 %v523_v53, %v2169_v4  ;;  %v938_v4 = vrot.slane %v1935_v13, 2 }
 0x11b   : > { %v759_v7 = vadd.f32 %v727_v18, %v668_v54  ;;  %v268_v54 = vld [vmem:[%s1917_s7 + $0x58] sm:$0xf] }
 0x11c   : > { %1700 = vmatmul.msk.bf16.gmra.mxu1 %vm382_vm2, %v935_v21  ;;  %v1169_v21 = vor.u32 %v1168_v45, %v1167_v29  ;;  %v939_v14 = vsel %vm924_vm7, %v936_v49, %v938_v4 }
 0x11d   : > { %1710 = vmatmul.msk.bf16.gmra.mxu2 %vm382_vm2, %v937_v50  ;;  %v2299_v12 = vadd.f32 %v881_v56, %v759_v7  ;;  %1721 = vmatmul.msk.bf16.gmra.mxu3 %vm382_vm2, %v1166_v25  ;;  %v2308_v62 = vpop.f32.mrf.mxu0  ;;  %v1308_v56 = vsel %vm1293_vm5, %v1305_v60, %v1307_v35  ;;  %v1175_v60 = vshll.u32 %v2141_v24, 16  ;;  %v291_v7 = vunpack.c.l.bf16 %v268_v54 }
 0x11e   : > { %v1170_v63 = vsel %vm1139_vm6, %v1165_v31, %v1169_v21 }
 0x11f   : > { %v1177_v31 = vrot.slane %v1175_v60, 3 }
 0x120   : > { %v639_v61 = vpop.f32.mrf.mxu2  ;;  %v735_v19 = vpop.f32.mrf.mxu3  ;;  %1732 = vmatmul.msk.bf16.gmra.mxu0 %vm382_vm2, %v1308_v56 }
 0x121   : > { %v669_v0 = vadd.f32 %v639_v61, %v524_v59  ;;  %v525_v40 = vpop.f32.mrf.mxu1 }
 0x122   : > { %v526_v43 = vadd.f32 %v525_v40, %v2178_v22 }
 0x123   : > { %v760_v58 = vadd.f32 %v730_v16, %v669_v0 }
 0x125   : > { %v2311_v18 = vadd.f32 %v884_v48, %v760_v58  ;;  %v2318_v16 = vpop.f32.mrf.mxu0  ;;  %v1172_v48 = vshrl.u32 %v2141_v24, 16  ;;  %v1047_v58 = vpack.c.bf16 %v291_v7, %v291_v7 }
 0x127   : > { %v1174_v27 = vrot.slane %v1172_v48, 2  ;;  %v1181_v29 = vshrl.u32 %v1047_v58, 16  ;;  %v1184_v45 = vshll.u32 %v1047_v58, 16  ;;  %v1311_v56 = vrot.slane %v1047_v58, 3 }
 0x128   : > { %v641_v36 = vpop.f32.mrf.mxu2  ;;  %v737_v39 = vpop.f32.mrf.mxu3  ;;  %v1054_v7 = vrot.slane %v1047_v58, 2 }
 0x129   : > { %v670_v51 = vadd.f32 %v641_v36, %v526_v43  ;;  %v528_v37 = vpop.f32.mrf.mxu1 }
 0x12a   : > { %v529_v22 = vadd.f32 %v528_v37, %v2191_v46  ;;  %v2334_v46 = vrot.slane %v1965_v28, 2  ;;  %v1186_v37 = vrot.slane %v1184_v45, 3 }
 0x12b   : > { %v761_v41 = vadd.f32 %v732_v47, %v670_v51 }
 0x12c   : > { %1701 = vmatmul.msk.bf16.gmra.mxu1 %vm382_vm2, %v937_v50  ;;  %v1178_v50 = vor.u32 %v1177_v31, %v1174_v27 }
 0x12d   : > { %1711 = vmatmul.msk.bf16.gmra.mxu2 %vm382_vm2, %v939_v14  ;;  %v2322_v13 = vadd.f32 %v886_v20, %v761_v41  ;;  %1722 = vmatmul.msk.bf16.gmra.mxu3 %vm382_vm2, %v1170_v63  ;;  %v899_v34 = vpop.f32.mrf.mxu0  ;;  %v1310_v20 = vsel %vm1293_vm5, %v1307_v35, %v1309_v42  ;;  %v1312_v41 = vsel %vm1293_vm5, %v1309_v42, %v1311_v56  ;;  %v1052_v63 = vrot.slane %v2141_v24, 2  ;;  %v2382_v56 = vld [vmem:[%s2477_s2] ss:$0 sm:$0xff] }
 0x130   : > { %v644_v17 = vpop.f32.mrf.mxu2  ;;  %v740_v30 = vpop.f32.mrf.mxu3  ;;  %1733 = vmatmul.msk.bf16.gmra.mxu0 %vm382_vm2, %v1310_v20 }
 0x131   : > { %v671_v2 = vadd.f32 %v644_v17, %v529_v22  ;;  %v530_v6 = vpop.f32.mrf.mxu1 }
 0x132   : > { %v531_v53 = vadd.f32 %v530_v6, %v2202_v3 }
 0x133   : > { %v762_v49 = vadd.f32 %v735_v19, %v671_v2  ;;  %v941_v19 = vsel %vm924_vm7, %v938_v4, %v2334_v46 }
 0x135   : > { %v2331_v47 = vadd.f32 %v889_v55, %v762_v49  ;;  %v1179_v55 = vsel %vm1139_vm6, %v1169_v21, %v1178_v50  ;;  %v901_v40 = vpop.f32.mrf.mxu0 }
 0x138   : > { %v646_v25 = vpop.f32.mrf.mxu2  ;;  %v742_v61 = vpop.f32.mrf.mxu3 }
 0x139   : > { %v672_v59 = vadd.f32 %v646_v25, %v531_v53  ;;  %v533_v0 = vpop.f32.mrf.mxu1 }
 0x13a   : > { %v534_v3 = vadd.f32 %v533_v0, %v2145_v52 }
 0x13b   : > { %v763_v35 = vadd.f32 %v737_v39, %v672_v59  ;;  %v1183_v39 = vrot.slane %v1181_v29, 2 }
 0x13c   : > { %1702 = vmatmul.msk.bf16.gmra.mxu1 %vm382_vm2, %v939_v14 }
 0x13d   : > { %1712 = vmatmul.msk.bf16.gmra.mxu2 %vm382_vm2, %v941_v19  ;;  %v2344_v28 = vadd.f32 %v2295_v26, %v763_v35  ;;  %1723 = vmatmul.msk.bf16.gmra.mxu3 %vm382_vm2, %v1179_v55  ;;  %v1352_v14 = vpop.f32.mrf.mxu0  ;;  %v1187_v22 = vor.u32 %v1186_v37, %v1183_v39  ;;  %v1055_v35 = vsel %vm924_vm7, %v1052_v63, %v1054_v7 }
 0x13f   : > { %v1188_v42 = vsel %vm1139_vm6, %v1178_v50, %v1187_v22  ;;  %v942_v50 = vrot.slane %v2152_v57, 2 }
 0x140   : > { %v649_v4 = vpop.f32.mrf.mxu2  ;;  %v745_v36 = vpop.f32.mrf.mxu3  ;;  %1734 = vmatmul.msk.bf16.gmra.mxu0 %vm382_vm2, %v1312_v41 }
 0x141   : > { %v673_v43 = vadd.f32 %v649_v4, %v534_v3  ;;  %v535_v21 = vpop.f32.mrf.mxu1 }
 0x142   : > { %v536_v52 = vadd.f32 %v535_v21, %v2159_v33 }
 0x143   : > { %v764_v51 = vadd.f32 %v740_v30, %v673_v43  ;;  %v1053_v30 = vsel %vm924_vm7, %v2334_v46, %v1052_v63 }
 0x145   : > { %v2350_v26 = vadd.f32 %v2308_v62, %v764_v51  ;;  %v1354_v62 = vpop.f32.mrf.mxu0 }
 0x148   : > { %v651_v48 = vpop.f32.mrf.mxu2  ;;  %v747_v17 = vpop.f32.mrf.mxu3 }
 0x149   : > { %v674_v60 = vadd.f32 %v651_v48, %v536_v52  ;;  %v538_v2 = vpop.f32.mrf.mxu1 }
 0x14a   : > { %v539_v33 = vadd.f32 %v538_v2, %v2171_v5  ;;  %v943_v5 = vsel %vm924_vm7, %v2334_v46, %v942_v50 }
 0x14b   : > { %v765_v6 = vadd.f32 %v742_v61, %v674_v60 }
 0x14c   : > { %1703 = vmatmul.msk.bf16.gmra.mxu1 %vm382_vm2, %v941_v19 }
 0x14d   : > { %1713 = vmatmul.msk.bf16.gmra.mxu2 %vm382_vm2, %v1053_v30  ;;  %v2361_v24 = vadd.f32 %v2318_v16, %v765_v6  ;;  %1724 = vmatmul.msk.bf16.gmra.mxu3 %vm382_vm2, %v1188_v42  ;;  %v1357_v25 = vpop.f32.mrf.mxu0 }
 0x150   : > { %v654_v49 = vpop.f32.mrf.mxu2  ;;  %v1228_v31 = vpop.f32.mrf.mxu3 }
 0x151   : > { %v675_v27 = vadd.f32 %v654_v49, %v539_v33  ;;  %v540_v20 = vpop.f32.mrf.mxu1 }
 0x152   : > { %v541_v16 = vadd.f32 %v540_v20, %v2180_v23 }
 0x153   : > { %v766_v54 = vadd.f32 %v745_v36, %v675_v27 }
 0x155   : > { %v2365_v53 = vadd.f32 %v899_v34, %v766_v54  ;;  %v1359_v58 = vpop.f32.mrf.mxu0 }
 0x158   : > { %v656_v59 = vpop.f32.mrf.mxu2  ;;  %v1230_v0 = vpop.f32.mrf.mxu3 }
 0x159   : > { %v676_v61 = vadd.f32 %v656_v59, %v541_v16  ;;  %v983_v19 = vpop.f32.mrf.mxu1 }
 0x15a   : > { %v1028_v23 = vadd.f32 %v983_v19, %v2217_v1 }
 0x15b   : > { %v767_v34 = vadd.f32 %v747_v17, %v676_v61 }
 0x15c   : > { %1704 = vmatmul.msk.bf16.gmra.mxu1 %vm382_vm2, %v943_v5 }
 0x15d   : > { %1714 = vmatmul.msk.bf16.gmra.mxu2 %vm382_vm2, %v1055_v35  ;;  %v2376_v57 = vadd.f32 %v901_v40, %v767_v34  ;;  %v1362_v37 = vpop.f32.mrf.mxu0 }
 0x160   : > { %v1074_v55 = vpop.f32.mrf.mxu2  ;;  %v1233_v29 = vpop.f32.mrf.mxu3 }
 0x161   : > { %v1119_v3 = vadd.f32 %v1074_v55, %v1028_v23  ;;  %v985_v46 = vpop.f32.mrf.mxu1 }
 0x162   : > { %v1029_v43 = vadd.f32 %v985_v46, %v2229_v38 }
 0x163   : > { %v1273_v45 = vadd.f32 %v1228_v31, %v1119_v3 }
 0x165   : > { %v1397_v4 = vadd.f32 %v1352_v14, %v1273_v45  ;;  %v1364_v30 = vpop.f32.mrf.mxu0 }
 0x167   : > { %v1419_v40 = vadd.f32 %v2382_v56, %v1397_v4 }
 0x168   : > { %v1076_v1 = vpop.f32.mrf.mxu2  ;;  %v1235_v51 = vpop.f32.mrf.mxu3 }
 0x169   : > { %v1437_v36 = vpack.c.bf16 %v1419_v40, %v1419_v40  ;;  %v1120_v21 = vadd.f32 %v1076_v1, %v1029_v43  ;;  %v988_v39 = vpop.f32.mrf.mxu1 }
 0x16a   : > { %v1030_v63 = vadd.f32 %v988_v39, %v2237_v32 }
 0x16b   : > { %1456 = vst.msk [vmem:[%s2389_s4] sm:$0xf] %vm1455_vm8, %v1437_v36  ;;  %v1274_v14 = vadd.f32 %v1230_v0, %v1120_v21 }
 0x16d   : > { %v1398_v41 = vadd.f32 %v1354_v62, %v1274_v14  ;;  %v1367_v50 = vpop.f32.mrf.mxu0 }
 0x16f   : > { %v1420_v38 = vadd.f32 %v2382_v56, %v1398_v41 }
 0x170   : > { %v1079_v52 = vpop.f32.mrf.mxu2  ;;  %v1238_v60 = vpop.f32.mrf.mxu3 }
 0x171   : > { %v1438_v22 = vpack.c.bf16 %v1420_v38, %v1420_v38  ;;  %v1121_v48 = vadd.f32 %v1079_v52, %v1030_v63  ;;  %v990_v17 = vpop.f32.mrf.mxu1 }
 0x172   : > { %v1031_v33 = vadd.f32 %v990_v17, %v2246_v10 }
 0x173   : > { %1457 = vst.msk [vmem:[%s2389_s4 + $0x4] sm:$0xf] %vm1455_vm8, %v1438_v22  ;;  %v1275_v2 = vadd.f32 %v1233_v29, %v1121_v48 }
 0x175   : > { %v1399_v6 = vadd.f32 %v1357_v25, %v1275_v2  ;;  %v1369_v55 = vpop.f32.mrf.mxu0 }
 0x177   : > { %v1421_v42 = vadd.f32 %v2382_v56, %v1399_v6 }
 0x178   : > { %v1081_v62 = vpop.f32.mrf.mxu2  ;;  %v1240_v32 = vpop.f32.mrf.mxu3 }
 0x179   : > { %v1439_v49 = vpack.c.bf16 %v1421_v42, %v1421_v42  ;;  %v1122_v27 = vadd.f32 %v1081_v62, %v1031_v33  ;;  %v993_v31 = vpop.f32.mrf.mxu1 }
 0x17a   : > { %v1032_v16 = vadd.f32 %v993_v31, %v2255_v15 }
 0x17b   : > { %1458 = vst.msk [vmem:[%s2389_s4 + $0x8] sm:$0xf] %vm1455_vm8, %v1439_v49  ;;  %v1276_v20 = vadd.f32 %v1235_v51, %v1122_v27 }
 0x17d   : > { %v1400_v54 = vadd.f32 %v1359_v58, %v1276_v20  ;;  %v1372_v51 = vpop.f32.mrf.mxu0 }
 0x17f   : > { %v1422_v7 = vadd.f32 %v2382_v56, %v1400_v54 }
 0x180   : > { %v1084_v25 = vpop.f32.mrf.mxu2  ;;  %v1243_v10 = vpop.f32.mrf.mxu3 }
 0x181   : > { %v1440_v59 = vpack.c.bf16 %v1422_v7, %v1422_v7  ;;  %v1123_v61 = vadd.f32 %v1084_v25, %v1032_v16  ;;  %v995_v0 = vpop.f32.mrf.mxu1 }
 0x182   : > { %v1033_v34 = vadd.f32 %v995_v0, %v2264_v11 }
 0x183   : > { %1459 = vst.msk [vmem:[%s2389_s4 + $0xc] sm:$0xf] %vm1455_vm8, %v1440_v59  ;;  %v1277_v19 = vadd.f32 %v1238_v60, %v1123_v61 }
 0x185   : > { %v1401_v5 = vadd.f32 %v1362_v37, %v1277_v19  ;;  %v1374_v60 = vpop.f32.mrf.mxu0 }
 0x187   : > { %v1423_v35 = vadd.f32 %v2382_v56, %v1401_v5 }
 0x188   : > { %v1086_v23 = vpop.f32.mrf.mxu2  ;;  %v1245_v15 = vpop.f32.mrf.mxu3 }
 0x189   : > { %v1441_v58 = vpack.c.bf16 %v1423_v35, %v1423_v35  ;;  %v1124_v3 = vadd.f32 %v1086_v23, %v1033_v34  ;;  %v998_v29 = vpop.f32.mrf.mxu1 }
 0x18a   : > { %v1034_v40 = vadd.f32 %v998_v29, %v2272_v9 }
 0x18b   : > { %1460 = vst.msk [vmem:[%s2389_s4 + $0x10] sm:$0xf] %vm1455_vm8, %v1441_v58  ;;  %v1278_v46 = vadd.f32 %v1240_v32, %v1124_v3 }
 0x18d   : > { %v1402_v45 = vadd.f32 %v1364_v30, %v1278_v46  ;;  %v1377_v32 = vpop.f32.mrf.mxu0 }
 0x18f   : > { %v1424_v4 = vadd.f32 %v2382_v56, %v1402_v45 }
 0x190   : > { %v1089_v43 = vpop.f32.mrf.mxu2  ;;  %v1248_v11 = vpop.f32.mrf.mxu3 }
 0x191   : > { %v1442_v1 = vpack.c.bf16 %v1424_v4, %v1424_v4  ;;  %v1125_v36 = vadd.f32 %v1089_v43, %v1034_v40  ;;  %v1000_v21 = vpop.f32.mrf.mxu1 }
 0x192   : > { %v1035_v41 = vadd.f32 %v1000_v21, %v2280_v44 }
 0x193   : > { %1461 = vst.msk [vmem:[%s2389_s4 + $0x14] sm:$0xf] %vm1455_vm8, %v1442_v1  ;;  %v1279_v39 = vadd.f32 %v1243_v10, %v1125_v36 }
 0x195   : > { %v1403_v37 = vadd.f32 %v1367_v50, %v1279_v39  ;;  %v1379_v19 = vpop.f32.mrf.mxu0 }
 0x197   : > { %v1425_v14 = vadd.f32 %v2382_v56, %v1403_v37 }
 0x198   : > { %v1091_v38 = vpop.f32.mrf.mxu2  ;;  %v1250_v22 = vpop.f32.mrf.mxu3 }
 0x199   : > { %v1443_v63 = vpack.c.bf16 %v1425_v14, %v1425_v14  ;;  %v1126_v52 = vadd.f32 %v1091_v38, %v1035_v41  ;;  %v1003_v9 = vpop.f32.mrf.mxu1 }
 0x19a   : > { %v1036_v30 = vadd.f32 %v1003_v9, %v2288_v8 }
 0x19b   : > { %1462 = vst.msk [vmem:[%s2389_s4 + $0x18] sm:$0xf] %vm1455_vm8, %v1443_v63  ;;  %v1280_v48 = vadd.f32 %v1245_v15, %v1126_v52 }
 0x19d   : > { %v1404_v17 = vadd.f32 %v1369_v55, %v1280_v48  ;;  %v1382_v45 = vpop.f32.mrf.mxu0 }
 0x19f   : > { %v1426_v2 = vadd.f32 %v2382_v56, %v1404_v17 }
 0x1a0   : > { %v1094_v6 = vpop.f32.mrf.mxu2  ;;  %v1253_v49 = vpop.f32.mrf.mxu3 }
 0x1a1   : > { %v1444_v42 = vpack.c.bf16 %v1426_v2, %v1426_v2  ;;  %v1127_v33 = vadd.f32 %v1094_v6, %v1036_v30  ;;  %v1005_v44 = vpop.f32.mrf.mxu1 }
 0x1a2   : > { %v1037_v20 = vadd.f32 %v1005_v44, %v2299_v12 }
 0x1a3   : > { %1463 = vst.msk [vmem:[%s2389_s4 + $0x1c] sm:$0xf] %vm1455_vm8, %v1444_v42  ;;  %v1281_v62 = vadd.f32 %v1248_v11, %v1127_v33 }
 0x1a5   : > { %v1405_v27 = vadd.f32 %v1372_v51, %v1281_v62  ;;  %v1384_v37 = vpop.f32.mrf.mxu0 }
 0x1a7   : > { %v1427_v31 = vadd.f32 %v2382_v56, %v1405_v27 }
 0x1a8   : > { %v1096_v54 = vpop.f32.mrf.mxu2  ;;  %v1255_v59 = vpop.f32.mrf.mxu3 }
 0x1a9   : > { %v1445_v50 = vpack.c.bf16 %v1427_v31, %v1427_v31  ;;  %v1128_v7 = vadd.f32 %v1096_v54, %v1037_v20  ;;  %v1008_v8 = vpop.f32.mrf.mxu1 }
 0x1aa   : > { %v1038_v10 = vadd.f32 %v1008_v8, %v2311_v18 }
 0x1ab   : > { %1464 = vst.msk [vmem:[%s2389_s4 + $0x20] sm:$0xf] %vm1455_vm8, %v1445_v50  ;;  %v1282_v16 = vadd.f32 %v1250_v22, %v1128_v7 }
 0x1ad   : > { %v1406_v25 = vadd.f32 %v1374_v60, %v1282_v16  ;;  %v1387_v17 = vpop.f32.mrf.mxu0 }
 0x1af   : > { %v1428_v61 = vadd.f32 %v2382_v56, %v1406_v25 }
 0x1b0   : > { %v1099_v0 = vpop.f32.mrf.mxu2  ;;  %v1258_v15 = vpop.f32.mrf.mxu3 }
 0x1b1   : > { %v1446_v5 = vpack.c.bf16 %v1428_v61, %v1428_v61  ;;  %v1129_v35 = vadd.f32 %v1099_v0, %v1038_v10  ;;  %v1010_v12 = vpop.f32.mrf.mxu1 }
 0x1b2   : > { %v1039_v58 = vadd.f32 %v1010_v12, %v2322_v13 }
 0x1b3   : > { %1465 = vst.msk [vmem:[%s2389_s4 + $0x24] sm:$0xf] %vm1455_vm8, %v1446_v5  ;;  %v1283_v34 = vadd.f32 %v1253_v49, %v1129_v35 }
 0x1b5   : > { %v1407_v23 = vadd.f32 %v1377_v32, %v1283_v34  ;;  %v1389_v31 = vpop.f32.mrf.mxu0 }
 0x1b7   : > { %v1429_v55 = vadd.f32 %v2382_v56, %v1407_v23 }
 0x1b8   : > { %v1101_v3 = vpop.f32.mrf.mxu2  ;;  %v1260_v51 = vpop.f32.mrf.mxu3 }
 0x1b9   : > { %v1447_v29 = vpack.c.bf16 %v1429_v55, %v1429_v55  ;;  %v1130_v46 = vadd.f32 %v1101_v3, %v1039_v58  ;;  %v1013_v18 = vpop.f32.mrf.mxu1 }
 0x1ba   : > { %v1040_v1 = vadd.f32 %v1013_v18, %v2331_v47 }
 0x1bb   : > { %1466 = vst.msk [vmem:[%s2389_s4 + $0x28] sm:$0xf] %vm1455_vm8, %v1447_v29  ;;  %v1284_v4 = vadd.f32 %v1255_v59, %v1130_v46 }
 0x1bd   : > { %v1408_v40 = vadd.f32 %v1379_v19, %v1284_v4 }
 0x1bf   : > { %v1430_v43 = vadd.f32 %v2382_v56, %v1408_v40 }
 0x1c0   : > { %v1104_v36 = vpop.f32.mrf.mxu2  ;;  %v1263_v48 = vpop.f32.mrf.mxu3 }
 0x1c1   : > { %v1448_v11 = vpack.c.bf16 %v1430_v43, %v1430_v43  ;;  %v1131_v21 = vadd.f32 %v1104_v36, %v1040_v1  ;;  %v1015_v13 = vpop.f32.mrf.mxu1 }
 0x1c2   : > { %v1041_v38 = vadd.f32 %v1015_v13, %v2344_v28 }
 0x1c3   : > { %1467 = vst.msk [vmem:[%s2389_s4 + $0x2c] sm:$0xf] %vm1455_vm8, %v1448_v11  ;;  %v1285_v39 = vadd.f32 %v1258_v15, %v1131_v21 }
 0x1c5   : > { %v1409_v14 = vadd.f32 %v1382_v45, %v1285_v39 }
 0x1c7   : > { %v1431_v41 = vadd.f32 %v2382_v56, %v1409_v14 }
 0x1c8   : > { %v1106_v63 = vpop.f32.mrf.mxu2  ;;  %v1265_v49 = vpop.f32.mrf.mxu3 }
 0x1c9   : > { %v1449_v52 = vpack.c.bf16 %v1431_v41, %v1431_v41  ;;  %v1132_v9 = vadd.f32 %v1106_v63, %v1041_v38  ;;  %v1018_v47 = vpop.f32.mrf.mxu1 }
 0x1ca   : > { %v1042_v30 = vadd.f32 %v1018_v47, %v2350_v26 }
 0x1cb   : > { %1468 = vst.msk [vmem:[%s2389_s4 + $0x30] sm:$0xf] %vm1455_vm8, %v1449_v52  ;;  %v1286_v22 = vadd.f32 %v1260_v51, %v1132_v9 }
 0x1cd   : > { %v1410_v60 = vadd.f32 %v1384_v37, %v1286_v22 }
 0x1cf   : > { %v1432_v2 = vadd.f32 %v2382_v56, %v1410_v60 }
 0x1d0   : > { %v1109_v6 = vpop.f32.mrf.mxu2  ;;  %v1268_v59 = vpop.f32.mrf.mxu3 }
 0x1d1   : > { %v1450_v42 = vpack.c.bf16 %v1432_v2, %v1432_v2  ;;  %v1133_v33 = vadd.f32 %v1109_v6, %v1042_v30  ;;  %v1020_v28 = vpop.f32.mrf.mxu1 }
 0x1d2   : > { %v1043_v32 = vadd.f32 %v1020_v28, %v2361_v24  ;;  %v1392_v24 = vpop.f32.mrf.mxu0 }
 0x1d3   : > { %1469 = vst.msk [vmem:[%s2389_s4 + $0x34] sm:$0xf] %vm1455_vm8, %v1450_v42  ;;  %v1287_v44 = vadd.f32 %v1263_v48, %v1133_v33 }
 0x1d5   : > { %v1411_v62 = vadd.f32 %v1387_v17, %v1287_v44 }
 0x1d7   : > { %v1433_v27 = vadd.f32 %v2382_v56, %v1411_v62 }
 0x1d8   : > { %v1111_v20 = vpop.f32.mrf.mxu2 }
 0x1d9   : > { %v1451_v54 = vpack.c.bf16 %v1433_v27, %v1433_v27  ;;  %v1134_v50 = vadd.f32 %v1111_v20, %v1043_v32  ;;  %v1023_v26 = vpop.f32.mrf.mxu1 }
 0x1da   : > { %v1044_v25 = vadd.f32 %v1023_v26, %v2365_v53  ;;  %v1270_v53 = vpop.f32.mrf.mxu3  ;;  %v1394_v15 = vpop.f32.mrf.mxu0 }
 0x1db   : > { %1470 = vst.msk [vmem:[%s2389_s4 + $0x38] sm:$0xf] %vm1455_vm8, %v1451_v54  ;;  %v1288_v7 = vadd.f32 %v1265_v49, %v1134_v50 }
 0x1dd   : > { %v1412_v8 = vadd.f32 %v1389_v31, %v1288_v7 }
 0x1df   : > { %v1434_v16 = vadd.f32 %v2382_v56, %v1412_v8 }
 0x1e0   : > { %v1114_v61 = vpop.f32.mrf.mxu2 }
 0x1e1   : > { %v1452_v10 = vpack.c.bf16 %v1434_v16, %v1434_v16  ;;  %v1135_v0 = vadd.f32 %v1114_v61, %v1044_v25  ;;  %v1025_v5 = vpop.f32.mrf.mxu1 }
 0x1e2   : > { %v1045_v34 = vadd.f32 %v1025_v5, %v2376_v57 }
 0x1e3   : > { %1471 = vst.msk [vmem:[%s2389_s4 + $0x3c] sm:$0xf] %vm1455_vm8, %v1452_v10  ;;  %v1289_v19 = vadd.f32 %v1268_v59, %v1135_v0 }
 0x1e5   : > { %v1413_v35 = vadd.f32 %v1392_v24, %v1289_v19 }
 0x1e7   : > { %v1435_v12 = vadd.f32 %v2382_v56, %v1413_v35 }
 0x1e8   : > { %v1116_v23 = vpop.f32.mrf.mxu2 }
 0x1e9   : > { %v1453_v55 = vpack.c.bf16 %v1435_v12, %v1435_v12  ;;  %v1136_v58 = vadd.f32 %v1116_v23, %v1045_v34 }
 0x1eb   : > { %1472 = vst.msk [vmem:[%s2389_s4 + $0x40] sm:$0xf] %vm1455_vm8, %v1453_v55  ;;  %v1290_v3 = vadd.f32 %v1270_v53, %v1136_v58 }
 0x1ed   : > { %v1414_v29 = vadd.f32 %v1394_v15, %v1290_v3 }
 0x1ef   : > { %v1436_v46 = vadd.f32 %v2382_v56, %v1414_v29 }
 0x1f1   : > { %v1454_v18 = vpack.c.bf16 %v1436_v46, %v1436_v46 }
 0x1f3   : > { %1473 = vst.msk [vmem:[%s2389_s4 + $0x44] sm:$0xf] %vm1455_vm8, %v1454_v18 }
 0x1f4 PF: > { %s13_s16 = sadd.s32 1, %s1840_s16   ;;  %s2479_s12 = smov %s1832_s14 }
 0x1f5   : > { %p10_p7 = scmp.ge.s32.totalorder %s13_s16, 6   ;;  %s2480_s13 = smov %s1836_s15 }
 0x1f6   : > { %s2481_s14 = smov %s2484_s17  ;;  %s2482_s15 = smov %s2488_s18 }
 0x1f7   :  { %12 = sbr.rel (!%p10_p7) target bundleno = 3 (0x3), region = 77 }

// kernel: generator_forward.49
= control target key start
LH: loop header
LB: loop body
LE: loop exit
PB: predicated region body
PF: predicated region fallthrough
CT: control target
= control target key end

     0   :  { %vm265_vm0 = vcmask 261120   ;;  %vm976_vm1 = vcmask 23552   ;;  %s2019_s1 = inlined_call_operand.vmem [shape: bf16[32,32], index: 1, kind: input, shape index: {}]   ;;  %s2020_s2 = inlined_call_operand.vmem [shape: f32[1,32], index: 2, kind: input, shape index: {}]   ;;  %s2021_s0 = inlined_call_operand.vmem [shape: bf16[512,32], index: 0, kind: input, shape index: {}]   ;;  %s2022_s3 = inlined_call_operand.vmem [shape: bf16[32,3], index: 3, kind: input, shape index: {}]   ;;  %s2023_s4 = inlined_call_operand.vmem [shape: f32[1,3], index: 4, kind: input, shape index: {}]   ;;  %s2024_s5 = inlined_call_operand.vmem [shape: f32[512,3], index: 5, kind: output, shape index: {}]  }
   0x1   :  { %v1286_v0 = vld [vmem:[%s2019_s1 + $0x8] sm:$0xff]  ;;  %v1285_v1 = vld [vmem:[%s2019_s1] sm:$0xff]  ;;  %v1255_v6 = vld [vmem:[%s2021_s0 + $0x10] sm:$0xff] }
   0x2   :  { %368 = vmatpush.bf16.msra.mxu0 %v1286_v0  ;;  %1289 = vmatpush.bf16.msra.mxu2 %v1286_v0  ;;  %v1253_v2 = vld [vmem:[%s2021_s0] sm:$0xff]  ;;  %v1254_v4 = vld [vmem:[%s2021_s0 + $0x8] sm:$0xff]  ;;  %v1271_v7 = vld [vmem:[%s2021_s0 + $0x90] sm:$0xff] }
   0x3   :  { %v1269_v3 = vld [vmem:[%s2021_s0 + $0x80] sm:$0xff]  ;;  %v1270_v5 = vld [vmem:[%s2021_s0 + $0x88] sm:$0xff]  ;;  %v1256_v8 = vld [vmem:[%s2021_s0 + $0x18] sm:$0xff] }
   0x4   :  { %v1272_v9 = vld [vmem:[%s2021_s0 + $0x98] sm:$0xff]  ;;  %v1257_v10 = vld [vmem:[%s2021_s0 + $0x20] sm:$0xff]  ;;  %v1258_v12 = vld [vmem:[%s2021_s0 + $0x28] sm:$0xff] }
   0x5   :  { %v1273_v11 = vld [vmem:[%s2021_s0 + $0xa0] sm:$0xff]  ;;  %v1274_v13 = vld [vmem:[%s2021_s0 + $0xa8] sm:$0xff]  ;;  %v1259_v14 = vld [vmem:[%s2021_s0 + $0x30] sm:$0xff] }
   0x6   :  { %369 = vmatpush.bf16.msra.mxu0 %v1285_v1  ;;  %1290 = vmatpush.bf16.msra.mxu2 %v1285_v1  ;;  %v1275_v15 = vld [vmem:[%s2021_s0 + $0xb0] sm:$0xff]  ;;  %v1288_v16 = vld [vmem:[%s2022_s3 + $0x8] sm:$0xff]  ;;  %v1287_v17 = vld [vmem:[%s2022_s3] sm:$0xff] }
   0x7   :  { %749 = vmatpush.bf16.msra.mxu1 %v1288_v16  ;;  %1291 = vmatpush.bf16.msra.mxu3 %v1288_v16  ;;  %v1260_v18 = vld [vmem:[%s2021_s0 + $0x38] sm:$0xff]  ;;  %v1261_v20 = vld [vmem:[%s2021_s0 + $0x40] sm:$0xff]  ;;  %v1262_v34 = vld [vmem:[%s2021_s0 + $0x48] sm:$0xff] }
   0x8   :  { %v1276_v19 = vld [vmem:[%s2021_s0 + $0xb8] sm:$0xff]  ;;  %v1277_v21 = vld [vmem:[%s2021_s0 + $0xc0] sm:$0xff]  ;;  %v1278_v35 = vld [vmem:[%s2021_s0 + $0xc8] sm:$0xff] }
   0x9   :  { %1181 = vmatmul.msk.bf16.vlgmr.msra.gmra.mxu0 %vm265_vm0, %v1253_v2  ;;  %1197 = vmatmul.msk.bf16.vlgmr.msra.gmra.mxu2 %vm265_vm0, %v1269_v3  ;;  %v1538_v23 = vld [vmem:[%s2020_s2] ss:$0 sm:$0xff]  ;;  %v1263_v50 = vld [vmem:[%s2021_s0 + $0x50] sm:$0xff]  ;;  %v1264_v2 = vld [vmem:[%s2021_s0 + $0x58] sm:$0xff] }
   0xa   :  { %v1279_v51 = vld [vmem:[%s2021_s0 + $0xd0] sm:$0xff]  ;;  %v1280_v3 = vld [vmem:[%s2021_s0 + $0xd8] sm:$0xff] }
   0xb   :  { %750 = vmatpush.bf16.msra.mxu1 %v1287_v17  ;;  %1292 = vmatpush.bf16.msra.mxu3 %v1287_v17 }
  0x19   :  { %1182 = vmatmul.msk.bf16.gmra.mxu0 %vm265_vm0, %v1254_v4  ;;  %1198 = vmatmul.msk.bf16.gmra.mxu2 %vm265_vm0, %v1270_v5 }
  0x29   :  { %1183 = vmatmul.msk.bf16.gmra.mxu0 %vm265_vm0, %v1255_v6  ;;  %1199 = vmatmul.msk.bf16.gmra.mxu2 %vm265_vm0, %v1271_v7 }
  0x39   :  { %1184 = vmatmul.msk.bf16.gmra.mxu0 %vm265_vm0, %v1256_v8  ;;  %1200 = vmatmul.msk.bf16.gmra.mxu2 %vm265_vm0, %v1272_v9 }
  0x49   :  { %1185 = vmatmul.msk.bf16.gmra.mxu0 %vm265_vm0, %v1257_v10  ;;  %1201 = vmatmul.msk.bf16.gmra.mxu2 %vm265_vm0, %v1273_v11 }
  0x59   :  { %1186 = vmatmul.msk.bf16.gmra.mxu0 %vm265_vm0, %v1258_v12  ;;  %1202 = vmatmul.msk.bf16.gmra.mxu2 %vm265_vm0, %v1274_v13 }
  0x69   :  { %1187 = vmatmul.msk.bf16.gmra.mxu0 %vm265_vm0, %v1259_v14  ;;  %1203 = vmatmul.msk.bf16.gmra.mxu2 %vm265_vm0, %v1275_v15 }
  0x79   :  { %1188 = vmatmul.msk.bf16.gmra.mxu0 %vm265_vm0, %v1260_v18  ;;  %1204 = vmatmul.msk.bf16.gmra.mxu2 %vm265_vm0, %v1276_v19  ;;  %v1265_v18 = vld [vmem:[%s2021_s0 + $0x60] sm:$0xff] }
  0x7a   :  { %v1281_v19 = vld [vmem:[%s2021_s0 + $0xe0] sm:$0xff] }
  0x86   :  { %v371_v22 = vpop.f32.mrf.mxu0 }
  0x87   :  { %v372_v24 = vadd.f32 %v1538_v23, %v371_v22 }
  0x89   :  { %1189 = vmatmul.msk.bf16.gmra.mxu0 %vm265_vm0, %v1261_v20  ;;  %1205 = vmatmul.msk.bf16.gmra.mxu2 %vm265_vm0, %v1277_v21  ;;  %v531_v27 = vmax.f32 %v372_v24, 0.0 }
  0x8c   :  { %v451_v25 = vpop.f32.mrf.mxu2 }
  0x8d   :  { %v452_v30 = vadd.f32 %v1538_v23, %v451_v25 }
  0x8e   :  { %v373_v26 = vpop.f32.mrf.mxu0 }
  0x8f   :  { %v374_v28 = vadd.f32 %v1538_v23, %v373_v26  ;;  %v563_v37 = vmax.f32 %v452_v30, 0.0 }
  0x91   :  { %v532_v29 = vmax.f32 %v374_v28, 0.0 }
  0x93   :  { %v595_v31 = vpack.c.bf16 %v532_v29, %v531_v27 }
  0x94   :  { %v453_v32 = vpop.f32.mrf.mxu2 }
  0x95   :  { %v454_v33 = vadd.f32 %v1538_v23, %v453_v32  ;;  %1221 = vmatmul.msk.bf16.vlgmr.msra.gmra.mxu1 %vm265_vm0, %v595_v31 }
  0x96   :  { %v376_v36 = vpop.f32.mrf.mxu0 }
  0x97   :  { %v564_v38 = vmax.f32 %v454_v33, 0.0  ;;  %v377_v40 = vadd.f32 %v1538_v23, %v376_v36  ;;  %v1282_v36 = vld [vmem:[%s2021_s0 + $0xe8] sm:$0xff] }
  0x99   :  { %1190 = vmatmul.msk.bf16.gmra.mxu0 %vm265_vm0, %v1262_v34  ;;  %1206 = vmatmul.msk.bf16.gmra.mxu2 %vm265_vm0, %v1278_v35  ;;  %v611_v39 = vpack.c.bf16 %v564_v38, %v563_v37  ;;  %v533_v43 = vmax.f32 %v377_v40, 0.0  ;;  %v1266_v35 = vld [vmem:[%s2021_s0 + $0x68] sm:$0xff] }
  0x9b   :  { %1237 = vmatmul.msk.bf16.vlgmr.msra.gmra.mxu3 %vm265_vm0, %v611_v39 }
  0x9c   :  { %v456_v41 = vpop.f32.mrf.mxu2 }
  0x9d   :  { %v457_v46 = vadd.f32 %v1538_v23, %v456_v41 }
  0x9e   :  { %v378_v42 = vpop.f32.mrf.mxu0 }
  0x9f   :  { %v379_v44 = vadd.f32 %v1538_v23, %v378_v42  ;;  %v565_v53 = vmax.f32 %v457_v46, 0.0 }
  0xa1   :  { %v534_v45 = vmax.f32 %v379_v44, 0.0 }
  0xa3   :  { %v596_v47 = vpack.c.bf16 %v534_v45, %v533_v43 }
  0xa4   :  { %v458_v48 = vpop.f32.mrf.mxu2 }
  0xa5   :  { %v459_v49 = vadd.f32 %v1538_v23, %v458_v48  ;;  %1222 = vmatmul.msk.bf16.gmra.mxu1 %vm265_vm0, %v596_v47 }
  0xa6   :  { %v381_v52 = vpop.f32.mrf.mxu0 }
  0xa7   :  { %v566_v54 = vmax.f32 %v459_v49, 0.0  ;;  %v382_v56 = vadd.f32 %v1538_v23, %v381_v52  ;;  %v1283_v52 = vld [vmem:[%s2021_s0 + $0xf0] sm:$0xff] }
  0xa9   :  { %1191 = vmatmul.msk.bf16.gmra.mxu0 %vm265_vm0, %v1263_v50  ;;  %1207 = vmatmul.msk.bf16.gmra.mxu2 %vm265_vm0, %v1279_v51  ;;  %v612_v55 = vpack.c.bf16 %v566_v54, %v565_v53  ;;  %v535_v59 = vmax.f32 %v382_v56, 0.0  ;;  %v1267_v51 = vld [vmem:[%s2021_s0 + $0x70] sm:$0xff] }
  0xab   :  { %1238 = vmatmul.msk.bf16.gmra.mxu3 %vm265_vm0, %v612_v55 }
  0xac   :  { %v461_v57 = vpop.f32.mrf.mxu2 }
  0xad   :  { %v462_v62 = vadd.f32 %v1538_v23, %v461_v57 }
  0xae   :  { %v383_v58 = vpop.f32.mrf.mxu0 }
  0xaf   :  { %v384_v60 = vadd.f32 %v1538_v23, %v383_v58  ;;  %v567_v5 = vmax.f32 %v462_v62, 0.0 }
  0xb1   :  { %v536_v61 = vmax.f32 %v384_v60, 0.0 }
  0xb3   :  { %v597_v63 = vpack.c.bf16 %v536_v61, %v535_v59 }
  0xb4   :  { %v463_v0 = vpop.f32.mrf.mxu2 }
  0xb5   :  { %v464_v1 = vadd.f32 %v1538_v23, %v463_v0  ;;  %1223 = vmatmul.msk.bf16.gmra.mxu1 %vm265_vm0, %v597_v63 }
  0xb6   :  { %v386_v4 = vpop.f32.mrf.mxu0 }
  0xb7   :  { %v568_v6 = vmax.f32 %v464_v1, 0.0  ;;  %v387_v8 = vadd.f32 %v1538_v23, %v386_v4  ;;  %v1284_v4 = vld [vmem:[%s2021_s0 + $0xf8] sm:$0xff] }
  0xb9   :  { %1192 = vmatmul.msk.bf16.gmra.mxu0 %vm265_vm0, %v1264_v2  ;;  %1208 = vmatmul.msk.bf16.gmra.mxu2 %vm265_vm0, %v1280_v3  ;;  %v613_v7 = vpack.c.bf16 %v568_v6, %v567_v5  ;;  %v537_v11 = vmax.f32 %v387_v8, 0.0  ;;  %v1268_v3 = vld [vmem:[%s2021_s0 + $0x78] sm:$0xff] }
  0xbb   :  { %1239 = vmatmul.msk.bf16.gmra.mxu3 %vm265_vm0, %v613_v7 }
  0xbc   :  { %v466_v9 = vpop.f32.mrf.mxu2 }
  0xbd   :  { %v467_v14 = vadd.f32 %v1538_v23, %v466_v9 }
  0xbe   :  { %v388_v10 = vpop.f32.mrf.mxu0 }
  0xbf   :  { %v389_v12 = vadd.f32 %v1538_v23, %v388_v10  ;;  %v569_v21 = vmax.f32 %v467_v14, 0.0 }
  0xc1   :  { %v538_v13 = vmax.f32 %v389_v12, 0.0 }
  0xc3   :  { %v598_v15 = vpack.c.bf16 %v538_v13, %v537_v11 }
  0xc4   :  { %v468_v16 = vpop.f32.mrf.mxu2 }
  0xc5   :  { %v469_v17 = vadd.f32 %v1538_v23, %v468_v16  ;;  %1224 = vmatmul.msk.bf16.gmra.mxu1 %vm265_vm0, %v598_v15 }
  0xc6   :  { %v391_v20 = vpop.f32.mrf.mxu0 }
  0xc7   :  { %v570_v22 = vmax.f32 %v469_v17, 0.0  ;;  %v392_v25 = vadd.f32 %v1538_v23, %v391_v20 }
  0xc9   :  { %1193 = vmatmul.msk.bf16.gmra.mxu0 %vm265_vm0, %v1265_v18  ;;  %1209 = vmatmul.msk.bf16.gmra.mxu2 %vm265_vm0, %v1281_v19  ;;  %v614_v24 = vpack.c.bf16 %v570_v22, %v569_v21  ;;  %v539_v28 = vmax.f32 %v392_v25, 0.0 }
  0xcb   :  { %1240 = vmatmul.msk.bf16.gmra.mxu3 %vm265_vm0, %v614_v24 }
  0xcc   :  { %v471_v26 = vpop.f32.mrf.mxu2 }
  0xcd   :  { %v472_v31 = vadd.f32 %v1538_v23, %v471_v26 }
  0xce   :  { %v393_v27 = vpop.f32.mrf.mxu0 }
  0xcf   :  { %v394_v29 = vadd.f32 %v1538_v23, %v393_v27  ;;  %v571_v38 = vmax.f32 %v472_v31, 0.0 }
  0xd1   :  { %v540_v30 = vmax.f32 %v394_v29, 0.0  ;;  %v1651_v29 = vld [vmem:[%s2023_s4] ss:$0 sm:$0xff] }
  0xd3   :  { %v599_v32 = vpack.c.bf16 %v540_v30, %v539_v28 }
  0xd4   :  { %v473_v33 = vpop.f32.mrf.mxu2 }
  0xd5   :  { %v474_v34 = vadd.f32 %v1538_v23, %v473_v33  ;;  %1225 = vmatmul.msk.bf16.gmra.mxu1 %vm265_vm0, %v599_v32 }
  0xd6   :  { %v396_v37 = vpop.f32.mrf.mxu0 }
  0xd7   :  { %v572_v39 = vmax.f32 %v474_v34, 0.0  ;;  %v397_v41 = vadd.f32 %v1538_v23, %v396_v37 }
  0xd9   :  { %v615_v40 = vpack.c.bf16 %v572_v39, %v571_v38  ;;  %1194 = vmatmul.msk.bf16.gmra.mxu0 %vm265_vm0, %v1266_v35  ;;  %1210 = vmatmul.msk.bf16.gmra.mxu2 %vm265_vm0, %v1282_v36  ;;  %v541_v44 = vmax.f32 %v397_v41, 0.0 }
  0xdb   :  { %1241 = vmatmul.msk.bf16.gmra.mxu3 %vm265_vm0, %v615_v40 }
  0xdc   :  { %v476_v42 = vpop.f32.mrf.mxu2 }
  0xdd   :  { %v477_v47 = vadd.f32 %v1538_v23, %v476_v42 }
  0xde   :  { %v398_v43 = vpop.f32.mrf.mxu0 }
  0xdf   :  { %v399_v45 = vadd.f32 %v1538_v23, %v398_v43  ;;  %v573_v54 = vmax.f32 %v477_v47, 0.0 }
  0xe1   :  { %v542_v46 = vmax.f32 %v399_v45, 0.0 }
  0xe3   :  { %v600_v48 = vpack.c.bf16 %v542_v46, %v541_v44 }
  0xe4   :  { %v478_v49 = vpop.f32.mrf.mxu2 }
  0xe5   :  { %v479_v50 = vadd.f32 %v1538_v23, %v478_v49  ;;  %1226 = vmatmul.msk.bf16.gmra.mxu1 %vm265_vm0, %v600_v48 }
  0xe6   :  { %v401_v53 = vpop.f32.mrf.mxu0 }
  0xe7   :  { %v574_v55 = vmax.f32 %v479_v50, 0.0  ;;  %v402_v57 = vadd.f32 %v1538_v23, %v401_v53 }
  0xe9   :  { %v616_v56 = vpack.c.bf16 %v574_v55, %v573_v54  ;;  %1195 = vmatmul.msk.bf16.gmra.mxu0 %vm265_vm0, %v1267_v51  ;;  %1211 = vmatmul.msk.bf16.gmra.mxu2 %vm265_vm0, %v1283_v52  ;;  %v543_v60 = vmax.f32 %v402_v57, 0.0 }
  0xeb   :  { %1242 = vmatmul.msk.bf16.gmra.mxu3 %vm265_vm0, %v616_v56 }
  0xec   :  { %v481_v58 = vpop.f32.mrf.mxu2 }
  0xed   :  { %v482_v63 = vadd.f32 %v1538_v23, %v481_v58 }
  0xee   :  { %v403_v59 = vpop.f32.mrf.mxu0 }
  0xef   :  { %v404_v61 = vadd.f32 %v1538_v23, %v403_v59  ;;  %v575_v6 = vmax.f32 %v482_v63, 0.0 }
  0xf1   :  { %v544_v62 = vmax.f32 %v404_v61, 0.0 }
  0xf3   :  { %v601_v0 = vpack.c.bf16 %v544_v62, %v543_v60 }
  0xf4   :  { %v483_v1 = vpop.f32.mrf.mxu2 }
  0xf5   :  { %v484_v2 = vadd.f32 %v1538_v23, %v483_v1  ;;  %1227 = vmatmul.msk.bf16.gmra.mxu1 %vm265_vm0, %v601_v0 }
  0xf6   :  { %v406_v5 = vpop.f32.mrf.mxu0 }
  0xf7   :  { %v576_v7 = vmax.f32 %v484_v2, 0.0  ;;  %v407_v9 = vadd.f32 %v1538_v23, %v406_v5 }
  0xf9   :  { %v617_v8 = vpack.c.bf16 %v576_v7, %v575_v6  ;;  %1196 = vmatmul.msk.bf16.gmra.mxu0 %vm265_vm0, %v1268_v3  ;;  %1212 = vmatmul.msk.bf16.gmra.mxu2 %vm265_vm0, %v1284_v4  ;;  %v545_v12 = vmax.f32 %v407_v9, 0.0 }
  0xfb   :  { %1243 = vmatmul.msk.bf16.gmra.mxu3 %vm265_vm0, %v617_v8 }
  0xfc   :  { %v486_v10 = vpop.f32.mrf.mxu2 }
  0xfd   :  { %v487_v15 = vadd.f32 %v1538_v23, %v486_v10 }
  0xfe   :  { %v408_v11 = vpop.f32.mrf.mxu0 }
  0xff   :  { %v409_v13 = vadd.f32 %v1538_v23, %v408_v11  ;;  %v577_v20 = vmax.f32 %v487_v15, 0.0 }
 0x101   :  { %v546_v14 = vmax.f32 %v409_v13, 0.0 }
 0x103   :  { %v602_v16 = vpack.c.bf16 %v546_v14, %v545_v12 }
 0x104   :  { %v488_v17 = vpop.f32.mrf.mxu2 }
 0x105   :  { %v489_v18 = vadd.f32 %v1538_v23, %v488_v17  ;;  %1228 = vmatmul.msk.bf16.gmra.mxu1 %vm265_vm0, %v602_v16 }
 0x106   :  { %v411_v19 = vpop.f32.mrf.mxu0 }
 0x107   :  { %v578_v21 = vmax.f32 %v489_v18, 0.0  ;;  %v412_v24 = vadd.f32 %v1538_v23, %v411_v19 }
 0x109   :  { %v618_v22 = vpack.c.bf16 %v578_v21, %v577_v20  ;;  %v547_v27 = vmax.f32 %v412_v24, 0.0 }
 0x10b   :  { %1244 = vmatmul.msk.bf16.gmra.mxu3 %vm265_vm0, %v618_v22 }
 0x10c   :  { %v491_v25 = vpop.f32.mrf.mxu2 }
 0x10d   :  { %v492_v32 = vadd.f32 %v1538_v23, %v491_v25 }
 0x10e   :  { %v413_v26 = vpop.f32.mrf.mxu0 }
 0x10f   :  { %v414_v28 = vadd.f32 %v1538_v23, %v413_v26  ;;  %v579_v38 = vmax.f32 %v492_v32, 0.0 }
 0x111   :  { %v548_v30 = vmax.f32 %v414_v28, 0.0 }
 0x112   :  { %v752_v31 = vpop.f32.mrf.mxu1 }
 0x113   :  { %v603_v33 = vpack.c.bf16 %v548_v30, %v547_v27  ;;  %v753_v34 = vadd.f32 %v1651_v29, %v752_v31 }
 0x114   :  { %v493_v35 = vpop.f32.mrf.mxu2 }
 0x115   :  { %1295 = vtanh.f32 %v753_v34  ;;  %v494_v36 = vadd.f32 %v1538_v23, %v493_v35  ;;  %1229 = vmatmul.msk.bf16.gmra.mxu1 %vm265_vm0, %v603_v33 }
 0x116   :  { %v416_v37 = vpop.f32.mrf.mxu0 }
 0x117   :  { %v580_v39 = vmax.f32 %v494_v36, 0.0  ;;  %v417_v43 = vadd.f32 %v1538_v23, %v416_v37 }
 0x119   :  { %v619_v40 = vpack.c.bf16 %v580_v39, %v579_v38  ;;  %v549_v48 = vmax.f32 %v417_v43, 0.0 }
 0x11a   :  { %v754_v41 = vpop.f32.mrf.mxu1 }
 0x11b   :  { %v1296_v42 = vpop.eup %1295  ;;  %v755_v44 = vadd.f32 %v1651_v29, %v754_v41  ;;  %1245 = vmatmul.msk.bf16.gmra.mxu3 %vm265_vm0, %v619_v40 }
 0x11c   :  { %977 = vst.msk [vmem:[%s2024_s5] sm:$0xff] %vm976_vm1, %v1296_v42  ;;  %v496_v45 = vpop.f32.mrf.mxu2 }
 0x11d   :  { %1297 = vtanh.f32 %v755_v44  ;;  %v497_v54 = vadd.f32 %v1538_v23, %v496_v45 }
 0x11e   :  { %v418_v46 = vpop.f32.mrf.mxu0  ;;  %v832_v47 = vpop.f32.mrf.mxu3 }
 0x11f   :  { %v419_v49 = vadd.f32 %v1538_v23, %v418_v46  ;;  %v833_v50 = vadd.f32 %v1651_v29, %v832_v47  ;;  %v581_v62 = vmax.f32 %v497_v54, 0.0 }
 0x121   :  { %v550_v51 = vmax.f32 %v419_v49, 0.0  ;;  %1299 = vtanh.f32 %v833_v50 }
 0x122   :  { %v757_v52 = vpop.f32.mrf.mxu1 }
 0x123   :  { %v1298_v53 = vpop.eup %1297  ;;  %v604_v55 = vpack.c.bf16 %v550_v51, %v549_v48  ;;  %v758_v56 = vadd.f32 %v1651_v29, %v757_v52 }
 0x124   :  { %978 = vst.msk [vmem:[%s2024_s5 + $0x8] sm:$0xff] %vm976_vm1, %v1298_v53  ;;  %v498_v57 = vpop.f32.mrf.mxu2 }
 0x125   :  { %1301 = vtanh.f32 %v758_v56  ;;  %v499_v58 = vadd.f32 %v1538_v23, %v498_v57  ;;  %1230 = vmatmul.msk.bf16.gmra.mxu1 %vm265_vm0, %v604_v55 }
 0x126   :  { %v421_v59 = vpop.f32.mrf.mxu0  ;;  %v834_v60 = vpop.f32.mrf.mxu3 }
 0x127   :  { %v1300_v61 = vpop.eup %1299  ;;  %v582_v63 = vmax.f32 %v499_v58, 0.0  ;;  %v835_v0 = vadd.f32 %v1651_v29, %v834_v60  ;;  %v422_v4 = vadd.f32 %v1538_v23, %v421_v59 }
 0x128   :  { %1009 = vst.msk [vmem:[%s2024_s5 + $0x100] sm:$0xff] %vm976_vm1, %v1300_v61 }
 0x129   :  { %v620_v1 = vpack.c.bf16 %v582_v63, %v581_v62  ;;  %1303 = vtanh.f32 %v835_v0  ;;  %v551_v10 = vmax.f32 %v422_v4, 0.0 }
 0x12a   :  { %v759_v2 = vpop.f32.mrf.mxu1 }
 0x12b   :  { %v1302_v3 = vpop.eup %1301  ;;  %v760_v5 = vadd.f32 %v1651_v29, %v759_v2  ;;  %1246 = vmatmul.msk.bf16.gmra.mxu3 %vm265_vm0, %v620_v1 }
 0x12c   :  { %979 = vst.msk [vmem:[%s2024_s5 + $0x10] sm:$0xff] %vm976_vm1, %v1302_v3  ;;  %v501_v6 = vpop.f32.mrf.mxu2 }
 0x12d   :  { %1305 = vtanh.f32 %v760_v5  ;;  %v502_v16 = vadd.f32 %v1538_v23, %v501_v6 }
 0x12e   :  { %v423_v7 = vpop.f32.mrf.mxu0  ;;  %v837_v8 = vpop.f32.mrf.mxu3 }
 0x12f   :  { %v1304_v9 = vpop.eup %1303  ;;  %v424_v11 = vadd.f32 %v1538_v23, %v423_v7  ;;  %v838_v12 = vadd.f32 %v1651_v29, %v837_v8  ;;  %v583_v25 = vmax.f32 %v502_v16, 0.0 }
 0x130   :  { %1010 = vst.msk [vmem:[%s2024_s5 + $0x108] sm:$0xff] %vm976_vm1, %v1304_v9 }
 0x131   :  { %v552_v13 = vmax.f32 %v424_v11, 0.0  ;;  %1307 = vtanh.f32 %v838_v12 }
 0x132   :  { %v762_v14 = vpop.f32.mrf.mxu1 }
 0x133   :  { %v1306_v15 = vpop.eup %1305  ;;  %v605_v17 = vpack.c.bf16 %v552_v13, %v551_v10  ;;  %v763_v18 = vadd.f32 %v1651_v29, %v762_v14 }
 0x134   :  { %980 = vst.msk [vmem:[%s2024_s5 + $0x18] sm:$0xff] %vm976_vm1, %v1306_v15  ;;  %v503_v19 = vpop.f32.mrf.mxu2 }
 0x135   :  { %1309 = vtanh.f32 %v763_v18  ;;  %v504_v20 = vadd.f32 %v1538_v23, %v503_v19  ;;  %1231 = vmatmul.msk.bf16.gmra.mxu1 %vm265_vm0, %v605_v17 }
 0x136   :  { %v426_v21 = vpop.f32.mrf.mxu0  ;;  %v839_v22 = vpop.f32.mrf.mxu3 }
 0x137   :  { %v1308_v24 = vpop.eup %1307  ;;  %v584_v26 = vmax.f32 %v504_v20, 0.0  ;;  %v840_v27 = vadd.f32 %v1651_v29, %v839_v22  ;;  %v427_v32 = vadd.f32 %v1538_v23, %v426_v21 }
 0x138   :  { %1011 = vst.msk [vmem:[%s2024_s5 + $0x110] sm:$0xff] %vm976_vm1, %v1308_v24 }
 0x139   :  { %v621_v28 = vpack.c.bf16 %v584_v26, %v583_v25  ;;  %1311 = vtanh.f32 %v840_v27  ;;  %v553_v38 = vmax.f32 %v427_v32, 0.0 }
 0x13a   :  { %v764_v30 = vpop.f32.mrf.mxu1 }
 0x13b   :  { %v1310_v31 = vpop.eup %1309  ;;  %v765_v33 = vadd.f32 %v1651_v29, %v764_v30  ;;  %1247 = vmatmul.msk.bf16.gmra.mxu3 %vm265_vm0, %v621_v28 }
 0x13c   :  { %981 = vst.msk [vmem:[%s2024_s5 + $0x20] sm:$0xff] %vm976_vm1, %v1310_v31  ;;  %v506_v34 = vpop.f32.mrf.mxu2 }
 0x13d   :  { %1313 = vtanh.f32 %v765_v33  ;;  %v507_v44 = vadd.f32 %v1538_v23, %v506_v34 }
 0x13e   :  { %v428_v35 = vpop.f32.mrf.mxu0  ;;  %v842_v36 = vpop.f32.mrf.mxu3 }
 0x13f   :  { %v1312_v37 = vpop.eup %1311  ;;  %v429_v39 = vadd.f32 %v1538_v23, %v428_v35  ;;  %v843_v40 = vadd.f32 %v1651_v29, %v842_v36  ;;  %v585_v52 = vmax.f32 %v507_v44, 0.0 }
 0x140   :  { %1012 = vst.msk [vmem:[%s2024_s5 + $0x118] sm:$0xff] %vm976_vm1, %v1312_v37 }
 0x141   :  { %v554_v41 = vmax.f32 %v429_v39, 0.0  ;;  %1315 = vtanh.f32 %v843_v40 }
 0x142   :  { %v767_v42 = vpop.f32.mrf.mxu1 }
 0x143   :  { %v1314_v43 = vpop.eup %1313  ;;  %v606_v45 = vpack.c.bf16 %v554_v41, %v553_v38  ;;  %v768_v46 = vadd.f32 %v1651_v29, %v767_v42 }
 0x144   :  { %982 = vst.msk [vmem:[%s2024_s5 + $0x28] sm:$0xff] %vm976_vm1, %v1314_v43  ;;  %v508_v47 = vpop.f32.mrf.mxu2 }
 0x145   :  { %1317 = vtanh.f32 %v768_v46  ;;  %v509_v48 = vadd.f32 %v1538_v23, %v508_v47  ;;  %1232 = vmatmul.msk.bf16.gmra.mxu1 %vm265_vm0, %v606_v45 }
 0x146   :  { %v431_v49 = vpop.f32.mrf.mxu0  ;;  %v844_v50 = vpop.f32.mrf.mxu3 }
 0x147   :  { %v1316_v51 = vpop.eup %1315  ;;  %v586_v53 = vmax.f32 %v509_v48, 0.0  ;;  %v845_v54 = vadd.f32 %v1651_v29, %v844_v50  ;;  %v432_v58 = vadd.f32 %v1538_v23, %v431_v49 }
 0x148   :  { %1013 = vst.msk [vmem:[%s2024_s5 + $0x120] sm:$0xff] %vm976_vm1, %v1316_v51 }
 0x149   :  { %v622_v55 = vpack.c.bf16 %v586_v53, %v585_v52  ;;  %1319 = vtanh.f32 %v845_v54  ;;  %v555_v0 = vmax.f32 %v432_v58, 0.0 }
 0x14a   :  { %v769_v56 = vpop.f32.mrf.mxu1 }
 0x14b   :  { %v1318_v57 = vpop.eup %1317  ;;  %v770_v59 = vadd.f32 %v1651_v29, %v769_v56  ;;  %1248 = vmatmul.msk.bf16.gmra.mxu3 %vm265_vm0, %v622_v55 }
 0x14c   :  { %983 = vst.msk [vmem:[%s2024_s5 + $0x30] sm:$0xff] %vm976_vm1, %v1318_v57  ;;  %v511_v60 = vpop.f32.mrf.mxu2 }
 0x14d   :  { %1321 = vtanh.f32 %v770_v59  ;;  %v512_v6 = vadd.f32 %v1538_v23, %v511_v60 }
 0x14e   :  { %v433_v61 = vpop.f32.mrf.mxu0  ;;  %v847_v62 = vpop.f32.mrf.mxu3 }
 0x14f   :  { %v1320_v63 = vpop.eup %1319  ;;  %v434_v1 = vadd.f32 %v1538_v23, %v433_v61  ;;  %v848_v2 = vadd.f32 %v1651_v29, %v847_v62  ;;  %v587_v14 = vmax.f32 %v512_v6, 0.0 }
 0x150   :  { %1014 = vst.msk [vmem:[%s2024_s5 + $0x128] sm:$0xff] %vm976_vm1, %v1320_v63 }
 0x151   :  { %v556_v3 = vmax.f32 %v434_v1, 0.0  ;;  %1323 = vtanh.f32 %v848_v2 }
 0x152   :  { %v772_v4 = vpop.f32.mrf.mxu1 }
 0x153   :  { %v1322_v5 = vpop.eup %1321  ;;  %v607_v7 = vpack.c.bf16 %v556_v3, %v555_v0  ;;  %v773_v8 = vadd.f32 %v1651_v29, %v772_v4 }
 0x154   :  { %984 = vst.msk [vmem:[%s2024_s5 + $0x38] sm:$0xff] %vm976_vm1, %v1322_v5  ;;  %v513_v9 = vpop.f32.mrf.mxu2 }
 0x155   :  { %1325 = vtanh.f32 %v773_v8  ;;  %v514_v10 = vadd.f32 %v1538_v23, %v513_v9  ;;  %1233 = vmatmul.msk.bf16.gmra.mxu1 %vm265_vm0, %v607_v7 }
 0x156   :  { %v436_v11 = vpop.f32.mrf.mxu0  ;;  %v849_v12 = vpop.f32.mrf.mxu3 }
 0x157   :  { %v1324_v13 = vpop.eup %1323  ;;  %v588_v15 = vmax.f32 %v514_v10, 0.0  ;;  %v850_v16 = vadd.f32 %v1651_v29, %v849_v12  ;;  %v437_v20 = vadd.f32 %v1538_v23, %v436_v11 }
 0x158   :  { %1015 = vst.msk [vmem:[%s2024_s5 + $0x130] sm:$0xff] %vm976_vm1, %v1324_v13 }
 0x159   :  { %v623_v17 = vpack.c.bf16 %v588_v15, %v587_v14  ;;  %1327 = vtanh.f32 %v850_v16  ;;  %v557_v27 = vmax.f32 %v437_v20, 0.0 }
 0x15a   :  { %v774_v18 = vpop.f32.mrf.mxu1 }
 0x15b   :  { %v1326_v19 = vpop.eup %1325  ;;  %v775_v21 = vadd.f32 %v1651_v29, %v774_v18  ;;  %1249 = vmatmul.msk.bf16.gmra.mxu3 %vm265_vm0, %v623_v17 }
 0x15c   :  { %985 = vst.msk [vmem:[%s2024_s5 + $0x40] sm:$0xff] %vm976_vm1, %v1326_v19  ;;  %v516_v22 = vpop.f32.mrf.mxu2 }
 0x15d   :  { %1329 = vtanh.f32 %v775_v21  ;;  %v517_v34 = vadd.f32 %v1538_v23, %v516_v22 }
 0x15e   :  { %v438_v24 = vpop.f32.mrf.mxu0  ;;  %v852_v25 = vpop.f32.mrf.mxu3 }
 0x15f   :  { %v1328_v26 = vpop.eup %1327  ;;  %v439_v28 = vadd.f32 %v1538_v23, %v438_v24  ;;  %v853_v30 = vadd.f32 %v1651_v29, %v852_v25  ;;  %v589_v42 = vmax.f32 %v517_v34, 0.0 }
 0x160   :  { %1016 = vst.msk [vmem:[%s2024_s5 + $0x138] sm:$0xff] %vm976_vm1, %v1328_v26 }
 0x161   :  { %v558_v31 = vmax.f32 %v439_v28, 0.0  ;;  %1331 = vtanh.f32 %v853_v30 }
 0x162   :  { %v777_v32 = vpop.f32.mrf.mxu1 }
 0x163   :  { %v1330_v33 = vpop.eup %1329  ;;  %v608_v35 = vpack.c.bf16 %v558_v31, %v557_v27  ;;  %v778_v36 = vadd.f32 %v1651_v29, %v777_v32 }
 0x164   :  { %986 = vst.msk [vmem:[%s2024_s5 + $0x48] sm:$0xff] %vm976_vm1, %v1330_v33  ;;  %v518_v37 = vpop.f32.mrf.mxu2 }
 0x165   :  { %1333 = vtanh.f32 %v778_v36  ;;  %v519_v38 = vadd.f32 %v1538_v23, %v518_v37  ;;  %1234 = vmatmul.msk.bf16.gmra.mxu1 %vm265_vm0, %v608_v35 }
 0x166   :  { %v441_v39 = vpop.f32.mrf.mxu0  ;;  %v854_v40 = vpop.f32.mrf.mxu3 }
 0x167   :  { %v1332_v41 = vpop.eup %1331  ;;  %v590_v43 = vmax.f32 %v519_v38, 0.0  ;;  %v855_v44 = vadd.f32 %v1651_v29, %v854_v40  ;;  %v442_v48 = vadd.f32 %v1538_v23, %v441_v39 }
 0x168   :  { %1017 = vst.msk [vmem:[%s2024_s5 + $0x140] sm:$0xff] %vm976_vm1, %v1332_v41 }
 0x169   :  { %v624_v45 = vpack.c.bf16 %v590_v43, %v589_v42  ;;  %1335 = vtanh.f32 %v855_v44  ;;  %v559_v54 = vmax.f32 %v442_v48, 0.0 }
 0x16a   :  { %v779_v46 = vpop.f32.mrf.mxu1 }
 0x16b   :  { %v1334_v47 = vpop.eup %1333  ;;  %v780_v49 = vadd.f32 %v1651_v29, %v779_v46  ;;  %1250 = vmatmul.msk.bf16.gmra.mxu3 %vm265_vm0, %v624_v45 }
 0x16c   :  { %987 = vst.msk [vmem:[%s2024_s5 + $0x50] sm:$0xff] %vm976_vm1, %v1334_v47  ;;  %v521_v50 = vpop.f32.mrf.mxu2 }
 0x16d   :  { %1337 = vtanh.f32 %v780_v49  ;;  %v522_v60 = vadd.f32 %v1538_v23, %v521_v50 }
 0x16e   :  { %v443_v51 = vpop.f32.mrf.mxu0  ;;  %v857_v52 = vpop.f32.mrf.mxu3 }
 0x16f   :  { %v1336_v53 = vpop.eup %1335  ;;  %v444_v55 = vadd.f32 %v1538_v23, %v443_v51  ;;  %v858_v56 = vadd.f32 %v1651_v29, %v857_v52  ;;  %v591_v4 = vmax.f32 %v522_v60, 0.0 }
 0x170   :  { %1018 = vst.msk [vmem:[%s2024_s5 + $0x148] sm:$0xff] %vm976_vm1, %v1336_v53 }
 0x171   :  { %v560_v57 = vmax.f32 %v444_v55, 0.0  ;;  %1339 = vtanh.f32 %v858_v56 }
 0x172   :  { %v782_v58 = vpop.f32.mrf.mxu1 }
 0x173   :  { %v1338_v59 = vpop.eup %1337  ;;  %v609_v61 = vpack.c.bf16 %v560_v57, %v559_v54  ;;  %v783_v62 = vadd.f32 %v1651_v29, %v782_v58 }
 0x174   :  { %988 = vst.msk [vmem:[%s2024_s5 + $0x58] sm:$0xff] %vm976_vm1, %v1338_v59  ;;  %v523_v63 = vpop.f32.mrf.mxu2 }
 0x175   :  { %1341 = vtanh.f32 %v783_v62  ;;  %v524_v0 = vadd.f32 %v1538_v23, %v523_v63  ;;  %1235 = vmatmul.msk.bf16.gmra.mxu1 %vm265_vm0, %v609_v61 }
 0x176   :  { %v446_v1 = vpop.f32.mrf.mxu0  ;;  %v859_v2 = vpop.f32.mrf.mxu3 }
 0x177   :  { %v1340_v3 = vpop.eup %1339  ;;  %v592_v5 = vmax.f32 %v524_v0, 0.0  ;;  %v860_v6 = vadd.f32 %v1651_v29, %v859_v2  ;;  %v447_v10 = vadd.f32 %v1538_v23, %v446_v1 }
 0x178   :  { %1019 = vst.msk [vmem:[%s2024_s5 + $0x150] sm:$0xff] %vm976_vm1, %v1340_v3 }
 0x179   :  { %v625_v7 = vpack.c.bf16 %v592_v5, %v591_v4  ;;  %1343 = vtanh.f32 %v860_v6  ;;  %v561_v16 = vmax.f32 %v447_v10, 0.0 }
 0x17a   :  { %v784_v8 = vpop.f32.mrf.mxu1 }
 0x17b   :  { %v1342_v9 = vpop.eup %1341  ;;  %v785_v11 = vadd.f32 %v1651_v29, %v784_v8  ;;  %1251 = vmatmul.msk.bf16.gmra.mxu3 %vm265_vm0, %v625_v7 }
 0x17c   :  { %989 = vst.msk [vmem:[%s2024_s5 + $0x60] sm:$0xff] %vm976_vm1, %v1342_v9  ;;  %v526_v12 = vpop.f32.mrf.mxu2 }
 0x17d   :  { %1345 = vtanh.f32 %v785_v11  ;;  %v527_v22 = vadd.f32 %v1538_v23, %v526_v12 }
 0x17e   :  { %v448_v13 = vpop.f32.mrf.mxu0  ;;  %v862_v14 = vpop.f32.mrf.mxu3 }
 0x17f   :  { %v1344_v15 = vpop.eup %1343  ;;  %v449_v17 = vadd.f32 %v1538_v23, %v448_v13  ;;  %v863_v18 = vadd.f32 %v1651_v29, %v862_v14  ;;  %v593_v31 = vmax.f32 %v527_v22, 0.0 }
 0x180   :  { %1020 = vst.msk [vmem:[%s2024_s5 + $0x158] sm:$0xff] %vm976_vm1, %v1344_v15 }
 0x181   :  { %v562_v19 = vmax.f32 %v449_v17, 0.0  ;;  %1347 = vtanh.f32 %v863_v18 }
 0x182   :  { %v787_v20 = vpop.f32.mrf.mxu1 }
 0x183   :  { %v1346_v21 = vpop.eup %1345  ;;  %v610_v24 = vpack.c.bf16 %v562_v19, %v561_v16  ;;  %v788_v25 = vadd.f32 %v1651_v29, %v787_v20 }
 0x184   :  { %990 = vst.msk [vmem:[%s2024_s5 + $0x68] sm:$0xff] %vm976_vm1, %v1346_v21  ;;  %v528_v26 = vpop.f32.mrf.mxu2 }
 0x185   :  { %1349 = vtanh.f32 %v788_v25  ;;  %v529_v27 = vadd.f32 %v1538_v23, %v528_v26  ;;  %1236 = vmatmul.msk.bf16.gmra.mxu1 %vm265_vm0, %v610_v24 }
 0x186   :  { %v864_v28 = vpop.f32.mrf.mxu3 }
 0x187   :  { %v1348_v30 = vpop.eup %1347  ;;  %v594_v32 = vmax.f32 %v529_v27, 0.0  ;;  %v865_v33 = vadd.f32 %v1651_v29, %v864_v28 }
 0x188   :  { %1021 = vst.msk [vmem:[%s2024_s5 + $0x160] sm:$0xff] %vm976_vm1, %v1348_v30 }
 0x189   :  { %v626_v34 = vpack.c.bf16 %v594_v32, %v593_v31  ;;  %1351 = vtanh.f32 %v865_v33 }
 0x18a   :  { %v789_v35 = vpop.f32.mrf.mxu1 }
 0x18b   :  { %v1350_v36 = vpop.eup %1349  ;;  %v790_v37 = vadd.f32 %v1651_v29, %v789_v35  ;;  %1252 = vmatmul.msk.bf16.gmra.mxu3 %vm265_vm0, %v626_v34 }
 0x18c   :  { %991 = vst.msk [vmem:[%s2024_s5 + $0x70] sm:$0xff] %vm976_vm1, %v1350_v36 }
 0x18d   :  { %1353 = vtanh.f32 %v790_v37 }
 0x18e   :  { %v867_v23 = vpop.f32.mrf.mxu3 }
 0x18f   :  { %v1352_v38 = vpop.eup %1351  ;;  %v868_v39 = vadd.f32 %v1651_v29, %v867_v23 }
 0x190   :  { %1022 = vst.msk [vmem:[%s2024_s5 + $0x168] sm:$0xff] %vm976_vm1, %v1352_v38 }
 0x191   :  { %1355 = vtanh.f32 %v868_v39 }
 0x192   :  { %v792_v40 = vpop.f32.mrf.mxu1 }
 0x193   :  { %v1354_v41 = vpop.eup %1353  ;;  %v793_v42 = vadd.f32 %v1651_v29, %v792_v40 }
 0x194   :  { %992 = vst.msk [vmem:[%s2024_s5 + $0x78] sm:$0xff] %vm976_vm1, %v1354_v41 }
 0x195   :  { %1357 = vtanh.f32 %v793_v42 }
 0x196   :  { %v869_v43 = vpop.f32.mrf.mxu3 }
 0x197   :  { %v1356_v44 = vpop.eup %1355  ;;  %v870_v45 = vadd.f32 %v1651_v29, %v869_v43 }
 0x198   :  { %1023 = vst.msk [vmem:[%s2024_s5 + $0x170] sm:$0xff] %vm976_vm1, %v1356_v44 }
 0x199   :  { %1359 = vtanh.f32 %v870_v45 }
 0x19a   :  { %v794_v46 = vpop.f32.mrf.mxu1 }
 0x19b   :  { %v1358_v47 = vpop.eup %1357  ;;  %v795_v48 = vadd.f32 %v1651_v29, %v794_v46 }
 0x19c   :  { %993 = vst.msk [vmem:[%s2024_s5 + $0x80] sm:$0xff] %vm976_vm1, %v1358_v47 }
 0x19d   :  { %1361 = vtanh.f32 %v795_v48 }
 0x19e   :  { %v872_v49 = vpop.f32.mrf.mxu3 }
 0x19f   :  { %v1360_v50 = vpop.eup %1359  ;;  %v873_v51 = vadd.f32 %v1651_v29, %v872_v49 }
 0x1a0   :  { %1024 = vst.msk [vmem:[%s2024_s5 + $0x178] sm:$0xff] %vm976_vm1, %v1360_v50 }
 0x1a1   :  { %1363 = vtanh.f32 %v873_v51 }
 0x1a2   :  { %v797_v52 = vpop.f32.mrf.mxu1 }
 0x1a3   :  { %v1362_v53 = vpop.eup %1361  ;;  %v798_v54 = vadd.f32 %v1651_v29, %v797_v52 }
 0x1a4   :  { %994 = vst.msk [vmem:[%s2024_s5 + $0x88] sm:$0xff] %vm976_vm1, %v1362_v53 }
 0x1a5   :  { %1365 = vtanh.f32 %v798_v54 }
 0x1a6   :  { %v874_v55 = vpop.f32.mrf.mxu3 }
 0x1a7   :  { %v1364_v56 = vpop.eup %1363  ;;  %v875_v57 = vadd.f32 %v1651_v29, %v874_v55 }
 0x1a8   :  { %1025 = vst.msk [vmem:[%s2024_s5 + $0x180] sm:$0xff] %vm976_vm1, %v1364_v56 }
 0x1a9   :  { %1367 = vtanh.f32 %v875_v57 }
 0x1aa   :  { %v799_v58 = vpop.f32.mrf.mxu1 }
 0x1ab   :  { %v1366_v59 = vpop.eup %1365  ;;  %v800_v60 = vadd.f32 %v1651_v29, %v799_v58 }
 0x1ac   :  { %995 = vst.msk [vmem:[%s2024_s5 + $0x90] sm:$0xff] %vm976_vm1, %v1366_v59 }
 0x1ad   :  { %1369 = vtanh.f32 %v800_v60 }
 0x1ae   :  { %v877_v61 = vpop.f32.mrf.mxu3 }
 0x1af   :  { %v1368_v62 = vpop.eup %1367  ;;  %v878_v63 = vadd.f32 %v1651_v29, %v877_v61 }
 0x1b0   :  { %1026 = vst.msk [vmem:[%s2024_s5 + $0x188] sm:$0xff] %vm976_vm1, %v1368_v62 }
 0x1b1   :  { %1371 = vtanh.f32 %v878_v63 }
 0x1b2   :  { %v802_v0 = vpop.f32.mrf.mxu1 }
 0x1b3   :  { %v1370_v1 = vpop.eup %1369  ;;  %v803_v2 = vadd.f32 %v1651_v29, %v802_v0 }
 0x1b4   :  { %996 = vst.msk [vmem:[%s2024_s5 + $0x98] sm:$0xff] %vm976_vm1, %v1370_v1 }
 0x1b5   :  { %1373 = vtanh.f32 %v803_v2 }
 0x1b6   :  { %v879_v3 = vpop.f32.mrf.mxu3 }
 0x1b7   :  { %v1372_v4 = vpop.eup %1371  ;;  %v880_v5 = vadd.f32 %v1651_v29, %v879_v3 }
 0x1b8   :  { %1027 = vst.msk [vmem:[%s2024_s5 + $0x190] sm:$0xff] %vm976_vm1, %v1372_v4 }
 0x1b9   :  { %1375 = vtanh.f32 %v880_v5 }
 0x1ba   :  { %v804_v6 = vpop.f32.mrf.mxu1 }
 0x1bb   :  { %v1374_v7 = vpop.eup %1373  ;;  %v805_v8 = vadd.f32 %v1651_v29, %v804_v6 }
 0x1bc   :  { %997 = vst.msk [vmem:[%s2024_s5 + $0xa0] sm:$0xff] %vm976_vm1, %v1374_v7 }
 0x1bd   :  { %1377 = vtanh.f32 %v805_v8 }
 0x1be   :  { %v882_v9 = vpop.f32.mrf.mxu3 }
 0x1bf   :  { %v1376_v10 = vpop.eup %1375  ;;  %v883_v11 = vadd.f32 %v1651_v29, %v882_v9 }
 0x1c0   :  { %1028 = vst.msk [vmem:[%s2024_s5 + $0x198] sm:$0xff] %vm976_vm1, %v1376_v10 }
 0x1c1   :  { %1379 = vtanh.f32 %v883_v11 }
 0x1c2   :  { %v807_v12 = vpop.f32.mrf.mxu1 }
 0x1c3   :  { %v1378_v13 = vpop.eup %1377  ;;  %v808_v14 = vadd.f32 %v1651_v29, %v807_v12 }
 0x1c4   :  { %998 = vst.msk [vmem:[%s2024_s5 + $0xa8] sm:$0xff] %vm976_vm1, %v1378_v13 }
 0x1c5   :  { %1381 = vtanh.f32 %v808_v14 }
 0x1c6   :  { %v884_v15 = vpop.f32.mrf.mxu3 }
 0x1c7   :  { %v1380_v16 = vpop.eup %1379  ;;  %v885_v17 = vadd.f32 %v1651_v29, %v884_v15 }
 0x1c8   :  { %1029 = vst.msk [vmem:[%s2024_s5 + $0x1a0] sm:$0xff] %vm976_vm1, %v1380_v16 }
 0x1c9   :  { %1383 = vtanh.f32 %v885_v17 }
 0x1ca   :  { %v809_v18 = vpop.f32.mrf.mxu1 }
 0x1cb   :  { %v1382_v19 = vpop.eup %1381  ;;  %v810_v20 = vadd.f32 %v1651_v29, %v809_v18 }
 0x1cc   :  { %999 = vst.msk [vmem:[%s2024_s5 + $0xb0] sm:$0xff] %vm976_vm1, %v1382_v19 }
 0x1cd   :  { %1385 = vtanh.f32 %v810_v20 }
 0x1ce   :  { %v887_v21 = vpop.f32.mrf.mxu3 }
 0x1cf   :  { %v1384_v22 = vpop.eup %1383  ;;  %v888_v24 = vadd.f32 %v1651_v29, %v887_v21 }
 0x1d0   :  { %1030 = vst.msk [vmem:[%s2024_s5 + $0x1a8] sm:$0xff] %vm976_vm1, %v1384_v22 }
 0x1d1   :  { %1387 = vtanh.f32 %v888_v24 }
 0x1d2   :  { %v812_v25 = vpop.f32.mrf.mxu1 }
 0x1d3   :  { %v1386_v26 = vpop.eup %1385  ;;  %v813_v27 = vadd.f32 %v1651_v29, %v812_v25 }
 0x1d4   :  { %1000 = vst.msk [vmem:[%s2024_s5 + $0xb8] sm:$0xff] %vm976_vm1, %v1386_v26 }
 0x1d5   :  { %1389 = vtanh.f32 %v813_v27 }
 0x1d6   :  { %v889_v28 = vpop.f32.mrf.mxu3 }
 0x1d7   :  { %v1388_v30 = vpop.eup %1387  ;;  %v890_v31 = vadd.f32 %v1651_v29, %v889_v28 }
 0x1d8   :  { %1031 = vst.msk [vmem:[%s2024_s5 + $0x1b0] sm:$0xff] %vm976_vm1, %v1388_v30 }
 0x1d9   :  { %1391 = vtanh.f32 %v890_v31 }
 0x1da   :  { %v814_v32 = vpop.f32.mrf.mxu1 }
 0x1db   :  { %v1390_v33 = vpop.eup %1389  ;;  %v815_v34 = vadd.f32 %v1651_v29, %v814_v32 }
 0x1dc   :  { %1001 = vst.msk [vmem:[%s2024_s5 + $0xc0] sm:$0xff] %vm976_vm1, %v1390_v33 }
 0x1dd   :  { %1393 = vtanh.f32 %v815_v34 }
 0x1de   :  { %v892_v35 = vpop.f32.mrf.mxu3 }
 0x1df   :  { %v1392_v36 = vpop.eup %1391  ;;  %v893_v37 = vadd.f32 %v1651_v29, %v892_v35 }
 0x1e0   :  { %1032 = vst.msk [vmem:[%s2024_s5 + $0x1b8] sm:$0xff] %vm976_vm1, %v1392_v36 }
 0x1e1   :  { %1395 = vtanh.f32 %v893_v37 }
 0x1e2   :  { %v817_v23 = vpop.f32.mrf.mxu1 }
 0x1e3   :  { %v1394_v38 = vpop.eup %1393  ;;  %v818_v39 = vadd.f32 %v1651_v29, %v817_v23 }
 0x1e4   :  { %1002 = vst.msk [vmem:[%s2024_s5 + $0xc8] sm:$0xff] %vm976_vm1, %v1394_v38 }
 0x1e5   :  { %1397 = vtanh.f32 %v818_v39 }
 0x1e6   :  { %v894_v40 = vpop.f32.mrf.mxu3 }
 0x1e7   :  { %v1396_v41 = vpop.eup %1395  ;;  %v895_v42 = vadd.f32 %v1651_v29, %v894_v40 }
 0x1e8   :  { %1033 = vst.msk [vmem:[%s2024_s5 + $0x1c0] sm:$0xff] %vm976_vm1, %v1396_v41 }
 0x1e9   :  { %1399 = vtanh.f32 %v895_v42 }
 0x1ea   :  { %v819_v43 = vpop.f32.mrf.mxu1 }
 0x1eb   :  { %v1398_v44 = vpop.eup %1397  ;;  %v820_v45 = vadd.f32 %v1651_v29, %v819_v43 }
 0x1ec   :  { %1003 = vst.msk [vmem:[%s2024_s5 + $0xd0] sm:$0xff] %vm976_vm1, %v1398_v44 }
 0x1ed   :  { %1401 = vtanh.f32 %v820_v45 }
 0x1ee   :  { %v897_v46 = vpop.f32.mrf.mxu3 }
 0x1ef   :  { %v1400_v47 = vpop.eup %1399  ;;  %v898_v48 = vadd.f32 %v1651_v29, %v897_v46 }
 0x1f0   :  { %1034 = vst.msk [vmem:[%s2024_s5 + $0x1c8] sm:$0xff] %vm976_vm1, %v1400_v47 }
 0x1f1   :  { %1403 = vtanh.f32 %v898_v48 }
 0x1f2   :  { %v822_v49 = vpop.f32.mrf.mxu1 }
 0x1f3   :  { %v1402_v50 = vpop.eup %1401  ;;  %v823_v51 = vadd.f32 %v1651_v29, %v822_v49 }
 0x1f4   :  { %1004 = vst.msk [vmem:[%s2024_s5 + $0xd8] sm:$0xff] %vm976_vm1, %v1402_v50 }
 0x1f5   :  { %1405 = vtanh.f32 %v823_v51 }
 0x1f6   :  { %v899_v52 = vpop.f32.mrf.mxu3 }
 0x1f7   :  { %v1404_v53 = vpop.eup %1403  ;;  %v900_v54 = vadd.f32 %v1651_v29, %v899_v52 }
 0x1f8   :  { %1035 = vst.msk [vmem:[%s2024_s5 + $0x1d0] sm:$0xff] %vm976_vm1, %v1404_v53 }
 0x1f9   :  { %1407 = vtanh.f32 %v900_v54 }
 0x1fa   :  { %v824_v55 = vpop.f32.mrf.mxu1 }
 0x1fb   :  { %v1406_v56 = vpop.eup %1405  ;;  %v825_v57 = vadd.f32 %v1651_v29, %v824_v55 }
 0x1fc   :  { %1005 = vst.msk [vmem:[%s2024_s5 + $0xe0] sm:$0xff] %vm976_vm1, %v1406_v56 }
 0x1fd   :  { %1409 = vtanh.f32 %v825_v57 }
 0x1fe   :  { %v902_v58 = vpop.f32.mrf.mxu3 }
 0x1ff   :  { %v1408_v59 = vpop.eup %1407  ;;  %v903_v60 = vadd.f32 %v1651_v29, %v902_v58 }
 0x200   :  { %1036 = vst.msk [vmem:[%s2024_s5 + $0x1d8] sm:$0xff] %vm976_vm1, %v1408_v59 }
 0x201   :  { %1411 = vtanh.f32 %v903_v60 }
 0x202   :  { %v827_v61 = vpop.f32.mrf.mxu1 }
 0x203   :  { %v1410_v62 = vpop.eup %1409  ;;  %v828_v63 = vadd.f32 %v1651_v29, %v827_v61 }
 0x204   :  { %1006 = vst.msk [vmem:[%s2024_s5 + $0xe8] sm:$0xff] %vm976_vm1, %v1410_v62 }
 0x205   :  { %1413 = vtanh.f32 %v828_v63 }
 0x206   :  { %v904_v0 = vpop.f32.mrf.mxu3 }
 0x207   :  { %v1412_v1 = vpop.eup %1411  ;;  %v905_v2 = vadd.f32 %v1651_v29, %v904_v0 }
 0x208   :  { %1037 = vst.msk [vmem:[%s2024_s5 + $0x1e0] sm:$0xff] %vm976_vm1, %v1412_v1 }
 0x209   :  { %1415 = vtanh.f32 %v905_v2 }
 0x20a   :  { %v829_v3 = vpop.f32.mrf.mxu1 }
 0x20b   :  { %v1414_v4 = vpop.eup %1413  ;;  %v830_v5 = vadd.f32 %v1651_v29, %v829_v3 }
 0x20c   :  { %1007 = vst.msk [vmem:[%s2024_s5 + $0xf0] sm:$0xff] %vm976_vm1, %v1414_v4 }
 0x20d   :  { %1417 = vtanh.f32 %v830_v5 }
 0x20e   :  { %v907_v6 = vpop.f32.mrf.mxu3 }
 0x20f   :  { %v1416_v7 = vpop.eup %1415  ;;  %v908_v8 = vadd.f32 %v1651_v29, %v907_v6 }
 0x210   :  { %1038 = vst.msk [vmem:[%s2024_s5 + $0x1e8] sm:$0xff] %vm976_vm1, %v1416_v7 }
 0x211   :  { %1419 = vtanh.f32 %v908_v8 }
 0x213   :  { %v1418_v9 = vpop.eup %1417 }
 0x214   :  { %1008 = vst.msk [vmem:[%s2024_s5 + $0xf8] sm:$0xff] %vm976_vm1, %v1418_v9 }
 0x216   :  { %v909_v10 = vpop.f32.mrf.mxu3 }
 0x217   :  { %v1420_v11 = vpop.eup %1419  ;;  %v910_v12 = vadd.f32 %v1651_v29, %v909_v10 }
 0x218   :  { %1039 = vst.msk [vmem:[%s2024_s5 + $0x1f0] sm:$0xff] %vm976_vm1, %v1420_v11 }
 0x219   :  { %1421 = vtanh.f32 %v910_v12 }
 0x21f   :  { %v1422_v13 = vpop.eup %1421 }
 0x220   :  { %1040 = vst.msk [vmem:[%s2024_s5 + $0x1f8] sm:$0xff] %vm976_vm1, %v1422_v13 }

</bundles_post_ra>
